<compile_context>
chip_gen: v6e
topology: v6e:2x2x1
jax: 0.10.0
libtpu: 0.0.40
codegen_flags: <defaults>
</compile_context>

<pallas_src>
import functools

import jax
import jax.numpy as jnp
from jax.experimental import pallas as pl
from jax.experimental.pallas import tpu as pltpu


def _make_kernel(eps, inv_n):
    def kernel(w_ref, p_ref, g_ref, b_ref, o_ref):
        # w_ref: (CO_T, 9*C_in) bf16 weight tile.
        # p_ref: (9*C_in, HW)   bf16 im2col patches; block index is constant
        #        across the grid so Pallas DMAs it to VMEM only once.
        # g_ref, b_ref: (CO_T, 1) f32 BN affine parameters.
        # o_ref: (CO_T, HW) f32 output tile (already NCHW order).
        acc = jnp.dot(w_ref[...], p_ref[...],
                      preferred_element_type=jnp.float32)        # (CO_T, HW)

        mean = jnp.sum(acc, axis=1, keepdims=True) * inv_n        # (CO_T, 1)
        ex2 = jnp.sum(acc * acc, axis=1, keepdims=True) * inv_n
        var = jnp.maximum(ex2 - mean * mean, 0.0)                 # biased var
        scale = g_ref[...] * jax.lax.rsqrt(var + eps)
        shift = b_ref[...] - mean * scale
        o_ref[...] = acc * scale + shift                          # one write

    return kernel


def _pick_co_tile(c_out):
    """128-channel tiles (2 parallel grid steps) on 2-TC chips (v7x); one
    256-wide step otherwise (v5e / v6e)."""
    try:
        kind = jax.devices()[0].device_kind.lower()
    except Exception:
        kind = ""
    if "v7" in kind and c_out % 128 == 0:
        return 128
    if c_out % 256 == 0:
        return 256
    return 128


@functools.partial(jax.jit, static_argnames=("eps", "co_t"))
def _add_conv_bn(x57, x51, weight, gamma, beta, *, eps, co_t):
    N, C_in, H, W = x57.shape
    C_out = weight.shape[0]
    HW = H * W
    # BN batch statistics are computed per channel inside a single output
    # block; correct only because N == 1 and the entire H*W extent lives in
    # one block per channel tile.
    assert N == 1 and C_out % co_t == 0

    # Fused residual add once, cast to bf16 *before* the pad/im2col relayouts.
    x = (x57 + x51).astype(jnp.bfloat16)                         # (1,C,H,W)
    xp = jnp.pad(x, ((0, 0), (0, 0), (1, 1), (1, 1)))            # (1,C,H+2,W+2)

    # Channels-first im2col: (9*C_in, H*W); tap order (kh, kw) matches the
    # weight reshape below.  No NCHW->NHWC transpose required.
    patches = jnp.concatenate(
        [xp[0, :, kh:kh + H, kw:kw + W].reshape(C_in, HW)
         for kh in range(3) for kw in range(3)],
        axis=0)                                                   # (576, 784)

    # OIHW -> (C_out, kh, kw, C_in) -> (C_out, 9*C_in), bf16.
    w = jnp.transpose(weight, (0, 2, 3, 1)).reshape(C_out, 9 * C_in)
    w = w.astype(jnp.bfloat16)
    g = gamma.reshape(C_out, 1).astype(jnp.float32)
    bt = beta.reshape(C_out, 1).astype(jnp.float32)

    flops = 2 * HW * (9 * C_in) * C_out
    bytes_accessed = (patches.size * 2 + w.size * 2
                      + (g.size + bt.size) * 4 + C_out * HW * 4)

    out2d = pl.pallas_call(
        _make_kernel(eps, 1.0 / HW),
        out_shape=jax.ShapeDtypeStruct((C_out, HW), jnp.float32),
        grid=(C_out // co_t,),
        in_specs=[
            pl.BlockSpec((co_t, 9 * C_in), lambda j: (j, 0)),
            pl.BlockSpec((9 * C_in, HW), lambda j: (0, 0)),   # constant block
            pl.BlockSpec((co_t, 1), lambda j: (j, 0)),
            pl.BlockSpec((co_t, 1), lambda j: (j, 0)),
        ],
        out_specs=pl.BlockSpec((co_t, HW), lambda j: (j, 0)),
        compiler_params=pltpu.CompilerParams(
            dimension_semantics=("parallel",)),
        cost_estimate=pl.CostEstimate(
            flops=flops, transcendentals=0, bytes_accessed=bytes_accessed),
    )(w, patches, g, bt)

    # (C_out, H*W) is already NCHW order for N == 1: reshape is free.
    return out2d.reshape(1, C_out, H, W)


def add_conv_bn(x57, x51, weight, gamma, beta, eps=1e-3):
    """x57, x51: (1, C_in, H, W) NCHW.  weight: (C_out, C_in, 3, 3) OIHW."""
    # TODO(synk): BatchNorm running_mean / running_var buffer updates (training
    # side-effect state) are not part of the returned value and are omitted.
    co_t = _pick_co_tile(weight.shape[0])
    return _add_conv_bn(x57, x51, weight, gamma, beta, eps=eps, co_t=co_t)


def _reference(x57, x51, weight, gamma, beta, eps=1e-3):
    x = x57 + x51
    y = jax.lax.conv_general_dilated(
        x, weight, window_strides=(1, 1), padding=((1, 1), (1, 1)),
        dimension_numbers=("NCHW", "OIHW", "NCHW"))
    mean = jnp.mean(y, axis=(0, 2, 3), keepdims=True)
    var = jnp.mean(jnp.square(y - mean), axis=(0, 2, 3), keepdims=True)
    yn = (y - mean) * jax.lax.rsqrt(var + eps)
    return yn * gamma.reshape(1, -1, 1, 1) + beta.reshape(1, -1, 1, 1)


if __name__ == "__main__":
    key = jax.random.PRNGKey(0)
    k1, k2, k3, k4, k5 = jax.random.split(key, 5)

    N, C_in, H, W = 1, 64, 28, 28
    C_out = 256

    x57 = jax.random.normal(k1, (N, C_in, H, W), jnp.float32)
    x51 = jax.random.normal(k2, (N, C_in, H, W), jnp.float32)
    weight = jax.random.normal(k3, (C_out, C_in, 3, 3), jnp.float32) * 0.05
    gamma = jax.random.normal(k4, (C_out,), jnp.float32) * 0.1 + 1.0
    beta = jax.random.normal(k5, (C_out,), jnp.float32) * 0.1

    out = add_conv_bn(x57, x51, weight, gamma, beta)
    out = jax.block_until_ready(out)

    ref = _reference(x57, x51, weight, gamma, beta)
    assert out.shape == (N, C_out, H, W), out.shape
    # Tolerances account for the intentional bf16 MXU operands.
    assert jnp.allclose(out, ref, atol=4e-2, rtol=4e-3), (
        float(jnp.max(jnp.abs(out - ref))))

    print("KERNEL_OK")
</pallas_src>

<mosaic_0001>
module attributes {stable_mosaic.version = 11 : i64} {
  func.func @kernel(%arg0: i32, %arg1: memref<256x576xbf16, #tpu.memory_space<vmem>>, %arg2: memref<576x784xbf16, #tpu.memory_space<vmem>>, %arg3: memref<256x1xf32, #tpu.memory_space<vmem>>, %arg4: memref<256x1xf32, #tpu.memory_space<vmem>>, %arg5: memref<256x784xf32, #tpu.memory_space<vmem>>) attributes {dimension_semantics = [#tpu.dimension_semantics<parallel>], iteration_bounds = array<i64: 1>, scalar_prefetch = 0 : i64, scratch_operands = 0 : i64, tpu.core_type = #tpu.core_type<tc>, window_params = [{transform_indices = @transform_0, window_bounds = array<i64: 256, 576>}, {pipeline_mode = #tpu.pipeline_mode<synchronous>, transform_indices = @transform_1, window_bounds = array<i64: 576, 784>}, {transform_indices = @transform_2, window_bounds = array<i64: 256, 1>}, {transform_indices = @transform_3, window_bounds = array<i64: 256, 1>}, {transform_indices = @transform_4, window_bounds = array<i64: 256, 784>}]} {
    %c0 = arith.constant 0 : index
    %c0_0 = arith.constant 0 : index
    %0 = vector.load %arg1[%c0, %c0_0] : memref<256x576xbf16, #tpu.memory_space<vmem>>, vector<256x576xbf16>
    %c0_1 = arith.constant 0 : index
    %c0_2 = arith.constant 0 : index
    %1 = vector.load %arg2[%c0_1, %c0_2] : memref<576x784xbf16, #tpu.memory_space<vmem>>, vector<576x784xbf16>
    %cst = arith.constant dense<0.000000e+00> : vector<256x784xf32>
    %2 = tpu.matmul %0, %1, %cst {dimension_numbers = #tpu.dot_dimension_numbers<[1], [0], [0], [1], [0, 0, 1, 1], [], []>} : vector<256x576xbf16>, vector<576x784xbf16>, vector<256x784xf32> -> vector<256x784xf32>
    %cst_3 = arith.constant dense<0.000000e+00> : vector<256xf32>
    %3 = vector.multi_reduction <add>, %2, %cst_3 [1] : vector<256x784xf32> to vector<256xf32>
    %4 = vector.shape_cast %3 : vector<256xf32> to vector<256x1xf32>
    %cst_4 = arith.constant 0.00127551018 : f32
    %5 = vector.broadcast %cst_4 : f32 to vector<256x1xf32>
    %6 = arith.mulf %4, %5 : vector<256x1xf32>
    %7 = arith.mulf %2, %2 : vector<256x784xf32>
    %cst_5 = arith.constant dense<0.000000e+00> : vector<256xf32>
    %8 = vector.multi_reduction <add>, %7, %cst_5 [1] : vector<256x784xf32> to vector<256xf32>
    %9 = vector.shape_cast %8 : vector<256xf32> to vector<256x1xf32>
    %cst_6 = arith.constant 0.00127551018 : f32
    %10 = vector.broadcast %cst_6 : f32 to vector<256x1xf32>
    %11 = arith.mulf %9, %10 : vector<256x1xf32>
    %12 = arith.mulf %6, %6 : vector<256x1xf32>
    %13 = arith.subf %11, %12 : vector<256x1xf32>
    %cst_7 = arith.constant 0.000000e+00 : f32
    %14 = vector.broadcast %cst_7 : f32 to vector<256x1xf32>
    %15 = arith.maximumf %13, %14 : vector<256x1xf32>
    %c0_8 = arith.constant 0 : index
    %c0_9 = arith.constant 0 : index
    %16 = vector.load %arg3[%c0_8, %c0_9] : memref<256x1xf32, #tpu.memory_space<vmem>>, vector<256x1xf32>
    %cst_10 = arith.constant 1.000000e-03 : f32
    %17 = vector.broadcast %cst_10 : f32 to vector<256x1xf32>
    %18 = arith.addf %15, %17 : vector<256x1xf32>
    %19 = math.rsqrt %18 : vector<256x1xf32>
    %20 = arith.mulf %16, %19 : vector<256x1xf32>
    %c0_11 = arith.constant 0 : index
    %c0_12 = arith.constant 0 : index
    %21 = vector.load %arg4[%c0_11, %c0_12] : memref<256x1xf32, #tpu.memory_space<vmem>>, vector<256x1xf32>
    %22 = arith.mulf %6, %20 : vector<256x1xf32>
    %23 = arith.subf %21, %22 : vector<256x1xf32>
    %24 = vector.broadcast %20 : vector<256x1xf32> to vector<256x784xf32>
    %25 = arith.mulf %2, %24 : vector<256x784xf32>
    %26 = vector.broadcast %23 : vector<256x1xf32> to vector<256x784xf32>
    %27 = arith.addf %25, %26 : vector<256x784xf32>
    %c0_13 = arith.constant 0 : index
    %c0_14 = arith.constant 0 : index
    %28 = vector.load %arg5[%c0_13, %c0_14] : memref<256x784xf32, #tpu.memory_space<vmem>>, vector<256x784xf32>
    tpu.vector_store %arg5[%c0_13, %c0_14], %27 {strides = array<i32>} : memref<256x784xf32, #tpu.memory_space<vmem>>, vector<256x784xf32>,
    return
  }
  func.func @transform_0(%arg0: i32) -> (i32, i32) {
    %c0_i32 = arith.constant 0 : i32
    %c0_i32_0 = arith.constant 0 : i32
    return %arg0, %c0_i32 : i32, i32
  }
  func.func @transform_1(%arg0: i32) -> (i32, i32) {
    %c0_i32 = arith.constant 0 : i32
    %c0_i32_0 = arith.constant 0 : i32
    %c0_i32_1 = arith.constant 0 : i32
    return %c0_i32, %c0_i32_0 : i32, i32
  }
  func.func @transform_2(%arg0: i32) -> (i32, i32) {
    %c0_i32 = arith.constant 0 : i32
    %c0_i32_0 = arith.constant 0 : i32
    return %arg0, %c0_i32 : i32, i32
  }
  func.func @transform_3(%arg0: i32) -> (i32, i32) {
    %c0_i32 = arith.constant 0 : i32
    %c0_i32_0 = arith.constant 0 : i32
    return %arg0, %c0_i32 : i32, i32
  }
  func.func @transform_4(%arg0: i32) -> (i32, i32) {
    %c0_i32 = arith.constant 0 : i32
    %c0_i32_0 = arith.constant 0 : i32
    return %arg0, %c0_i32 : i32, i32
  }
}

</mosaic_0001>

<bundles_post_ra>
// kernel: squeeze.17
= control target key start
LH: loop header
LB: loop body
LE: loop exit
PB: predicated region body
PF: predicated region fallthrough
CT: control target
= control target key end

     0   :  { %vm1795_vm0 = vcmask 523264   ;;  %s4644_s0 = inlined_call_operand.vmem [shape: bf16[64,28,28], index: 0, kind: input, shape index: {}]   ;;  %s4645_s1 = inlined_call_operand.vmem [shape: bf16[64,784], index: 1, kind: output, shape index: {}]  }
   0x1   :  { %v4020_v0 = vld [vmem:[%s4644_s0 + $0x1b8] sm:$0xff]   ;;  %v4021_v1 = vld [vmem:[%s4644_s0 + $0x1b0] sm:$0xff]   ;;  %v4022_v2 = vld [vmem:[%s4644_s0 + $0x1a8] sm:$0xff]  }
   0x2   :  { %v3553_v3 = vunpack.c.l.bf16 %v4020_v0  ;;  %v3554_v4 = vunpack.c.h.bf16 %v4020_v0  ;;  %v3557_v5 = vunpack.c.l.bf16 %v4021_v1  ;;  %v3558_v6 = vunpack.c.h.bf16 %v4021_v1  ;;  %v4023_v7 = vld [vmem:[%s4644_s0 + $0x1a0] sm:$0xff]   ;;  %v4024_v8 = vld [vmem:[%s4644_s0 + $0x198] sm:$0xff]   ;;  %v4025_v9 = vld [vmem:[%s4644_s0 + $0x190] sm:$0xff]  }
   0x3   :  { %v3561_v10 = vunpack.c.l.bf16 %v4022_v2  ;;  %v3562_v11 = vunpack.c.h.bf16 %v4022_v2  ;;  %v3565_v12 = vunpack.c.l.bf16 %v4023_v7  ;;  %v3566_v13 = vunpack.c.h.bf16 %v4023_v7  ;;  %v4026_v14 = vld [vmem:[%s4644_s0 + $0x188] sm:$0xff]   ;;  %v4027_v15 = vld [vmem:[%s4644_s0 + $0x180] sm:$0xff]   ;;  %v4028_v16 = vld [vmem:[%s4644_s0 + $0x178] sm:$0xff]  }
   0x4   :  { %21 = vst [vmem:[#allocation1 + $0xc8] sm:$0xff] %v3554_v4  ;;  %v3569_v17 = vunpack.c.l.bf16 %v4024_v8  ;;  %v3570_v18 = vunpack.c.h.bf16 %v4024_v8  ;;  %v3573_v19 = vunpack.c.l.bf16 %v4025_v9  ;;  %v3574_v20 = vunpack.c.h.bf16 %v4025_v9  ;;  %v4029_v21 = vld [vmem:[%s4644_s0 + $0x170] sm:$0xff]   ;;  %v4030_v22 = vld [vmem:[%s4644_s0 + $0x168] sm:$0xff]   ;;  %v4031_v23 = vld [vmem:[%s4644_s0 + $0x160] sm:$0xff]  }
   0x5   :  { %2336 = vst.msk [vmem:[#allocation0 + $0x2f4] sm:$0xff] %vm1795_vm0, %v3557_v5   ;;  %2341 = vst.msk [vmem:[#allocation0 + $0x2fc] sm:$0xff] %vm1795_vm0, %v3558_v6   ;;  %v3577_v24 = vunpack.c.l.bf16 %v4026_v14  ;;  %v3578_v25 = vunpack.c.h.bf16 %v4026_v14  ;;  %v3581_v26 = vunpack.c.l.bf16 %v4027_v15  ;;  %v3582_v27 = vunpack.c.h.bf16 %v4027_v15  ;;  %v4032_v28 = vld [vmem:[%s4644_s0 + $0x158] sm:$0xff]   ;;  %v4033_v29 = vld [vmem:[%s4644_s0 + $0x150] sm:$0xff]  }
   0x6   :  { %2346 = vst.msk [vmem:[#allocation0 + $0x304] sm:$0xff] %vm1795_vm0, %v3553_v3   ;;  %85 = vst [vmem:[#allocation1 + $0x18] sm:$0xff] %v3562_v11  ;;  %v3585_v30 = vunpack.c.l.bf16 %v4028_v16  ;;  %v3586_v31 = vunpack.c.h.bf16 %v4028_v16  ;;  %v3589_v32 = vunpack.c.l.bf16 %v4029_v21  ;;  %v3590_v33 = vunpack.c.h.bf16 %v4029_v21  ;;  %v4034_v34 = vld [vmem:[%s4644_s0 + $0x148] sm:$0xff]   ;;  %v4035_v35 = vld [vmem:[%s4644_s0 + $0x140] sm:$0xff]  }
   0x7   :  { %2316 = vst.msk [vmem:[#allocation0 + $0x2d8] sm:$0xff] %vm1795_vm0, %v3565_v12   ;;  %2321 = vst.msk [vmem:[#allocation0 + $0x2e0] sm:$0xff] %vm1795_vm0, %v3566_v13   ;;  %v3593_v36 = vunpack.c.l.bf16 %v4030_v22  ;;  %v3594_v37 = vunpack.c.h.bf16 %v4030_v22  ;;  %v3597_v38 = vunpack.c.l.bf16 %v4031_v23  ;;  %v3598_v39 = vunpack.c.h.bf16 %v4031_v23  ;;  %v4036_v40 = vld [vmem:[%s4644_s0 + $0x138] sm:$0xff]   ;;  %v4037_v41 = vld [vmem:[%s4644_s0 + $0x130] sm:$0xff]  }
   0x8   :  { %2326 = vst.msk [vmem:[#allocation0 + $0x2e8] sm:$0xff] %vm1795_vm0, %v3561_v10   ;;  %149 = vst [vmem:[#allocation1 + $0x270] sm:$0xff] %v3570_v18  ;;  %v3601_v42 = vunpack.c.l.bf16 %v4032_v28  ;;  %v3602_v43 = vunpack.c.h.bf16 %v4032_v28  ;;  %v3605_v44 = vunpack.c.l.bf16 %v4033_v29  ;;  %v3606_v45 = vunpack.c.h.bf16 %v4033_v29  ;;  %v4038_v46 = vld [vmem:[%s4644_s0 + $0x128] sm:$0xff]   ;;  %v4039_v47 = vld [vmem:[%s4644_s0 + $0x120] sm:$0xff]  }
   0x9   :  { %2296 = vst.msk [vmem:[#allocation0 + $0x2bc] sm:$0xff] %vm1795_vm0, %v3573_v19   ;;  %2301 = vst.msk [vmem:[#allocation0 + $0x2c4] sm:$0xff] %vm1795_vm0, %v3574_v20   ;;  %v3609_v48 = vunpack.c.l.bf16 %v4034_v34  ;;  %v3610_v49 = vunpack.c.h.bf16 %v4034_v34  ;;  %v3613_v50 = vunpack.c.l.bf16 %v4035_v35  ;;  %v3614_v51 = vunpack.c.h.bf16 %v4035_v35  ;;  %v4040_v52 = vld [vmem:[%s4644_s0 + $0x118] sm:$0xff]   ;;  %v4041_v53 = vld [vmem:[%s4644_s0 + $0x110] sm:$0xff]  }
   0xa   :  { %2306 = vst.msk [vmem:[#allocation0 + $0x2cc] sm:$0xff] %vm1795_vm0, %v3569_v17   ;;  %213 = vst [vmem:[#allocation1 + $0x230] sm:$0xff] %v3578_v25  ;;  %v3617_v54 = vunpack.c.l.bf16 %v4036_v40  ;;  %v3618_v55 = vunpack.c.h.bf16 %v4036_v40  ;;  %v3621_v56 = vunpack.c.l.bf16 %v4037_v41  ;;  %v3622_v57 = vunpack.c.h.bf16 %v4037_v41  ;;  %v4042_v58 = vld [vmem:[%s4644_s0 + $0x108] sm:$0xff]   ;;  %v4043_v59 = vld [vmem:[%s4644_s0 + $0x100] sm:$0xff]  }
   0xb   :  { %2276 = vst.msk [vmem:[#allocation0 + $0x2a0] sm:$0xff] %vm1795_vm0, %v3581_v26   ;;  %2281 = vst.msk [vmem:[#allocation0 + $0x2a8] sm:$0xff] %vm1795_vm0, %v3582_v27   ;;  %v3625_v60 = vunpack.c.l.bf16 %v4038_v46  ;;  %v3626_v61 = vunpack.c.h.bf16 %v4038_v46  ;;  %v3629_v62 = vunpack.c.l.bf16 %v4039_v47  ;;  %v3630_v63 = vunpack.c.h.bf16 %v4039_v47  ;;  %v4044_v0 = vld [vmem:[%s4644_s0 + $0xf8] sm:$0xff]   ;;  %v4045_v1 = vld [vmem:[%s4644_s0 + $0xf0] sm:$0xff]  }
   0xc   :  { %2286 = vst.msk [vmem:[#allocation0 + $0x2b0] sm:$0xff] %vm1795_vm0, %v3577_v24   ;;  %277 = vst [vmem:[#allocation1 + $0x350] sm:$0xff] %v3586_v31  ;;  %v3633_v2 = vunpack.c.l.bf16 %v4040_v52  ;;  %v3634_v3 = vunpack.c.h.bf16 %v4040_v52  ;;  %v3637_v4 = vunpack.c.l.bf16 %v4041_v53  ;;  %v3638_v5 = vunpack.c.h.bf16 %v4041_v53  ;;  %v4046_v6 = vld [vmem:[%s4644_s0 + $0xe8] sm:$0xff]   ;;  %v4047_v7 = vld [vmem:[%s4644_s0 + $0xe0] sm:$0xff]  }
   0xd   :  { %2256 = vst.msk [vmem:[#allocation0 + $0x284] sm:$0xff] %vm1795_vm0, %v3589_v32   ;;  %2261 = vst.msk [vmem:[#allocation0 + $0x28c] sm:$0xff] %vm1795_vm0, %v3590_v33   ;;  %v3641_v8 = vunpack.c.l.bf16 %v4042_v58  ;;  %v3642_v9 = vunpack.c.h.bf16 %v4042_v58  ;;  %v3645_v10 = vunpack.c.l.bf16 %v4043_v59  ;;  %v3646_v11 = vunpack.c.h.bf16 %v4043_v59  ;;  %v4048_v12 = vld [vmem:[%s4644_s0 + $0xd8] sm:$0xff]   ;;  %v4049_v13 = vld [vmem:[%s4644_s0 + $0xd0] sm:$0xff]  }
   0xe   :  { %2266 = vst.msk [vmem:[#allocation0 + $0x294] sm:$0xff] %vm1795_vm0, %v3585_v30   ;;  %341 = vst [vmem:[#allocation1 + $0x1d0] sm:$0xff] %v3594_v37  ;;  %v3649_v14 = vunpack.c.l.bf16 %v4044_v0  ;;  %v3650_v15 = vunpack.c.h.bf16 %v4044_v0  ;;  %v3653_v16 = vunpack.c.l.bf16 %v4045_v1  ;;  %v3654_v17 = vunpack.c.h.bf16 %v4045_v1  ;;  %v4050_v18 = vld [vmem:[%s4644_s0 + $0xc8] sm:$0xff]   ;;  %v4051_v19 = vld [vmem:[%s4644_s0 + $0xc0] sm:$0xff]  }
   0xf   :  { %2236 = vst.msk [vmem:[#allocation0 + $0x268] sm:$0xff] %vm1795_vm0, %v3597_v38   ;;  %2241 = vst.msk [vmem:[#allocation0 + $0x270] sm:$0xff] %vm1795_vm0, %v3598_v39   ;;  %v3657_v20 = vunpack.c.l.bf16 %v4046_v6  ;;  %v3658_v21 = vunpack.c.h.bf16 %v4046_v6  ;;  %v3661_v22 = vunpack.c.l.bf16 %v4047_v7  ;;  %v3662_v23 = vunpack.c.h.bf16 %v4047_v7  ;;  %v4052_v24 = vld [vmem:[%s4644_s0 + $0xb8] sm:$0xff]   ;;  %v4053_v25 = vld [vmem:[%s4644_s0 + $0xb0] sm:$0xff]  }
  0x10   :  { %2246 = vst.msk [vmem:[#allocation0 + $0x278] sm:$0xff] %vm1795_vm0, %v3593_v36   ;;  %405 = vst [vmem:[#allocation1 + $0x28] sm:$0xff] %v3602_v43  ;;  %v4271_v26 = vld [vmem:[%s4644_s0 + $0xa8] sm:$0xff]   ;;  %v3665_v27 = vunpack.c.l.bf16 %v4048_v12  ;;  %v3666_v28 = vunpack.c.h.bf16 %v4048_v12  ;;  %v3669_v29 = vunpack.c.l.bf16 %v4049_v13  ;;  %v3670_v30 = vunpack.c.h.bf16 %v4049_v13  ;;  %v4055_v31 = vld [vmem:[%s4644_s0 + $0xa0] sm:$0xff]  }
  0x11   :  { %2216 = vst.msk [vmem:[#allocation0 + $0x24c] sm:$0xff] %vm1795_vm0, %v3605_v44   ;;  %2221 = vst.msk [vmem:[#allocation0 + $0x254] sm:$0xff] %vm1795_vm0, %v3606_v45   ;;  %v4282_v32 = vld [vmem:[%s4644_s0 + $0x98] sm:$0xff]   ;;  %v4287_v33 = vld [vmem:[%s4644_s0 + $0x90] sm:$0xff]   ;;  %v3673_v34 = vunpack.c.l.bf16 %v4050_v18  ;;  %v3674_v35 = vunpack.c.h.bf16 %v4050_v18  ;;  %v3677_v36 = vunpack.c.l.bf16 %v4051_v19  ;;  %v3678_v37 = vunpack.c.h.bf16 %v4051_v19 }
  0x12   :  { %2226 = vst.msk [vmem:[#allocation0 + $0x25c] sm:$0xff] %vm1795_vm0, %v3601_v42   ;;  %469 = vst [vmem:[#allocation1 + $0x298] sm:$0xff] %v3610_v49  ;;  %v4295_v38 = vld [vmem:[%s4644_s0 + $0x88] sm:$0xff]   ;;  %v4300_v39 = vld [vmem:[%s4644_s0 + $0x80] sm:$0xff]   ;;  %v3681_v41 = vunpack.c.l.bf16 %v4052_v24  ;;  %v3682_v42 = vunpack.c.h.bf16 %v4052_v24  ;;  %v3685_v43 = vunpack.c.l.bf16 %v4053_v25  ;;  %v3686_v44 = vunpack.c.h.bf16 %v4053_v25 }
  0x13   :  { %2196 = vst.msk [vmem:[#allocation0 + $0x230] sm:$0xff] %vm1795_vm0, %v3613_v50   ;;  %2201 = vst.msk [vmem:[#allocation0 + $0x238] sm:$0xff] %vm1795_vm0, %v3614_v51   ;;  %v4305_v40 = vld [vmem:[%s4644_s0 + $0x78] sm:$0xff]   ;;  %v4313_v45 = vld [vmem:[%s4644_s0 + $0x70] sm:$0xff]   ;;  %v3690_v49 = vunpack.c.h.bf16 %v4271_v26  ;;  %v3693_v50 = vunpack.c.l.bf16 %v4055_v31  ;;  %v3694_v51 = vunpack.c.h.bf16 %v4055_v31  ;;  %v3702_v58 = vunpack.c.h.bf16 %v4287_v33 }
  0x14   :  { %2206 = vst.msk [vmem:[#allocation0 + $0x240] sm:$0xff] %vm1795_vm0, %v3609_v48   ;;  %533 = vst [vmem:[#allocation1 + $0x2a0] sm:$0xff] %v3618_v55  ;;  %v4318_v46 = vld [vmem:[%s4644_s0 + $0x68] sm:$0xff]   ;;  %v4323_v47 = vld [vmem:[%s4644_s0 + $0x60] sm:$0xff]   ;;  %v3689_v48 = vunpack.c.l.bf16 %v4271_v26  ;;  %v3697_v55 = vunpack.c.l.bf16 %v4282_v32  ;;  %v3705_v0 = vunpack.c.l.bf16 %v4295_v38  ;;  %v3706_v1 = vunpack.c.h.bf16 %v4295_v38 }
  0x15   :  { %2176 = vst.msk [vmem:[#allocation0 + $0x214] sm:$0xff] %vm1795_vm0, %v3621_v56   ;;  %2181 = vst.msk [vmem:[#allocation0 + $0x21c] sm:$0xff] %vm1795_vm0, %v3622_v57   ;;  %v4333_v52 = vld [vmem:[%s4644_s0 + $0x58] sm:$0xff]   ;;  %v4338_v53 = vld [vmem:[%s4644_s0 + $0x50] sm:$0xff]   ;;  %v3698_v56 = vunpack.c.h.bf16 %v4282_v32  ;;  %v3701_v57 = vunpack.c.l.bf16 %v4287_v33  ;;  %v3718_v12 = vunpack.c.h.bf16 %v4313_v45  ;;  %v3721_v18 = vunpack.c.l.bf16 %v4318_v46 }
  0x16   :  { %2186 = vst.msk [vmem:[#allocation0 + $0x224] sm:$0xff] %vm1795_vm0, %v3617_v54   ;;  %597 = vst [vmem:[#allocation1 + $0x2e0] sm:$0xff] %v3626_v61  ;;  %v4350_v59 = vld [vmem:[%s4644_s0 + $0x48] sm:$0xff]   ;;  %v2248_v7 = vld [vmem:[#allocation1 + $0x1d0] sm:$0xf]   ;;  %v3722_v19 = vunpack.c.h.bf16 %v4318_v46  ;;  %v3729_v25 = vunpack.c.l.bf16 %v4333_v52  ;;  %v3730_v26 = vunpack.c.h.bf16 %v4333_v52 }
  0x17   :  { %2156 = vst.msk [vmem:[#allocation0 + $0x1f8] sm:$0xff] %vm1795_vm0, %v3629_v62   ;;  %2161 = vst.msk [vmem:[#allocation0 + $0x200] sm:$0xff] %vm1795_vm0, %v3630_v63   ;;  %v2228_v63 = vld [vmem:[#allocation1 + $0x28] sm:$0xf]   ;;  %v4388_v13 = vld [vmem:[%s4644_s0 + $0x28] sm:$0xff]   ;;  %v3737_v32 = vunpack.c.l.bf16 %v4350_v59  ;;  %v3738_v33 = vunpack.c.h.bf16 %v4350_v59 }
  0x18   :  { %2166 = vst.msk [vmem:[#allocation0 + $0x208] sm:$0xff] %vm1795_vm0, %v3625_v60   ;;  %661 = vst [vmem:[#allocation1 + $0x180] sm:$0xff] %v3634_v3  ;;  %v4355_v60 = vld [vmem:[%s4644_s0 + $0x40] sm:$0xff]   ;;  %v3710_v3 = vunpack.c.h.bf16 %v4300_v39  ;;  %v2348_v24 = vld [vmem:[#allocation1 + $0xc8] sm:$0xf]   ;;  %v3753_v46 = vunpack.c.l.bf16 %v4388_v13 }
  0x19   :  { %2136 = vst.msk [vmem:[#allocation0 + $0x1dc] sm:$0xff] %vm1795_vm0, %v3637_v4   ;;  %2141 = vst.msk [vmem:[#allocation0 + $0x1e4] sm:$0xff] %vm1795_vm0, %v3638_v5   ;;  %v2208_v62 = vld [vmem:[#allocation1 + $0x298] sm:$0xf]   ;;  %v4368_v4 = vld [vmem:[%s4644_s0 + $0x38] sm:$0xff]  }
  0x1a   :  { %2146 = vst.msk [vmem:[#allocation0 + $0x1ec] sm:$0xff] %vm1795_vm0, %v3633_v2   ;;  %725 = vst [vmem:[#allocation1 + $0x130] sm:$0xff] %v3642_v9  ;;  %v3709_v2 = vunpack.c.l.bf16 %v4300_v39  ;;  %v4373_v5 = vld [vmem:[%s4644_s0 + $0x30] sm:$0xff]   ;;  %v3713_v9 = vunpack.c.l.bf16 %v4305_v40  ;;  %v3745_v39 = vunpack.c.l.bf16 %v4368_v4 }
  0x1b   :  { %2116 = vst.msk [vmem:[#allocation0 + $0x1c0] sm:$0xff] %vm1795_vm0, %v3645_v10   ;;  %2121 = vst.msk [vmem:[#allocation0 + $0x1c8] sm:$0xff] %vm1795_vm0, %v3646_v11   ;;  %v2188_v54 = vld [vmem:[#allocation1 + $0x2a0] sm:$0xf]   ;;  %v3714_v10 = vunpack.c.h.bf16 %v4305_v40  ;;  %v3717_v11 = vunpack.c.l.bf16 %v4313_v45  ;;  %v3746_v40 = vunpack.c.h.bf16 %v4368_v4 }
  0x1c   :  { %2126 = vst.msk [vmem:[#allocation0 + $0x1d0] sm:$0xff] %vm1795_vm0, %v3641_v8   ;;  %789 = vst [vmem:[#allocation1 + $0xc0] sm:$0xff] %v3650_v15  ;;  %v2268_v8 = vld [vmem:[#allocation1 + $0x350] sm:$0xf]  }
  0x1d   :  { %2096 = vst.msk [vmem:[#allocation0 + $0x1a4] sm:$0xff] %vm1795_vm0, %v3653_v16   ;;  %2101 = vst.msk [vmem:[#allocation0 + $0x1ac] sm:$0xff] %vm1795_vm0, %v3654_v17   ;;  %v2168_v61 = vld [vmem:[#allocation1 + $0x2e0] sm:$0xf]   ;;  %v2288_v16 = vld [vmem:[#allocation1 + $0x230] sm:$0xf]  }
  0x1e   :  { %2106 = vst.msk [vmem:[#allocation0 + $0x1b4] sm:$0xff] %vm1795_vm0, %v3649_v14   ;;  %853 = vst [vmem:[#allocation1 + $0x90] sm:$0xff] %v3658_v21  ;;  %v4393_v14 = vld [vmem:[%s4644_s0 + $0x20] sm:$0xff]   ;;  %v3726_v21 = vunpack.c.h.bf16 %v4323_v47 }
  0x1f   :  { %2076 = vst.msk [vmem:[#allocation0 + $0x188] sm:$0xff] %vm1795_vm0, %v3661_v22   ;;  %2081 = vst.msk [vmem:[#allocation0 + $0x190] sm:$0xff] %vm1795_vm0, %v3662_v23   ;;  %v2148_v6 = vld [vmem:[#allocation1 + $0x180] sm:$0xf]   ;;  %v2308_v17 = vld [vmem:[#allocation1 + $0x270] sm:$0xf]  }
  0x20   :  { %2086 = vst.msk [vmem:[#allocation0 + $0x198] sm:$0xff] %vm1795_vm0, %v3657_v20   ;;  %917 = vst [vmem:[#allocation1 + $0x108] sm:$0xff] %v3666_v28  ;;  %v3725_v20 = vunpack.c.l.bf16 %v4323_v47  ;;  %v2328_v23 = vld [vmem:[#allocation1 + $0x18] sm:$0xf]   ;;  %v3734_v28 = vunpack.c.h.bf16 %v4338_v53  ;;  %v3754_v47 = vunpack.c.h.bf16 %v4388_v13 }
  0x21   :  { %2056 = vst.msk [vmem:[#allocation0 + $0x16c] sm:$0xff] %vm1795_vm0, %v3669_v29   ;;  %2061 = vst.msk [vmem:[#allocation0 + $0x174] sm:$0xff] %vm1795_vm0, %v3670_v30   ;;  %v2128_v15 = vld [vmem:[#allocation1 + $0x130] sm:$0xf]   ;;  %v4418_v29 = vld [vmem:[%s4644_s0 + $0x18] sm:$0xff]  }
  0x22   :  { %2066 = vst.msk [vmem:[#allocation0 + $0x17c] sm:$0xff] %vm1795_vm0, %v3665_v27   ;;  %981 = vst [vmem:[#allocation1 + $0x240] sm:$0xff] %v3674_v35  ;;  %v3733_v27 = vunpack.c.l.bf16 %v4338_v53  ;;  %v4423_v30 = vld [vmem:[%s4644_s0 + $0x10] sm:$0xff]   ;;  %v3742_v35 = vunpack.c.h.bf16 %v4355_v60  ;;  %v3761_v53 = vunpack.c.l.bf16 %v4418_v29 }
  0x23   :  { %2036 = vst.msk [vmem:[#allocation0 + $0x150] sm:$0xff] %vm1795_vm0, %v3677_v36   ;;  %2041 = vst.msk [vmem:[#allocation0 + $0x158] sm:$0xff] %vm1795_vm0, %v3678_v37   ;;  %v2108_v22 = vld [vmem:[#allocation1 + $0xc0] sm:$0xf]   ;;  %v4438_v36 = vld [vmem:[%s4644_s0 + $0x8] sm:$0xff]  }
  0x24   :  { %2046 = vst.msk [vmem:[#allocation0 + $0x160] sm:$0xff] %vm1795_vm0, %v3673_v34   ;;  %1045 = vst [vmem:[#allocation1 + $0x160] sm:$0xff] %v3682_v42  ;;  %v3741_v34 = vunpack.c.l.bf16 %v4355_v60  ;;  %v4443_v37 = vld [vmem:[%s4644_s0] sm:$0xff]   ;;  %v3750_v42 = vunpack.c.h.bf16 %v4373_v5  ;;  %v3770_v59 = vunpack.c.h.bf16 %v4438_v36 }
  0x25   :  { %2016 = vst.msk [vmem:[#allocation0 + $0x134] sm:$0xff] %vm1795_vm0, %v3685_v43   ;;  %2021 = vst.msk [vmem:[#allocation0 + $0x13c] sm:$0xff] %vm1795_vm0, %v3686_v44   ;;  %v2088_v31 = vld [vmem:[#allocation1 + $0x90] sm:$0xf]   ;;  %v3773_v60 = vunpack.c.l.bf16 %v4443_v37 }
  0x26   :  { %2026 = vst.msk [vmem:[#allocation0 + $0x144] sm:$0xff] %vm1795_vm0, %v3681_v41   ;;  %2191 = vst.msk [vmem:[#allocation0 + $0x22c] sm:$0xf] %vm1795_vm0, %v2188_v54   ;;  %v3749_v41 = vunpack.c.l.bf16 %v4373_v5  ;;  %v3762_v54 = vunpack.c.h.bf16 %v4418_v29 }
  0x27   :  { %1109 = vst [vmem:[#allocation1 + $0x40] sm:$0xff] %v3690_v49  ;;  %1996 = vst.msk [vmem:[#allocation0 + $0x118] sm:$0xff] %vm1795_vm0, %v3693_v50   ;;  %v2068_v38 = vld [vmem:[#allocation1 + $0x108] sm:$0xf]   ;;  %v3758_v49 = vunpack.c.h.bf16 %v4393_v14 }
  0x28   :  { %2001 = vst.msk [vmem:[#allocation0 + $0x120] sm:$0xff] %vm1795_vm0, %v3694_v51   ;;  %2006 = vst.msk [vmem:[#allocation0 + $0x128] sm:$0xff] %vm1795_vm0, %v3689_v48   ;;  %v2722_v44 = vld [vmem:[#allocation0 + $0x170] sm:$0xff]  ;;  %v3757_v48 = vunpack.c.l.bf16 %v4393_v14 }
  0x29   :  { %2171 = vst.msk [vmem:[#allocation0 + $0x210] sm:$0xf] %vm1795_vm0, %v2168_v61   ;;  %2211 = vst.msk [vmem:[#allocation0 + $0x248] sm:$0xf] %vm1795_vm0, %v2208_v62   ;;  %v2048_v43 = vld [vmem:[#allocation1 + $0x240] sm:$0xf]   ;;  %v3774_v61 = vunpack.c.h.bf16 %v4443_v37 }
  0x2a   :  { %2231 = vst.msk [vmem:[#allocation0 + $0x264] sm:$0xf] %vm1795_vm0, %v2228_v63   ;;  %1173 = vst [vmem:[#allocation1 + $0x348] sm:$0xff] %v3698_v56  ;;  %v2730_v45 = vld [vmem:[#allocation0 + $0x178] sm:$0xff]  ;;  %v2690_v51 = vld [vmem:[#allocation0 + $0x150] sm:$0xff]  ;;  %v3766_v56 = vunpack.c.h.bf16 %v4423_v30 }
  0x2b   :  { %1976 = vst.msk [vmem:[#allocation0 + $0xfc] sm:$0xff] %vm1795_vm0, %v3701_v57   ;;  %1981 = vst.msk [vmem:[#allocation0 + $0x104] sm:$0xff] %vm1795_vm0, %v3702_v58   ;;  %v2028_v50 = vld [vmem:[#allocation1 + $0x160] sm:$0xf]   ;;  %v2698_v52 = vld [vmem:[#allocation0 + $0x158] sm:$0xff]  ;;  %v3769_v58 = vunpack.c.l.bf16 %v4438_v36 }
  0x2c   :  { %1986 = vst.msk [vmem:[#allocation0 + $0x10c] sm:$0xff] %vm1795_vm0, %v3697_v55   ;;  %2151 = vst.msk [vmem:[#allocation0 + $0x1f4] sm:$0xf] %vm1795_vm0, %v2148_v6   ;;  %v3765_v55 = vunpack.c.l.bf16 %v4423_v30  ;;  %v3883_v5 = vpack.c.bf16 %v2698_v52, %v2690_v51  ;;  %v3893_v6 = vpack.c.bf16 %v2730_v45, %v2722_v44  ;;  %v2746_v52 = vld [vmem:[#allocation0 + $0x188] sm:$0xff] }
  0x2d   :  { %2251 = vst.msk [vmem:[#allocation0 + $0x280] sm:$0xf] %vm1795_vm0, %v2248_v7   ;;  %2271 = vst.msk [vmem:[#allocation0 + $0x29c] sm:$0xf] %vm1795_vm0, %v2268_v8  }
  0x2e   :  { %1237 = vst [vmem:[#allocation1 + $0x2f8] sm:$0xff] %v3706_v1  ;;  %1956 = vst.msk [vmem:[#allocation0 + $0xe0] sm:$0xff] %vm1795_vm0, %v3709_v2   ;;  %v2008_v57 = vld [vmem:[#allocation1 + $0x40] sm:$0xf]  }
  0x2f   :  { %1961 = vst.msk [vmem:[#allocation0 + $0xe8] sm:$0xff] %vm1795_vm0, %v3710_v3   ;;  %1966 = vst.msk [vmem:[#allocation0 + $0xf0] sm:$0xff] %vm1795_vm0, %v3705_v0  }
  0x30   :  { %2131 = vst.msk [vmem:[#allocation0 + $0x1d8] sm:$0xf] %vm1795_vm0, %v2128_v15   ;;  %2291 = vst.msk [vmem:[#allocation0 + $0x2b8] sm:$0xf] %vm1795_vm0, %v2288_v16  }
  0x31   :  { %2311 = vst.msk [vmem:[#allocation0 + $0x2d4] sm:$0xf] %vm1795_vm0, %v2308_v17   ;;  %1301 = vst [vmem:[#allocation1 + $0x238] sm:$0xff] %v3714_v10  ;;  %v1988_v62 = vld [vmem:[#allocation1 + $0x348] sm:$0xf]  }
  0x32   :  { %1936 = vst.msk [vmem:[#allocation0 + $0xc4] sm:$0xff] %vm1795_vm0, %v3717_v11   ;;  %1941 = vst.msk [vmem:[#allocation0 + $0xcc] sm:$0xff] %vm1795_vm0, %v3718_v12   ;;  %v2610_v63 = vld [vmem:[#allocation0 + $0x100] sm:$0xff] }
  0x33   :  { %1946 = vst.msk [vmem:[#allocation0 + $0xd4] sm:$0xff] %vm1795_vm0, %v3713_v9   ;;  %2111 = vst.msk [vmem:[#allocation0 + $0x1bc] sm:$0xf] %vm1795_vm0, %v2108_v22   ;;  %v2618_v0 = vld [vmem:[#allocation0 + $0x108] sm:$0xff] }
  0x34   :  { %2331 = vst.msk [vmem:[#allocation0 + $0x2f0] sm:$0xf] %vm1795_vm0, %v2328_v23   ;;  %2351 = vst.msk [vmem:[#allocation0 + $0x30c] sm:$0xf] %vm1795_vm0, %v2348_v24   ;;  %v3858_v4 = vpack.c.bf16 %v2618_v0, %v2610_v63 }
  0x35   :  { %1365 = vst [vmem:[#allocation1 + $0x1f0] sm:$0xff] %v3722_v19  ;;  %1916 = vst.msk [vmem:[#allocation0 + $0xa8] sm:$0xff] %vm1795_vm0, %v3725_v20   ;;  %v1968_v1 = vld [vmem:[#allocation1 + $0x2f8] sm:$0xf]   ;;  %v2578_v2 = vld [vmem:[#allocation0 + $0xe0] sm:$0xff] }
  0x36   :  { %1921 = vst.msk [vmem:[#allocation0 + $0xb0] sm:$0xff] %vm1795_vm0, %v3726_v21   ;;  %1926 = vst.msk [vmem:[#allocation0 + $0xb8] sm:$0xff] %vm1795_vm0, %v3721_v18   ;;  %v2586_v3 = vld [vmem:[#allocation0 + $0xe8] sm:$0xff] }
  0x37   :  { %2091 = vst.msk [vmem:[#allocation0 + $0x1a0] sm:$0xf] %vm1795_vm0, %v2088_v31   ;;  %1429 = vst [vmem:[#allocation1 + $0x30] sm:$0xff] %v3730_v26  ;;  %v3848_v8 = vpack.c.bf16 %v2586_v3, %v2578_v2 }
  0x38   :  { %1896 = vst.msk [vmem:[#allocation0 + $0x8c] sm:$0xff] %vm1795_vm0, %v3733_v27   ;;  %1901 = vst.msk [vmem:[#allocation0 + $0x94] sm:$0xff] %vm1795_vm0, %v3734_v28   ;;  %v1948_v7 = vld [vmem:[#allocation1 + $0x238] sm:$0xf]  }
  0x39   :  { %1906 = vst.msk [vmem:[#allocation0 + $0x9c] sm:$0xff] %vm1795_vm0, %v3729_v25   ;;  %2071 = vst.msk [vmem:[#allocation0 + $0x184] sm:$0xf] %vm1795_vm0, %v2068_v38   ;;  %v2554_v22 = vld [vmem:[#allocation0 + $0xc8] sm:$0xff]  ;;  %v2666_v38 = vld [vmem:[#allocation0 + $0x138] sm:$0xff] }
  0x3a   :  { %1493 = vst [vmem:[#allocation1 + $0xf8] sm:$0xff] %v3738_v33  ;;  %1876 = vst.msk [vmem:[#allocation0 + $0x70] sm:$0xff] %vm1795_vm0, %v3741_v34   ;;  %v2562_v23 = vld [vmem:[#allocation0 + $0xd0] sm:$0xff]  ;;  %v2642_v33 = vld [vmem:[#allocation0 + $0x120] sm:$0xff] }
  0x3b   :  { %1881 = vst.msk [vmem:[#allocation0 + $0x78] sm:$0xff] %vm1795_vm0, %v3742_v35   ;;  %1886 = vst.msk [vmem:[#allocation0 + $0x80] sm:$0xff] %vm1795_vm0, %v3737_v32   ;;  %v2634_v32 = vld [vmem:[#allocation0 + $0x118] sm:$0xff] }
  0x3c   :  { %2051 = vst.msk [vmem:[#allocation0 + $0x168] sm:$0xf] %vm1795_vm0, %v2048_v43   ;;  %1557 = vst [vmem:[#allocation1 + $0x138] sm:$0xff] %v3746_v40  ;;  %v1928_v9 = vld [vmem:[#allocation1 + $0x1f0] sm:$0xf]   ;;  %v2522_v27 = vld [vmem:[#allocation0 + $0xa8] sm:$0xff] }
  0x3d   :  { %1856 = vst.msk [vmem:[#allocation0 + $0x54] sm:$0xff] %vm1795_vm0, %v3749_v41   ;;  %1861 = vst.msk [vmem:[#allocation0 + $0x5c] sm:$0xff] %vm1795_vm0, %v3750_v42   ;;  %v2530_v21 = vld [vmem:[#allocation0 + $0xb0] sm:$0xff]  ;;  %v2538_v42 = vld [vmem:[#allocation0 + $0xb8] sm:$0xff] }
  0x3e   :  { %1866 = vst.msk [vmem:[#allocation0 + $0x64] sm:$0xff] %vm1795_vm0, %v3745_v39   ;;  %2031 = vst.msk [vmem:[#allocation0 + $0x14c] sm:$0xf] %vm1795_vm0, %v2028_v50   ;;  %v1908_v10 = vld [vmem:[#allocation1 + $0x30] sm:$0xf]   ;;  %v2594_v50 = vld [vmem:[#allocation0 + $0xf0] sm:$0xff] }
  0x3f   :  { %1621 = vst [vmem:[#allocation1 + $0x2f0] sm:$0xff] %v3754_v47  ;;  %1836 = vst.msk [vmem:[#allocation0 + $0x38] sm:$0xff] %vm1795_vm0, %v3757_v48   ;;  %v2498_v11 = vld [vmem:[#allocation0 + $0x90] sm:$0xff]  ;;  %v2674_v39 = vld [vmem:[#allocation0 + $0x140] sm:$0xff]  ;;  %v3833_v47 = vpack.c.bf16 %v2538_v42, %v2530_v21 }
  0x40   :  { %1841 = vst.msk [vmem:[#allocation0 + $0x40] sm:$0xff] %vm1795_vm0, %v3758_v49   ;;  %1846 = vst.msk [vmem:[#allocation0 + $0x48] sm:$0xff] %vm1795_vm0, %v3753_v46   ;;  %v2506_v12 = vld [vmem:[#allocation0 + $0x98] sm:$0xff]  ;;  %v2786_v21 = vld [vmem:[#allocation0 + $0x1b0] sm:$0xff] }
  0x41   :  { %2011 = vst.msk [vmem:[#allocation0 + $0x130] sm:$0xf] %vm1795_vm0, %v2008_v57   ;;  %1685 = vst [vmem:[#allocation1 + $0x1e8] sm:$0xff] %v3762_v54  ;;  %v1888_v13 = vld [vmem:[#allocation1 + $0xf8] sm:$0xf]   ;;  %v2466_v14 = vld [vmem:[#allocation0 + $0x70] sm:$0xff]  ;;  %v3823_v16 = vpack.c.bf16 %v2506_v12, %v2498_v11 }
  0x42   :  { %1816 = vst.msk [vmem:[#allocation0 + $0x1c] sm:$0xff] %vm1795_vm0, %v3765_v55   ;;  %1821 = vst.msk [vmem:[#allocation0 + $0x24] sm:$0xff] %vm1795_vm0, %v3766_v56   ;;  %v2474_v15 = vld [vmem:[#allocation0 + $0x78] sm:$0xff]  ;;  %v2482_v37 = vld [vmem:[#allocation0 + $0x80] sm:$0xff] }
  0x43   :  { %1826 = vst.msk [vmem:[#allocation0 + $0x2c] sm:$0xff] %vm1795_vm0, %v3761_v53   ;;  %1991 = vst.msk [vmem:[#allocation0 + $0x114] sm:$0xf] %vm1795_vm0, %v1988_v62   ;;  %v1868_v17 = vld [vmem:[#allocation1 + $0x138] sm:$0xf]   ;;  %v3813_v18 = vpack.c.bf16 %v2474_v15, %v2466_v14  ;;  %v2754_v53 = vld [vmem:[#allocation0 + $0x190] sm:$0xff] }
  0x44   :  { %1749 = vst [vmem:[#allocation1 + $0x378] sm:$0xff] %v3770_v59  ;;  %1796 = vst.msk [vmem:[#allocation0] sm:$0xff] %vm1795_vm0, %v3773_v60   ;;  %v2442_v41 = vld [vmem:[#allocation0 + $0x58] sm:$0xff]  ;;  %v2650_v59 = vld [vmem:[#allocation0 + $0x128] sm:$0xff] }
  0x45   :  { %1801 = vst.msk [vmem:[#allocation0 + $0x8] sm:$0xff] %vm1795_vm0, %v3774_v61   ;;  %1806 = vst.msk [vmem:[#allocation0 + $0x10] sm:$0xff] %vm1795_vm0, %v3769_v58   ;;  %v2450_v36 = vld [vmem:[#allocation0 + $0x60] sm:$0xff]  ;;  %v3868_v63 = vpack.c.bf16 %v2650_v59, %v2642_v33  ;;  %v2762_v12 = vld [vmem:[#allocation0 + $0x198] sm:$0xff] }
  0x46   :  { %1971 = vst.msk [vmem:[#allocation0 + $0xf8] sm:$0xf] %vm1795_vm0, %v1968_v1   ;;  %1951 = vst.msk [vmem:[#allocation0 + $0xdc] sm:$0xf] %vm1795_vm0, %v1948_v7   ;;  %v1848_v19 = vld [vmem:[#allocation1 + $0x2f0] sm:$0xf]  }
  0x47   :  { %4090 = vst [vmem:[%s4645_s1 + $0x80] sm:$0xff] %v3858_v4   ;;  %4095 = vst [vmem:[%s4645_s1 + $0xa8] sm:$0xff] %v3883_v5   ;;  %v2418_v20 = vld [vmem:[#allocation0 + $0x40] sm:$0xff]  ;;  %v2426_v35 = vld [vmem:[#allocation0 + $0x48] sm:$0xff] }
  0x48   :  { %4097 = vst [vmem:[%s4645_s1 + $0xb8] sm:$0xff] %v3893_v6   ;;  %1931 = vst.msk [vmem:[#allocation0 + $0xc0] sm:$0xf] %vm1795_vm0, %v1928_v9   ;;  %v1828_v24 = vld [vmem:[#allocation1 + $0x1e8] sm:$0xf]   ;;  %v3798_v40 = vpack.c.bf16 %v2426_v35, %v2418_v20  ;;  %v2658_v0 = vld [vmem:[#allocation0 + $0x130] sm:$0xff] }
  0x49   :  { %4088 = vst [vmem:[%s4645_s1 + $0x70] sm:$0xff] %v3848_v8   ;;  %1911 = vst.msk [vmem:[#allocation0 + $0xa4] sm:$0xf] %vm1795_vm0, %v1908_v10   ;;  %v2386_v25 = vld [vmem:[#allocation0 + $0x20] sm:$0xff]  ;;  %v2410_v45 = vld [vmem:[#allocation0 + $0x38] sm:$0xff]  ;;  %v3873_v4 = vpack.c.bf16 %v2666_v38, %v2658_v0 }
  0x4a   :  { %1891 = vst.msk [vmem:[#allocation0 + $0x88] sm:$0xf] %vm1795_vm0, %v1888_v13   ;;  %1871 = vst.msk [vmem:[#allocation0 + $0x6c] sm:$0xf] %vm1795_vm0, %v1868_v17   ;;  %v2394_v26 = vld [vmem:[#allocation0 + $0x28] sm:$0xff]  ;;  %v2626_v58 = vld [vmem:[#allocation0 + $0x110] sm:$0xff] }
  0x4b   :  { %4083 = vst [vmem:[%s4645_s1 + $0x48] sm:$0xff] %v3823_v16   ;;  %1851 = vst.msk [vmem:[#allocation0 + $0x50] sm:$0xf] %vm1795_vm0, %v1848_v19   ;;  %v1808_v28 = vld [vmem:[#allocation1 + $0x378] sm:$0xf]   ;;  %v2357_v29 = vld [vmem:[#allocation0] sm:$0xff]  ;;  %v3788_v31 = vpack.c.bf16 %v2394_v26, %v2386_v25  ;;  %v3863_v62 = vpack.c.bf16 %v2634_v32, %v2626_v58  ;;  %v3903_v16 = vpack.c.bf16 %v2762_v12, %v2754_v53 }
  0x4c   :  { %4081 = vst [vmem:[%s4645_s1 + $0x38] sm:$0xff] %v3813_v18   ;;  %1831 = vst.msk [vmem:[#allocation0 + $0x34] sm:$0xf] %vm1795_vm0, %v1828_v24   ;;  %v2363_v30 = vld [vmem:[#allocation0 + $0x8] sm:$0xff]  ;;  %v2370_v54 = vld [vmem:[#allocation0 + $0x10] sm:$0xff] }
  0x4d   :  { %1811 = vst.msk [vmem:[#allocation0 + $0x18] sm:$0xf] %vm1795_vm0, %v1808_v28   ;;  %v3778_v34 = vpack.c.bf16 %v2363_v30, %v2357_v29  ;;  %4076 = vst [vmem:[%s4645_s1 + $0x10] sm:$0xff] %v3788_v31   ;;  %v2570_v44 = vld [vmem:[#allocation0 + $0xd8] sm:$0xff]  ;;  %v2682_v1 = vld [vmem:[#allocation0 + $0x148] sm:$0xff] }
  0x4e   :  { %v3843_v49 = vpack.c.bf16 %v2570_v44, %v2562_v23  ;;  %v2602_v51 = vld [vmem:[#allocation0 + $0xf8] sm:$0xff]  ;;  %4078 = vst [vmem:[%s4645_s1 + $0x20] sm:$0xff] %v3798_v40   ;;  %4085 = vst [vmem:[%s4645_s1 + $0x58] sm:$0xff] %v3833_v47   ;;  %v3878_v5 = vpack.c.bf16 %v2682_v1, %v2674_v39  ;;  %v2706_v6 = vld [vmem:[#allocation0 + $0x160] sm:$0xff] }
  0x4f   :  { %v2546_v43 = vld [vmem:[#allocation0 + $0xc0] sm:$0xff]  ;;  %3779 = vst [vmem:[%s4645_s1] sm:$0xff] %v3778_v34   ;;  %v3853_v57 = vpack.c.bf16 %v2602_v51, %v2594_v50  ;;  %v2714_v7 = vld [vmem:[#allocation0 + $0x168] sm:$0xff]  ;;  %4091 = vst [vmem:[%s4645_s1 + $0x88] sm:$0xff] %v3863_v62  }
  0x50   :  { %v2514_v46 = vld [vmem:[#allocation0 + $0xa0] sm:$0xff]  ;;  %v3838_v48 = vpack.c.bf16 %v2554_v22, %v2546_v43  ;;  %4087 = vst [vmem:[%s4645_s1 + $0x68] sm:$0xff] %v3843_v49   ;;  %4092 = vst [vmem:[%s4645_s1 + $0x90] sm:$0xff] %v3868_v63   ;;  %v3888_v10 = vpack.c.bf16 %v2714_v7, %v2706_v6  ;;  %v2778_v18 = vld [vmem:[#allocation0 + $0x1a8] sm:$0xff] }
  0x51   :  { %v2490_v55 = vld [vmem:[#allocation0 + $0x88] sm:$0xff]  ;;  %v3828_v56 = vpack.c.bf16 %v2522_v27, %v2514_v46  ;;  %4089 = vst [vmem:[%s4645_s1 + $0x78] sm:$0xff] %v3853_v57   ;;  %v2738_v11 = vld [vmem:[#allocation0 + $0x180] sm:$0xff]  ;;  %4093 = vst [vmem:[%s4645_s1 + $0x98] sm:$0xff] %v3873_v4  }
  0x52   :  { %v2458_v60 = vld [vmem:[#allocation0 + $0x68] sm:$0xff]  ;;  %v3818_v61 = vpack.c.bf16 %v2490_v55, %v2482_v37  ;;  %4086 = vst [vmem:[%s4645_s1 + $0x60] sm:$0xff] %v3838_v48   ;;  %v2434_v2 = vld [vmem:[#allocation0 + $0x50] sm:$0xff]  ;;  %4094 = vst [vmem:[%s4645_s1 + $0xa0] sm:$0xff] %v3878_v5   ;;  %v3898_v15 = vpack.c.bf16 %v2746_v52, %v2738_v11 }
  0x53   :  { %v3808_v3 = vpack.c.bf16 %v2458_v60, %v2450_v36  ;;  %4084 = vst [vmem:[%s4645_s1 + $0x50] sm:$0xff] %v3828_v56   ;;  %v2402_v8 = vld [vmem:[#allocation0 + $0x30] sm:$0xff]  ;;  %v3803_v9 = vpack.c.bf16 %v2442_v41, %v2434_v2  ;;  %v2770_v17 = vld [vmem:[#allocation0 + $0x1a0] sm:$0xff]  ;;  %4096 = vst [vmem:[%s4645_s1 + $0xb0] sm:$0xff] %v3888_v10  }
  0x54   :  { %4082 = vst [vmem:[%s4645_s1 + $0x40] sm:$0xff] %v3818_v61   ;;  %v2378_v13 = vld [vmem:[#allocation0 + $0x18] sm:$0xff]  ;;  %v3793_v14 = vpack.c.bf16 %v2410_v45, %v2402_v8  ;;  %v3908_v20 = vpack.c.bf16 %v2778_v18, %v2770_v17  ;;  %v2802_v23 = vld [vmem:[#allocation0 + $0x1c0] sm:$0xff]  ;;  %4098 = vst [vmem:[%s4645_s1 + $0xc0] sm:$0xff] %v3898_v15  }
  0x55   :  { %4080 = vst [vmem:[%s4645_s1 + $0x30] sm:$0xff] %v3808_v3   ;;  %v3783_v19 = vpack.c.bf16 %v2378_v13, %v2370_v54  ;;  %4079 = vst [vmem:[%s4645_s1 + $0x28] sm:$0xff] %v3803_v9   ;;  %v2794_v22 = vld [vmem:[#allocation0 + $0x1b8] sm:$0xff]  ;;  %v2810_v25 = vld [vmem:[#allocation0 + $0x1c8] sm:$0xff] }
  0x56   :  { %4077 = vst [vmem:[%s4645_s1 + $0x18] sm:$0xff] %v3793_v14   ;;  %4099 = vst [vmem:[%s4645_s1 + $0xc8] sm:$0xff] %v3903_v16   ;;  %v3913_v24 = vpack.c.bf16 %v2794_v22, %v2786_v21  ;;  %v2818_v26 = vld [vmem:[#allocation0 + $0x1d0] sm:$0xff]  ;;  %v2826_v27 = vld [vmem:[#allocation0 + $0x1d8] sm:$0xff]  ;;  %v3918_v28 = vpack.c.bf16 %v2810_v25, %v2802_v23 }
  0x57   :  { %4075 = vst [vmem:[%s4645_s1 + $0x8] sm:$0xff] %v3783_v19   ;;  %4100 = vst [vmem:[%s4645_s1 + $0xd0] sm:$0xff] %v3908_v20   ;;  %v3923_v29 = vpack.c.bf16 %v2826_v27, %v2818_v26  ;;  %v2834_v30 = vld [vmem:[#allocation0 + $0x1e0] sm:$0xff]  ;;  %v2842_v31 = vld [vmem:[#allocation0 + $0x1e8] sm:$0xff] }
  0x58   :  { %v2850_v32 = vld [vmem:[#allocation0 + $0x1f0] sm:$0xff]  ;;  %4101 = vst [vmem:[%s4645_s1 + $0xd8] sm:$0xff] %v3913_v24   ;;  %v3928_v33 = vpack.c.bf16 %v2842_v31, %v2834_v30  ;;  %v2858_v34 = vld [vmem:[#allocation0 + $0x1f8] sm:$0xff]  ;;  %v2866_v35 = vld [vmem:[#allocation0 + $0x200] sm:$0xff] }
  0x59   :  { %v2874_v36 = vld [vmem:[#allocation0 + $0x208] sm:$0xff]  ;;  %4102 = vst [vmem:[%s4645_s1 + $0xe0] sm:$0xff] %v3918_v28   ;;  %4103 = vst [vmem:[%s4645_s1 + $0xe8] sm:$0xff] %v3923_v29   ;;  %v3933_v37 = vpack.c.bf16 %v2858_v34, %v2850_v32  ;;  %v2882_v39 = vld [vmem:[#allocation0 + $0x210] sm:$0xff] }
  0x5a   :  { %v3938_v38 = vpack.c.bf16 %v2874_v36, %v2866_v35  ;;  %v2890_v40 = vld [vmem:[#allocation0 + $0x218] sm:$0xff]  ;;  %v2898_v41 = vld [vmem:[#allocation0 + $0x220] sm:$0xff]  ;;  %4104 = vst [vmem:[%s4645_s1 + $0xf0] sm:$0xff] %v3928_v33   ;;  %v2906_v43 = vld [vmem:[#allocation0 + $0x228] sm:$0xff] }
  0x5b   :  { %v3943_v42 = vpack.c.bf16 %v2890_v40, %v2882_v39  ;;  %v2914_v44 = vld [vmem:[#allocation0 + $0x230] sm:$0xff]  ;;  %v2922_v45 = vld [vmem:[#allocation0 + $0x238] sm:$0xff]  ;;  %4105 = vst [vmem:[%s4645_s1 + $0xf8] sm:$0xff] %v3933_v37   ;;  %v3948_v46 = vpack.c.bf16 %v2906_v43, %v2898_v41  ;;  %v2930_v48 = vld [vmem:[#allocation0 + $0x240] sm:$0xff] }
  0x5c   :  { %4106 = vst [vmem:[%s4645_s1 + $0x100] sm:$0xff] %v3938_v38   ;;  %v3953_v47 = vpack.c.bf16 %v2922_v45, %v2914_v44  ;;  %v2938_v49 = vld [vmem:[#allocation0 + $0x248] sm:$0xff]  ;;  %v2946_v50 = vld [vmem:[#allocation0 + $0x250] sm:$0xff]  ;;  %v2954_v52 = vld [vmem:[#allocation0 + $0x258] sm:$0xff] }
  0x5d   :  { %4107 = vst [vmem:[%s4645_s1 + $0x108] sm:$0xff] %v3943_v42   ;;  %v3958_v51 = vpack.c.bf16 %v2938_v49, %v2930_v48  ;;  %v2962_v53 = vld [vmem:[#allocation0 + $0x260] sm:$0xff]  ;;  %v2970_v54 = vld [vmem:[#allocation0 + $0x268] sm:$0xff]  ;;  %4108 = vst [vmem:[%s4645_s1 + $0x110] sm:$0xff] %v3948_v46   ;;  %v3963_v55 = vpack.c.bf16 %v2954_v52, %v2946_v50 }
  0x5e   :  { %4109 = vst [vmem:[%s4645_s1 + $0x118] sm:$0xff] %v3953_v47   ;;  %v3968_v56 = vpack.c.bf16 %v2970_v54, %v2962_v53  ;;  %v2978_v57 = vld [vmem:[#allocation0 + $0x270] sm:$0xff]  ;;  %v2986_v58 = vld [vmem:[#allocation0 + $0x278] sm:$0xff]  ;;  %v2994_v59 = vld [vmem:[#allocation0 + $0x280] sm:$0xff] }
  0x5f   :  { %4110 = vst [vmem:[%s4645_s1 + $0x120] sm:$0xff] %v3958_v51   ;;  %v3973_v60 = vpack.c.bf16 %v2986_v58, %v2978_v57  ;;  %v3002_v61 = vld [vmem:[#allocation0 + $0x288] sm:$0xff]  ;;  %v3010_v62 = vld [vmem:[#allocation0 + $0x290] sm:$0xff]  ;;  %v3018_v63 = vld [vmem:[#allocation0 + $0x298] sm:$0xff] }
  0x60   :  { %4111 = vst [vmem:[%s4645_s1 + $0x128] sm:$0xff] %v3963_v55   ;;  %4112 = vst [vmem:[%s4645_s1 + $0x130] sm:$0xff] %v3968_v56   ;;  %v3978_v0 = vpack.c.bf16 %v3002_v61, %v2994_v59  ;;  %v3983_v1 = vpack.c.bf16 %v3018_v63, %v3010_v62  ;;  %v3026_v2 = vld [vmem:[#allocation0 + $0x2a0] sm:$0xff]  ;;  %v3034_v3 = vld [vmem:[#allocation0 + $0x2a8] sm:$0xff] }
  0x61   :  { %v3042_v4 = vld [vmem:[#allocation0 + $0x2b0] sm:$0xff]  ;;  %4113 = vst [vmem:[%s4645_s1 + $0x138] sm:$0xff] %v3973_v60   ;;  %v3988_v5 = vpack.c.bf16 %v3034_v3, %v3026_v2  ;;  %v3050_v6 = vld [vmem:[#allocation0 + $0x2b8] sm:$0xff]  ;;  %v3058_v7 = vld [vmem:[#allocation0 + $0x2c0] sm:$0xff] }
  0x62   :  { %v3066_v8 = vld [vmem:[#allocation0 + $0x2c8] sm:$0xff]  ;;  %4114 = vst [vmem:[%s4645_s1 + $0x140] sm:$0xff] %v3978_v0   ;;  %4115 = vst [vmem:[%s4645_s1 + $0x148] sm:$0xff] %v3983_v1   ;;  %v3993_v9 = vpack.c.bf16 %v3050_v6, %v3042_v4  ;;  %v3074_v11 = vld [vmem:[#allocation0 + $0x2d0] sm:$0xff] }
  0x63   :  { %v3998_v10 = vpack.c.bf16 %v3066_v8, %v3058_v7  ;;  %v3082_v12 = vld [vmem:[#allocation0 + $0x2d8] sm:$0xff]  ;;  %v3090_v13 = vld [vmem:[#allocation0 + $0x2e0] sm:$0xff]  ;;  %4116 = vst [vmem:[%s4645_s1 + $0x150] sm:$0xff] %v3988_v5   ;;  %v3098_v15 = vld [vmem:[#allocation0 + $0x2e8] sm:$0xff] }
  0x64   :  { %v4003_v14 = vpack.c.bf16 %v3082_v12, %v3074_v11  ;;  %v3106_v16 = vld [vmem:[#allocation0 + $0x2f0] sm:$0xff]  ;;  %v3114_v17 = vld [vmem:[#allocation0 + $0x2f8] sm:$0xff]  ;;  %4117 = vst [vmem:[%s4645_s1 + $0x158] sm:$0xff] %v3993_v9   ;;  %v4008_v18 = vpack.c.bf16 %v3098_v15, %v3090_v13  ;;  %v3122_v20 = vld [vmem:[#allocation0 + $0x300] sm:$0xff] }
  0x65   :  { %4118 = vst [vmem:[%s4645_s1 + $0x160] sm:$0xff] %v3998_v10   ;;  %v4013_v19 = vpack.c.bf16 %v3114_v17, %v3106_v16  ;;  %v3130_v21 = vld [vmem:[#allocation0 + $0x308] sm:$0xff] }
  0x66   :  { %4119 = vst [vmem:[%s4645_s1 + $0x168] sm:$0xff] %v4003_v14   ;;  %v4018_v22 = vpack.c.bf16 %v3130_v21, %v3122_v20  ;;  %4120 = vst [vmem:[%s4645_s1 + $0x170] sm:$0xff] %v4008_v18  }
  0x67   :  { %4121 = vst [vmem:[%s4645_s1 + $0x178] sm:$0xff] %v4013_v19  }
  0x68   :  { %4122 = vst [vmem:[%s4645_s1 + $0x180] sm:$0xff] %v4018_v22  }

// kernel: _add_conv_bn.1
= control target key start
LH: loop header
LB: loop body
LE: loop exit
PB: predicated region body
PF: predicated region fallthrough
CT: control target
= control target key end

     0   :  { %vm2098_vm0 = vcmask 523264   ;;  %vm4372_vm1 = vcmask 130048   ;;  %s14076_s1 = inlined_call_operand.vmem [shape: bf16[576,784], index: 1, kind: input, shape index: {}]   ;;  %s14077_s0 = inlined_call_operand.vmem [shape: bf16[256,576], index: 0, kind: input, shape index: {}]   ;;  %s14078_s2 = inlined_call_operand.vmem [shape: f32[256,1], index: 2, kind: input, shape index: {}]   ;;  %s14079_s3 = inlined_call_operand.vmem [shape: f32[256,1], index: 3, kind: input, shape index: {}]   ;;  %s14080_s4 = inlined_call_operand.vmem [shape: f32[256,784], index: 4, kind: output, shape index: {}]  }
   0x1   :  { %v7263_v0 = vld [vmem:[%s14076_s1 + $0x18c] ss:$28 sps:$4 sm:$0xff]   ;;  %v7269_v4 = vld [vmem:[%s14076_s1 + $0x154] ss:$28 sps:$4 sm:$0xff]   ;;  %v7275_v8 = vld [vmem:[%s14076_s1 + $0x11c] ss:$28 sps:$4 sm:$0xff]  }
   0x2   :  { %v7265_v1 = vld [vmem:[%s14076_s1 + $0x50c] ss:$28 sps:$4 sm:$0xff]   ;;  %2147 = vmatprep.subr.bf16.mxu0 %v7263_v0  ;;  %v7271_v5 = vld [vmem:[%s14076_s1 + $0x4d4] ss:$28 sps:$4 sm:$0xff]   ;;  %v7277_v9 = vld [vmem:[%s14076_s1 + $0x49c] ss:$28 sps:$4 sm:$0xff]  }
   0x3   :  { %v7267_v2 = vld [vmem:[%s14076_s1 + $0x188] ss:$28 sps:$4 sm:$0xff]   ;;  %2340 = vmatprep.subr.bf16.mxu1 %v7265_v1  ;;  %v7273_v6 = vld [vmem:[%s14076_s1 + $0x150] ss:$28 sps:$4 sm:$0xff]   ;;  %v7279_v10 = vld [vmem:[%s14076_s1 + $0x118] ss:$28 sps:$4 sm:$0xff]  }
   0x4   :  { %v7268_v3 = vld [vmem:[%s14076_s1 + $0x508] ss:$28 sps:$4 sm:$0xff]   ;;  %2148 = vmatpush1.bf16.msra.mxu0 %v7267_v2  ;;  %v7274_v7 = vld [vmem:[%s14076_s1 + $0x4d0] ss:$28 sps:$4 sm:$0xff]   ;;  %v7280_v11 = vld [vmem:[%s14076_s1 + $0x498] ss:$28 sps:$4 sm:$0xff]  }
   0x5   :  { %2341 = vmatpush1.bf16.msra.mxu1 %v7268_v3  ;;  %2149 = vmatprep.subr.bf16.mxu0 %v7269_v4  ;;  %v7281_v12 = vld [vmem:[%s14076_s1 + $0xe4] ss:$28 sps:$4 sm:$0xff]   ;;  %v7287_v16 = vld [vmem:[%s14076_s1 + $0xac] ss:$28 sps:$4 sm:$0xff]   ;;  %v7293_v20 = vld [vmem:[%s14076_s1 + $0x74] ss:$28 sps:$4 sm:$0xff]  }
   0x6   :  { %2342 = vmatprep.subr.bf16.mxu1 %v7271_v5  ;;  %v7283_v13 = vld [vmem:[%s14076_s1 + $0x464] ss:$28 sps:$4 sm:$0xff]   ;;  %v7289_v17 = vld [vmem:[%s14076_s1 + $0x42c] ss:$28 sps:$4 sm:$0xff]   ;;  %v7295_v21 = vld [vmem:[%s14076_s1 + $0x3f4] ss:$28 sps:$4 sm:$0xff]  }
   0x7   :  { %v7285_v14 = vld [vmem:[%s14076_s1 + $0xe0] ss:$28 sps:$4 sm:$0xff]   ;;  %v7291_v18 = vld [vmem:[%s14076_s1 + $0xa8] ss:$28 sps:$4 sm:$0xff]   ;;  %v7297_v22 = vld [vmem:[%s14076_s1 + $0x70] ss:$28 sps:$4 sm:$0xff]  }
   0x8   :  { %2150 = vmatpush1.bf16.msra.mxu0 %v7273_v6  ;;  %v7286_v15 = vld [vmem:[%s14076_s1 + $0x460] ss:$28 sps:$4 sm:$0xff]   ;;  %v7292_v19 = vld [vmem:[%s14076_s1 + $0x428] ss:$28 sps:$4 sm:$0xff]   ;;  %v7298_v23 = vld [vmem:[%s14076_s1 + $0x3f0] ss:$28 sps:$4 sm:$0xff]  }
   0x9   :  { %2343 = vmatpush1.bf16.msra.mxu1 %v7274_v7  ;;  %2151 = vmatprep.subr.bf16.mxu0 %v7275_v8  ;;  %v7299_v24 = vld [vmem:[%s14076_s1 + $0x3c] ss:$28 sps:$4 sm:$0xff]   ;;  %v7305_v28 = vld [vmem:[%s14076_s1 + $0x4] ss:$28 sps:$4 sm:$0xff]   ;;  %v7311_v32 = vld [vmem:[%s14076_s1 + $0x34c] ss:$28 sps:$4 sm:$0xff]  }
   0xa   :  { %2344 = vmatprep.subr.bf16.mxu1 %v7277_v9  ;;  %v7301_v25 = vld [vmem:[%s14076_s1 + $0x3bc] ss:$28 sps:$4 sm:$0xff]   ;;  %v7307_v29 = vld [vmem:[%s14076_s1 + $0x384] ss:$28 sps:$4 sm:$0xff]   ;;  %v7313_v33 = vld [vmem:[%s14076_s1 + $0x6cc] ss:$28 sps:$4 sm:$0xff]  }
   0xb   :  { %v7303_v26 = vld [vmem:[%s14076_s1 + $0x38] ss:$28 sps:$4 sm:$0xff]   ;;  %v7309_v30 = vld [vmem:[%s14076_s1] ss:$28 sps:$4 sm:$0xff]   ;;  %v7315_v34 = vld [vmem:[%s14076_s1 + $0x348] ss:$28 sps:$4 sm:$0xff]  }
   0xc   :  { %2152 = vmatpush1.bf16.msra.mxu0 %v7279_v10  ;;  %v7304_v27 = vld [vmem:[%s14076_s1 + $0x3b8] ss:$28 sps:$4 sm:$0xff]   ;;  %v7310_v31 = vld [vmem:[%s14076_s1 + $0x380] ss:$28 sps:$4 sm:$0xff]   ;;  %v7316_v35 = vld [vmem:[%s14076_s1 + $0x6c8] ss:$28 sps:$4 sm:$0xff]  }
   0xd   :  { %2345 = vmatpush1.bf16.msra.mxu1 %v7280_v11  ;;  %2153 = vmatprep.subr.bf16.mxu0 %v7281_v12  ;;  %v7317_v36 = vld [vmem:[%s14076_s1 + $0x314] ss:$28 sps:$4 sm:$0xff]   ;;  %v7323_v40 = vld [vmem:[%s14076_s1 + $0x2dc] ss:$28 sps:$4 sm:$0xff]   ;;  %v7329_v44 = vld [vmem:[%s14076_s1 + $0x2a4] ss:$28 sps:$4 sm:$0xff]  }
   0xe   :  { %2346 = vmatprep.subr.bf16.mxu1 %v7283_v13  ;;  %v7319_v37 = vld [vmem:[%s14076_s1 + $0x694] ss:$28 sps:$4 sm:$0xff]   ;;  %v7325_v41 = vld [vmem:[%s14076_s1 + $0x65c] ss:$28 sps:$4 sm:$0xff]   ;;  %v7331_v45 = vld [vmem:[%s14076_s1 + $0x624] ss:$28 sps:$4 sm:$0xff]  }
   0xf   :  { %v7321_v38 = vld [vmem:[%s14076_s1 + $0x310] ss:$28 sps:$4 sm:$0xff]   ;;  %v7327_v42 = vld [vmem:[%s14076_s1 + $0x2d8] ss:$28 sps:$4 sm:$0xff]   ;;  %v7333_v46 = vld [vmem:[%s14076_s1 + $0x2a0] ss:$28 sps:$4 sm:$0xff]  }
  0x10   :  { %2154 = vmatpush1.bf16.msra.mxu0 %v7285_v14  ;;  %v7322_v39 = vld [vmem:[%s14076_s1 + $0x690] ss:$28 sps:$4 sm:$0xff]   ;;  %v7328_v43 = vld [vmem:[%s14076_s1 + $0x658] ss:$28 sps:$4 sm:$0xff]   ;;  %v7334_v47 = vld [vmem:[%s14076_s1 + $0x620] ss:$28 sps:$4 sm:$0xff]  }
  0x11   :  { %2347 = vmatpush1.bf16.msra.mxu1 %v7286_v15  ;;  %2155 = vmatprep.subr.bf16.mxu0 %v7287_v16  ;;  %v7359_v48 = vld [vmem:[%s14077_s0 + $0x4] ss:$20 sps:$4 sm:$0xff]   ;;  %v7335_v49 = vld [vmem:[%s14076_s1 + $0x26c] ss:$28 sps:$4 sm:$0xff]   ;;  %v7341_v54 = vld [vmem:[%s14076_s1 + $0x234] ss:$28 sps:$4 sm:$0xff]  }
  0x12   :  { %2348 = vmatprep.subr.bf16.mxu1 %v7289_v17  ;;  %v7361_v50 = vld [vmem:[%s14077_s0 + $0xc] ss:$20 sps:$4 sm:$0xff]   ;;  %2179 = vmatprep.mubr.bf16.mxu0 %v7359_v48  ;;  %v7339_v52 = vld [vmem:[%s14076_s1 + $0x268] ss:$28 sps:$4 sm:$0xff]   ;;  %v7343_v55 = vld [vmem:[%s14076_s1 + $0x5b4] ss:$28 sps:$4 sm:$0xff]  }
  0x13   :  { %v7337_v51 = vld [vmem:[%s14076_s1 + $0x5ec] ss:$28 sps:$4 sm:$0xff]   ;;  %2372 = vmatprep.mubr.bf16.mxu1 %v7361_v50  ;;  %v7347_v58 = vld [vmem:[%s14076_s1 + $0x1fc] ss:$28 sps:$4 sm:$0xff]   ;;  %v7353_v62 = vld [vmem:[%s14076_s1 + $0x1c4] ss:$28 sps:$4 sm:$0xff]  }
  0x14   :  { %2156 = vmatpush1.bf16.msra.mxu0 %v7291_v18  ;;  %v7340_v53 = vld [vmem:[%s14076_s1 + $0x5e8] ss:$28 sps:$4 sm:$0xff]   ;;  %v7345_v56 = vld [vmem:[%s14076_s1 + $0x230] ss:$28 sps:$4 sm:$0xff]   ;;  %v7349_v59 = vld [vmem:[%s14076_s1 + $0x57c] ss:$28 sps:$4 sm:$0xff]  }
  0x15   :  { %2349 = vmatpush1.bf16.msra.mxu1 %v7292_v19  ;;  %2157 = vmatprep.subr.bf16.mxu0 %v7293_v20  ;;  %v7346_v57 = vld [vmem:[%s14076_s1 + $0x5b0] ss:$28 sps:$4 sm:$0xff]   ;;  %v7351_v60 = vld [vmem:[%s14076_s1 + $0x1f8] ss:$28 sps:$4 sm:$0xff]   ;;  %v7355_v63 = vld [vmem:[%s14076_s1 + $0x544] ss:$28 sps:$4 sm:$0xff]  }
  0x16   :  { %2350 = vmatprep.subr.bf16.mxu1 %v7295_v21  ;;  %v7352_v61 = vld [vmem:[%s14076_s1 + $0x578] ss:$28 sps:$4 sm:$0xff]   ;;  %v7357_v0 = vld [vmem:[%s14076_s1 + $0x1c0] ss:$28 sps:$4 sm:$0xff]   ;;  %v14081_v5 = vmov 0  }
  0x17   :  { %v7358_v1 = vld [vmem:[%s14076_s1 + $0x540] ss:$28 sps:$4 sm:$0xff]   ;;  %v7367_v2 = vld [vmem:[%s14076_s1 + $0x194] ss:$28 sps:$4 sm:$0xff]   ;;  %7261 = vset.pattern.permute.xlu1 %v14081_v5  ;;  %7262 = vset.pattern.permute.xlu0 %v14081_v5  ;;  %v7422_v15 = vld [vmem:[%s14076_s1 + $0x7a8] ss:$28 sps:$4 sm:$0xff]  }
  0x18   :  { %2158 = vmatpush1.bf16.msra.mxu0 %v7297_v22  ;;  %v8134_v3 = vld [vmem:[%s14077_s0] ss:$20 sps:$4 sm:$0xff]   ;;  %v7364_v4 = vld [vmem:[%s14077_s0 + $0x8] ss:$20 sps:$4 sm:$0xff]   ;;  %v7365_v6 = vld [vmem:[%s14076_s1 + $0x190] ss:$28 sps:$4 sm:$0xff]  }
  0x19   :  { %2351 = vmatpush1.bf16.msra.mxu1 %v7298_v23  ;;  %2159 = vmatprep.subr.bf16.mxu0 %v7299_v24  ;;  %v8147_v7 = vld [vmem:[%s14077_s0 + $0x2c] ss:$20 sps:$4 sm:$0xff]   ;;  %v7370_v8 = vld [vmem:[%s14077_s0 + $0x34] ss:$20 sps:$4 sm:$0xff]   ;;  %v7376_v9 = vld [vmem:[%s14076_s1 + $0x15c] ss:$28 sps:$4 sm:$0xff]  }
  0x1a   :  { %2352 = vmatprep.subr.bf16.mxu1 %v7301_v25  ;;  %v7374_v10 = vld [vmem:[%s14076_s1 + $0x158] ss:$28 sps:$4 sm:$0xff]   ;;  %v8163_v11 = vld [vmem:[%s14077_s0 + $0x28] ss:$20 sps:$4 sm:$0xff]   ;;  %v7385_v12 = vld [vmem:[%s14076_s1 + $0x124] ss:$28 sps:$4 sm:$0xff]  }
  0x1b   :  { %v7373_v13 = vld [vmem:[%s14077_s0 + $0x30] ss:$20 sps:$4 sm:$0xff]   ;;  %v8174_v14 = vld [vmem:[%s14077_s0 + $0x54] ss:$20 sps:$4 sm:$0xff]   ;;  %v7383_v18 = vld [vmem:[%s14076_s1 + $0x120] ss:$28 sps:$4 sm:$0xff]  }
  0x1c   :  { %2160 = vmatpush1.bf16.msra.mxu0 %v7303_v26  ;;  %v7424_v16 = vld [vmem:[%s14076_s1 + $0x7ac] ss:$28 sps:$4 sm:$0xff]   ;;  %v7379_v17 = vld [vmem:[%s14077_s0 + $0x5c] ss:$20 sps:$4 sm:$0xff]   ;;  %v7388_v25 = vld [vmem:[%s14077_s0 + $0x84] ss:$20 sps:$4 sm:$0xff]  }
  0x1d   :  { %2353 = vmatpush1.bf16.msra.mxu1 %v7304_v27  ;;  %2161 = vmatprep.subr.bf16.mxu0 %v7305_v28  ;;  %v7394_v19 = vld [vmem:[%s14076_s1 + $0xec] ss:$28 sps:$4 sm:$0xff]   ;;  %v8199_v21 = vld [vmem:[%s14077_s0 + $0x50] ss:$20 sps:$4 sm:$0xff]   ;;  %v7412_v27 = vld [vmem:[%s14076_s1 + $0x7c] ss:$28 sps:$4 sm:$0xff]  }
  0x1e   :  { %2354 = vmatprep.subr.bf16.mxu1 %v7307_v29  ;;  %v7392_v20 = vld [vmem:[%s14076_s1 + $0xe8] ss:$28 sps:$4 sm:$0xff]   ;;  %v7403_v22 = vld [vmem:[%s14076_s1 + $0xb4] ss:$28 sps:$4 sm:$0xff]   ;;  %v7382_v23 = vld [vmem:[%s14077_s0 + $0x58] ss:$20 sps:$4 sm:$0xff]  }
  0x1f   :  { %v8210_v24 = vld [vmem:[%s14077_s0 + $0x7c] ss:$20 sps:$4 sm:$0xff]   ;;  %v8226_v28 = vld [vmem:[%s14077_s0 + $0x78] ss:$20 sps:$4 sm:$0xff]   ;;  %v7391_v29 = vld [vmem:[%s14077_s0 + $0x80] ss:$20 sps:$4 sm:$0xff]  }
  0x20   :  { %2162 = vmatpush1.bf16.msra.mxu0 %v7309_v30  ;;  %v7401_v26 = vld [vmem:[%s14076_s1 + $0xb0] ss:$28 sps:$4 sm:$0xff]   ;;  %v7410_v30 = vld [vmem:[%s14076_s1 + $0x78] ss:$28 sps:$4 sm:$0xff]   ;;  %v7460_v48 = vld [vmem:[%s14076_s1 + $0x2e4] ss:$28 sps:$4 sm:$0xff]  }
  0x21   :  { %2355 = vmatpush1.bf16.msra.mxu1 %v7310_v31  ;;  %2163 = vmatprep.subr.bf16.mxu0 %v7311_v32  ;;  %v8237_v31 = vld [vmem:[%s14077_s0 + $0xa4] ss:$20 sps:$4 sm:$0xff]   ;;  %v8306_v50 = vld [vmem:[%s14077_s0 + $0xf4] ss:$20 sps:$4 sm:$0xff]  }
  0x22   :  { %2356 = vmatprep.subr.bf16.mxu1 %v7313_v33  ;;  %v7421_v32 = vld [vmem:[%s14076_s1 + $0x44] ss:$28 sps:$4 sm:$0xff]  }
  0x23   :  { %v7397_v33 = vld [vmem:[%s14077_s0 + $0xac] ss:$20 sps:$4 sm:$0xff]  }
  0x24   :  { %2164 = vmatpush2.bf16.msra.mxu0 %v7315_v34  ;;  %v7419_v34 = vld [vmem:[%s14076_s1 + $0x40] ss:$28 sps:$4 sm:$0xff]  }
  0x25   :  { %2357 = vmatpush2.bf16.msra.mxu1 %v7316_v35  ;;  %2165 = vmatprep.subr.bf16.mxu0 %v7317_v36  ;;  %v7433_v35 = vld [vmem:[%s14076_s1 + $0xc] ss:$28 sps:$4 sm:$0xff]   ;;  %v7463_v36 = vld [vmem:[%s14076_s1 + $0x774] ss:$28 sps:$4 sm:$0xff]  }
  0x26   :  { %2358 = vmatprep.subr.bf16.mxu1 %v7319_v37  ;;  %v7461_v37 = vld [vmem:[%s14076_s1 + $0x770] ss:$28 sps:$4 sm:$0xff]  }
  0x28   :  { %2166 = vmatpush2.bf16.msra.mxu0 %v7321_v38  ;;  %v7431_v38 = vld [vmem:[%s14076_s1 + $0x8] ss:$28 sps:$4 sm:$0xff]  }
  0x29   :  { %2359 = vmatpush2.bf16.msra.mxu1 %v7322_v39  ;;  %2167 = vmatprep.subr.bf16.mxu0 %v7323_v40  ;;  %v7442_v39 = vld [vmem:[%s14076_s1 + $0x354] ss:$28 sps:$4 sm:$0xff]  }
  0x2a   :  { %2360 = vmatprep.subr.bf16.mxu1 %v7325_v41  ;;  %v8268_v40 = vld [vmem:[%s14077_s0 + $0xa0] ss:$20 sps:$4 sm:$0xff]   ;;  %v7400_v41 = vld [vmem:[%s14077_s0 + $0xa8] ss:$20 sps:$4 sm:$0xff]  }
  0x2c   :  { %2168 = vmatpush2.bf16.msra.mxu0 %v7327_v42  ;;  %v8276_v42 = vld [vmem:[%s14077_s0 + $0xcc] ss:$20 sps:$4 sm:$0xff]  }
  0x2d   :  { %2361 = vmatpush2.bf16.msra.mxu1 %v7328_v43  ;;  %2169 = vmatprep.subr.bf16.mxu0 %v7329_v44  ;;  %v7406_v43 = vld [vmem:[%s14077_s0 + $0xd4] ss:$20 sps:$4 sm:$0xff]   ;;  %v7440_v44 = vld [vmem:[%s14076_s1 + $0x350] ss:$28 sps:$4 sm:$0xff]  }
  0x2e   :  { %2362 = vmatprep.subr.bf16.mxu1 %v7331_v45  ;;  %v7451_v45 = vld [vmem:[%s14076_s1 + $0x31c] ss:$28 sps:$4 sm:$0xff]  }
  0x30   :  { %2170 = vmatpush2.bf16.msra.mxu0 %v7333_v46  ;;  %v8292_v46 = vld [vmem:[%s14077_s0 + $0xc8] ss:$20 sps:$4 sm:$0xff]  }
  0x31   :  { %2363 = vmatpush2.bf16.msra.mxu1 %v7334_v47  ;;  %2171 = vmatprep.subr.bf16.mxu0 %v7335_v49  ;;  %v7449_v47 = vld [vmem:[%s14076_s1 + $0x318] ss:$28 sps:$4 sm:$0xff]   ;;  %v7409_v49 = vld [vmem:[%s14077_s0 + $0xd0] ss:$20 sps:$4 sm:$0xff]  }
  0x32   :  { %2364 = vmatprep.subr.bf16.mxu1 %v7337_v51  ;;  %v7415_v51 = vld [vmem:[%s14077_s0 + $0xfc] ss:$20 sps:$4 sm:$0xff]  }
  0x34   :  { %2172 = vmatpush2.bf16.msra.mxu0 %v7339_v52  ;;  %v7458_v52 = vld [vmem:[%s14076_s1 + $0x2e0] ss:$28 sps:$4 sm:$0xff]  }
  0x35   :  { %2365 = vmatpush2.bf16.msra.mxu1 %v7340_v53  ;;  %2173 = vmatprep.subr.bf16.mxu0 %v7341_v54  ;;  %v7472_v53 = vld [vmem:[%s14076_s1 + $0x2ac] ss:$28 sps:$4 sm:$0xff]   ;;  %v7500_v54 = vld [vmem:[%s14076_s1 + $0x738] ss:$28 sps:$4 sm:$0xff]  }
  0x36   :  { %2366 = vmatprep.subr.bf16.mxu1 %v7343_v55  ;;  %v7502_v55 = vld [vmem:[%s14076_s1 + $0x73c] ss:$28 sps:$4 sm:$0xff]  }
  0x38   :  { %2174 = vmatpush2.bf16.msra.mxu0 %v7345_v56  ;;  %v8328_v56 = vld [vmem:[%s14077_s0 + $0xf0] ss:$20 sps:$4 sm:$0xff]  }
  0x39   :  { %2367 = vmatpush2.bf16.msra.mxu1 %v7346_v57  ;;  %2175 = vmatprep.subr.bf16.mxu0 %v7347_v58  ;;  %v7418_v57 = vld [vmem:[%s14077_s0 + $0xf8] ss:$20 sps:$4 sm:$0xff]   ;;  %v7470_v58 = vld [vmem:[%s14076_s1 + $0x2a8] ss:$28 sps:$4 sm:$0xff]  }
  0x3a   :  { %2368 = vmatprep.subr.bf16.mxu1 %v7349_v59  ;;  %v8339_v59 = vld [vmem:[%s14077_s0 + $0x11c] ss:$20 sps:$4 sm:$0xff]  }
  0x3c   :  { %2176 = vmatpush2.bf16.msra.mxu0 %v7351_v60  ;;  %v7427_v60 = vld [vmem:[%s14077_s0 + $0x124] ss:$20 sps:$4 sm:$0xff]  }
  0x3d   :  { %2369 = vmatpush2.bf16.msra.mxu1 %v7352_v61  ;;  %2177 = vmatprep.subr.bf16.mxu0 %v7353_v62  ;;  %v7481_v61 = vld [vmem:[%s14076_s1 + $0x274] ss:$28 sps:$4 sm:$0xff]   ;;  %v7512_v62 = vld [vmem:[%s14076_s1 + $0x700] ss:$28 sps:$4 sm:$0xff]  }
  0x3e   :  { %2370 = vmatprep.subr.bf16.mxu1 %v7355_v63  ;;  %v7514_v63 = vld [vmem:[%s14076_s1 + $0x704] ss:$28 sps:$4 sm:$0xff]  }
  0x40   :  { %2178 = vmatpush2.bf16.msra.mxu0 %v7357_v0  ;;  %v7479_v0 = vld [vmem:[%s14076_s1 + $0x270] ss:$28 sps:$4 sm:$0xff]  }
  0x41   :  { %2371 = vmatpush2.bf16.msra.mxu1 %v7358_v1  ;;  %2541 = vmatprep.subr.bf16.mxu0 %v7424_v16  ;;  %v7490_v1 = vld [vmem:[%s14076_s1 + $0x23c] ss:$28 sps:$4 sm:$0xff]   ;;  %v8397_v16 = vld [vmem:[%s14077_s0 + $0x140] ss:$20 sps:$4 sm:$0xff]  }
  0x42   :  { %2726 = vmatprep.subr.bf16.mxu1 %v7367_v2  ;;  %v7518_v2 = vld [vmem:[%s14076_s1 + $0x514] ss:$28 sps:$4 sm:$0xff]  }
  0x43   :  { %2180 = vmatmul.mubr.bf16.vlgmr.msra.gmra.mxu0 %v8134_v3 }
  0x44   :  { %2373 = vmatmul.mubr.bf16.vlgmr.msra.gmra.mxu1 %v7364_v4  ;;  %2189 = vmatprep.mubr.bf16.mxu0 %v8147_v7  ;;  %v8367_v4 = vld [vmem:[%s14077_s0 + $0x118] ss:$20 sps:$4 sm:$0xff]  }
  0x45   :  { %2727 = vmatpush1.bf16.msra.mxu1 %v7365_v6  ;;  %2382 = vmatprep.mubr.bf16.mxu1 %v7370_v8  ;;  %v7488_v6 = vld [vmem:[%s14076_s1 + $0x238] ss:$28 sps:$4 sm:$0xff]  }
  0x46   :  { %2728 = vmatprep.subr.bf16.mxu1 %v7376_v9  ;;  %2542 = vmatpush1.bf16.msra.mxu0 %v7422_v15  ;;  %v7430_v8 = vld [vmem:[%s14077_s0 + $0x120] ss:$20 sps:$4 sm:$0xff]   ;;  %v7511_v15 = vld [vmem:[%s14076_s1 + $0x1cc] ss:$28 sps:$4 sm:$0xff]  }
  0x47   :  { %2543 = vmatprep.subr.bf16.mxu0 %v7463_v36  ;;  %v7499_v9 = vld [vmem:[%s14076_s1 + $0x204] ss:$28 sps:$4 sm:$0xff]  }
  0x48   :  { %v8467_v36 = vld [vmem:[%s14077_s0 + $0x1ec] ss:$20 sps:$4 sm:$0xff]  }
  0x49   :  { %2729 = vmatpush1.bf16.msra.mxu1 %v7374_v10  ;;  %v8381_v10 = vld [vmem:[%s14077_s0 + $0x144] ss:$20 sps:$4 sm:$0xff]  }
  0x4a   :  { %2730 = vmatprep.subr.bf16.mxu1 %v7385_v12  ;;  %2544 = vmatpush1.bf16.msra.mxu0 %v7461_v37  ;;  %v7436_v12 = vld [vmem:[%s14077_s0 + $0x14c] ss:$20 sps:$4 sm:$0xff]  }
  0x4b   :  { %2190 = vmatmul.mubr.bf16.gmra.mxu0 %v8163_v11  ;;  %2545 = vmatprep.subr.bf16.mxu0 %v7502_v55  ;;  %v8475_v37 = vld [vmem:[%s14077_s0 + $0x1e0] ss:$20 sps:$4 sm:$0xff]   ;;  %v7799_v55 = vld [vmem:[%s14077_s0 + $0x4] ss:$20 sps:$4 sm:$0xff]  }
  0x4c   :  { %2383 = vmatmul.mubr.bf16.gmra.mxu1 %v7373_v13  ;;  %2199 = vmatprep.mubr.bf16.mxu0 %v8174_v14  ;;  %v7497_v13 = vld [vmem:[%s14076_s1 + $0x200] ss:$28 sps:$4 sm:$0xff]  }
  0x4d   :  { %2392 = vmatprep.mubr.bf16.mxu1 %v7379_v17  ;;  %2731 = vmatpush1.bf16.msra.mxu1 %v7383_v18  ;;  %v7509_v17 = vld [vmem:[%s14076_s1 + $0x1c8] ss:$28 sps:$4 sm:$0xff]  }
  0x4e   :  { %2732 = vmatprep.subr.bf16.mxu1 %v7394_v19  ;;  %2546 = vmatpush1.bf16.msra.mxu0 %v7500_v54  ;;  %v7439_v18 = vld [vmem:[%s14077_s0 + $0x148] ss:$20 sps:$4 sm:$0xff]   ;;  %v8408_v19 = vld [vmem:[%s14077_s0 + $0x16c] ss:$20 sps:$4 sm:$0xff]  }
  0x4f   :  { %2547 = vmatprep.subr.bf16.mxu0 %v7514_v63  ;;  %v8552_v54 = vld [vmem:[%s14077_s0 + $0x260] ss:$20 sps:$4 sm:$0xff]   ;;  %v8585_v63 = vld [vmem:[%s14077_s0 + $0x38] ss:$20 sps:$4 sm:$0xff]  }
  0x51   :  { %2733 = vmatpush1.bf16.msra.mxu1 %v7392_v20  ;;  %v7445_v20 = vld [vmem:[%s14077_s0 + $0x174] ss:$20 sps:$4 sm:$0xff]  }
  0x52   :  { %2734 = vmatprep.subr.bf16.mxu1 %v7403_v22  ;;  %2548 = vmatpush1.bf16.msra.mxu0 %v7512_v62  ;;  %v8418_v22 = vld [vmem:[%s14077_s0 + $0x168] ss:$20 sps:$4 sm:$0xff]   ;;  %v7526_v62 = vld [vmem:[%s14076_s1 + $0x4a4] ss:$28 sps:$4 sm:$0xff]  }
  0x53   :  { %2200 = vmatmul.mubr.bf16.gmra.mxu0 %v8199_v21  ;;  %2919 = vmatprep.subr.bf16.mxu0 %v7518_v2 }
  0x54   :  { %2393 = vmatmul.mubr.bf16.gmra.mxu1 %v7382_v23  ;;  %2209 = vmatprep.mubr.bf16.mxu0 %v8210_v24  ;;  %v7448_v23 = vld [vmem:[%s14077_s0 + $0x170] ss:$20 sps:$4 sm:$0xff]  }
  0x55   :  { %2402 = vmatprep.mubr.bf16.mxu1 %v7388_v25  ;;  %2735 = vmatpush1.bf16.msra.mxu1 %v7401_v26  ;;  %v8426_v25 = vld [vmem:[%s14077_s0 + $0x194] ss:$20 sps:$4 sm:$0xff]   ;;  %v7454_v26 = vld [vmem:[%s14077_s0 + $0x19c] ss:$20 sps:$4 sm:$0xff]  }
  0x56   :  { %2736 = vmatprep.subr.bf16.mxu1 %v7412_v27  ;;  %v8436_v27 = vld [vmem:[%s14077_s0 + $0x190] ss:$20 sps:$4 sm:$0xff]  }
  0x59   :  { %2737 = vmatpush1.bf16.msra.mxu1 %v7410_v30  ;;  %v8444_v30 = vld [vmem:[%s14077_s0 + $0x1bc] ss:$20 sps:$4 sm:$0xff]  }
  0x5a   :  { %2738 = vmatprep.subr.bf16.mxu1 %v7421_v32  ;;  %v7466_v32 = vld [vmem:[%s14077_s0 + $0x1c4] ss:$20 sps:$4 sm:$0xff]  }
  0x5b   :  { %2210 = vmatmul.mubr.bf16.gmra.mxu0 %v8226_v28 }
  0x5c   :  { %2403 = vmatmul.mubr.bf16.gmra.mxu1 %v7391_v29  ;;  %2219 = vmatprep.mubr.bf16.mxu0 %v8237_v31  ;;  %v7457_v29 = vld [vmem:[%s14077_s0 + $0x198] ss:$20 sps:$4 sm:$0xff]  }
  0x5d   :  { %2412 = vmatprep.mubr.bf16.mxu1 %v7397_v33  ;;  %2739 = vmatpush1.bf16.msra.mxu1 %v7419_v34  ;;  %v8454_v33 = vld [vmem:[%s14077_s0 + $0x1b8] ss:$20 sps:$4 sm:$0xff]   ;;  %v7469_v34 = vld [vmem:[%s14077_s0 + $0x1c0] ss:$20 sps:$4 sm:$0xff]  }
  0x5e   :  { %2740 = vmatprep.subr.bf16.mxu1 %v7433_v35  ;;  %v8462_v35 = vld [vmem:[%s14077_s0 + $0x1e4] ss:$20 sps:$4 sm:$0xff]  }
  0x61   :  { %2741 = vmatpush1.bf16.msra.mxu1 %v7431_v38  ;;  %v8480_v38 = vld [vmem:[%s14077_s0 + $0x1e8] ss:$20 sps:$4 sm:$0xff]  }
  0x62   :  { %2742 = vmatprep.subr.bf16.mxu1 %v7442_v39  ;;  %v8485_v39 = vld [vmem:[%s14077_s0 + $0x20c] ss:$20 sps:$4 sm:$0xff]  }
  0x63   :  { %2220 = vmatmul.mubr.bf16.gmra.mxu0 %v8268_v40 }
  0x64   :  { %2413 = vmatmul.mubr.bf16.gmra.mxu1 %v7400_v41  ;;  %2229 = vmatprep.mubr.bf16.mxu0 %v8276_v42  ;;  %v8490_v41 = vld [vmem:[%s14077_s0 + $0x214] ss:$20 sps:$4 sm:$0xff]  }
  0x65   :  { %2422 = vmatprep.mubr.bf16.mxu1 %v7406_v43  ;;  %2743 = vmatpush2.bf16.msra.mxu1 %v7440_v44  ;;  %v8499_v43 = vld [vmem:[%s14077_s0 + $0x208] ss:$20 sps:$4 sm:$0xff]   ;;  %v8504_v44 = vld [vmem:[%s14077_s0 + $0x210] ss:$20 sps:$4 sm:$0xff]  }
  0x66   :  { %2744 = vmatprep.subr.bf16.mxu1 %v7451_v45  ;;  %v8509_v45 = vld [vmem:[%s14077_s0 + $0x234] ss:$20 sps:$4 sm:$0xff]  }
  0x69   :  { %2745 = vmatpush2.bf16.msra.mxu1 %v7449_v47  ;;  %v8514_v47 = vld [vmem:[%s14077_s0 + $0x23c] ss:$20 sps:$4 sm:$0xff]  }
  0x6a   :  { %2746 = vmatprep.subr.bf16.mxu1 %v7460_v48  ;;  %v8523_v48 = vld [vmem:[%s14077_s0 + $0x230] ss:$20 sps:$4 sm:$0xff]  }
  0x6b   :  { %2230 = vmatmul.mubr.bf16.gmra.mxu0 %v8292_v46 }
  0x6c   :  { %2423 = vmatmul.mubr.bf16.gmra.mxu1 %v7409_v49  ;;  %2239 = vmatprep.mubr.bf16.mxu0 %v8306_v50  ;;  %v8528_v49 = vld [vmem:[%s14077_s0 + $0x238] ss:$20 sps:$4 sm:$0xff]  }
  0x6d   :  { %2432 = vmatprep.mubr.bf16.mxu1 %v7415_v51  ;;  %2747 = vmatpush2.bf16.msra.mxu1 %v7458_v52  ;;  %v8533_v51 = vld [vmem:[%s14077_s0 + $0x25c] ss:$20 sps:$4 sm:$0xff]   ;;  %v8538_v52 = vld [vmem:[%s14077_s0 + $0x264] ss:$20 sps:$4 sm:$0xff]  }
  0x6e   :  { %2748 = vmatprep.subr.bf16.mxu1 %v7472_v53  ;;  %v8547_v53 = vld [vmem:[%s14077_s0 + $0x258] ss:$20 sps:$4 sm:$0xff]  }
  0x71   :  { %2749 = vmatpush2.bf16.msra.mxu1 %v7470_v58  ;;  %v7516_v58 = vld [vmem:[%s14076_s1 + $0x510] ss:$28 sps:$4 sm:$0xff]  }
  0x72   :  { %2750 = vmatprep.subr.bf16.mxu1 %v7481_v61  ;;  %v7520_v61 = vld [vmem:[%s14076_s1 + $0x4d8] ss:$28 sps:$4 sm:$0xff]  }
  0x73   :  { %2240 = vmatmul.mubr.bf16.gmra.mxu0 %v8328_v56 }
  0x74   :  { %2433 = vmatmul.mubr.bf16.gmra.mxu1 %v7418_v57  ;;  %2249 = vmatprep.mubr.bf16.mxu0 %v8339_v59  ;;  %v8563_v57 = vld [vmem:[%s14077_s0 + $0x10] ss:$20 sps:$4 sm:$0xff]  }
  0x75   :  { %2442 = vmatprep.mubr.bf16.mxu1 %v7427_v60  ;;  %2751 = vmatpush2.bf16.msra.mxu1 %v7479_v0  ;;  %v7522_v60 = vld [vmem:[%s14076_s1 + $0x4dc] ss:$28 sps:$4 sm:$0xff]   ;;  %v7530_v0 = vld [vmem:[%s14076_s1 + $0x46c] ss:$28 sps:$4 sm:$0xff]  }
  0x76   :  { %2752 = vmatprep.subr.bf16.mxu1 %v7490_v1  ;;  %v7534_v1 = vld [vmem:[%s14076_s1 + $0x434] ss:$28 sps:$4 sm:$0xff]  }
  0x79   :  { %2753 = vmatpush2.bf16.msra.mxu1 %v7488_v6  ;;  %v7536_v6 = vld [vmem:[%s14076_s1 + $0x3f8] ss:$28 sps:$4 sm:$0xff]  }
  0x7a   :  { %2754 = vmatprep.subr.bf16.mxu1 %v7499_v9  ;;  %v7546_v9 = vld [vmem:[%s14076_s1 + $0x38c] ss:$28 sps:$4 sm:$0xff]  }
  0x7b   :  { %2250 = vmatmul.mubr.bf16.gmra.mxu0 %v8367_v4 }
  0x7c   :  { %2443 = vmatmul.mubr.bf16.gmra.mxu1 %v7430_v8  ;;  %2259 = vmatprep.mubr.bf16.mxu0 %v8381_v10  ;;  %v7542_v8 = vld [vmem:[%s14076_s1 + $0x3c4] ss:$28 sps:$4 sm:$0xff]  }
  0x7d   :  { %2452 = vmatprep.mubr.bf16.mxu1 %v7436_v12  ;;  %2755 = vmatpush2.bf16.msra.mxu1 %v7497_v13  ;;  %v7544_v12 = vld [vmem:[%s14076_s1 + $0x388] ss:$28 sps:$4 sm:$0xff]   ;;  %v7550_v13 = vld [vmem:[%s14076_s1 + $0x6d4] ss:$28 sps:$4 sm:$0xff]  }
  0x7e   :  { %2756 = vmatprep.subr.bf16.mxu1 %v7511_v15  ;;  %v7554_v15 = vld [vmem:[%s14076_s1 + $0x69c] ss:$28 sps:$4 sm:$0xff]  }
  0x81   :  { %2757 = vmatpush2.bf16.msra.mxu1 %v7509_v17  ;;  %v7552_v17 = vld [vmem:[%s14076_s1 + $0x698] ss:$28 sps:$4 sm:$0xff]  }
  0x82   :  { %7228 = vmatprep.subr.bf16.mxu1 %v7518_v2  ;;  %v7538_v2 = vld [vmem:[%s14076_s1 + $0x3fc] ss:$28 sps:$4 sm:$0xff]  }
  0x83   :  { %2260 = vmatmul.mubr.bf16.gmra.mxu0 %v8397_v16 }
  0x84   :  { %2453 = vmatmul.mubr.bf16.gmra.mxu1 %v7439_v18  ;;  %2269 = vmatprep.mubr.bf16.mxu0 %v8408_v19  ;;  %v7558_v18 = vld [vmem:[%s14076_s1 + $0x664] ss:$28 sps:$4 sm:$0xff]  }
  0x85   :  { %2462 = vmatprep.mubr.bf16.mxu1 %v7445_v20  ;;  %v7562_v20 = vld [vmem:[%s14076_s1 + $0x62c] ss:$28 sps:$4 sm:$0xff]  }
  0x8b   :  { %2270 = vmatmul.mubr.bf16.gmra.mxu0 %v8418_v22 }
  0x8c   :  { %2463 = vmatmul.mubr.bf16.gmra.mxu1 %v7448_v23  ;;  %2279 = vmatprep.mubr.bf16.mxu0 %v8426_v25  ;;  %v7560_v23 = vld [vmem:[%s14076_s1 + $0x628] ss:$28 sps:$4 sm:$0xff]  }
  0x8d   :  { %2472 = vmatprep.mubr.bf16.mxu1 %v7454_v26  ;;  %v7566_v26 = vld [vmem:[%s14076_s1 + $0x5f4] ss:$28 sps:$4 sm:$0xff]  }
  0x93   :  { %2280 = vmatmul.mubr.bf16.gmra.mxu0 %v8436_v27 }
  0x94   :  { %2473 = vmatmul.mubr.bf16.gmra.mxu1 %v7457_v29  ;;  %2289 = vmatprep.mubr.bf16.mxu0 %v8444_v30  ;;  %v7570_v29 = vld [vmem:[%s14076_s1 + $0x5bc] ss:$28 sps:$4 sm:$0xff]  }
  0x95   :  { %2482 = vmatprep.mubr.bf16.mxu1 %v7466_v32  ;;  %v7568_v32 = vld [vmem:[%s14076_s1 + $0x5b8] ss:$28 sps:$4 sm:$0xff]  }
  0x9b   :  { %2290 = vmatmul.mubr.bf16.gmra.mxu0 %v8454_v33 }
  0x9c   :  { %2483 = vmatmul.mubr.bf16.gmra.mxu1 %v7469_v34  ;;  %2299 = vmatprep.mubr.bf16.mxu0 %v8462_v35  ;;  %v7574_v34 = vld [vmem:[%s14076_s1 + $0x584] ss:$28 sps:$4 sm:$0xff]  }
  0x9d   :  { %2492 = vmatprep.mubr.bf16.mxu1 %v8467_v36 }
  0xa3   :  { %2300 = vmatmul.mubr.bf16.gmra.mxu0 %v8475_v37 }
  0xa4   :  { %2493 = vmatmul.mubr.bf16.gmra.mxu1 %v8480_v38  ;;  %2309 = vmatprep.mubr.bf16.mxu0 %v8485_v39 }
  0xa5   :  { %2502 = vmatprep.mubr.bf16.mxu1 %v8490_v41 }
  0xab   :  { %2310 = vmatmul.mubr.bf16.gmra.mxu0 %v8499_v43 }
  0xac   :  { %2503 = vmatmul.mubr.bf16.gmra.mxu1 %v8504_v44  ;;  %2319 = vmatprep.mubr.bf16.mxu0 %v8509_v45 }
  0xad   :  { %2512 = vmatprep.mubr.bf16.mxu1 %v8514_v47 }
  0xb3   :  { %2320 = vmatmul.mubr.bf16.gmra.mxu0 %v8523_v48 }
  0xb4   :  { %2513 = vmatmul.mubr.bf16.gmra.mxu1 %v8528_v49  ;;  %2329 = vmatprep.mubr.bf16.mxu0 %v8533_v51 }
  0xb5   :  { %2522 = vmatprep.mubr.bf16.mxu1 %v8538_v52 }
  0xbb   :  { %2330 = vmatmul.mubr.bf16.gmra.mxu0 %v8547_v53 }
  0xbc   :  { %2523 = vmatmul.mubr.bf16.gmra.mxu1 %v8552_v54  ;;  %2565 = vmatprep.mubr.bf16.mxu0 %v14081_v5 }
  0xbd   :  { %2758 = vmatprep.mubr.bf16.mxu1 %v7799_v55  ;;  %v7578_v55 = vld [vmem:[%s14076_s1 + $0x54c] ss:$28 sps:$4 sm:$0xff]  }
  0xc3   :  { %6880 = vmatmul.mubr.msk.bf16.vlgmr.msra.gmra.mxu0 %vm2098_vm0, %v8563_v57 }
  0xc4   :  { %2759 = vmatmul.mubr.bf16.vlgmr.msra.gmra.mxu1 %v8134_v3  ;;  %2575 = vmatprep.mubr.bf16.mxu0 %v14081_v5  ;;  %v7524_v3 = vld [vmem:[%s14076_s1 + $0x4a0] ss:$28 sps:$4 sm:$0xff]  }
  0xc5   :  { %7244 = vmatpush1.bf16.msra.mxu1 %v7516_v58  ;;  %2768 = vmatprep.mubr.bf16.mxu1 %v8147_v7  ;;  %v7528_v7 = vld [vmem:[%s14076_s1 + $0x468] ss:$28 sps:$4 sm:$0xff]  }
  0xc6   :  { %7229 = vmatprep.subr.bf16.mxu1 %v7522_v60  ;;  %2920 = vmatpush1.bf16.msra.mxu0 %v7516_v58  ;;  %v7576_v58 = vld [vmem:[%s14076_s1 + $0x548] ss:$28 sps:$4 sm:$0xff]  }
  0xc7   :  { %2921 = vmatprep.subr.bf16.mxu0 %v7522_v60  ;;  %v7581_v60 = vld [vmem:[%s14076_s1 + $0x7b4] ss:$28 sps:$4 sm:$0xff]  }
  0xc9   :  { %7245 = vmatpush1.bf16.msra.mxu1 %v7520_v61 }
  0xca   :  { %7230 = vmatprep.subr.bf16.mxu1 %v7526_v62  ;;  %2922 = vmatpush1.bf16.msra.mxu0 %v7520_v61 }
  0xcb   :  { %6881 = vmatmul.mubr.msk.bf16.gmra.mxu0 %vm2098_vm0, %v8585_v63  ;;  %2923 = vmatprep.subr.bf16.mxu0 %v7526_v62 }
  0xcc   :  { %2769 = vmatmul.mubr.bf16.gmra.mxu1 %v8163_v11  ;;  %2585 = vmatprep.mubr.bf16.mxu0 %v14081_v5  ;;  %v8607_v11 = vld [vmem:[%s14077_s0 + $0x60] ss:$20 sps:$4 sm:$0xff]  }
  0xcd   :  { %2778 = vmatprep.mubr.bf16.mxu1 %v8174_v14  ;;  %7246 = vmatpush1.bf16.msra.mxu1 %v7524_v3  ;;  %v7532_v14 = vld [vmem:[%s14076_s1 + $0x430] ss:$28 sps:$4 sm:$0xff]  }
  0xce   :  { %7231 = vmatprep.subr.bf16.mxu1 %v7530_v0  ;;  %2924 = vmatpush1.bf16.msra.mxu0 %v7524_v3 }
  0xcf   :  { %2925 = vmatprep.subr.bf16.mxu0 %v7530_v0 }
  0xd1   :  { %7247 = vmatpush1.bf16.msra.mxu1 %v7528_v7 }
  0xd2   :  { %7232 = vmatprep.subr.bf16.mxu1 %v7534_v1  ;;  %2926 = vmatpush1.bf16.msra.mxu0 %v7528_v7 }
  0xd3   :  { %6882 = vmatmul.mubr.msk.bf16.gmra.mxu0 %vm2098_vm0, %v8607_v11  ;;  %2927 = vmatprep.subr.bf16.mxu0 %v7534_v1 }
  0xd4   :  { %2779 = vmatmul.mubr.bf16.gmra.mxu1 %v8199_v21  ;;  %2595 = vmatprep.mubr.bf16.mxu0 %v14081_v5  ;;  %v8629_v21 = vld [vmem:[%s14077_s0 + $0x88] ss:$20 sps:$4 sm:$0xff]  }
  0xd5   :  { %2788 = vmatprep.mubr.bf16.mxu1 %v8210_v24  ;;  %7248 = vmatpush1.bf16.msra.mxu1 %v7532_v14  ;;  %v7540_v24 = vld [vmem:[%s14076_s1 + $0x3c0] ss:$28 sps:$4 sm:$0xff]  }
  0xd6   :  { %7233 = vmatprep.subr.bf16.mxu1 %v7538_v2  ;;  %2928 = vmatpush1.bf16.msra.mxu0 %v7532_v14 }
  0xd7   :  { %2929 = vmatprep.subr.bf16.mxu0 %v7538_v2 }
  0xd9   :  { %7249 = vmatpush1.bf16.msra.mxu1 %v7536_v6 }
  0xda   :  { %7234 = vmatprep.subr.bf16.mxu1 %v7542_v8  ;;  %2930 = vmatpush1.bf16.msra.mxu0 %v7536_v6  ;;  %v8756_v6 = vld [vmem:[%s14077_s0 + $0x178] ss:$20 sps:$4 sm:$0xff]  }
  0xdb   :  { %6883 = vmatmul.mubr.msk.bf16.gmra.mxu0 %vm2098_vm0, %v8629_v21  ;;  %2931 = vmatprep.subr.bf16.mxu0 %v7542_v8 }
  0xdc   :  { %2789 = vmatmul.mubr.bf16.gmra.mxu1 %v8226_v28  ;;  %2605 = vmatprep.mubr.bf16.mxu0 %v14081_v5  ;;  %v8651_v28 = vld [vmem:[%s14077_s0 + $0xb0] ss:$20 sps:$4 sm:$0xff]  }
  0xdd   :  { %2798 = vmatprep.mubr.bf16.mxu1 %v8237_v31  ;;  %7250 = vmatpush1.bf16.msra.mxu1 %v7540_v24  ;;  %v7548_v31 = vld [vmem:[%s14076_s1 + $0x6d0] ss:$28 sps:$4 sm:$0xff]  }
  0xde   :  { %7235 = vmatprep.subr.bf16.mxu1 %v7546_v9  ;;  %2932 = vmatpush1.bf16.msra.mxu0 %v7540_v24 }
  0xdf   :  { %2933 = vmatprep.subr.bf16.mxu0 %v7546_v9 }
  0xe1   :  { %7251 = vmatpush1.bf16.msra.mxu1 %v7544_v12 }
  0xe2   :  { %7236 = vmatprep.subr.bf16.mxu1 %v7550_v13  ;;  %2934 = vmatpush1.bf16.msra.mxu0 %v7544_v12 }
  0xe3   :  { %6884 = vmatmul.mubr.msk.bf16.gmra.mxu0 %vm2098_vm0, %v8651_v28  ;;  %2935 = vmatprep.subr.bf16.mxu0 %v7550_v13 }
  0xe4   :  { %2799 = vmatmul.mubr.bf16.gmra.mxu1 %v8268_v40  ;;  %2615 = vmatprep.mubr.bf16.mxu0 %v14081_v5  ;;  %v8673_v40 = vld [vmem:[%s14077_s0 + $0xd8] ss:$20 sps:$4 sm:$0xff]  }
  0xe5   :  { %2808 = vmatprep.mubr.bf16.mxu1 %v8276_v42  ;;  %7252 = vmatpush2.bf16.msra.mxu1 %v7548_v31  ;;  %v7556_v42 = vld [vmem:[%s14076_s1 + $0x660] ss:$28 sps:$4 sm:$0xff]  }
  0xe6   :  { %7237 = vmatprep.subr.bf16.mxu1 %v7554_v15  ;;  %2936 = vmatpush2.bf16.msra.mxu0 %v7548_v31 }
  0xe7   :  { %2937 = vmatprep.subr.bf16.mxu0 %v7554_v15 }
  0xe9   :  { %7253 = vmatpush2.bf16.msra.mxu1 %v7552_v17 }
  0xea   :  { %7238 = vmatprep.subr.bf16.mxu1 %v7558_v18  ;;  %2938 = vmatpush2.bf16.msra.mxu0 %v7552_v17 }
  0xeb   :  { %6885 = vmatmul.mubr.msk.bf16.gmra.mxu0 %vm2098_vm0, %v8673_v40  ;;  %2939 = vmatprep.subr.bf16.mxu0 %v7558_v18 }
  0xec   :  { %2809 = vmatmul.mubr.bf16.gmra.mxu1 %v8292_v46  ;;  %2625 = vmatprep.mubr.bf16.mxu0 %v14081_v5  ;;  %v8695_v46 = vld [vmem:[%s14077_s0 + $0x100] ss:$20 sps:$4 sm:$0xff]  }
  0xed   :  { %2818 = vmatprep.mubr.bf16.mxu1 %v8306_v50  ;;  %7254 = vmatpush2.bf16.msra.mxu1 %v7556_v42  ;;  %v7564_v50 = vld [vmem:[%s14076_s1 + $0x5f0] ss:$28 sps:$4 sm:$0xff]  }
  0xee   :  { %7239 = vmatprep.subr.bf16.mxu1 %v7562_v20  ;;  %2940 = vmatpush2.bf16.msra.mxu0 %v7556_v42 }
  0xef   :  { %2941 = vmatprep.subr.bf16.mxu0 %v7562_v20  ;;  %v8774_v20 = vld [vmem:[%s14077_s0 + $0x1a0] ss:$20 sps:$4 sm:$0xff]  }
  0xf1   :  { %7255 = vmatpush2.bf16.msra.mxu1 %v7560_v23 }
  0xf2   :  { %7240 = vmatprep.subr.bf16.mxu1 %v7566_v26  ;;  %2942 = vmatpush2.bf16.msra.mxu0 %v7560_v23 }
  0xf3   :  { %6886 = vmatmul.mubr.msk.bf16.gmra.mxu0 %vm2098_vm0, %v8695_v46  ;;  %2943 = vmatprep.subr.bf16.mxu0 %v7566_v26 }
  0xf4   :  { %2819 = vmatmul.mubr.bf16.gmra.mxu1 %v8328_v56  ;;  %2635 = vmatprep.mubr.bf16.mxu0 %v14081_v5  ;;  %v8717_v56 = vld [vmem:[%s14077_s0 + $0x128] ss:$20 sps:$4 sm:$0xff]  }
  0xf5   :  { %2828 = vmatprep.mubr.bf16.mxu1 %v8339_v59  ;;  %7256 = vmatpush2.bf16.msra.mxu1 %v7564_v50  ;;  %v7572_v59 = vld [vmem:[%s14076_s1 + $0x580] ss:$28 sps:$4 sm:$0xff]  }
  0xf6   :  { %7241 = vmatprep.subr.bf16.mxu1 %v7570_v29  ;;  %2944 = vmatpush2.bf16.msra.mxu0 %v7564_v50 }
  0xf7   :  { %2945 = vmatprep.subr.bf16.mxu0 %v7570_v29 }
  0xf9   :  { %7257 = vmatpush2.bf16.msra.mxu1 %v7568_v32 }
  0xfa   :  { %7242 = vmatprep.subr.bf16.mxu1 %v7574_v34  ;;  %2946 = vmatpush2.bf16.msra.mxu0 %v7568_v32 }
  0xfb   :  { %6887 = vmatmul.mubr.msk.bf16.gmra.mxu0 %vm2098_vm0, %v8717_v56  ;;  %2947 = vmatprep.subr.bf16.mxu0 %v7574_v34 }
  0xfc   :  { %2829 = vmatmul.mubr.bf16.gmra.mxu1 %v8367_v4  ;;  %2645 = vmatprep.mubr.bf16.mxu0 %v14081_v5  ;;  %v8739_v4 = vld [vmem:[%s14077_s0 + $0x150] ss:$20 sps:$4 sm:$0xff]  }
  0xfd   :  { %2838 = vmatprep.mubr.bf16.mxu1 %v8381_v10  ;;  %7258 = vmatpush2.bf16.msra.mxu1 %v7572_v59  ;;  %v7593_v10 = vld [vmem:[%s14076_s1 + $0x19c] ss:$28 sps:$4 sm:$0xff]  }
  0xfe   :  { %7243 = vmatprep.subr.bf16.mxu1 %v7578_v55  ;;  %2948 = vmatpush2.bf16.msra.mxu0 %v7572_v59 }
  0xff   :  { %2949 = vmatprep.subr.bf16.mxu0 %v7578_v55 }
 0x101   :  { %7259 = vmatpush2.bf16.msra.mxu1 %v7576_v58 }
 0x102   :  { %2950 = vmatpush2.bf16.msra.mxu0 %v7576_v58  ;;  %3120 = vmatprep.subr.bf16.mxu1 %v7581_v60 }
 0x103   :  { %v2181_v61 = vpop.f32.mrf.mxu0  ;;  %6888 = vmatmul.mubr.msk.bf16.gmra.mxu0 %vm2098_vm0, %v8739_v4  ;;  %3305 = vmatprep.subr.bf16.mxu0 %v7593_v10  ;;  %v8792_v10 = vld [vmem:[%s14077_s0 + $0x1c8] ss:$20 sps:$4 sm:$0xff]  }
 0x104   :  { %v2374_v62 = vpop.f32.mrf.mxu1  ;;  %2839 = vmatmul.mubr.bf16.gmra.mxu1 %v8397_v16  ;;  %2655 = vmatprep.mubr.bf16.mxu0 %v14081_v5 }
 0x105   :  { %v8747_v3 = vadd.f32 %v2374_v62, %v2181_v61  ;;  %2848 = vmatprep.mubr.bf16.mxu1 %v8408_v19  ;;  %v2183_v0 = vpop.f32.mrf.mxu0 }
 0x106   :  { %v2376_v7 = vpop.f32.mrf.mxu1 }
 0x107   :  { %v8751_v1 = vadd.f32 %v2376_v7, %v2183_v0  ;;  %v2185_v14 = vpop.f32.mrf.mxu0 }
 0x108   :  { %v2378_v2 = vpop.f32.mrf.mxu1 }
 0x109   :  { %v8758_v8 = vadd.f32 %v2378_v2, %v2185_v14  ;;  %v2187_v16 = vpop.f32.mrf.mxu0 }
 0x10a   :  { %v2380_v24 = vpop.f32.mrf.mxu1 }
 0x10b   :  { %v8760_v9 = vadd.f32 %v2380_v24, %v2187_v16  ;;  %v2191_v12 = vpop.f32.mrf.mxu0  ;;  %6889 = vmatmul.mubr.msk.bf16.gmra.mxu0 %vm2098_vm0, %v8756_v6 }
 0x10c   :  { %v2384_v19 = vpop.f32.mrf.mxu1  ;;  %2849 = vmatmul.mubr.bf16.gmra.mxu1 %v8418_v22  ;;  %2665 = vmatprep.mubr.bf16.mxu0 %v14081_v5 }
 0x10d   :  { %v8765_v13 = vadd.f32 %v2384_v19, %v2191_v12  ;;  %2858 = vmatprep.mubr.bf16.mxu1 %v8426_v25  ;;  %v2193_v31 = vpop.f32.mrf.mxu0 }
 0x10e   :  { %v2386_v15 = vpop.f32.mrf.mxu1 }
 0x10f   :  { %v8769_v17 = vadd.f32 %v2386_v15, %v2193_v31  ;;  %v2195_v18 = vpop.f32.mrf.mxu0  ;;  %v8810_v31 = vld [vmem:[%s14077_s0 + $0x1f0] ss:$20 sps:$4 sm:$0xff]  }
 0x110   :  { %v2388_v42 = vpop.f32.mrf.mxu1 }
 0x111   :  { %v8776_v23 = vadd.f32 %v2388_v42, %v2195_v18  ;;  %v2197_v22 = vpop.f32.mrf.mxu0 }
 0x112   :  { %v2390_v26 = vpop.f32.mrf.mxu1 }
 0x113   :  { %v8778_v50 = vadd.f32 %v2390_v26, %v2197_v22  ;;  %v2201_v29 = vpop.f32.mrf.mxu0  ;;  %6890 = vmatmul.mubr.msk.bf16.gmra.mxu0 %vm2098_vm0, %v8774_v20 }
 0x114   :  { %v2394_v32 = vpop.f32.mrf.mxu1  ;;  %2859 = vmatmul.mubr.bf16.gmra.mxu1 %v8436_v27  ;;  %2675 = vmatprep.mubr.bf16.mxu0 %v14081_v5 }
 0x115   :  { %v8783_v25 = vadd.f32 %v2394_v32, %v2201_v29  ;;  %2868 = vmatprep.mubr.bf16.mxu1 %v8444_v30  ;;  %v2203_v34 = vpop.f32.mrf.mxu0 }
 0x116   :  { %v2396_v59 = vpop.f32.mrf.mxu1 }
 0x117   :  { %v8787_v55 = vadd.f32 %v2396_v59, %v2203_v34  ;;  %v2205_v58 = vpop.f32.mrf.mxu0 }
 0x118   :  { %v2398_v60 = vpop.f32.mrf.mxu1 }
 0x119   :  { %v8794_v61 = vadd.f32 %v2398_v60, %v2205_v58  ;;  %v2207_v27 = vpop.f32.mrf.mxu0  ;;  %v8828_v60 = vld [vmem:[%s14077_s0 + $0x218] ss:$20 sps:$4 sm:$0xff]  }
 0x11a   :  { %v2400_v62 = vpop.f32.mrf.mxu1  ;;  %14543 = vst [vmem:[#allocation2_spill] sm:$0xff] %v8828_v60 }
 0x11b   :  { %v8796_v0 = vadd.f32 %v2400_v62, %v2207_v27  ;;  %v2211_v7 = vpop.f32.mrf.mxu0  ;;  %6891 = vmatmul.mubr.msk.bf16.gmra.mxu0 %vm2098_vm0, %v8792_v10 }
 0x11c   :  { %v2404_v14 = vpop.f32.mrf.mxu1  ;;  %2869 = vmatmul.mubr.bf16.gmra.mxu1 %v8454_v33  ;;  %2685 = vmatprep.mubr.bf16.mxu0 %v14081_v5 }
 0x11d   :  { %v8801_v30 = vadd.f32 %v2404_v14, %v2211_v7  ;;  %2878 = vmatprep.mubr.bf16.mxu1 %v8462_v35  ;;  %v2213_v2 = vpop.f32.mrf.mxu0 }
 0x11e   :  { %v2406_v16 = vpop.f32.mrf.mxu1 }
 0x11f   :  { %v8805_v24 = vadd.f32 %v2406_v16, %v2213_v2  ;;  %v2215_v12 = vpop.f32.mrf.mxu0 }
 0x120   :  { %v2408_v19 = vpop.f32.mrf.mxu1 }
 0x121   :  { %v8812_v15 = vadd.f32 %v2408_v19, %v2215_v12  ;;  %v2217_v33 = vpop.f32.mrf.mxu0 }
 0x122   :  { %v2410_v18 = vpop.f32.mrf.mxu1 }
 0x123   :  { %v8814_v42 = vadd.f32 %v2410_v18, %v2217_v33  ;;  %v2221_v22 = vpop.f32.mrf.mxu0  ;;  %6892 = vmatmul.mubr.msk.bf16.gmra.mxu0 %vm2098_vm0, %v8810_v31 }
 0x124   :  { %v2414_v26 = vpop.f32.mrf.mxu1  ;;  %2879 = vmatmul.mubr.bf16.gmra.mxu1 %v8475_v37  ;;  %2695 = vmatprep.mubr.bf16.mxu0 %v14081_v5 }
 0x125   :  { %v8819_v35 = vadd.f32 %v2414_v26, %v2221_v22  ;;  %2888 = vmatprep.mubr.bf16.mxu1 %v8485_v39  ;;  %v2223_v29 = vpop.f32.mrf.mxu0  ;;  %v8846_v22 = vld [vmem:[%s14077_s0 + $0x240] ss:$20 sps:$4 sm:$0xff]  }
 0x126   :  { %v2416_v32 = vpop.f32.mrf.mxu1  ;;  %14544 = vst [vmem:[#allocation3_spill] sm:$0xff] %v8846_v22 }
 0x127   :  { %v8823_v34 = vadd.f32 %v2416_v32, %v2223_v29  ;;  %v2225_v59 = vpop.f32.mrf.mxu0 }
 0x128   :  { %v2418_v58 = vpop.f32.mrf.mxu1 }
 0x129   :  { %v8830_v27 = vadd.f32 %v2418_v58, %v2225_v59  ;;  %v2227_v37 = vpop.f32.mrf.mxu0 }
 0x12a   :  { %v2420_v62 = vpop.f32.mrf.mxu1 }
 0x12b   :  { %v8832_v7 = vadd.f32 %v2420_v62, %v2227_v37  ;;  %v2231_v14 = vpop.f32.mrf.mxu0  ;;  %6893 = vmatmul.mubr.msk.bf16.gmra.mxu0 %vm2098_vm0, %v8828_v60 }
 0x12c   :  { %v2424_v2 = vpop.f32.mrf.mxu1  ;;  %2889 = vmatmul.mubr.bf16.gmra.mxu1 %v8499_v43  ;;  %2705 = vmatprep.mubr.bf16.mxu0 %v14081_v5 }
 0x12d   :  { %v8837_v39 = vadd.f32 %v2424_v2, %v2231_v14  ;;  %2898 = vmatprep.mubr.bf16.mxu1 %v8509_v45  ;;  %v2233_v16 = vpop.f32.mrf.mxu0 }
 0x12e   :  { %v2426_v12 = vpop.f32.mrf.mxu1 }
 0x12f   :  { %v8841_v19 = vadd.f32 %v2426_v12, %v2233_v16  ;;  %v2235_v33 = vpop.f32.mrf.mxu0  ;;  %v8864_v12 = vld [vmem:[%s14077_s0 + $0x268] ss:$20 sps:$4 sm:$0xff]  }
 0x130   :  { %v2428_v18 = vpop.f32.mrf.mxu1  ;;  %14545 = vst [vmem:[#allocation4_spill] sm:$0xff] %v8864_v12 }
 0x131   :  { %v8848_v26 = vadd.f32 %v2428_v18, %v2235_v33  ;;  %v2237_v43 = vpop.f32.mrf.mxu0 }
 0x132   :  { %v2430_v29 = vpop.f32.mrf.mxu1 }
 0x133   :  { %v8850_v32 = vadd.f32 %v2430_v29, %v2237_v43  ;;  %v2241_v59 = vpop.f32.mrf.mxu0  ;;  %6894 = vmatmul.mubr.msk.bf16.gmra.mxu0 %vm2098_vm0, %v8846_v22 }
 0x134   :  { %v2434_v58 = vpop.f32.mrf.mxu1  ;;  %2899 = vmatmul.mubr.bf16.gmra.mxu1 %v8523_v48  ;;  %2715 = vmatprep.mubr.bf16.mxu0 %v14081_v5  ;;  %v7584_v5 = vld [vmem:[%s14076_s1 + $0x77c] ss:$28 sps:$4 sm:$0xff]  }
 0x135   :  { %v8855_v45 = vadd.f32 %v2434_v58, %v2241_v59  ;;  %2908 = vmatprep.mubr.bf16.mxu1 %v8533_v51  ;;  %v2243_v37 = vpop.f32.mrf.mxu0  ;;  %v8878_v58 = vld [vmem:[%s14077_s0 + $0xc] ss:$20 sps:$4 sm:$0xff]  }
 0x136   :  { %v2436_v62 = vpop.f32.mrf.mxu1  ;;  %14546 = vst [vmem:[#allocation5_spill] sm:$0xff] %v8878_v58 }
 0x137   :  { %v8859_v14 = vadd.f32 %v2436_v62, %v2243_v37  ;;  %v2245_v2 = vpop.f32.mrf.mxu0 }
 0x138   :  { %v2438_v16 = vpop.f32.mrf.mxu1 }
 0x139   :  { %v8866_v33 = vadd.f32 %v2438_v16, %v2245_v2  ;;  %v2247_v48 = vpop.f32.mrf.mxu0 }
 0x13a   :  { %v2440_v18 = vpop.f32.mrf.mxu1 }
 0x13b   :  { %v8868_v43 = vadd.f32 %v2440_v18, %v2247_v48  ;;  %v2251_v29 = vpop.f32.mrf.mxu0  ;;  %6895 = vmatmul.mubr.msk.bf16.gmra.mxu0 %vm2098_vm0, %v8864_v12 }
 0x13c   :  { %v2444_v59 = vpop.f32.mrf.mxu1  ;;  %2909 = vmatmul.mubr.bf16.gmra.mxu1 %v8547_v53  ;;  %2951 = vmatprep.mubr.bf16.mxu0 %v8878_v58  ;;  %v7579_v53 = vld [vmem:[%s14076_s1 + $0x7b0] ss:$28 sps:$4 sm:$0xff]  }
 0x13d   :  { %v8873_v51 = vadd.f32 %v2444_v59, %v2251_v29  ;;  %3071 = vmatprep.mubr.bf16.mxu1 %v8467_v36  ;;  %v2253_v37 = vpop.f32.mrf.mxu0  ;;  %v7591_v36 = vld [vmem:[%s14076_s1 + $0x198] ss:$28 sps:$4 sm:$0xff]  }
 0x13e   :  { %v2446_v62 = vpop.f32.mrf.mxu1 }
 0x13f   :  { %v8882_v2 = vadd.f32 %v2446_v62, %v2253_v37  ;;  %v2255_v16 = vpop.f32.mrf.mxu0 }
 0x140   :  { %v2448_v48 = vpop.f32.mrf.mxu1 }
 0x141   :  { %v8884_v18 = vadd.f32 %v2448_v48, %v2255_v16  ;;  %v2257_v29 = vpop.f32.mrf.mxu0  ;;  %v8900_v16 = vld [vmem:[%s14077_s0 + $0x8] ss:$20 sps:$4 sm:$0xff]   ;;  %v7599_v48 = vld [vmem:[%s14076_s1 + $0x164] ss:$28 sps:$4 sm:$0xff]  }
 0x142   :  { %v2450_v59 = vpop.f32.mrf.mxu1  ;;  %14547 = vst [vmem:[#allocation6_spill] sm:$0xff] %v8900_v16 }
 0x143   :  { %v8892_v58 = vadd.f32 %v2450_v59, %v2257_v29  ;;  %v2261_v37 = vpop.f32.mrf.mxu0  ;;  %2952 = vmatmul.mubr.bf16.vlgmr.msra.gmra.mxu0 %v8900_v16  ;;  %v8912_v59 = vld [vmem:[%s14077_s0 + $0x34] ss:$20 sps:$4 sm:$0xff]  }
 0x144   :  { %v2454_v62 = vpop.f32.mrf.mxu1  ;;  %3072 = vmatmul.mubr.bf16.vlgmr.msra.gmra.mxu1 %v8480_v38  ;;  %14549 = vst [vmem:[#allocation8_spill] sm:$0xff] %v8912_v59  ;;  %2961 = vmatprep.mubr.bf16.mxu0 %v8912_v59  ;;  %v7582_v16 = vld [vmem:[%s14076_s1 + $0x778] ss:$28 sps:$4 sm:$0xff]  }
 0x145   :  { %v8907_v29 = vadd.f32 %v2454_v62, %v2261_v37  ;;  %3121 = vmatpush1.bf16.msra.mxu1 %v7579_v53  ;;  %v2263_v12 = vpop.f32.mrf.mxu0  ;;  %3081 = vmatprep.mubr.bf16.mxu1 %v8490_v41  ;;  %v7587_v53 = vld [vmem:[%s14076_s1 + $0x744] ss:$28 sps:$4 sm:$0xff]  }
 0x146   :  { %v2456_v38 = vpop.f32.mrf.mxu1  ;;  %3122 = vmatprep.subr.bf16.mxu1 %v7584_v5  ;;  %3306 = vmatpush1.bf16.msra.mxu0 %v7591_v36  ;;  %v7597_v62 = vld [vmem:[%s14076_s1 + $0x160] ss:$28 sps:$4 sm:$0xff]  }
 0x147   :  { %14548 = vst [vmem:[#allocation7_spill] sm:$0xff] %v8907_v29  ;;  %v8922_v37 = vadd.f32 %v2456_v38, %v2263_v12  ;;  %v2265_v59 = vpop.f32.mrf.mxu0  ;;  %3307 = vmatprep.subr.bf16.mxu0 %v7599_v48  ;;  %v7585_v5 = vld [vmem:[%s14076_s1 + $0x740] ss:$28 sps:$4 sm:$0xff]   ;;  %v7602_v12 = vld [vmem:[%s14076_s1 + $0x12c] ss:$28 sps:$4 sm:$0xff]  }
 0x148   :  { %v2458_v22 = vpop.f32.mrf.mxu1  ;;  %v7590_v48 = vld [vmem:[%s14076_s1 + $0x70c] ss:$28 sps:$4 sm:$0xff]   ;;  %v8946_v38 = vld [vmem:[%s14077_s0 + $0x30] ss:$20 sps:$4 sm:$0xff]  }
 0x149   :  { %v8927_v60 = vadd.f32 %v2458_v22, %v2265_v59  ;;  %3123 = vmatpush1.bf16.msra.mxu1 %v7582_v16  ;;  %v2267_v29 = vpop.f32.mrf.mxu0  ;;  %v7600_v22 = vld [vmem:[%s14076_s1 + $0x128] ss:$28 sps:$4 sm:$0xff]   ;;  %14552 = vst [vmem:[#allocation11_spill] sm:$0xff] %v8946_v38 }
 0x14a   :  { %v2460_v41 = vpop.f32.mrf.mxu1  ;;  %3124 = vmatprep.subr.bf16.mxu1 %v7587_v53  ;;  %3308 = vmatpush1.bf16.msra.mxu0 %v7597_v62  ;;  %v8958_v62 = vld [vmem:[%s14077_s0 + $0x5c] ss:$20 sps:$4 sm:$0xff]  }
 0x14b   :  { %14550 = vst [vmem:[#allocation9_spill] sm:$0xff] %v8927_v60  ;;  %v8935_v36 = vadd.f32 %v2460_v41, %v2267_v29  ;;  %v2271_v16 = vpop.f32.mrf.mxu0  ;;  %2962 = vmatmul.mubr.bf16.gmra.mxu0 %v8946_v38  ;;  %v7608_v29 = vld [vmem:[%s14076_s1 + $0xf4] ss:$28 sps:$4 sm:$0xff]   ;;  %14554 = vst [vmem:[#allocation13_spill] sm:$0xff] %v8958_v62  ;;  %3309 = vmatprep.subr.bf16.mxu0 %v7602_v12  ;;  %v7611_v12 = vld [vmem:[%s14076_s1 + $0xbc] ss:$28 sps:$4 sm:$0xff]  }
 0x14c   :  { %v2464_v59 = vpop.f32.mrf.mxu1  ;;  %3082 = vmatmul.mubr.bf16.gmra.mxu1 %v8504_v44  ;;  %2971 = vmatprep.mubr.bf16.mxu0 %v8958_v62  ;;  %v7588_v44 = vld [vmem:[%s14076_s1 + $0x708] ss:$28 sps:$4 sm:$0xff]  }
 0x14d   :  { %14551 = vst [vmem:[#allocation10_spill] sm:$0xff] %v8935_v36  ;;  %v8953_v53 = vadd.f32 %v2464_v59, %v2271_v16  ;;  %3091 = vmatprep.mubr.bf16.mxu1 %v8514_v47  ;;  %v2273_v41 = vpop.f32.mrf.mxu0  ;;  %3125 = vmatpush1.bf16.msra.mxu1 %v7585_v5  ;;  %v7596_v16 = vld [vmem:[%s14076_s1 + $0x51c] ss:$28 sps:$4 sm:$0xff]   ;;  %v7606_v47 = vld [vmem:[%s14076_s1 + $0xf0] ss:$28 sps:$4 sm:$0xff]  }
 0x14e   :  { %v2466_v36 = vpop.f32.mrf.mxu1  ;;  %3126 = vmatprep.subr.bf16.mxu1 %v7590_v48  ;;  %3310 = vmatpush1.bf16.msra.mxu0 %v7600_v22  ;;  %v7609_v48 = vld [vmem:[%s14076_s1 + $0xb8] ss:$28 sps:$4 sm:$0xff]  }
 0x14f   :  { %14553 = vst [vmem:[#allocation12_spill] sm:$0xff] %v8953_v53  ;;  %v8965_v38 = vadd.f32 %v2466_v36, %v2273_v41  ;;  %v2275_v59 = vpop.f32.mrf.mxu0  ;;  %3311 = vmatprep.subr.bf16.mxu0 %v7608_v29  ;;  %v8986_v29 = vld [vmem:[%s14077_s0 + $0x58] ss:$20 sps:$4 sm:$0xff]  }
 0x150   :  { %v2468_v62 = vpop.f32.mrf.mxu1  ;;  %14555 = vst [vmem:[#allocation14_spill] sm:$0xff] %v8986_v29 }
 0x151   :  { %v8973_v5 = vadd.f32 %v2468_v62, %v2275_v59  ;;  %v2277_v53 = vpop.f32.mrf.mxu0  ;;  %3127 = vmatpush1.bf16.msra.mxu1 %v7588_v44  ;;  %v8998_v62 = vld [vmem:[%s14077_s0 + $0x84] ss:$20 sps:$4 sm:$0xff]  }
 0x152   :  { %v2470_v60 = vpop.f32.mrf.mxu1  ;;  %3498 = vmatprep.subr.bf16.mxu1 %v7596_v16  ;;  %3312 = vmatpush1.bf16.msra.mxu0 %v7606_v47  ;;  %14557 = vst [vmem:[#allocation16_spill] sm:$0xff] %v8998_v62 }
 0x153   :  { %v8978_v36 = vadd.f32 %v2470_v60, %v2277_v53  ;;  %v2281_v22 = vpop.f32.mrf.mxu0  ;;  %2972 = vmatmul.mubr.bf16.gmra.mxu0 %v8986_v29  ;;  %v7617_v60 = vld [vmem:[%s14076_s1 + $0x84] ss:$28 sps:$4 sm:$0xff]   ;;  %3313 = vmatprep.subr.bf16.mxu0 %v7611_v12 }
 0x154   :  { %v2474_v41 = vpop.f32.mrf.mxu1  ;;  %3092 = vmatmul.mubr.bf16.gmra.mxu1 %v8528_v49  ;;  %2981 = vmatprep.mubr.bf16.mxu0 %v8998_v62  ;;  %v7615_v49 = vld [vmem:[%s14076_s1 + $0x80] ss:$28 sps:$4 sm:$0xff]   ;;  %v7618_v12 = vld [vmem:[%s14076_s1 + $0x48] ss:$28 sps:$4 sm:$0xff]  }
 0x155   :  { %v8993_v53 = vadd.f32 %v2474_v41, %v2281_v22  ;;  %3101 = vmatprep.mubr.bf16.mxu1 %v8538_v52  ;;  %v2283_v44 = vpop.f32.mrf.mxu0  ;;  %v7620_v52 = vld [vmem:[%s14076_s1 + $0x4c] ss:$28 sps:$4 sm:$0xff]  }
 0x156   :  { %v2476_v16 = vpop.f32.mrf.mxu1  ;;  %3314 = vmatpush1.bf16.msra.mxu0 %v7609_v48 }
 0x157   :  { %14556 = vst [vmem:[#allocation15_spill] sm:$0xff] %v8993_v53  ;;  %v9002_v47 = vadd.f32 %v2476_v16, %v2283_v44  ;;  %v2285_v59 = vpop.f32.mrf.mxu0  ;;  %3315 = vmatprep.subr.bf16.mxu0 %v7617_v60  ;;  %v9020_v60 = vld [vmem:[%s14077_s0 + $0x80] ss:$20 sps:$4 sm:$0xff]  }
 0x158   :  { %v2478_v22 = vpop.f32.mrf.mxu1  ;;  %14560 = vst [vmem:[#allocation19_spill] sm:$0xff] %v9020_v60  ;;  %v9032_v16 = vld [vmem:[%s14077_s0 + $0xac] ss:$20 sps:$4 sm:$0xff]  }
 0x159   :  { %v9007_v41 = vadd.f32 %v2478_v22, %v2285_v59  ;;  %v2287_v29 = vpop.f32.mrf.mxu0  ;;  %14562 = vst [vmem:[#allocation21_spill] sm:$0xff] %v9032_v16 }
 0x15a   :  { %v2480_v53 = vpop.f32.mrf.mxu1  ;;  %3316 = vmatpush1.bf16.msra.mxu0 %v7615_v49  ;;  %v14563_v49 = vmov 0  }
 0x15b   :  { %14558 = vst [vmem:[#allocation17_spill] sm:$0xff] %v9007_v41  ;;  %v9012_v62 = vadd.f32 %v2480_v53, %v2287_v29  ;;  %v2291_v48 = vpop.f32.mrf.mxu0  ;;  %2982 = vmatmul.mubr.bf16.gmra.mxu0 %v9020_v60  ;;  %v7626_v29 = vld [vmem:[%s14076_s1 + $0x14] ss:$28 sps:$4 sm:$0xff]   ;;  %3317 = vmatprep.subr.bf16.mxu0 %v7620_v52  ;;  %v7605_v52 = vld [vmem:[%s14076_s1 + $0x4e4] ss:$28 sps:$4 sm:$0xff]  }
 0x15c   :  { %v2484_v44 = vpop.f32.mrf.mxu1  ;;  %3102 = vmatmul.mubr.bf16.gmra.mxu1 %v8552_v54  ;;  %2991 = vmatprep.mubr.bf16.mxu0 %v9032_v16  ;;  %v7624_v54 = vld [vmem:[%s14076_s1 + $0x10] ss:$28 sps:$4 sm:$0xff]   ;;  %v7594_v16 = vld [vmem:[%s14076_s1 + $0x518] ss:$28 sps:$4 sm:$0xff]  }
 0x15d   :  { %14559 = vst [vmem:[#allocation18_spill] sm:$0xff] %v9012_v62  ;;  %v9027_v53 = vadd.f32 %v2484_v44, %v2291_v48  ;;  %3144 = vmatprep.mubr.bf16.mxu1 %v14563_v49  ;;  %v2293_v59 = vpop.f32.mrf.mxu0 }
 0x15e   :  { %v2486_v22 = vpop.f32.mrf.mxu1  ;;  %3318 = vmatpush1.bf16.msra.mxu0 %v7618_v12 }
 0x15f   :  { %14561 = vst [vmem:[#allocation20_spill] sm:$0xff] %v9027_v53  ;;  %v9036_v60 = vadd.f32 %v2486_v22, %v2293_v59  ;;  %v2295_v48 = vpop.f32.mrf.mxu0  ;;  %3319 = vmatprep.subr.bf16.mxu0 %v7626_v29  ;;  %v7629_v59 = vld [vmem:[%s14076_s1 + $0x35c] ss:$28 sps:$4 sm:$0xff]  }
 0x160   :  { %v2488_v44 = vpop.f32.mrf.mxu1 }
 0x161   :  { %14564 = vst [vmem:[#allocation22_spill] sm:$0xff] %v9036_v60  ;;  %v9041_v53 = vadd.f32 %v2488_v44, %v2295_v48  ;;  %v2297_v62 = vpop.f32.mrf.mxu0  ;;  %v9057_v48 = vld [vmem:[%s14077_s0 + $0xa8] ss:$20 sps:$4 sm:$0xff]  }
 0x162   :  { %v2490_v41 = vpop.f32.mrf.mxu1  ;;  %3320 = vmatpush1.bf16.msra.mxu0 %v7624_v54  ;;  %14567 = vst [vmem:[#allocation25_spill] sm:$0xff] %v9057_v48  ;;  %v9070_v54 = vld [vmem:[%s14077_s0 + $0xd4] ss:$20 sps:$4 sm:$0xff]   ;;  %v7603_v44 = vld [vmem:[%s14076_s1 + $0x4e0] ss:$28 sps:$4 sm:$0xff]  }
 0x163   :  { %14565 = vst [vmem:[#allocation23_spill] sm:$0xff] %v9041_v53  ;;  %v9049_v12 = vadd.f32 %v2490_v41, %v2297_v62  ;;  %v2301_v29 = vpop.f32.mrf.mxu0  ;;  %2992 = vmatmul.mubr.bf16.gmra.mxu0 %v9057_v48  ;;  %v7627_v62 = vld [vmem:[%s14076_s1 + $0x358] ss:$28 sps:$4 sm:$0xff]   ;;  %14569 = vst [vmem:[#allocation27_spill] sm:$0xff] %v9070_v54  ;;  %3321 = vmatprep.subr.bf16.mxu0 %v7629_v59 }
 0x164   :  { %v2494_v22 = vpop.f32.mrf.mxu1  ;;  %6896 = vmatmul.mubr.msk.bf16.vlgmr.msra.gmra.mxu1 %vm2098_vm0, %v8563_v57  ;;  %3001 = vmatprep.mubr.bf16.mxu0 %v9070_v54  ;;  %v7635_v57 = vld [vmem:[%s14076_s1 + $0x324] ss:$28 sps:$4 sm:$0xff]   ;;  %v7623_v59 = vld [vmem:[%s14076_s1 + $0x474] ss:$28 sps:$4 sm:$0xff]  }
 0x165   :  { %14566 = vst [vmem:[#allocation24_spill] sm:$0xff] %v9049_v12  ;;  %v9065_v41 = vadd.f32 %v2494_v22, %v2301_v29  ;;  %3499 = vmatpush1.bf16.msra.mxu1 %v7594_v16  ;;  %v2303_v48 = vpop.f32.mrf.mxu0  ;;  %3154 = vmatprep.mubr.bf16.mxu1 %v14563_v49  ;;  %v7614_v16 = vld [vmem:[%s14076_s1 + $0x4ac] ss:$28 sps:$4 sm:$0xff]  }
 0x166   :  { %v2496_v12 = vpop.f32.mrf.mxu1  ;;  %3500 = vmatprep.subr.bf16.mxu1 %v7605_v52  ;;  %3322 = vmatpush2.bf16.msra.mxu0 %v7627_v62  ;;  %v7612_v52 = vld [vmem:[%s14076_s1 + $0x4a8] ss:$28 sps:$4 sm:$0xff]  }
 0x167   :  { %14568 = vst [vmem:[#allocation26_spill] sm:$0xff] %v9065_v41  ;;  %v9083_v29 = vadd.f32 %v2496_v12, %v2303_v48  ;;  %v2305_v22 = vpop.f32.mrf.mxu0  ;;  %3323 = vmatprep.subr.bf16.mxu0 %v7635_v57  ;;  %v7633_v12 = vld [vmem:[%s14076_s1 + $0x320] ss:$28 sps:$4 sm:$0xff]   ;;  %v7638_v62 = vld [vmem:[%s14076_s1 + $0x2ec] ss:$28 sps:$4 sm:$0xff]  }
 0x168   :  { %v2498_v54 = vpop.f32.mrf.mxu1  ;;  %v9104_v57 = vld [vmem:[%s14077_s0 + $0xd0] ss:$20 sps:$4 sm:$0xff]  }
 0x169   :  { %v9085_v41 = vadd.f32 %v2498_v54, %v2305_v22  ;;  %3501 = vmatpush1.bf16.msra.mxu1 %v7603_v44  ;;  %v2307_v53 = vpop.f32.mrf.mxu0  ;;  %14572 = vst [vmem:[#allocation30_spill] sm:$0xff] %v9104_v57 }
 0x16a   :  { %v2500_v60 = vpop.f32.mrf.mxu1  ;;  %3502 = vmatprep.subr.bf16.mxu1 %v7614_v16  ;;  %3324 = vmatpush2.bf16.msra.mxu0 %v7633_v12 }
 0x16b   :  { %14570 = vst [vmem:[#allocation28_spill] sm:$0xff] %v9085_v41  ;;  %v9093_v48 = vadd.f32 %v2500_v60, %v2307_v53  ;;  %v2311_v54 = vpop.f32.mrf.mxu0  ;;  %3002 = vmatmul.mubr.bf16.gmra.mxu0 %v9104_v57  ;;  %v9114_v53 = vld [vmem:[%s14077_s0 + $0xfc] ss:$20 sps:$4 sm:$0xff]   ;;  %3325 = vmatprep.subr.bf16.mxu0 %v7638_v62 }
 0x16c   :  { %v2504_v44 = vpop.f32.mrf.mxu1  ;;  %6897 = vmatmul.mubr.msk.bf16.gmra.mxu1 %vm2098_vm0, %v8585_v63  ;;  %14574 = vst [vmem:[#allocation32_spill] sm:$0xff] %v9114_v53  ;;  %3011 = vmatprep.mubr.bf16.mxu0 %v9114_v53  ;;  %v7621_v57 = vld [vmem:[%s14076_s1 + $0x470] ss:$28 sps:$4 sm:$0xff]   ;;  %v7636_v63 = vld [vmem:[%s14076_s1 + $0x2e8] ss:$28 sps:$4 sm:$0xff]  }
 0x16d   :  { %14571 = vst [vmem:[#allocation29_spill] sm:$0xff] %v9093_v48  ;;  %v9109_v60 = vadd.f32 %v2504_v44, %v2311_v54  ;;  %3164 = vmatprep.mubr.bf16.mxu1 %v14563_v49  ;;  %v2313_v16 = vpop.f32.mrf.mxu0  ;;  %3503 = vmatpush1.bf16.msra.mxu1 %v7612_v52  ;;  %v7632_v44 = vld [vmem:[%s14076_s1 + $0x43c] ss:$28 sps:$4 sm:$0xff]   ;;  %v7644_v52 = vld [vmem:[%s14076_s1 + $0x2b4] ss:$28 sps:$4 sm:$0xff]  }
 0x16e   :  { %v2506_v22 = vpop.f32.mrf.mxu1  ;;  %3504 = vmatprep.subr.bf16.mxu1 %v7623_v59  ;;  %v7630_v59 = vld [vmem:[%s14076_s1 + $0x438] ss:$28 sps:$4 sm:$0xff]   ;;  %3326 = vmatpush2.bf16.msra.mxu0 %v7636_v63  ;;  %v7642_v62 = vld [vmem:[%s14076_s1 + $0x2b0] ss:$28 sps:$4 sm:$0xff]  }
 0x16f   :  { %14573 = vst [vmem:[#allocation31_spill] sm:$0xff] %v9109_v60  ;;  %v9124_v54 = vadd.f32 %v2506_v22, %v2313_v16  ;;  %v2315_v53 = vpop.f32.mrf.mxu0  ;;  %3327 = vmatprep.subr.bf16.mxu0 %v7644_v52  ;;  %v9151_v63 = vld [vmem:[%s14077_s0 + $0xf8] ss:$20 sps:$4 sm:$0xff]  }
 0x170   :  { %v2508_v60 = vpop.f32.mrf.mxu1  ;;  %14577 = vst [vmem:[#allocation35_spill] sm:$0xff] %v9151_v63 }
 0x171   :  { %v9132_v48 = vadd.f32 %v2508_v60, %v2315_v53  ;;  %v2317_v12 = vpop.f32.mrf.mxu0  ;;  %3505 = vmatpush1.bf16.msra.mxu1 %v7621_v57  ;;  %v7641_v60 = vld [vmem:[%s14076_s1 + $0x404] ss:$28 sps:$4 sm:$0xff]   ;;  %v7647_v57 = vld [vmem:[%s14076_s1 + $0x27c] ss:$28 sps:$4 sm:$0xff]  }
 0x172   :  { %v2510_v41 = vpop.f32.mrf.mxu1  ;;  %3506 = vmatprep.subr.bf16.mxu1 %v7632_v44  ;;  %v9161_v44 = vld [vmem:[%s14077_s0 + $0x124] ss:$20 sps:$4 sm:$0xff]   ;;  %3328 = vmatpush2.bf16.msra.mxu0 %v7642_v62 }
 0x173   :  { %14575 = vst [vmem:[#allocation33_spill] sm:$0xff] %v9132_v48  ;;  %v9140_v16 = vadd.f32 %v2510_v41, %v2317_v12  ;;  %v2321_v53 = vpop.f32.mrf.mxu0  ;;  %3012 = vmatmul.mubr.bf16.gmra.mxu0 %v9151_v63  ;;  %14579 = vst [vmem:[#allocation37_spill] sm:$0xff] %v9161_v44  ;;  %v7639_v63 = vld [vmem:[%s14076_s1 + $0x400] ss:$28 sps:$4 sm:$0xff]   ;;  %3329 = vmatprep.subr.bf16.mxu0 %v7647_v57 }
 0x174   :  { %v2514_v22 = vpop.f32.mrf.mxu1  ;;  %6898 = vmatmul.mubr.msk.bf16.gmra.mxu1 %vm2098_vm0, %v8607_v11  ;;  %3021 = vmatprep.mubr.bf16.mxu0 %v9161_v44  ;;  %v7645_v11 = vld [vmem:[%s14076_s1 + $0x278] ss:$28 sps:$4 sm:$0xff]   ;;  %v7651_v57 = vld [vmem:[%s14076_s1 + $0x240] ss:$28 sps:$4 sm:$0xff]  }
 0x175   :  { %14576 = vst [vmem:[#allocation34_spill] sm:$0xff] %v9140_v16  ;;  %v9156_v41 = vadd.f32 %v2514_v22, %v2321_v53  ;;  %3174 = vmatprep.mubr.bf16.mxu1 %v14563_v49  ;;  %v2323_v52 = vpop.f32.mrf.mxu0  ;;  %3507 = vmatpush1.bf16.msra.mxu1 %v7630_v59  ;;  %v7650_v22 = vld [vmem:[%s14076_s1 + $0x3cc] ss:$28 sps:$4 sm:$0xff]   ;;  %v7653_v59 = vld [vmem:[%s14076_s1 + $0x244] ss:$28 sps:$4 sm:$0xff]  }
 0x176   :  { %v2516_v12 = vpop.f32.mrf.mxu1  ;;  %3508 = vmatprep.subr.bf16.mxu1 %v7641_v60  ;;  %v7648_v60 = vld [vmem:[%s14076_s1 + $0x3c8] ss:$28 sps:$4 sm:$0xff]   ;;  %3330 = vmatpush2.bf16.msra.mxu0 %v7645_v11  ;;  %v9198_v11 = vld [vmem:[%s14077_s0 + $0x120] ss:$20 sps:$4 sm:$0xff]  }
 0x177   :  { %14578 = vst [vmem:[#allocation36_spill] sm:$0xff] %v9156_v41  ;;  %v9171_v53 = vadd.f32 %v2516_v12, %v2323_v52  ;;  %v2325_v44 = vpop.f32.mrf.mxu0  ;;  %3331 = vmatprep.subr.bf16.mxu0 %v7653_v59  ;;  %14582 = vst [vmem:[#allocation40_spill] sm:$0xff] %v9198_v11 }
 0x178   :  { %v2518_v41 = vpop.f32.mrf.mxu1 }
 0x179   :  { %v9179_v16 = vadd.f32 %v2518_v41, %v2325_v44  ;;  %v2327_v62 = vpop.f32.mrf.mxu0  ;;  %3509 = vmatpush1.bf16.msra.mxu1 %v7639_v63  ;;  %v7656_v41 = vld [vmem:[%s14076_s1 + $0x20c] ss:$28 sps:$4 sm:$0xff]   ;;  %v7659_v63 = vld [vmem:[%s14076_s1 + $0x394] ss:$28 sps:$4 sm:$0xff]  }
 0x17a   :  { %v2520_v48 = vpop.f32.mrf.mxu1  ;;  %3510 = vmatprep.subr.bf16.mxu1 %v7650_v22  ;;  %v9208_v22 = vld [vmem:[%s14077_s0 + $0x14c] ss:$20 sps:$4 sm:$0xff]   ;;  %3332 = vmatpush2.bf16.msra.mxu0 %v7651_v57 }
 0x17b   :  { %14580 = vst [vmem:[#allocation38_spill] sm:$0xff] %v9179_v16  ;;  %v9187_v52 = vadd.f32 %v2520_v48, %v2327_v62  ;;  %v2331_v44 = vpop.f32.mrf.mxu0  ;;  %3022 = vmatmul.mubr.bf16.gmra.mxu0 %v9198_v11  ;;  %14584 = vst [vmem:[#allocation42_spill] sm:$0xff] %v9208_v22  ;;  %v7654_v11 = vld [vmem:[%s14076_s1 + $0x208] ss:$28 sps:$4 sm:$0xff]   ;;  %3333 = vmatprep.subr.bf16.mxu0 %v7656_v41  ;;  %v7660_v41 = vld [vmem:[%s14076_s1 + $0x1d0] ss:$28 sps:$4 sm:$0xff]  }
 0x17c   :  { %v2524_v12 = vpop.f32.mrf.mxu1  ;;  %6899 = vmatmul.mubr.msk.bf16.gmra.mxu1 %vm2098_vm0, %v8629_v21  ;;  %3031 = vmatprep.mubr.bf16.mxu0 %v9208_v22  ;;  %v7657_v21 = vld [vmem:[%s14076_s1 + $0x390] ss:$28 sps:$4 sm:$0xff]  }
 0x17d   :  { %14581 = vst [vmem:[#allocation39_spill] sm:$0xff] %v9187_v52  ;;  %v9203_v48 = vadd.f32 %v2524_v12, %v2331_v44  ;;  %3184 = vmatprep.mubr.bf16.mxu1 %v14563_v49  ;;  %v2333_v59 = vpop.f32.mrf.mxu0  ;;  %3511 = vmatpush1.bf16.msra.mxu1 %v7648_v60  ;;  %v7662_v12 = vld [vmem:[%s14076_s1 + $0x1d4] ss:$28 sps:$4 sm:$0xff]   ;;  %v7665_v60 = vld [vmem:[%s14076_s1 + $0x6dc] ss:$28 sps:$4 sm:$0xff]  }
 0x17e   :  { %v2526_v62 = vpop.f32.mrf.mxu1  ;;  %3512 = vmatprep.subr.bf16.mxu1 %v7659_v63  ;;  %3334 = vmatpush2.bf16.msra.mxu0 %v7654_v11  ;;  %v7663_v63 = vld [vmem:[%s14076_s1 + $0x6d8] ss:$28 sps:$4 sm:$0xff]  }
 0x17f   :  { %14583 = vst [vmem:[#allocation41_spill] sm:$0xff] %v9203_v48  ;;  %v9218_v44 = vadd.f32 %v2526_v62, %v2333_v59  ;;  %v2335_v57 = vpop.f32.mrf.mxu0  ;;  %3335 = vmatprep.subr.bf16.mxu0 %v7662_v12  ;;  %v7686_v11 = vld [vmem:[%s14076_s1 + $0x7bc] ss:$28 sps:$4 sm:$0xff]  }
 0x180   :  { %v2528_v22 = vpop.f32.mrf.mxu1 }
 0x181   :  { %v9226_v48 = vadd.f32 %v2528_v22, %v2335_v57  ;;  %v2337_v52 = vpop.f32.mrf.mxu0  ;;  %3513 = vmatpush1.bf16.msra.mxu1 %v7657_v21  ;;  %v7668_v22 = vld [vmem:[%s14076_s1 + $0x6a4] ss:$28 sps:$4 sm:$0xff]   ;;  %v9247_v57 = vld [vmem:[%s14077_s0 + $0x148] ss:$20 sps:$4 sm:$0xff]  }
 0x182   :  { %v2530_v16 = vpop.f32.mrf.mxu1  ;;  %3514 = vmatprep.subr.bf16.mxu1 %v7665_v60  ;;  %3336 = vmatpush2.bf16.msra.mxu0 %v7660_v41 }
 0x183   :  { %v9234_v59 = vadd.f32 %v2530_v16, %v2337_v52  ;;  %v2567_v62 = vpop.f32.mrf.mxu0  ;;  %3032 = vmatmul.mubr.bf16.gmra.mxu0 %v9247_v57  ;;  %v9258_v52 = vld [vmem:[%s14077_s0 + $0x174] ss:$20 sps:$4 sm:$0xff]   ;;  %3699 = vmatprep.subr.bf16.mxu0 %v7686_v11 }
 0x184   :  { %v9242_v21 = vpop.f32.mrf.mxu1  ;;  %6900 = vmatmul.mubr.msk.bf16.gmra.mxu1 %vm2098_vm0, %v8651_v28  ;;  %v9253_v16 = vadd.f32 %v2567_v62, %v8747_v3  ;;  %14586 = vst [vmem:[#allocation44_spill] sm:$0xff] %v9258_v52  ;;  %3041 = vmatprep.mubr.bf16.mxu0 %v9258_v52  ;;  %v7666_v28 = vld [vmem:[%s14076_s1 + $0x6a0] ss:$28 sps:$4 sm:$0xff]   ;;  %v7671_v62 = vld [vmem:[%s14076_s1 + $0x66c] ss:$28 sps:$4 sm:$0xff]  }
 0x185   :  { %3194 = vmatprep.mubr.bf16.mxu1 %v14563_v49  ;;  %v2569_v12 = vpop.f32.mrf.mxu0  ;;  %3515 = vmatpush2.bf16.msra.mxu1 %v7663_v63  ;;  %v7674_v11 = vld [vmem:[%s14076_s1 + $0x634] ss:$28 sps:$4 sm:$0xff]  }
 0x186   :  { %14585 = vst [vmem:[#allocation43_spill] sm:$0xff] %v9253_v16  ;;  %v9262_v60 = vpop.f32.mrf.mxu1  ;;  %v9268_v3 = vadd.f32 %v2569_v12, %v8751_v1  ;;  %3516 = vmatprep.subr.bf16.mxu1 %v7668_v22  ;;  %v7669_v1 = vld [vmem:[%s14076_s1 + $0x668] ss:$28 sps:$4 sm:$0xff]  }
 0x187   :  { %14587 = vst [vmem:[#allocation45_spill] sm:$0xff] %v9262_v60  ;;  %v2571_v16 = vpop.f32.mrf.mxu0 }
 0x188   :  { %14588 = vst [vmem:[#allocation46_spill] sm:$0xff] %v9268_v3  ;;  %v9273_v52 = vpop.f32.mrf.mxu1  ;;  %v9276_v60 = vadd.f32 %v2571_v16, %v8758_v8  ;;  %v9294_v8 = vld [vmem:[%s14077_s0 + $0x170] ss:$20 sps:$4 sm:$0xff]  }
 0x189   :  { %v2573_v41 = vpop.f32.mrf.mxu0  ;;  %3517 = vmatpush2.bf16.msra.mxu1 %v7666_v28  ;;  %v9305_v16 = vld [vmem:[%s14077_s0 + $0x19c] ss:$20 sps:$4 sm:$0xff]  }
 0x18a   :  { %14589 = vst [vmem:[#allocation47_spill] sm:$0xff] %v9276_v60  ;;  %v9278_v63 = vpop.f32.mrf.mxu1  ;;  %v9284_v22 = vadd.f32 %v2573_v41, %v8760_v9  ;;  %3518 = vmatprep.subr.bf16.mxu1 %v7671_v62  ;;  %v7677_v41 = vld [vmem:[%s14076_s1 + $0x5fc] ss:$28 sps:$4 sm:$0xff]  }
 0x18b   :  { %v2577_v12 = vpop.f32.mrf.mxu0  ;;  %3042 = vmatmul.mubr.bf16.gmra.mxu0 %v9294_v8 }
 0x18c   :  { %14590 = vst [vmem:[#allocation48_spill] sm:$0xff] %v9284_v22  ;;  %v9289_v3 = vpop.f32.mrf.mxu1  ;;  %6901 = vmatmul.mubr.msk.bf16.gmra.mxu1 %vm2098_vm0, %v8673_v40  ;;  %v9300_v9 = vadd.f32 %v2577_v12, %v8765_v13  ;;  %3051 = vmatprep.mubr.bf16.mxu0 %v9305_v16  ;;  %v7672_v40 = vld [vmem:[%s14076_s1 + $0x630] ss:$28 sps:$4 sm:$0xff]  }
 0x18d   :  { %3204 = vmatprep.mubr.bf16.mxu1 %v14563_v49  ;;  %v2579_v28 = vpop.f32.mrf.mxu0  ;;  %3519 = vmatpush2.bf16.msra.mxu1 %v7669_v1 }
 0x18e   :  { %14591 = vst [vmem:[#allocation49_spill] sm:$0xff] %v9300_v9  ;;  %v9309_v62 = vpop.f32.mrf.mxu1  ;;  %v9315_v13 = vadd.f32 %v2579_v28, %v8769_v17  ;;  %3520 = vmatprep.subr.bf16.mxu1 %v7674_v11  ;;  %v7675_v17 = vld [vmem:[%s14076_s1 + $0x5f8] ss:$28 sps:$4 sm:$0xff]   ;;  %v7680_v28 = vld [vmem:[%s14076_s1 + $0x5c4] ss:$28 sps:$4 sm:$0xff]  }
 0x18f   :  { %v2581_v12 = vpop.f32.mrf.mxu0 }
 0x190   :  { %14592 = vst [vmem:[#allocation50_spill] sm:$0xff] %v9315_v13  ;;  %v9320_v9 = vpop.f32.mrf.mxu1  ;;  %v9323_v60 = vadd.f32 %v2581_v12, %v8776_v23  ;;  %v9341_v23 = vld [vmem:[%s14077_s0 + $0x198] ss:$20 sps:$4 sm:$0xff]  }
 0x191   :  { %14593 = vst [vmem:[#allocation51_spill] sm:$0xff] %v9320_v9  ;;  %v2583_v22 = vpop.f32.mrf.mxu0  ;;  %3521 = vmatpush2.bf16.msra.mxu1 %v7672_v40 }
 0x192   :  { %14594 = vst [vmem:[#allocation52_spill] sm:$0xff] %v9323_v60  ;;  %v9325_v1 = vpop.f32.mrf.mxu1  ;;  %v9331_v11 = vadd.f32 %v2583_v22, %v8778_v50  ;;  %3522 = vmatprep.subr.bf16.mxu1 %v7677_v41  ;;  %v9352_v22 = vld [vmem:[%s14077_s0 + $0x1c4] ss:$20 sps:$4 sm:$0xff]  }
 0x193   :  { %v2587_v13 = vpop.f32.mrf.mxu0  ;;  %3052 = vmatmul.mubr.bf16.gmra.mxu0 %v9341_v23 }
 0x194   :  { %14595 = vst [vmem:[#allocation53_spill] sm:$0xff] %v9331_v11  ;;  %v9336_v9 = vpop.f32.mrf.mxu1  ;;  %6902 = vmatmul.mubr.msk.bf16.gmra.mxu1 %vm2098_vm0, %v8695_v46  ;;  %v9347_v50 = vadd.f32 %v2587_v13, %v8783_v25  ;;  %3061 = vmatprep.mubr.bf16.mxu0 %v9352_v22  ;;  %v7678_v46 = vld [vmem:[%s14076_s1 + $0x5c0] ss:$28 sps:$4 sm:$0xff]   ;;  %v7683_v13 = vld [vmem:[%s14076_s1 + $0x58c] ss:$28 sps:$4 sm:$0xff]  }
 0x195   :  { %3214 = vmatprep.mubr.bf16.mxu1 %v14563_v49  ;;  %v2589_v40 = vpop.f32.mrf.mxu0  ;;  %3523 = vmatpush2.bf16.msra.mxu1 %v7675_v17 }
 0x196   :  { %14596 = vst [vmem:[#allocation54_spill] sm:$0xff] %v9347_v50  ;;  %v9356_v41 = vpop.f32.mrf.mxu1  ;;  %v9362_v25 = vadd.f32 %v2589_v40, %v8787_v55  ;;  %3524 = vmatprep.subr.bf16.mxu1 %v7680_v28  ;;  %v7681_v55 = vld [vmem:[%s14076_s1 + $0x588] ss:$28 sps:$4 sm:$0xff]   ;;  %v7689_v40 = vld [vmem:[%s14076_s1 + $0x554] ss:$28 sps:$4 sm:$0xff]  }
 0x197   :  { %v2591_v12 = vpop.f32.mrf.mxu0 }
 0x198   :  { %14597 = vst [vmem:[#allocation55_spill] sm:$0xff] %v9362_v25  ;;  %v9367_v50 = vpop.f32.mrf.mxu1  ;;  %v9370_v60 = vadd.f32 %v2591_v12, %v8794_v61  ;;  %v9388_v61 = vld [vmem:[%s14077_s0 + $0x1c0] ss:$20 sps:$4 sm:$0xff]  }
 0x199   :  { %14598 = vst [vmem:[#allocation56_spill] sm:$0xff] %v9367_v50  ;;  %v2593_v11 = vpop.f32.mrf.mxu0  ;;  %3525 = vmatpush2.bf16.msra.mxu1 %v7678_v46 }
 0x19a   :  { %14599 = vst [vmem:[#allocation57_spill] sm:$0xff] %v9370_v60  ;;  %v9372_v17 = vpop.f32.mrf.mxu1  ;;  %v9378_v28 = vadd.f32 %v2593_v11, %v8796_v0  ;;  %3526 = vmatprep.subr.bf16.mxu1 %v7683_v13  ;;  %v9400_v11 = vld [vmem:[%s14077_s0 + $0x4] ss:$20 sps:$4 sm:$0xff]  }
 0x19b   :  { %v2597_v25 = vpop.f32.mrf.mxu0  ;;  %3062 = vmatmul.mubr.bf16.gmra.mxu0 %v9388_v61  ;;  %14602 = vst [vmem:[#allocation60_spill] sm:$0xff] %v9400_v11 }
 0x19c   :  { %14600 = vst [vmem:[#allocation58_spill] sm:$0xff] %v9378_v28  ;;  %v9383_v50 = vpop.f32.mrf.mxu1  ;;  %6903 = vmatmul.mubr.msk.bf16.gmra.mxu1 %vm2098_vm0, %v8717_v56  ;;  %v9394_v0 = vadd.f32 %v2597_v25, %v8801_v30  ;;  %3337 = vmatprep.mubr.bf16.mxu0 %v9400_v11  ;;  %v7687_v56 = vld [vmem:[%s14076_s1 + $0x550] ss:$28 sps:$4 sm:$0xff]   ;;  %v7690_v25 = vld [vmem:[%s14076_s1 + $0x360] ss:$28 sps:$4 sm:$0xff]  }
 0x19d   :  { %3224 = vmatprep.mubr.bf16.mxu1 %v14563_v49  ;;  %v2599_v46 = vpop.f32.mrf.mxu0  ;;  %3527 = vmatpush2.bf16.msra.mxu1 %v7681_v55  ;;  %v7684_v11 = vld [vmem:[%s14076_s1 + $0x7b8] ss:$28 sps:$4 sm:$0xff]  }
 0x19e   :  { %14601 = vst [vmem:[#allocation59_spill] sm:$0xff] %v9394_v0  ;;  %v9403_v13 = vpop.f32.mrf.mxu1  ;;  %v9409_v30 = vadd.f32 %v2599_v46, %v8805_v24  ;;  %3528 = vmatprep.subr.bf16.mxu1 %v7689_v40  ;;  %v7696_v40 = vld [vmem:[%s14076_s1 + $0x784] ss:$28 sps:$4 sm:$0xff]  }
 0x19f   :  { %v2601_v12 = vpop.f32.mrf.mxu0 }
 0x1a0   :  { %14603 = vst [vmem:[#allocation61_spill] sm:$0xff] %v9409_v30  ;;  %v9414_v0 = vpop.f32.mrf.mxu1  ;;  %v9417_v60 = vadd.f32 %v2601_v12, %v8812_v15  ;;  %v9437_v15 = vld [vmem:[%s14077_s0] ss:$20 sps:$4 sm:$0xff]   ;;  %v7703_v12 = vld [vmem:[%s14076_s1 + $0x74c] ss:$28 sps:$4 sm:$0xff]  }
 0x1a1   :  { %v2603_v28 = vpop.f32.mrf.mxu0  ;;  %3529 = vmatpush2.bf16.msra.mxu1 %v7687_v56  ;;  %14606 = vst [vmem:[#allocation64_spill] sm:$0xff] %v9437_v15 }
 0x1a2   :  { %14604 = vst [vmem:[#allocation62_spill] sm:$0xff] %v9417_v60  ;;  %v9419_v55 = vpop.f32.mrf.mxu1  ;;  %v9425_v24 = vadd.f32 %v2603_v28, %v8814_v42  ;;  %6944 = vmatprep.subr.bf16.mxu1 %v7690_v25  ;;  %v9447_v28 = vld [vmem:[%s14077_s0 + $0x2c] ss:$20 sps:$4 sm:$0xff]  }
 0x1a3   :  { %v2607_v46 = vpop.f32.mrf.mxu0  ;;  %3338 = vmatmul.mubr.bf16.vlgmr.msra.gmra.mxu0 %v9437_v15  ;;  %14608 = vst [vmem:[#allocation66_spill] sm:$0xff] %v9447_v28  ;;  %v7694_v25 = vld [vmem:[%s14076_s1 + $0x780] ss:$28 sps:$4 sm:$0xff]  }
 0x1a4   :  { %14605 = vst [vmem:[#allocation63_spill] sm:$0xff] %v9425_v24  ;;  %v9430_v30 = vpop.f32.mrf.mxu1  ;;  %6904 = vmatmul.mubr.msk.bf16.gmra.mxu1 %vm2098_vm0, %v8739_v4  ;;  %v9441_v42 = vadd.f32 %v2607_v46, %v8819_v35  ;;  %3347 = vmatprep.mubr.bf16.mxu0 %v9447_v28 }
 0x1a5   :  { %3234 = vmatprep.mubr.bf16.mxu1 %v14563_v49  ;;  %v2609_v4 = vpop.f32.mrf.mxu0  ;;  %3700 = vmatpush1.bf16.msra.mxu0 %v7684_v11 }
 0x1a6   :  { %14607 = vst [vmem:[#allocation65_spill] sm:$0xff] %v9441_v42  ;;  %v9450_v56 = vpop.f32.mrf.mxu1  ;;  %v9456_v35 = vadd.f32 %v2609_v4, %v8823_v34  ;;  %3701 = vmatprep.subr.bf16.mxu0 %v7696_v40  ;;  %v7701_v34 = vld [vmem:[%s14076_s1 + $0x748] ss:$28 sps:$4 sm:$0xff]   ;;  %v7706_v4 = vld [vmem:[%s14076_s1 + $0x714] ss:$28 sps:$4 sm:$0xff]  }
 0x1a7   :  { %v2611_v46 = vpop.f32.mrf.mxu0 }
 0x1a8   :  { %14609 = vst [vmem:[#allocation67_spill] sm:$0xff] %v9456_v35  ;;  %v9461_v42 = vpop.f32.mrf.mxu1  ;;  %v9464_v60 = vadd.f32 %v2611_v46, %v8830_v27  ;;  %v9484_v27 = vld [vmem:[%s14077_s0 + $0x28] ss:$20 sps:$4 sm:$0xff]  }
 0x1a9   :  { %v2613_v24 = vpop.f32.mrf.mxu0  ;;  %3702 = vmatpush1.bf16.msra.mxu0 %v7694_v25  ;;  %14612 = vst [vmem:[#allocation70_spill] sm:$0xff] %v9484_v27 }
 0x1aa   :  { %14610 = vst [vmem:[#allocation68_spill] sm:$0xff] %v9464_v60  ;;  %v9466_v11 = vpop.f32.mrf.mxu1  ;;  %v9472_v40 = vadd.f32 %v2613_v24, %v8832_v7  ;;  %3703 = vmatprep.subr.bf16.mxu0 %v7703_v12  ;;  %v9494_v24 = vld [vmem:[%s14077_s0 + $0x54] ss:$20 sps:$4 sm:$0xff]   ;;  %v7704_v12 = vld [vmem:[%s14076_s1 + $0x710] ss:$28 sps:$4 sm:$0xff]  }
 0x1ab   :  { %v2617_v35 = vpop.f32.mrf.mxu0  ;;  %3348 = vmatmul.mubr.bf16.gmra.mxu0 %v9484_v27  ;;  %14614 = vst [vmem:[#allocation72_spill] sm:$0xff] %v9494_v24 }
 0x1ac   :  { %14611 = vst [vmem:[#allocation69_spill] sm:$0xff] %v9472_v40  ;;  %v9477_v28 = vpop.f32.mrf.mxu1  ;;  %6905 = vmatmul.mubr.msk.bf16.gmra.mxu1 %vm2098_vm0, %v8756_v6  ;;  %v9488_v7 = vadd.f32 %v2617_v35, %v8837_v39  ;;  %3357 = vmatprep.mubr.bf16.mxu0 %v9494_v24 }
 0x1ad   :  { %3244 = vmatprep.mubr.bf16.mxu1 %v14563_v49  ;;  %v2619_v6 = vpop.f32.mrf.mxu0  ;;  %3704 = vmatpush1.bf16.msra.mxu0 %v7701_v34 }
 0x1ae   :  { %14613 = vst [vmem:[#allocation71_spill] sm:$0xff] %v9488_v7  ;;  %v9497_v25 = vpop.f32.mrf.mxu1  ;;  %v9503_v39 = vadd.f32 %v2619_v6, %v8841_v19  ;;  %3705 = vmatprep.subr.bf16.mxu0 %v7706_v4  ;;  %v9522_v19 = vld [vmem:[%s14077_s0 + $0x50] ss:$20 sps:$4 sm:$0xff]  }
 0x1af   :  { %v2621_v35 = vpop.f32.mrf.mxu0  ;;  %14618 = vst [vmem:[#allocation76_spill] sm:$0xff] %v9522_v19 }
 0x1b0   :  { %14615 = vst [vmem:[#allocation73_spill] sm:$0xff] %v9503_v39  ;;  %v9505_v46 = vpop.f32.mrf.mxu1  ;;  %v9508_v7 = vadd.f32 %v2621_v35, %v8848_v26 }
 0x1b1   :  { %v2623_v60 = vpop.f32.mrf.mxu0  ;;  %3706 = vmatpush1.bf16.msra.mxu0 %v7704_v12 }
 0x1b2   :  { %14616 = vst [vmem:[#allocation74_spill] sm:$0xff] %v9508_v7  ;;  %v9510_v40 = vpop.f32.mrf.mxu1  ;;  %v9513_v34 = vadd.f32 %v2623_v60, %v8850_v32  ;;  %v9532_v32 = vld [vmem:[%s14077_s0 + $0x7c] ss:$20 sps:$4 sm:$0xff]  }
 0x1b3   :  { %v2627_v24 = vpop.f32.mrf.mxu0  ;;  %3358 = vmatmul.mubr.bf16.gmra.mxu0 %v9522_v19  ;;  %14620 = vst [vmem:[#allocation78_spill] sm:$0xff] %v9532_v32  ;;  %v14656_v19 = vld [vmem:[#allocation3_spill] sm:$0xff] }
 0x1b4   :  { %14617 = vst [vmem:[#allocation75_spill] sm:$0xff] %v9513_v34  ;;  %v9515_v27 = vpop.f32.mrf.mxu1  ;;  %6906 = vmatmul.mubr.msk.bf16.gmra.mxu1 %vm2098_vm0, %v8774_v20  ;;  %v9526_v26 = vadd.f32 %v2627_v24, %v8855_v45  ;;  %3367 = vmatprep.mubr.bf16.mxu0 %v9532_v32  ;;  %v14644_v32 = vld [vmem:[#allocation2_spill] sm:$0xff] }
 0x1b5   :  { %3254 = vmatprep.mubr.bf16.mxu1 %v14563_v49  ;;  %v2629_v20 = vpop.f32.mrf.mxu0 }
 0x1b6   :  { %14619 = vst [vmem:[#allocation77_spill] sm:$0xff] %v9526_v26  ;;  %v9535_v60 = vpop.f32.mrf.mxu1  ;;  %v9538_v4 = vadd.f32 %v2629_v20, %v8859_v14  ;;  %v9557_v14 = vld [vmem:[%s14077_s0 + $0x78] ss:$20 sps:$4 sm:$0xff]  }
 0x1b7   :  { %v2631_v6 = vpop.f32.mrf.mxu0  ;;  %14624 = vst [vmem:[#allocation82_spill] sm:$0xff] %v9557_v14 }
 0x1b8   :  { %14621 = vst [vmem:[#allocation79_spill] sm:$0xff] %v9538_v4  ;;  %v9540_v12 = vpop.f32.mrf.mxu1  ;;  %v9543_v45 = vadd.f32 %v2631_v6, %v8866_v33 }
 0x1b9   :  { %v2633_v24 = vpop.f32.mrf.mxu0 }
 0x1ba   :  { %14622 = vst [vmem:[#allocation80_spill] sm:$0xff] %v9543_v45  ;;  %v9545_v35 = vpop.f32.mrf.mxu1  ;;  %v9548_v26 = vadd.f32 %v2633_v24, %v8868_v43  ;;  %v9567_v43 = vld [vmem:[%s14077_s0 + $0xa4] ss:$20 sps:$4 sm:$0xff]  }
 0x1bb   :  { %v2637_v7 = vpop.f32.mrf.mxu0  ;;  %3368 = vmatmul.mubr.bf16.gmra.mxu0 %v9557_v14  ;;  %14626 = vst [vmem:[#allocation84_spill] sm:$0xff] %v9567_v43 }
 0x1bc   :  { %14623 = vst [vmem:[#allocation81_spill] sm:$0xff] %v9548_v26  ;;  %v9550_v34 = vpop.f32.mrf.mxu1  ;;  %6907 = vmatmul.mubr.msk.bf16.gmra.mxu1 %vm2098_vm0, %v8792_v10  ;;  %v9561_v33 = vadd.f32 %v2637_v7, %v8873_v51  ;;  %3377 = vmatprep.mubr.bf16.mxu0 %v9567_v43 }
 0x1bd   :  { %3264 = vmatprep.mubr.bf16.mxu1 %v14563_v49  ;;  %v2639_v10 = vpop.f32.mrf.mxu0 }
 0x1be   :  { %14625 = vst [vmem:[#allocation83_spill] sm:$0xff] %v9561_v33  ;;  %v9570_v20 = vpop.f32.mrf.mxu1  ;;  %v9573_v6 = vadd.f32 %v2639_v10, %v8882_v2  ;;  %v9592_v2 = vld [vmem:[%s14077_s0 + $0xa0] ss:$20 sps:$4 sm:$0xff]  }
 0x1bf   :  { %v2641_v24 = vpop.f32.mrf.mxu0  ;;  %14631 = vst [vmem:[#allocation89_spill] sm:$0xff] %v9592_v2 }
 0x1c0   :  { %14627 = vst [vmem:[#allocation85_spill] sm:$0xff] %v9573_v6  ;;  %v9575_v45 = vpop.f32.mrf.mxu1  ;;  %v9578_v51 = vadd.f32 %v2641_v24, %v8884_v18  ;;  %v14632_v18 = vld [vmem:[#allocation7_spill] sm:$0xff] }
 0x1c1   :  { %v2643_v7 = vpop.f32.mrf.mxu0 }
 0x1c2   :  { %14628 = vst [vmem:[#allocation86_spill] sm:$0xff] %v9578_v51  ;;  %v9580_v33 = vpop.f32.mrf.mxu1  ;;  %v9583_v26 = vadd.f32 %v2643_v7, %v8892_v58  ;;  %v9602_v58 = vld [vmem:[%s14077_s0 + $0xcc] ss:$20 sps:$4 sm:$0xff]  }
 0x1c3   :  { %v2647_v4 = vpop.f32.mrf.mxu0  ;;  %3378 = vmatmul.mubr.bf16.gmra.mxu0 %v9592_v2  ;;  %14634 = vst [vmem:[#allocation90_spill] sm:$0xff] %v9602_v58  ;;  %v14641_v2 = vld [vmem:[#allocation10_spill] sm:$0xff] }
 0x1c4   :  { %14629 = vst [vmem:[#allocation87_spill] sm:$0xff] %v9583_v26  ;;  %v9585_v39 = vpop.f32.mrf.mxu1  ;;  %6908 = vmatmul.mubr.msk.bf16.gmra.mxu1 %vm2098_vm0, %v8810_v31  ;;  %v9596_v10 = vadd.f32 %v2647_v4, %v14632_v18  ;;  %3387 = vmatprep.mubr.bf16.mxu0 %v9602_v58  ;;  %v14638_v4 = vld [vmem:[#allocation9_spill] sm:$0xff] }
 0x1c5   :  { %14630 = vst [vmem:[#allocation88_spill] sm:$0xff] %v9585_v39  ;;  %3274 = vmatprep.mubr.bf16.mxu1 %v14563_v49  ;;  %v2649_v31 = vpop.f32.mrf.mxu0 }
 0x1c6   :  { %14633 = vst [vmem:[#allocation7_spill] sm:$0xff] %v9596_v10  ;;  %v9605_v24 = vpop.f32.mrf.mxu1  ;;  %v9608_v7 = vadd.f32 %v2649_v31, %v8922_v37  ;;  %v9627_v37 = vld [vmem:[%s14077_s0 + $0xc8] ss:$20 sps:$4 sm:$0xff]  }
 0x1c7   :  { %14635 = vst [vmem:[#allocation91_spill] sm:$0xff] %v9605_v24  ;;  %v2651_v51 = vpop.f32.mrf.mxu0  ;;  %14645 = vst [vmem:[#allocation2_spill] sm:$0xff] %v9627_v37 }
 0x1c8   :  { %14636 = vst [vmem:[#allocation92_spill] sm:$0xff] %v9608_v7  ;;  %v9610_v26 = vpop.f32.mrf.mxu1  ;;  %v9613_v18 = vadd.f32 %v2651_v51, %v14638_v4  ;;  %v14646_v51 = vld [vmem:[#allocation12_spill] sm:$0xff] }
 0x1c9   :  { %14637 = vst [vmem:[#allocation93_spill] sm:$0xff] %v9610_v26  ;;  %v2653_v10 = vpop.f32.mrf.mxu0 }
 0x1ca   :  { %14639 = vst [vmem:[#allocation9_spill] sm:$0xff] %v9613_v18  ;;  %v9615_v6 = vpop.f32.mrf.mxu1  ;;  %v9618_v43 = vadd.f32 %v2653_v10, %v14641_v2  ;;  %v9637_v2 = vld [vmem:[%s14077_s0 + $0xf4] ss:$20 sps:$4 sm:$0xff]  }
 0x1cb   :  { %14640 = vst [vmem:[#allocation94_spill] sm:$0xff] %v9615_v6  ;;  %v2657_v14 = vpop.f32.mrf.mxu0  ;;  %3388 = vmatmul.mubr.bf16.gmra.mxu0 %v9627_v37  ;;  %14648 = vst [vmem:[#allocation96_spill] sm:$0xff] %v9637_v2 }
 0x1cc   :  { %14642 = vst [vmem:[#allocation10_spill] sm:$0xff] %v9618_v43  ;;  %v9620_v58 = vpop.f32.mrf.mxu1  ;;  %6909 = vmatmul.mubr.msk.bf16.gmra.mxu1 %vm2098_vm0, %v14644_v32  ;;  %v9631_v31 = vadd.f32 %v2657_v14, %v14646_v51  ;;  %3397 = vmatprep.mubr.bf16.mxu0 %v9637_v2 }
 0x1cd   :  { %14643 = vst [vmem:[#allocation95_spill] sm:$0xff] %v9620_v58  ;;  %3284 = vmatprep.mubr.bf16.mxu1 %v14563_v49  ;;  %v2659_v32 = vpop.f32.mrf.mxu0 }
 0x1ce   :  { %14647 = vst [vmem:[#allocation12_spill] sm:$0xff] %v9631_v31  ;;  %v9640_v10 = vpop.f32.mrf.mxu1  ;;  %v9643_v4 = vadd.f32 %v2659_v32, %v8965_v38  ;;  %v9662_v38 = vld [vmem:[%s14077_s0 + $0xf0] ss:$20 sps:$4 sm:$0xff]  }
 0x1cf   :  { %14649 = vst [vmem:[#allocation97_spill] sm:$0xff] %v9640_v10  ;;  %v2661_v18 = vpop.f32.mrf.mxu0  ;;  %14657 = vst [vmem:[#allocation3_spill] sm:$0xff] %v9662_v38 }
 0x1d0   :  { %14650 = vst [vmem:[#allocation98_spill] sm:$0xff] %v9643_v4  ;;  %v9645_v43 = vpop.f32.mrf.mxu1  ;;  %v9648_v14 = vadd.f32 %v2661_v18, %v8973_v5  ;;  %v14658_v5 = vld [vmem:[#allocation15_spill] sm:$0xff] }
 0x1d1   :  { %14651 = vst [vmem:[#allocation99_spill] sm:$0xff] %v9645_v43  ;;  %v2663_v51 = vpop.f32.mrf.mxu0  ;;  %v14670_v43 = vld [vmem:[#allocation4_spill] sm:$0xff] }
 0x1d2   :  { %14652 = vst [vmem:[#allocation100_spill] sm:$0xff] %v9648_v14  ;;  %v9650_v31 = vpop.f32.mrf.mxu1  ;;  %v9653_v7 = vadd.f32 %v2663_v51, %v8978_v36  ;;  %v9672_v36 = vld [vmem:[%s14077_s0 + $0x11c] ss:$20 sps:$4 sm:$0xff]  }
 0x1d3   :  { %14653 = vst [vmem:[#allocation101_spill] sm:$0xff] %v9650_v31  ;;  %v2667_v37 = vpop.f32.mrf.mxu0  ;;  %3398 = vmatmul.mubr.bf16.gmra.mxu0 %v9662_v38  ;;  %14660 = vst [vmem:[#allocation104_spill] sm:$0xff] %v9672_v36  ;;  %v14667_v38 = vld [vmem:[#allocation18_spill] sm:$0xff] }
 0x1d4   :  { %14654 = vst [vmem:[#allocation102_spill] sm:$0xff] %v9653_v7  ;;  %v9655_v2 = vpop.f32.mrf.mxu1  ;;  %6910 = vmatmul.mubr.msk.bf16.gmra.mxu1 %vm2098_vm0, %v14656_v19  ;;  %v9666_v18 = vadd.f32 %v2667_v37, %v14658_v5  ;;  %3407 = vmatprep.mubr.bf16.mxu0 %v9672_v36  ;;  %v14664_v37 = vld [vmem:[#allocation17_spill] sm:$0xff] }
 0x1d5   :  { %14655 = vst [vmem:[#allocation103_spill] sm:$0xff] %v9655_v2  ;;  %3294 = vmatprep.mubr.bf16.mxu1 %v14563_v49  ;;  %v2669_v19 = vpop.f32.mrf.mxu0 }
 0x1d6   :  { %14659 = vst [vmem:[#allocation15_spill] sm:$0xff] %v9666_v18  ;;  %v9675_v32 = vpop.f32.mrf.mxu1  ;;  %v9678_v51 = vadd.f32 %v2669_v19, %v9002_v47  ;;  %v9697_v47 = vld [vmem:[%s14077_s0 + $0x118] ss:$20 sps:$4 sm:$0xff]  }
 0x1d7   :  { %14661 = vst [vmem:[#allocation105_spill] sm:$0xff] %v9675_v32  ;;  %v2671_v14 = vpop.f32.mrf.mxu0  ;;  %14671 = vst [vmem:[#allocation4_spill] sm:$0xff] %v9697_v47 }
 0x1d8   :  { %14662 = vst [vmem:[#allocation106_spill] sm:$0xff] %v9678_v51  ;;  %v9680_v7 = vpop.f32.mrf.mxu1  ;;  %v9683_v5 = vadd.f32 %v2671_v14, %v14664_v37  ;;  %v14672_v14 = vld [vmem:[#allocation20_spill] sm:$0xff] }
 0x1d9   :  { %14663 = vst [vmem:[#allocation107_spill] sm:$0xff] %v9680_v7  ;;  %v2673_v18 = vpop.f32.mrf.mxu0 }
 0x1da   :  { %14665 = vst [vmem:[#allocation17_spill] sm:$0xff] %v9683_v5  ;;  %v9685_v4 = vpop.f32.mrf.mxu1  ;;  %v9688_v2 = vadd.f32 %v2673_v18, %v14667_v38  ;;  %v9706_v38 = vld [vmem:[%s14077_s0 + $0x144] ss:$20 sps:$4 sm:$0xff]   ;;  %v7715_v5 = vld [vmem:[%s14076_s1 + $0x6e0] ss:$28 sps:$4 sm:$0xff]  }
 0x1db   :  { %14666 = vst [vmem:[#allocation108_spill] sm:$0xff] %v9685_v4  ;;  %v2677_v31 = vpop.f32.mrf.mxu0  ;;  %3408 = vmatmul.mubr.bf16.gmra.mxu0 %v9697_v47  ;;  %14674 = vst [vmem:[#allocation110_spill] sm:$0xff] %v9706_v38  ;;  %v14675_v18 = vld [vmem:[#allocation5_spill] sm:$0xff]  ;;  %7056 = vmatprep.subr.bf16.mxu0 %v7715_v5  ;;  %v9739_v5 = vld [vmem:[%s14077_s0 + $0x140] ss:$20 sps:$4 sm:$0xff]  }
 0x1dc   :  { %14668 = vst [vmem:[#allocation18_spill] sm:$0xff] %v9688_v2  ;;  %v9690_v36 = vpop.f32.mrf.mxu1  ;;  %6911 = vmatmul.mubr.msk.bf16.gmra.mxu1 %vm2098_vm0, %v14670_v43  ;;  %v9701_v19 = vadd.f32 %v2677_v31, %v14672_v14  ;;  %3417 = vmatprep.mubr.bf16.mxu0 %v9706_v38  ;;  %v14677_v2 = vld [vmem:[#allocation22_spill] sm:$0xff]  ;;  %14685 = vst [vmem:[#allocation113_spill] sm:$0xff] %v9739_v5 }
 0x1dd   :  { %14669 = vst [vmem:[#allocation109_spill] sm:$0xff] %v9690_v36  ;;  %3530 = vmatprep.mubr.bf16.mxu1 %v14675_v18  ;;  %v2679_v43 = vpop.f32.mrf.mxu0  ;;  %v7691_v18 = vld [vmem:[%s14076_s1 + $0x1a0] ss:$28 sps:$4 sm:$0xff]   ;;  %v7692_v36 = vld [vmem:[%s14076_s1 + $0x328] ss:$28 sps:$4 sm:$0xff]  }
 0x1de   :  { %14673 = vst [vmem:[#allocation20_spill] sm:$0xff] %v9701_v19  ;;  %v9710_v37 = vpop.f32.mrf.mxu1  ;;  %v9716_v51 = vadd.f32 %v2679_v43, %v14677_v2  ;;  %v14680_v19 = vld [vmem:[#allocation23_spill] sm:$0xff]  ;;  %v14683_v2 = vld [vmem:[#allocation24_spill] sm:$0xff] }
 0x1df   :  { %14676 = vst [vmem:[#allocation5_spill] sm:$0xff] %v9710_v37  ;;  %v2681_v31 = vpop.f32.mrf.mxu0 }
 0x1e0   :  { %14678 = vst [vmem:[#allocation22_spill] sm:$0xff] %v9716_v51  ;;  %v9718_v14 = vpop.f32.mrf.mxu1  ;;  %v9721_v47 = vadd.f32 %v2681_v31, %v14680_v19  ;;  %v14686_v19 = vld [vmem:[#allocation6_spill] sm:$0xff] }
 0x1e1   :  { %14679 = vst [vmem:[#allocation111_spill] sm:$0xff] %v9718_v14  ;;  %v2683_v38 = vpop.f32.mrf.mxu0  ;;  %v14687_v31 = vld [vmem:[#allocation26_spill] sm:$0xff] }
 0x1e2   :  { %14681 = vst [vmem:[#allocation23_spill] sm:$0xff] %v9721_v47  ;;  %v9726_v37 = vpop.f32.mrf.mxu1  ;;  %v9732_v43 = vadd.f32 %v2683_v38, %v14683_v2  ;;  %v9749_v38 = vld [vmem:[%s14077_s0 + $0x16c] ss:$20 sps:$4 sm:$0xff]   ;;  %v7693_v2 = vld [vmem:[%s14076_s1 + $0x168] ss:$28 sps:$4 sm:$0xff]  }
 0x1e3   :  { %14682 = vst [vmem:[#allocation112_spill] sm:$0xff] %v9726_v37  ;;  %v2687_v51 = vpop.f32.mrf.mxu0  ;;  %3418 = vmatmul.mubr.bf16.gmra.mxu0 %v9739_v5  ;;  %14689 = vst [vmem:[#allocation26_spill] sm:$0xff] %v9749_v38  ;;  %v14690_v5 = vld [vmem:[#allocation8_spill] sm:$0xff] }
 0x1e4   :  { %14684 = vst [vmem:[#allocation24_spill] sm:$0xff] %v9732_v43  ;;  %v9734_v14 = vpop.f32.mrf.mxu1  ;;  %3531 = vmatmul.mubr.bf16.vlgmr.msra.gmra.mxu1 %v14686_v19  ;;  %v9744_v47 = vadd.f32 %v2687_v51, %v14687_v31  ;;  %3427 = vmatprep.mubr.bf16.mxu0 %v9749_v38  ;;  %v7697_v51 = vld [vmem:[%s14076_s1 + $0x2f0] ss:$28 sps:$4 sm:$0xff]  }
 0x1e5   :  { %6945 = vmatpush3.bf16.msra.mxu1 %v7691_v18  ;;  %v2689_v43 = vpop.f32.mrf.mxu0  ;;  %3540 = vmatprep.mubr.bf16.mxu1 %v14690_v5  ;;  %v14694_v5 = vld [vmem:[#allocation29_spill] sm:$0xff] }
 0x1e6   :  { %14688 = vst [vmem:[#allocation6_spill] sm:$0xff] %v9744_v47  ;;  %v9755_v37 = vpop.f32.mrf.mxu1  ;;  %6946 = vmatprep.subr.bf16.mxu1 %v7692_v36  ;;  %v9762_v18 = vadd.f32 %v2689_v43, %v9083_v29  ;;  %v14692_v47 = vld [vmem:[#allocation28_spill] sm:$0xff] }
 0x1e7   :  { %v2691_v19 = vpop.f32.mrf.mxu0  ;;  %v7698_v36 = vld [vmem:[%s14076_s1 + $0x130] ss:$28 sps:$4 sm:$0xff]   ;;  %v7699_v29 = vld [vmem:[%s14076_s1 + $0x2b8] ss:$28 sps:$4 sm:$0xff]  }
 0x1e8   :  { %14691 = vst [vmem:[#allocation8_spill] sm:$0xff] %v9762_v18  ;;  %v9764_v31 = vpop.f32.mrf.mxu1  ;;  %v9767_v38 = vadd.f32 %v2691_v19, %v14692_v47  ;;  %v9785_v47 = vld [vmem:[%s14077_s0 + $0x168] ss:$20 sps:$4 sm:$0xff]  }
 0x1e9   :  { %6947 = vmatpush3.bf16.msra.mxu1 %v7693_v2  ;;  %v2693_v4 = vpop.f32.mrf.mxu0  ;;  %14696 = vst [vmem:[#allocation114_spill] sm:$0xff] %v9785_v47  ;;  %v14697_v2 = vld [vmem:[#allocation11_spill] sm:$0xff] }
 0x1ea   :  { %14693 = vst [vmem:[#allocation28_spill] sm:$0xff] %v9767_v38  ;;  %v9769_v7 = vpop.f32.mrf.mxu1  ;;  %6948 = vmatprep.subr.bf16.mxu1 %v7697_v51  ;;  %v9775_v32 = vadd.f32 %v2693_v4, %v14694_v5  ;;  %v14698_v51 = vld [vmem:[#allocation31_spill] sm:$0xff]  ;;  %v14701_v5 = vld [vmem:[#allocation13_spill] sm:$0xff] }
 0x1eb   :  { %v2697_v43 = vpop.f32.mrf.mxu0  ;;  %3428 = vmatmul.mubr.bf16.gmra.mxu0 %v9785_v47  ;;  %v9795_v4 = vld [vmem:[%s14077_s0 + $0x194] ss:$20 sps:$4 sm:$0xff]  }
 0x1ec   :  { %14695 = vst [vmem:[#allocation29_spill] sm:$0xff] %v9775_v32  ;;  %v9780_v18 = vpop.f32.mrf.mxu1  ;;  %3541 = vmatmul.mubr.bf16.gmra.mxu1 %v14697_v2  ;;  %v9790_v19 = vadd.f32 %v2697_v43, %v14698_v51  ;;  %14700 = vst [vmem:[#allocation31_spill] sm:$0xff] %v9795_v4  ;;  %3437 = vmatprep.mubr.bf16.mxu0 %v9795_v4  ;;  %v7700_v2 = vld [vmem:[%s14076_s1 + $0xf8] ss:$28 sps:$4 sm:$0xff]   ;;  %v7707_v51 = vld [vmem:[%s14076_s1 + $0x280] ss:$28 sps:$4 sm:$0xff]  }
 0x1ed   :  { %3550 = vmatprep.mubr.bf16.mxu1 %v14701_v5  ;;  %v2699_v38 = vpop.f32.mrf.mxu0  ;;  %6949 = vmatpush3.bf16.msra.mxu1 %v7698_v36  ;;  %v14703_v5 = vld [vmem:[#allocation33_spill] sm:$0xff] }
 0x1ee   :  { %14699 = vst [vmem:[#allocation11_spill] sm:$0xff] %v9790_v19  ;;  %v9799_v32 = vpop.f32.mrf.mxu1  ;;  %v9805_v43 = vadd.f32 %v2699_v38, %v9124_v54  ;;  %6950 = vmatprep.subr.bf16.mxu1 %v7699_v29  ;;  %v7708_v54 = vld [vmem:[%s14076_s1 + $0xc0] ss:$28 sps:$4 sm:$0xff]  }
 0x1ef   :  { %v2701_v19 = vpop.f32.mrf.mxu0  ;;  %v14705_v38 = vld [vmem:[#allocation34_spill] sm:$0xff] }
 0x1f0   :  { %14702 = vst [vmem:[#allocation13_spill] sm:$0xff] %v9805_v43  ;;  %v9810_v4 = vpop.f32.mrf.mxu1  ;;  %v9813_v47 = vadd.f32 %v2701_v19, %v14703_v5  ;;  %v7709_v43 = vld [vmem:[%s14076_s1 + $0x248] ss:$28 sps:$4 sm:$0xff]   ;;  %v14709_v5 = vld [vmem:[#allocation36_spill] sm:$0xff] }
 0x1f1   :  { %v2703_v10 = vpop.f32.mrf.mxu0  ;;  %6951 = vmatpush3.bf16.msra.mxu1 %v7700_v2  ;;  %v9831_v19 = vld [vmem:[%s14077_s0 + $0x190] ss:$20 sps:$4 sm:$0xff]  }
 0x1f2   :  { %14704 = vst [vmem:[#allocation33_spill] sm:$0xff] %v9813_v47  ;;  %v9815_v36 = vpop.f32.mrf.mxu1  ;;  %v9821_v29 = vadd.f32 %v2703_v10, %v14705_v38  ;;  %6952 = vmatprep.subr.bf16.mxu1 %v7707_v51  ;;  %14707 = vst [vmem:[#allocation115_spill] sm:$0xff] %v9831_v19  ;;  %v14708_v2 = vld [vmem:[#allocation14_spill] sm:$0xff]  ;;  %v9841_v51 = vld [vmem:[%s14077_s0 + $0x1bc] ss:$20 sps:$4 sm:$0xff]  }
 0x1f3   :  { %v2707_v58 = vpop.f32.mrf.mxu0  ;;  %3438 = vmatmul.mubr.bf16.gmra.mxu0 %v9831_v19  ;;  %14711 = vst [vmem:[#allocation36_spill] sm:$0xff] %v9841_v51  ;;  %v14712_v38 = vld [vmem:[#allocation16_spill] sm:$0xff] }
 0x1f4   :  { %14706 = vst [vmem:[#allocation34_spill] sm:$0xff] %v9821_v29  ;;  %v9826_v6 = vpop.f32.mrf.mxu1  ;;  %3551 = vmatmul.mubr.bf16.gmra.mxu1 %v14708_v2  ;;  %v9836_v10 = vadd.f32 %v2707_v58, %v14709_v5  ;;  %3447 = vmatprep.mubr.bf16.mxu0 %v9841_v51  ;;  %v7710_v2 = vld [vmem:[%s14076_s1 + $0x88] ss:$28 sps:$4 sm:$0xff]   ;;  %v7711_v5 = vld [vmem:[%s14076_s1 + $0x210] ss:$28 sps:$4 sm:$0xff]  }
 0x1f5   :  { %3560 = vmatprep.mubr.bf16.mxu1 %v14712_v38  ;;  %v2709_v47 = vpop.f32.mrf.mxu0  ;;  %6953 = vmatpush3.bf16.msra.mxu1 %v7708_v54  ;;  %v14714_v38 = vld [vmem:[#allocation38_spill] sm:$0xff] }
 0x1f6   :  { %14710 = vst [vmem:[#allocation14_spill] sm:$0xff] %v9836_v10  ;;  %v9845_v29 = vpop.f32.mrf.mxu1  ;;  %v9851_v58 = vadd.f32 %v2709_v47, %v9171_v53  ;;  %6954 = vmatprep.subr.bf16.mxu1 %v7709_v43  ;;  %v7712_v53 = vld [vmem:[%s14076_s1 + $0x50] ss:$28 sps:$4 sm:$0xff]  }
 0x1f7   :  { %v2711_v10 = vpop.f32.mrf.mxu0  ;;  %v14716_v47 = vld [vmem:[#allocation39_spill] sm:$0xff] }
 0x1f8   :  { %14713 = vst [vmem:[#allocation16_spill] sm:$0xff] %v9851_v58  ;;  %v9856_v51 = vpop.f32.mrf.mxu1  ;;  %v9859_v19 = vadd.f32 %v2711_v10, %v14714_v38  ;;  %v7713_v58 = vld [vmem:[%s14076_s1 + $0x1d8] ss:$28 sps:$4 sm:$0xff]  }
 0x1f9   :  { %v2713_v26 = vpop.f32.mrf.mxu0  ;;  %6955 = vmatpush3.bf16.msra.mxu1 %v7710_v2  ;;  %v9877_v10 = vld [vmem:[%s14077_s0 + $0x1b8] ss:$20 sps:$4 sm:$0xff]  }
 0x1fa   :  { %14715 = vst [vmem:[#allocation38_spill] sm:$0xff] %v9859_v19  ;;  %v9861_v54 = vpop.f32.mrf.mxu1  ;;  %v9867_v43 = vadd.f32 %v2713_v26, %v14716_v47  ;;  %6956 = vmatprep.subr.bf16.mxu1 %v7711_v5  ;;  %14718 = vst [vmem:[#allocation116_spill] sm:$0xff] %v9877_v10  ;;  %v14719_v2 = vld [vmem:[#allocation19_spill] sm:$0xff]  ;;  %v14720_v38 = vld [vmem:[#allocation41_spill] sm:$0xff] }
 0x1fb   :  { %v2717_v24 = vpop.f32.mrf.mxu0  ;;  %3448 = vmatmul.mubr.bf16.gmra.mxu0 %v9877_v10  ;;  %v9887_v5 = vld [vmem:[%s14077_s0 + $0x1e4] ss:$20 sps:$4 sm:$0xff]  }
 0x1fc   :  { %14717 = vst [vmem:[#allocation39_spill] sm:$0xff] %v9867_v43  ;;  %v9872_v15 = vpop.f32.mrf.mxu1  ;;  %3561 = vmatmul.mubr.bf16.gmra.mxu1 %v14719_v2  ;;  %v9882_v26 = vadd.f32 %v2717_v24, %v14720_v38  ;;  %14722 = vst [vmem:[#allocation41_spill] sm:$0xff] %v9887_v5  ;;  %3457 = vmatprep.mubr.bf16.mxu0 %v9887_v5  ;;  %v14723_v47 = vld [vmem:[#allocation21_spill] sm:$0xff] }
 0x1fd   :  { %3570 = vmatprep.mubr.bf16.mxu1 %v14723_v47  ;;  %v2719_v19 = vpop.f32.mrf.mxu0  ;;  %6957 = vmatpush3.bf16.msra.mxu1 %v7712_v53  ;;  %v7714_v2 = vld [vmem:[%s14076_s1 + $0x18] ss:$28 sps:$4 sm:$0xff]   ;;  %v9902_v38 = vld [vmem:[%s14076_s1 + $0x7c0] ss:$28 sps:$4 sm:$0xff]  }
 0x1fe   :  { %14721 = vst [vmem:[#allocation19_spill] sm:$0xff] %v9882_v26  ;;  %v9891_v43 = vpop.f32.mrf.mxu1  ;;  %v9897_v24 = vadd.f32 %v2719_v19, %v9218_v44  ;;  %6958 = vmatprep.subr.bf16.mxu1 %v7713_v58  ;;  %14725 = vst [vmem:[#allocation117_spill] sm:$0xff] %v9902_v38  ;;  %v9920_v58 = vld [vmem:[%s14077_s0 + $0x1e0] ss:$20 sps:$4 sm:$0xff]  }
 0x1ff   :  { %v2721_v26 = vpop.f32.mrf.mxu0  ;;  %14728 = vst [vmem:[#allocation120_spill] sm:$0xff] %v9920_v58 }
 0x200   :  { %14724 = vst [vmem:[#allocation21_spill] sm:$0xff] %v9897_v24  ;;  %v9904_v5 = vpop.f32.mrf.mxu1  ;;  %v9907_v47 = vadd.f32 %v2721_v26, %v9226_v48  ;;  %v14729_v48 = vld [vmem:[#allocation25_spill] sm:$0xff] }
 0x201   :  { %v2723_v53 = vpop.f32.mrf.mxu0  ;;  %6959 = vmatpush3.bf16.msra.mxu1 %v7714_v2 }
 0x202   :  { %14726 = vst [vmem:[#allocation118_spill] sm:$0xff] %v9907_v47  ;;  %v9909_v10 = vpop.f32.mrf.mxu1  ;;  %v9912_v39 = vadd.f32 %v2723_v53, %v9234_v59  ;;  %7188 = vmatprep.subr.bf16.mxu1 %v9902_v38  ;;  %v9930_v59 = vld [vmem:[%s14077_s0 + $0x20c] ss:$20 sps:$4 sm:$0xff]  }
 0x203   :  { %v9915_v44 = vpop.f32.mrf.mxu0  ;;  %3458 = vmatmul.mubr.bf16.gmra.mxu0 %v9920_v58  ;;  %14731 = vst [vmem:[#allocation121_spill] sm:$0xff] %v9930_v59  ;;  %v14732_v47 = vld [vmem:[#allocation27_spill] sm:$0xff] }
 0x204   :  { %14727 = vst [vmem:[#allocation119_spill] sm:$0xff] %v9912_v39  ;;  %v3073_v19 = vpop.f32.mrf.mxu1  ;;  %3571 = vmatmul.mubr.bf16.gmra.mxu1 %v14729_v48  ;;  %3467 = vmatprep.mubr.bf16.mxu0 %v9930_v59 }
 0x205   :  { %v9925_v26 = vadd.f32 %v3073_v19, %v9734_v14  ;;  %v9933_v2 = vpop.f32.mrf.mxu0  ;;  %3580 = vmatprep.mubr.bf16.mxu1 %v14732_v47  ;;  %v14736_v47 = vld [vmem:[#allocation30_spill] sm:$0xff] }
 0x206   :  { %v3075_v53 = vpop.f32.mrf.mxu1 }
 0x207   :  { %14730 = vst [vmem:[#allocation25_spill] sm:$0xff] %v9925_v26  ;;  %v9937_v39 = vadd.f32 %v3075_v53, %v9755_v37  ;;  %v9939_v24 = vpop.f32.mrf.mxu0  ;;  %v9954_v37 = vld [vmem:[%s14077_s0 + $0x208] ss:$20 sps:$4 sm:$0xff]  }
 0x208   :  { %v3077_v48 = vpop.f32.mrf.mxu1  ;;  %14735 = vst [vmem:[#allocation123_spill] sm:$0xff] %v9954_v37 }
 0x209   :  { %v9942_v14 = vadd.f32 %v3077_v48, %v9764_v31  ;;  %v9944_v19 = vpop.f32.mrf.mxu0 }
 0x20a   :  { %v3079_v58 = vpop.f32.mrf.mxu1 }
 0x20b   :  { %14733 = vst [vmem:[#allocation27_spill] sm:$0xff] %v9942_v14  ;;  %v9947_v26 = vadd.f32 %v3079_v58, %v9769_v7  ;;  %v9949_v59 = vpop.f32.mrf.mxu0  ;;  %3468 = vmatmul.mubr.bf16.gmra.mxu0 %v9954_v37  ;;  %v9964_v7 = vld [vmem:[%s14077_s0 + $0x234] ss:$20 sps:$4 sm:$0xff]  }
 0x20c   :  { %v3083_v38 = vpop.f32.mrf.mxu1  ;;  %3581 = vmatmul.mubr.bf16.gmra.mxu1 %v14736_v47  ;;  %14738 = vst [vmem:[#allocation124_spill] sm:$0xff] %v9964_v7  ;;  %3477 = vmatprep.mubr.bf16.mxu0 %v9964_v7  ;;  %v14739_v58 = vld [vmem:[#allocation32_spill] sm:$0xff] }
 0x20d   :  { %14734 = vst [vmem:[#allocation122_spill] sm:$0xff] %v9947_v26  ;;  %v9959_v31 = vadd.f32 %v3083_v38, %v9780_v18  ;;  %3590 = vmatprep.mubr.bf16.mxu1 %v14739_v58  ;;  %v9968_v53 = vpop.f32.mrf.mxu0 }
 0x20e   :  { %v3085_v48 = vpop.f32.mrf.mxu1 }
 0x20f   :  { %14737 = vst [vmem:[#allocation30_spill] sm:$0xff] %v9959_v31  ;;  %v9971_v26 = vadd.f32 %v3085_v48, %v9799_v32  ;;  %v9973_v37 = vpop.f32.mrf.mxu0  ;;  %v9988_v32 = vld [vmem:[%s14077_s0 + $0x230] ss:$20 sps:$4 sm:$0xff]   ;;  %v14744_v48 = vld [vmem:[#allocation35_spill] sm:$0xff] }
 0x210   :  { %v3087_v47 = vpop.f32.mrf.mxu1  ;;  %14743 = vst [vmem:[#allocation127_spill] sm:$0xff] %v9988_v32 }
 0x211   :  { %14740 = vst [vmem:[#allocation32_spill] sm:$0xff] %v9971_v26  ;;  %v9976_v18 = vadd.f32 %v3087_v47, %v9810_v4  ;;  %v9978_v38 = vpop.f32.mrf.mxu0 }
 0x212   :  { %v3089_v31 = vpop.f32.mrf.mxu1 }
 0x213   :  { %14741 = vst [vmem:[#allocation125_spill] sm:$0xff] %v9976_v18  ;;  %v9981_v14 = vadd.f32 %v3089_v31, %v9815_v36  ;;  %v9983_v7 = vpop.f32.mrf.mxu0  ;;  %3478 = vmatmul.mubr.bf16.gmra.mxu0 %v9988_v32  ;;  %v9998_v36 = vld [vmem:[%s14077_s0 + $0x25c] ss:$20 sps:$4 sm:$0xff]  }
 0x214   :  { %v3093_v58 = vpop.f32.mrf.mxu1  ;;  %3591 = vmatmul.mubr.bf16.gmra.mxu1 %v14744_v48  ;;  %14746 = vst [vmem:[#allocation128_spill] sm:$0xff] %v9998_v36  ;;  %3487 = vmatprep.mubr.bf16.mxu0 %v9998_v36  ;;  %v14747_v31 = vld [vmem:[#allocation37_spill] sm:$0xff] }
 0x215   :  { %14742 = vst [vmem:[#allocation126_spill] sm:$0xff] %v9981_v14  ;;  %v9993_v4 = vadd.f32 %v3093_v58, %v9826_v6  ;;  %3600 = vmatprep.mubr.bf16.mxu1 %v14747_v31  ;;  %v10002_v47 = vpop.f32.mrf.mxu0 }
 0x216   :  { %v3095_v14 = vpop.f32.mrf.mxu1 }
 0x217   :  { %14745 = vst [vmem:[#allocation35_spill] sm:$0xff] %v9993_v4  ;;  %v10005_v18 = vadd.f32 %v3095_v14, %v9845_v29  ;;  %v10007_v32 = vpop.f32.mrf.mxu0  ;;  %v10022_v29 = vld [vmem:[%s14077_s0 + $0x258] ss:$20 sps:$4 sm:$0xff]   ;;  %v14752_v14 = vld [vmem:[#allocation40_spill] sm:$0xff] }
 0x218   :  { %v3097_v48 = vpop.f32.mrf.mxu1  ;;  %14751 = vst [vmem:[#allocation131_spill] sm:$0xff] %v10022_v29 }
 0x219   :  { %14748 = vst [vmem:[#allocation37_spill] sm:$0xff] %v10005_v18  ;;  %v10010_v6 = vadd.f32 %v3097_v48, %v9856_v51  ;;  %v10012_v58 = vpop.f32.mrf.mxu0  ;;  %v14754_v48 = vld [vmem:[#allocation42_spill] sm:$0xff] }
 0x21a   :  { %v3099_v4 = vpop.f32.mrf.mxu1 }
 0x21b   :  { %14749 = vst [vmem:[#allocation129_spill] sm:$0xff] %v10010_v6  ;;  %v10015_v26 = vadd.f32 %v3099_v4, %v9861_v54  ;;  %v10017_v36 = vpop.f32.mrf.mxu0  ;;  %3488 = vmatmul.mubr.bf16.gmra.mxu0 %v10022_v29 }
 0x21c   :  { %v3103_v31 = vpop.f32.mrf.mxu1  ;;  %3601 = vmatmul.mubr.bf16.gmra.mxu1 %v14752_v14  ;;  %3723 = vmatprep.mubr.bf16.mxu0 %v14563_v49 }
 0x21d   :  { %14750 = vst [vmem:[#allocation130_spill] sm:$0xff] %v10015_v26  ;;  %v10027_v51 = vadd.f32 %v3103_v31, %v9872_v15  ;;  %3610 = vmatprep.mubr.bf16.mxu1 %v14754_v48  ;;  %v10031_v54 = vpop.f32.mrf.mxu0  ;;  %v7716_v31 = vld [vmem:[%s14076_s1 + $0x520] ss:$28 sps:$4 sm:$0xff]   ;;  %v2954_v48 = vadd.f32 %v9915_v44, %v9242_v21 }
 0x21e   :  { %v3105_v4 = vpop.f32.mrf.mxu1  ;;  %v14758_v21 = vld [vmem:[#allocation45_spill] sm:$0xff] }
 0x21f   :  { %14753 = vst [vmem:[#allocation40_spill] sm:$0xff] %v10027_v51  ;;  %v10034_v26 = vadd.f32 %v3105_v4, %v9891_v43  ;;  %v10036_v6 = vpop.f32.mrf.mxu0  ;;  %v7718_v43 = vld [vmem:[%s14076_s1 + $0x6a8] ss:$28 sps:$4 sm:$0xff]  }
 0x220   :  { %v3107_v18 = vpop.f32.mrf.mxu1 }
 0x221   :  { %14755 = vst [vmem:[#allocation42_spill] sm:$0xff] %v10034_v26  ;;  %v10039_v29 = vadd.f32 %v3107_v18, %v9904_v5  ;;  %v10041_v14 = vpop.f32.mrf.mxu0  ;;  %v10060_v18 = vld [vmem:[%s14077_s0 + $0x10] ss:$20 sps:$4 sm:$0xff]  }
 0x222   :  { %v3109_v15 = vpop.f32.mrf.mxu1 }
 0x223   :  { %14756 = vst [vmem:[#allocation132_spill] sm:$0xff] %v10039_v29  ;;  %v10049_v51 = vadd.f32 %v3109_v15, %v9909_v10  ;;  %v10054_v4 = vpop.f32.mrf.mxu0  ;;  %6912 = vmatmul.mubr.msk.bf16.vlgmr.msra.gmra.mxu0 %vm2098_vm0, %v10060_v18  ;;  %v2956_v10 = vadd.f32 %v9933_v2, %v14758_v21  ;;  %v14760_v15 = vld [vmem:[#allocation44_spill] sm:$0xff]  ;;  %v7719_v29 = vld [vmem:[%s14076_s1 + $0x4e8] ss:$28 sps:$4 sm:$0xff]  }
 0x224   :  { %v3146_v5 = vpop.f32.mrf.mxu1  ;;  %3611 = vmatmul.mubr.bf16.gmra.mxu1 %v9247_v57  ;;  %3733 = vmatprep.mubr.bf16.mxu0 %v14563_v49  ;;  %v7720_v2 = vld [vmem:[%s14076_s1 + $0x670] ss:$28 sps:$4 sm:$0xff]  }
 0x225   :  { %14757 = vst [vmem:[#allocation133_spill] sm:$0xff] %v10049_v51  ;;  %v10066_v44 = vadd.f32 %v3146_v5, %v2954_v48  ;;  %3620 = vmatprep.mubr.bf16.mxu1 %v14760_v15  ;;  %v10070_v51 = vpop.f32.mrf.mxu0  ;;  %7057 = vmatpush3.bf16.msra.mxu0 %v7716_v31  ;;  %v2958_v48 = vadd.f32 %v9939_v24, %v9273_v52 }
 0x226   :  { %v3148_v57 = vpop.f32.mrf.mxu1  ;;  %7058 = vmatprep.subr.bf16.mxu0 %v7718_v43  ;;  %v2960_v31 = vadd.f32 %v9944_v19, %v9278_v63  ;;  %v7721_v43 = vld [vmem:[%s14076_s1 + $0x4b0] ss:$28 sps:$4 sm:$0xff]   ;;  %v7723_v63 = vld [vmem:[%s14076_s1 + $0x638] ss:$28 sps:$4 sm:$0xff]  }
 0x227   :  { %14759 = vst [vmem:[#allocation45_spill] sm:$0xff] %v10066_v44  ;;  %v10075_v26 = vadd.f32 %v3148_v57, %v2956_v10  ;;  %v10082_v5 = vpop.f32.mrf.mxu0  ;;  %v2964_v57 = vadd.f32 %v9949_v59, %v9289_v3  ;;  %v2966_v3 = vadd.f32 %v9968_v53, %v9309_v62  ;;  %v7725_v62 = vld [vmem:[%s14076_s1 + $0x600] ss:$28 sps:$4 sm:$0xff]   ;;  %v14766_v53 = vld [vmem:[#allocation51_spill] sm:$0xff] }
 0x228   :  { %v3150_v21 = vpop.f32.mrf.mxu1 }
 0x229   :  { %14761 = vst [vmem:[#allocation44_spill] sm:$0xff] %v10075_v26  ;;  %v10086_v15 = vadd.f32 %v3150_v21, %v2958_v48  ;;  %v10088_v44 = vpop.f32.mrf.mxu0  ;;  %7059 = vmatpush3.bf16.msra.mxu0 %v7719_v29  ;;  %v10106_v29 = vld [vmem:[%s14077_s0 + $0x38] ss:$20 sps:$4 sm:$0xff]  }
 0x22a   :  { %v3152_v10 = vpop.f32.mrf.mxu1  ;;  %7060 = vmatprep.subr.bf16.mxu0 %v7720_v2  ;;  %v7724_v48 = vld [vmem:[%s14076_s1 + $0x478] ss:$28 sps:$4 sm:$0xff]  }
 0x22b   :  { %14762 = vst [vmem:[#allocation134_spill] sm:$0xff] %v10086_v15  ;;  %v10095_v52 = vadd.f32 %v3152_v10, %v2960_v31  ;;  %v10100_v24 = vpop.f32.mrf.mxu0  ;;  %6913 = vmatmul.mubr.msk.bf16.gmra.mxu0 %vm2098_vm0, %v10106_v29  ;;  %v14876_v26 = vld [vmem:[#allocation129_spill] sm:$0xff] }
 0x22c   :  { %v3156_v19 = vpop.f32.mrf.mxu1  ;;  %3621 = vmatmul.mubr.bf16.gmra.mxu1 %v9294_v8  ;;  %3743 = vmatprep.mubr.bf16.mxu0 %v14563_v49 }
 0x22d   :  { %14763 = vst [vmem:[#allocation135_spill] sm:$0xff] %v10095_v52  ;;  %v10112_v59 = vadd.f32 %v3156_v19, %v2964_v57  ;;  %3630 = vmatprep.mubr.bf16.mxu1 %v9305_v16  ;;  %v10116_v2 = vpop.f32.mrf.mxu0  ;;  %7061 = vmatpush3.bf16.msra.mxu0 %v7721_v43  ;;  %v2968_v16 = vadd.f32 %v9973_v37, %v14766_v53 }
 0x22e   :  { %v3158_v8 = vpop.f32.mrf.mxu1  ;;  %7062 = vmatprep.subr.bf16.mxu0 %v7723_v63  ;;  %v2970_v43 = vadd.f32 %v9978_v38, %v9325_v1  ;;  %v7726_v63 = vld [vmem:[%s14076_s1 + $0x440] ss:$28 sps:$4 sm:$0xff]   ;;  %v7727_v1 = vld [vmem:[%s14076_s1 + $0x5c8] ss:$28 sps:$4 sm:$0xff]  }
 0x22f   :  { %14764 = vst [vmem:[#allocation136_spill] sm:$0xff] %v10112_v59  ;;  %v10121_v21 = vadd.f32 %v3158_v8, %v2966_v3  ;;  %v10128_v31 = vpop.f32.mrf.mxu0  ;;  %v2974_v8 = vadd.f32 %v9983_v7, %v9336_v9  ;;  %v2976_v9 = vadd.f32 %v10002_v47, %v9356_v41  ;;  %v7729_v41 = vld [vmem:[%s14076_s1 + $0x590] ss:$28 sps:$4 sm:$0xff]  }
 0x230   :  { %v3160_v10 = vpop.f32.mrf.mxu1  ;;  %v14771_v47 = vld [vmem:[#allocation56_spill] sm:$0xff] }
 0x231   :  { %14765 = vst [vmem:[#allocation137_spill] sm:$0xff] %v10121_v21  ;;  %v10132_v57 = vadd.f32 %v3160_v10, %v2968_v16  ;;  %v10134_v19 = vpop.f32.mrf.mxu0  ;;  %7063 = vmatpush3.bf16.msra.mxu0 %v7724_v48  ;;  %v10152_v48 = vld [vmem:[%s14077_s0 + $0x60] ss:$20 sps:$4 sm:$0xff]   ;;  %v7728_v16 = vld [vmem:[%s14076_s1 + $0x408] ss:$28 sps:$4 sm:$0xff]  }
 0x232   :  { %v3162_v3 = vpop.f32.mrf.mxu1  ;;  %7064 = vmatprep.subr.bf16.mxu0 %v7725_v62 }
 0x233   :  { %14767 = vst [vmem:[#allocation51_spill] sm:$0xff] %v10132_v57  ;;  %v10141_v37 = vadd.f32 %v3162_v3, %v2970_v43  ;;  %v10146_v38 = vpop.f32.mrf.mxu0  ;;  %6914 = vmatmul.mubr.msk.bf16.gmra.mxu0 %vm2098_vm0, %v10152_v48 }
 0x234   :  { %v3166_v53 = vpop.f32.mrf.mxu1  ;;  %3631 = vmatmul.mubr.bf16.gmra.mxu1 %v9341_v23  ;;  %3753 = vmatprep.mubr.bf16.mxu0 %v14563_v49 }
 0x235   :  { %14768 = vst [vmem:[#allocation138_spill] sm:$0xff] %v10141_v37  ;;  %v10158_v7 = vadd.f32 %v3166_v53, %v2974_v8  ;;  %3640 = vmatprep.mubr.bf16.mxu1 %v9352_v22  ;;  %v10162_v62 = vpop.f32.mrf.mxu0  ;;  %7065 = vmatpush3.bf16.msra.mxu0 %v7726_v63  ;;  %v2978_v22 = vadd.f32 %v10007_v32, %v14771_v47 }
 0x236   :  { %v3168_v23 = vpop.f32.mrf.mxu1  ;;  %7066 = vmatprep.subr.bf16.mxu0 %v7727_v1  ;;  %v2980_v63 = vadd.f32 %v10012_v58, %v9372_v17  ;;  %v7730_v1 = vld [vmem:[%s14076_s1 + $0x3d0] ss:$28 sps:$4 sm:$0xff]   ;;  %v7731_v17 = vld [vmem:[%s14076_s1 + $0x558] ss:$28 sps:$4 sm:$0xff]  }
 0x237   :  { %14769 = vst [vmem:[#allocation139_spill] sm:$0xff] %v10158_v7  ;;  %v10167_v10 = vadd.f32 %v3168_v23, %v2976_v9  ;;  %v10174_v43 = vpop.f32.mrf.mxu0  ;;  %v2984_v23 = vadd.f32 %v10017_v36, %v9383_v50  ;;  %v2986_v50 = vadd.f32 %v10031_v54, %v9403_v13  ;;  %v2988_v54 = vadd.f32 %v10036_v6, %v9414_v0  ;;  %v10239_v6 = vld [vmem:[%s14077_s0 + $0x1e8] ss:$20 sps:$4 sm:$0xff]  }
 0x238   :  { %v3170_v3 = vpop.f32.mrf.mxu1  ;;  %14779 = vst [vmem:[#allocation147_spill] sm:$0xff] %v10239_v6 }
 0x239   :  { %14770 = vst [vmem:[#allocation140_spill] sm:$0xff] %v10167_v10  ;;  %v10178_v8 = vadd.f32 %v3170_v3, %v2978_v22  ;;  %v10180_v53 = vpop.f32.mrf.mxu0  ;;  %7067 = vmatpush3.bf16.msra.mxu0 %v7728_v16  ;;  %v10198_v16 = vld [vmem:[%s14077_s0 + $0x88] ss:$20 sps:$4 sm:$0xff]   ;;  %v7732_v3 = vld [vmem:[%s14076_s1 + $0x398] ss:$28 sps:$4 sm:$0xff]  }
 0x23a   :  { %v3172_v9 = vpop.f32.mrf.mxu1  ;;  %7068 = vmatprep.subr.bf16.mxu0 %v7729_v41  ;;  %v10209_v41 = vld [vmem:[%s14077_s0 + $0x1ec] ss:$20 sps:$4 sm:$0xff]  }
 0x23b   :  { %14772 = vst [vmem:[#allocation56_spill] sm:$0xff] %v10178_v8  ;;  %v10187_v32 = vadd.f32 %v3172_v9, %v2980_v63  ;;  %v10192_v58 = vpop.f32.mrf.mxu0  ;;  %6915 = vmatmul.mubr.msk.bf16.gmra.mxu0 %vm2098_vm0, %v10198_v16  ;;  %14775 = vst [vmem:[#allocation143_spill] sm:$0xff] %v10209_v41  ;;  %v14865_v8 = vld [vmem:[#allocation125_spill] sm:$0xff] }
 0x23c   :  { %v3176_v47 = vpop.f32.mrf.mxu1  ;;  %3641 = vmatmul.mubr.bf16.gmra.mxu1 %v9388_v61  ;;  %3763 = vmatprep.mubr.bf16.mxu0 %v14563_v49 }
 0x23d   :  { %14773 = vst [vmem:[#allocation141_spill] sm:$0xff] %v10187_v32  ;;  %v10204_v36 = vadd.f32 %v3176_v47, %v2984_v23  ;;  %3650 = vmatprep.mubr.bf16.mxu1 %v10209_v41  ;;  %v10213_v61 = vpop.f32.mrf.mxu0  ;;  %7069 = vmatpush3.bf16.msra.mxu0 %v7730_v1  ;;  %v2990_v23 = vadd.f32 %v10041_v14, %v9419_v55  ;;  %v10245_v55 = vld [vmem:[%s14077_s0 + $0xb0] ss:$20 sps:$4 sm:$0xff]  }
 0x23e   :  { %v3178_v22 = vpop.f32.mrf.mxu1  ;;  %7070 = vmatprep.subr.bf16.mxu0 %v7731_v17 }
 0x23f   :  { %14774 = vst [vmem:[#allocation142_spill] sm:$0xff] %v10204_v36  ;;  %v10218_v13 = vadd.f32 %v3178_v22, %v2986_v50  ;;  %v10222_v63 = vpop.f32.mrf.mxu0  ;;  %v2994_v50 = vadd.f32 %v10054_v4, %v9430_v30  ;;  %v2996_v30 = vadd.f32 %v10070_v51, %v9450_v56  ;;  %v10256_v4 = vld [vmem:[%s14077_s0 + $0x214] ss:$20 sps:$4 sm:$0xff]  }
 0x240   :  { %v3180_v9 = vpop.f32.mrf.mxu1  ;;  %14781 = vst [vmem:[#allocation149_spill] sm:$0xff] %v10256_v4 }
 0x241   :  { %14776 = vst [vmem:[#allocation144_spill] sm:$0xff] %v10218_v13  ;;  %v10226_v47 = vadd.f32 %v3180_v9, %v2988_v54  ;;  %v10228_v32 = vpop.f32.mrf.mxu0  ;;  %7071 = vmatpush3.bf16.msra.mxu0 %v7732_v3  ;;  %v3004_v13 = vadd.f32 %v10100_v24, %v9477_v28  ;;  %v3006_v28 = vadd.f32 %v10116_v2, %v9497_v25 }
 0x242   :  { %v3182_v1 = vpop.f32.mrf.mxu1 }
 0x243   :  { %14777 = vst [vmem:[#allocation145_spill] sm:$0xff] %v10226_v47  ;;  %v10232_v22 = vadd.f32 %v3182_v1, %v2990_v23  ;;  %v10234_v17 = vpop.f32.mrf.mxu0  ;;  %6916 = vmatmul.mubr.msk.bf16.gmra.mxu0 %vm2098_vm0, %v10245_v55  ;;  %v2998_v23 = vadd.f32 %v10082_v5, %v9461_v42  ;;  %v3000_v1 = vadd.f32 %v10088_v44, %v9466_v11  ;;  %v10283_v42 = vld [vmem:[%s14077_s0 + $0x210] ss:$20 sps:$4 sm:$0xff]   ;;  %v10289_v11 = vld [vmem:[%s14077_s0 + $0xd8] ss:$20 sps:$4 sm:$0xff]  }
 0x244   :  { %v3186_v0 = vpop.f32.mrf.mxu1  ;;  %3651 = vmatmul.mubr.bf16.gmra.mxu1 %v10239_v6  ;;  %3773 = vmatprep.mubr.bf16.mxu0 %v14563_v49  ;;  %14785 = vst [vmem:[#allocation153_spill] sm:$0xff] %v10283_v42  ;;  %v10300_v5 = vld [vmem:[%s14077_s0 + $0x23c] ss:$20 sps:$4 sm:$0xff]  }
 0x245   :  { %14778 = vst [vmem:[#allocation146_spill] sm:$0xff] %v10232_v22  ;;  %v10251_v14 = vadd.f32 %v3186_v0, %v2994_v50  ;;  %3660 = vmatprep.mubr.bf16.mxu1 %v10256_v4  ;;  %v10260_v3 = vpop.f32.mrf.mxu0  ;;  %14787 = vst [vmem:[#allocation155_spill] sm:$0xff] %v10300_v5 }
 0x246   :  { %v3188_v54 = vpop.f32.mrf.mxu1 }
 0x247   :  { %14780 = vst [vmem:[#allocation148_spill] sm:$0xff] %v10251_v14  ;;  %v10262_v9 = vadd.f32 %v3188_v54, %v2996_v30  ;;  %v10266_v56 = vpop.f32.mrf.mxu0 }
 0x248   :  { %v3190_v51 = vpop.f32.mrf.mxu1 }
 0x249   :  { %14782 = vst [vmem:[#allocation150_spill] sm:$0xff] %v10262_v9  ;;  %v10270_v50 = vadd.f32 %v3190_v51, %v2998_v23  ;;  %v10272_v0 = vpop.f32.mrf.mxu0  ;;  %v3008_v51 = vadd.f32 %v10128_v31, %v9505_v46  ;;  %v10327_v46 = vld [vmem:[%s14077_s0 + $0x238] ss:$20 sps:$4 sm:$0xff]  }
 0x24a   :  { %v3192_v22 = vpop.f32.mrf.mxu1  ;;  %14791 = vst [vmem:[#allocation159_spill] sm:$0xff] %v10327_v46 }
 0x24b   :  { %14783 = vst [vmem:[#allocation151_spill] sm:$0xff] %v10270_v50  ;;  %v10276_v14 = vadd.f32 %v3192_v22, %v3000_v1  ;;  %v10278_v30 = vpop.f32.mrf.mxu0  ;;  %6917 = vmatmul.mubr.msk.bf16.gmra.mxu0 %vm2098_vm0, %v10289_v11 }
 0x24c   :  { %v3196_v54 = vpop.f32.mrf.mxu1  ;;  %3661 = vmatmul.mubr.bf16.gmra.mxu1 %v10283_v42  ;;  %3783 = vmatprep.mubr.bf16.mxu0 %v14563_v49 }
 0x24d   :  { %14784 = vst [vmem:[#allocation152_spill] sm:$0xff] %v10276_v14  ;;  %v10295_v44 = vadd.f32 %v3196_v54, %v3004_v13  ;;  %3670 = vmatprep.mubr.bf16.mxu1 %v10300_v5  ;;  %v10304_v24 = vpop.f32.mrf.mxu0  ;;  %v3010_v13 = vadd.f32 %v10134_v19, %v9510_v40  ;;  %v10333_v40 = vld [vmem:[%s14077_s0 + $0x100] ss:$20 sps:$4 sm:$0xff]   ;;  %v10344_v19 = vld [vmem:[%s14077_s0 + $0x264] ss:$20 sps:$4 sm:$0xff]  }
 0x24e   :  { %v3198_v22 = vpop.f32.mrf.mxu1  ;;  %14793 = vst [vmem:[#allocation161_spill] sm:$0xff] %v10344_v19 }
 0x24f   :  { %14786 = vst [vmem:[#allocation154_spill] sm:$0xff] %v10295_v44  ;;  %v10306_v23 = vadd.f32 %v3198_v22, %v3006_v28  ;;  %v10310_v25 = vpop.f32.mrf.mxu0  ;;  %v3014_v44 = vadd.f32 %v10146_v38, %v9515_v27  ;;  %v3016_v27 = vadd.f32 %v10162_v62, %v9535_v60 }
 0x250   :  { %v3200_v2 = vpop.f32.mrf.mxu1 }
 0x251   :  { %14788 = vst [vmem:[#allocation156_spill] sm:$0xff] %v10306_v23  ;;  %v10314_v1 = vadd.f32 %v3200_v2, %v3008_v51  ;;  %v10316_v54 = vpop.f32.mrf.mxu0  ;;  %v3018_v2 = vadd.f32 %v10174_v43, %v9540_v12  ;;  %v3024_v23 = vadd.f32 %v10192_v58, %v9550_v34  ;;  %v10371_v12 = vld [vmem:[%s14077_s0 + $0x260] ss:$20 sps:$4 sm:$0xff]   ;;  %v3026_v34 = vadd.f32 %v10213_v61, %v9570_v20 }
 0x252   :  { %v3202_v14 = vpop.f32.mrf.mxu1  ;;  %14797 = vst [vmem:[#allocation165_spill] sm:$0xff] %v10371_v12  ;;  %v3030_v20 = vadd.f32 %v10228_v32, %v9580_v33  ;;  %v10413_v33 = vld [vmem:[%s14077_s0 + $0x150] ss:$20 sps:$4 sm:$0xff]  }
 0x253   :  { %14789 = vst [vmem:[#allocation157_spill] sm:$0xff] %v10314_v1  ;;  %v10320_v9 = vadd.f32 %v3202_v14, %v3010_v13  ;;  %v10322_v28 = vpop.f32.mrf.mxu0  ;;  %6918 = vmatmul.mubr.msk.bf16.gmra.mxu0 %vm2098_vm0, %v10333_v40  ;;  %14804 = vst [vmem:[#allocation168_spill] sm:$0xff] %v10413_v33  ;;  %v14805_v32 = vld [vmem:[#allocation64_spill] sm:$0xff] }
 0x254   :  { %v3206_v22 = vpop.f32.mrf.mxu1  ;;  %3671 = vmatmul.mubr.bf16.gmra.mxu1 %v10327_v46  ;;  %3793 = vmatprep.mubr.bf16.mxu0 %v14563_v49  ;;  %v14893_v46 = vld [vmem:[#allocation114_spill] sm:$0xff] }
 0x255   :  { %14790 = vst [vmem:[#allocation158_spill] sm:$0xff] %v10320_v9  ;;  %v10339_v31 = vadd.f32 %v3206_v22, %v3014_v44  ;;  %3680 = vmatprep.mubr.bf16.mxu1 %v10344_v19  ;;  %v10348_v38 = vpop.f32.mrf.mxu0  ;;  %v3020_v44 = vadd.f32 %v10180_v53, %v9545_v35  ;;  %v10377_v35 = vld [vmem:[%s14077_s0 + $0x128] ss:$20 sps:$4 sm:$0xff]   ;;  %v14799_v53 = vld [vmem:[#allocation60_spill] sm:$0xff] }
 0x256   :  { %v3208_v14 = vpop.f32.mrf.mxu1 }
 0x257   :  { %14792 = vst [vmem:[#allocation160_spill] sm:$0xff] %v10339_v31  ;;  %v10350_v51 = vadd.f32 %v3208_v14, %v3016_v27  ;;  %v10354_v60 = vpop.f32.mrf.mxu0 }
 0x258   :  { %v3210_v62 = vpop.f32.mrf.mxu1 }
 0x259   :  { %14794 = vst [vmem:[#allocation162_spill] sm:$0xff] %v10350_v51  ;;  %v10358_v13 = vadd.f32 %v3210_v62, %v3018_v2  ;;  %v10360_v22 = vpop.f32.mrf.mxu0  ;;  %v3028_v62 = vadd.f32 %v10222_v63, %v9575_v45 }
 0x25a   :  { %v3212_v9 = vpop.f32.mrf.mxu1 }
 0x25b   :  { %14795 = vst [vmem:[#allocation163_spill] sm:$0xff] %v10358_v13  ;;  %v10364_v31 = vadd.f32 %v3212_v9, %v3020_v44  ;;  %v10366_v27 = vpop.f32.mrf.mxu0  ;;  %6919 = vmatmul.mubr.msk.bf16.gmra.mxu0 %vm2098_vm0, %v10377_v35  ;;  %v14814_v13 = vld [vmem:[#allocation95_spill] sm:$0xff] }
 0x25c   :  { %v3216_v14 = vpop.f32.mrf.mxu1  ;;  %3681 = vmatmul.mubr.bf16.gmra.mxu1 %v10371_v12  ;;  %3803 = vmatprep.mubr.bf16.mxu0 %v14563_v49  ;;  %v3044_v1 = vadd.f32 %v10278_v30, %v14814_v13  ;;  %v14818_v30 = vld [vmem:[#allocation97_spill] sm:$0xff] }
 0x25d   :  { %14796 = vst [vmem:[#allocation164_spill] sm:$0xff] %v10364_v31  ;;  %v10383_v43 = vadd.f32 %v3216_v14, %v3024_v23  ;;  %3916 = vmatprep.mubr.bf16.mxu1 %v14799_v53  ;;  %v10387_v58 = vpop.f32.mrf.mxu0  ;;  %v7722_v53 = vld [vmem:[%s14076_s1 + $0x788] ss:$28 sps:$4 sm:$0xff]   ;;  %v3046_v13 = vadd.f32 %v10304_v24, %v14818_v30  ;;  %v14823_v24 = vld [vmem:[#allocation101_spill] sm:$0xff] }
 0x25e   :  { %v3218_v9 = vpop.f32.mrf.mxu1 }
 0x25f   :  { %14798 = vst [vmem:[#allocation166_spill] sm:$0xff] %v10383_v43  ;;  %v10389_v2 = vadd.f32 %v3218_v9, %v3026_v34  ;;  %v10393_v44 = vpop.f32.mrf.mxu0  ;;  %v14802_v34 = vld [vmem:[#allocation88_spill] sm:$0xff] }
 0x260   :  { %v3220_v31 = vpop.f32.mrf.mxu1  ;;  %v3034_v9 = vadd.f32 %v10234_v17, %v14802_v34  ;;  %v14808_v17 = vld [vmem:[#allocation117_spill] sm:$0xff]  ;;  %v14809_v34 = vld [vmem:[#allocation66_spill] sm:$0xff] }
 0x261   :  { %14800 = vst [vmem:[#allocation60_spill] sm:$0xff] %v10389_v2  ;;  %v10397_v61 = vadd.f32 %v3220_v31, %v3028_v62  ;;  %v10399_v23 = vpop.f32.mrf.mxu0  ;;  %v14806_v31 = vld [vmem:[#allocation91_spill] sm:$0xff] }
 0x262   :  { %v3222_v14 = vpop.f32.mrf.mxu1  ;;  %v3036_v62 = vadd.f32 %v10260_v3, %v14806_v31  ;;  %v14812_v31 = vld [vmem:[#allocation94_spill] sm:$0xff] }
 0x263   :  { %14801 = vst [vmem:[#allocation167_spill] sm:$0xff] %v10397_v61  ;;  %v10406_v2 = vadd.f32 %v3222_v14, %v3030_v20  ;;  %v10408_v63 = vpop.f32.mrf.mxu0  ;;  %6920 = vmatmul.mubr.msk.bf16.gmra.mxu0 %vm2098_vm0, %v10413_v33 }
 0x264   :  { %v3226_v45 = vpop.f32.mrf.mxu1  ;;  %3917 = vmatmul.mubr.bf16.vlgmr.msra.gmra.mxu1 %v14805_v32  ;;  %3813 = vmatprep.mubr.bf16.mxu0 %v14563_v49  ;;  %v14810_v32 = vld [vmem:[#allocation93_spill] sm:$0xff] }
 0x265   :  { %14803 = vst [vmem:[#allocation88_spill] sm:$0xff] %v10406_v2  ;;  %v10420_v61 = vadd.f32 %v3226_v45, %v3034_v9  ;;  %7189 = vmatpush3.bf16.msra.mxu1 %v14808_v17  ;;  %v10424_v14 = vpop.f32.mrf.mxu0  ;;  %3924 = vmatprep.mubr.bf16.mxu1 %v14809_v34  ;;  %v7733_v2 = vld [vmem:[%s14076_s1 + $0x750] ss:$28 sps:$4 sm:$0xff]   ;;  %v3038_v51 = vadd.f32 %v10266_v56, %v14810_v32  ;;  %v7734_v56 = vld [vmem:[%s14076_s1 + $0x718] ss:$28 sps:$4 sm:$0xff]  }
 0x266   :  { %v3228_v20 = vpop.f32.mrf.mxu1  ;;  %7190 = vmatprep.subr.bf16.mxu1 %v7722_v53  ;;  %v3040_v17 = vadd.f32 %v10272_v0, %v14812_v31  ;;  %v10454_v0 = vld [vmem:[%s14077_s0 + $0x178] ss:$20 sps:$4 sm:$0xff]   ;;  %v14820_v31 = vld [vmem:[#allocation72_spill] sm:$0xff] }
 0x267   :  { %14807 = vst [vmem:[#allocation64_spill] sm:$0xff] %v10420_v61  ;;  %v10432_v3 = vadd.f32 %v3228_v20, %v3036_v62  ;;  %v10434_v45 = vpop.f32.mrf.mxu0  ;;  %14816 = vst [vmem:[#allocation93_spill] sm:$0xff] %v10454_v0 }
 0x268   :  { %v3230_v9 = vpop.f32.mrf.mxu1 }
 0x269   :  { %14811 = vst [vmem:[#allocation91_spill] sm:$0xff] %v10432_v3  ;;  %v10438_v61 = vadd.f32 %v3230_v9, %v3038_v51  ;;  %7191 = vmatpush3.bf16.msra.mxu1 %v7722_v53  ;;  %v10440_v43 = vpop.f32.mrf.mxu0  ;;  %v14817_v51 = vld [vmem:[#allocation70_spill] sm:$0xff] }
 0x26a   :  { %v3232_v34 = vpop.f32.mrf.mxu1  ;;  %7192 = vmatprep.subr.bf16.mxu1 %v7733_v2 }
 0x26b   :  { %14813 = vst [vmem:[#allocation117_spill] sm:$0xff] %v10438_v61  ;;  %v10444_v50 = vadd.f32 %v3232_v34, %v3040_v17  ;;  %v10449_v20 = vpop.f32.mrf.mxu0  ;;  %6921 = vmatmul.mubr.msk.bf16.gmra.mxu0 %vm2098_vm0, %v10454_v0  ;;  %v14821_v17 = vld [vmem:[#allocation99_spill] sm:$0xff]  ;;  %v14897_v0 = vld [vmem:[#allocation116_spill] sm:$0xff] }
 0x26c   :  { %v3236_v62 = vpop.f32.mrf.mxu1  ;;  %3925 = vmatmul.mubr.bf16.gmra.mxu1 %v14817_v51  ;;  %3823 = vmatprep.mubr.bf16.mxu0 %v14563_v49  ;;  %v3048_v34 = vadd.f32 %v10310_v25, %v14821_v17  ;;  %v14829_v17 = vld [vmem:[#allocation105_spill] sm:$0xff] }
 0x26d   :  { %14815 = vst [vmem:[#allocation66_spill] sm:$0xff] %v10444_v50  ;;  %v10461_v53 = vadd.f32 %v3236_v62, %v3044_v1  ;;  %v10464_v9 = vpop.f32.mrf.mxu0  ;;  %3932 = vmatprep.mubr.bf16.mxu1 %v14820_v31  ;;  %7193 = vmatpush3.bf16.msra.mxu1 %v7733_v2  ;;  %v3050_v1 = vadd.f32 %v10316_v54, %v14823_v24  ;;  %v14825_v31 = vld [vmem:[#allocation103_spill] sm:$0xff]  ;;  %v14828_v54 = vld [vmem:[#allocation76_spill] sm:$0xff]  ;;  %v14831_v24 = vld [vmem:[#allocation78_spill] sm:$0xff] }
 0x26e   :  { %v3238_v32 = vpop.f32.mrf.mxu1  ;;  %7194 = vmatprep.subr.bf16.mxu1 %v7734_v56  ;;  %v3054_v2 = vadd.f32 %v10322_v28, %v14825_v31 }
 0x26f   :  { %14819 = vst [vmem:[#allocation94_spill] sm:$0xff] %v10461_v53  ;;  %v10469_v50 = vadd.f32 %v3238_v32, %v3046_v13  ;;  %v10471_v3 = vpop.f32.mrf.mxu0  ;;  %v10488_v32 = vld [vmem:[%s14077_s0 + $0x1a0] ss:$20 sps:$4 sm:$0xff]  }
 0x270   :  { %v3240_v51 = vpop.f32.mrf.mxu1  ;;  %14827 = vst [vmem:[#allocation72_spill] sm:$0xff] %v10488_v32 }
 0x271   :  { %14822 = vst [vmem:[#allocation95_spill] sm:$0xff] %v10469_v50  ;;  %v10475_v62 = vadd.f32 %v3240_v51, %v3048_v34  ;;  %v10477_v53 = vpop.f32.mrf.mxu0  ;;  %7195 = vmatpush3.bf16.msra.mxu1 %v7734_v56  ;;  %v3056_v56 = vadd.f32 %v10348_v38, %v14829_v17 }
 0x272   :  { %v3242_v30 = vpop.f32.mrf.mxu1 }
 0x273   :  { %14824 = vst [vmem:[#allocation70_spill] sm:$0xff] %v10475_v62  ;;  %v10481_v61 = vadd.f32 %v3242_v30, %v3050_v1  ;;  %v10483_v13 = vpop.f32.mrf.mxu0  ;;  %6922 = vmatmul.mubr.msk.bf16.gmra.mxu0 %vm2098_vm0, %v10488_v32  ;;  %v14832_v1 = vld [vmem:[#allocation107_spill] sm:$0xff] }
 0x274   :  { %v3246_v25 = vpop.f32.mrf.mxu1  ;;  %3933 = vmatmul.mubr.bf16.gmra.mxu1 %v14828_v54  ;;  %3833 = vmatprep.mubr.bf16.mxu0 %v14563_v49  ;;  %v3058_v30 = vadd.f32 %v10354_v60, %v14832_v1  ;;  %v14834_v54 = vld [vmem:[#allocation108_spill] sm:$0xff] }
 0x275   :  { %14826 = vst [vmem:[#allocation97_spill] sm:$0xff] %v10481_v61  ;;  %v10495_v34 = vadd.f32 %v3246_v25, %v3054_v2  ;;  %v10498_v51 = vpop.f32.mrf.mxu0  ;;  %3940 = vmatprep.mubr.bf16.mxu1 %v14831_v24  ;;  %v3060_v38 = vadd.f32 %v10360_v22, %v14834_v54  ;;  %v14839_v22 = vld [vmem:[#allocation82_spill] sm:$0xff]  ;;  %v14843_v54 = vld [vmem:[#allocation111_spill] sm:$0xff] }
 0x276   :  { %v3248_v28 = vpop.f32.mrf.mxu1 }
 0x277   :  { %14830 = vst [vmem:[#allocation99_spill] sm:$0xff] %v10495_v34  ;;  %v10503_v31 = vadd.f32 %v3248_v28, %v3056_v56  ;;  %v10505_v50 = vpop.f32.mrf.mxu0  ;;  %v14836_v34 = vld [vmem:[#allocation109_spill] sm:$0xff] }
 0x278   :  { %v3250_v61 = vpop.f32.mrf.mxu1  ;;  %v3064_v62 = vadd.f32 %v10366_v27, %v14836_v34  ;;  %v10522_v56 = vld [vmem:[%s14077_s0 + $0x1c8] ss:$20 sps:$4 sm:$0xff]  }
 0x279   :  { %14833 = vst [vmem:[#allocation101_spill] sm:$0xff] %v10503_v31  ;;  %v10509_v2 = vadd.f32 %v3250_v61, %v3058_v30  ;;  %v10511_v17 = vpop.f32.mrf.mxu0  ;;  %14838 = vst [vmem:[#allocation105_spill] sm:$0xff] %v10522_v56  ;;  %v14840_v61 = vld [vmem:[#allocation5_spill] sm:$0xff]  ;;  %v14842_v30 = vld [vmem:[#allocation84_spill] sm:$0xff] }
 0x27a   :  { %v3252_v25 = vpop.f32.mrf.mxu1  ;;  %v3066_v28 = vadd.f32 %v10387_v58, %v14840_v61 }
 0x27b   :  { %14835 = vst [vmem:[#allocation103_spill] sm:$0xff] %v10509_v2  ;;  %v10515_v24 = vadd.f32 %v3252_v25, %v3060_v38  ;;  %v10517_v60 = vpop.f32.mrf.mxu0  ;;  %6923 = vmatmul.mubr.msk.bf16.gmra.mxu0 %vm2098_vm0, %v10522_v56  ;;  %v3068_v38 = vadd.f32 %v10393_v44, %v14843_v54  ;;  %v10554_v44 = vld [vmem:[%s14077_s0 + $0x1f0] ss:$20 sps:$4 sm:$0xff]   ;;  %v14895_v56 = vld [vmem:[#allocation115_spill] sm:$0xff] }
 0x27c   :  { %v3256_v47 = vpop.f32.mrf.mxu1  ;;  %3941 = vmatmul.mubr.bf16.gmra.mxu1 %v14839_v22  ;;  %3843 = vmatprep.mubr.bf16.mxu0 %v14563_v49  ;;  %v14845_v22 = vld [vmem:[#allocation112_spill] sm:$0xff]  ;;  %14848 = vst [vmem:[#allocation82_spill] sm:$0xff] %v10554_v44 }
 0x27d   :  { %14837 = vst [vmem:[#allocation76_spill] sm:$0xff] %v10515_v24  ;;  %v10529_v1 = vadd.f32 %v3256_v47, %v3064_v62  ;;  %v10532_v34 = vpop.f32.mrf.mxu0  ;;  %3948 = vmatprep.mubr.bf16.mxu1 %v14842_v30  ;;  %v3070_v58 = vadd.f32 %v10399_v23, %v14845_v22  ;;  %v14850_v23 = vld [vmem:[#allocation25_spill] sm:$0xff] }
 0x27e   :  { %v3258_v27 = vpop.f32.mrf.mxu1 }
 0x27f   :  { %14841 = vst [vmem:[#allocation78_spill] sm:$0xff] %v10529_v1  ;;  %v10537_v25 = vadd.f32 %v3258_v27, %v3066_v28  ;;  %v10539_v2 = vpop.f32.mrf.mxu0  ;;  %v14849_v28 = vld [vmem:[#allocation89_spill] sm:$0xff] }
 0x280   :  { %v3260_v24 = vpop.f32.mrf.mxu1 }
 0x281   :  { %14844 = vst [vmem:[#allocation107_spill] sm:$0xff] %v10537_v25  ;;  %v10543_v47 = vadd.f32 %v3260_v24, %v3068_v38  ;;  %v10545_v61 = vpop.f32.mrf.mxu0  ;;  %v14852_v38 = vld [vmem:[#allocation90_spill] sm:$0xff] }
 0x282   :  { %v3262_v62 = vpop.f32.mrf.mxu1 }
 0x283   :  { %14846 = vst [vmem:[#allocation108_spill] sm:$0xff] %v10543_v47  ;;  %v10547_v1 = vadd.f32 %v3262_v62, %v3070_v58  ;;  %v10549_v30 = vpop.f32.mrf.mxu0  ;;  %6924 = vmatmul.mubr.msk.bf16.gmra.mxu0 %vm2098_vm0, %v10554_v44 }
 0x284   :  { %v3266_v31 = vpop.f32.mrf.mxu1  ;;  %3949 = vmatmul.mubr.bf16.gmra.mxu1 %v14849_v28  ;;  %3853 = vmatprep.mubr.bf16.mxu0 %v14563_v49 }
 0x285   :  { %14847 = vst [vmem:[#allocation109_spill] sm:$0xff] %v10547_v1  ;;  %v10560_v24 = vadd.f32 %v3266_v31, %v14850_v23  ;;  %v10563_v54 = vpop.f32.mrf.mxu0  ;;  %3956 = vmatprep.mubr.bf16.mxu1 %v14852_v38  ;;  %v14854_v1 = vld [vmem:[#allocation27_spill] sm:$0xff]  ;;  %v14856_v31 = vld [vmem:[#allocation122_spill] sm:$0xff] }
 0x286   :  { %v3268_v27 = vpop.f32.mrf.mxu1 }
 0x287   :  { %14851 = vst [vmem:[#allocation5_spill] sm:$0xff] %v10560_v24  ;;  %v10567_v22 = vadd.f32 %v3268_v27, %v9937_v39  ;;  %v10569_v62 = vpop.f32.mrf.mxu0  ;;  %v10584_v39 = vld [vmem:[%s14077_s0 + $0x218] ss:$20 sps:$4 sm:$0xff]   ;;  %v14859_v27 = vld [vmem:[#allocation2_spill] sm:$0xff] }
 0x288   :  { %v3270_v58 = vpop.f32.mrf.mxu1  ;;  %14858 = vst [vmem:[#allocation89_spill] sm:$0xff] %v10584_v39 }
 0x289   :  { %14853 = vst [vmem:[#allocation84_spill] sm:$0xff] %v10567_v22  ;;  %v10572_v47 = vadd.f32 %v3270_v58, %v14854_v1  ;;  %v10574_v25 = vpop.f32.mrf.mxu0  ;;  %v14860_v1 = vld [vmem:[#allocation30_spill] sm:$0xff] }
 0x28a   :  { %v3272_v28 = vpop.f32.mrf.mxu1 }
 0x28b   :  { %14855 = vst [vmem:[#allocation111_spill] sm:$0xff] %v10572_v47  ;;  %v10577_v23 = vadd.f32 %v3272_v28, %v14856_v31  ;;  %v10579_v36 = vpop.f32.mrf.mxu0  ;;  %6925 = vmatmul.mubr.msk.bf16.gmra.mxu0 %vm2098_vm0, %v10584_v39  ;;  %v14862_v31 = vld [vmem:[#allocation96_spill] sm:$0xff]  ;;  %v14891_v39 = vld [vmem:[#allocation113_spill] sm:$0xff] }
 0x28c   :  { %v3276_v24 = vpop.f32.mrf.mxu1  ;;  %3957 = vmatmul.mubr.bf16.gmra.mxu1 %v14859_v27  ;;  %3863 = vmatprep.mubr.bf16.mxu0 %v14563_v49 }
 0x28d   :  { %14857 = vst [vmem:[#allocation112_spill] sm:$0xff] %v10577_v23  ;;  %v10590_v38 = vadd.f32 %v3276_v24, %v14860_v1  ;;  %v10593_v28 = vpop.f32.mrf.mxu0  ;;  %3964 = vmatprep.mubr.bf16.mxu1 %v14862_v31  ;;  %v14863_v23 = vld [vmem:[#allocation32_spill] sm:$0xff]  ;;  %v14867_v24 = vld [vmem:[#allocation126_spill] sm:$0xff] }
 0x28e   :  { %v3278_v58 = vpop.f32.mrf.mxu1 }
 0x28f   :  { %14861 = vst [vmem:[#allocation25_spill] sm:$0xff] %v10590_v38  ;;  %v10597_v47 = vadd.f32 %v3278_v58, %v14863_v23  ;;  %v10599_v10 = vpop.f32.mrf.mxu0  ;;  %v10614_v23 = vld [vmem:[%s14077_s0 + $0x240] ss:$20 sps:$4 sm:$0xff]   ;;  %v14870_v58 = vld [vmem:[#allocation3_spill] sm:$0xff] }
 0x290   :  { %v3280_v22 = vpop.f32.mrf.mxu1  ;;  %14869 = vst [vmem:[#allocation2_spill] sm:$0xff] %v10614_v23 }
 0x291   :  { %14864 = vst [vmem:[#allocation90_spill] sm:$0xff] %v10597_v47  ;;  %v10602_v37 = vadd.f32 %v3280_v22, %v14865_v8  ;;  %v10604_v21 = vpop.f32.mrf.mxu0  ;;  %v14871_v8 = vld [vmem:[#allocation35_spill] sm:$0xff] }
 0x292   :  { %v3282_v27 = vpop.f32.mrf.mxu1 }
 0x293   :  { %14866 = vst [vmem:[#allocation27_spill] sm:$0xff] %v10602_v37  ;;  %v10607_v1 = vadd.f32 %v3282_v27, %v14867_v24  ;;  %v10609_v7 = vpop.f32.mrf.mxu0  ;;  %6926 = vmatmul.mubr.msk.bf16.gmra.mxu0 %vm2098_vm0, %v10614_v23  ;;  %v14873_v24 = vld [vmem:[#allocation104_spill] sm:$0xff] }
 0x294   :  { %v3286_v38 = vpop.f32.mrf.mxu1  ;;  %3965 = vmatmul.mubr.bf16.gmra.mxu1 %v14870_v58  ;;  %3873 = vmatprep.mubr.bf16.mxu0 %v14563_v49 }
 0x295   :  { %14868 = vst [vmem:[#allocation122_spill] sm:$0xff] %v10607_v1  ;;  %v10620_v22 = vadd.f32 %v3286_v38, %v14871_v8  ;;  %v10623_v27 = vpop.f32.mrf.mxu0  ;;  %3972 = vmatprep.mubr.bf16.mxu1 %v14873_v24  ;;  %v14874_v1 = vld [vmem:[#allocation37_spill] sm:$0xff]  ;;  %v14878_v38 = vld [vmem:[#allocation130_spill] sm:$0xff] }
 0x296   :  { %v3288_v31 = vpop.f32.mrf.mxu1  ;;  %v14884_v24 = vld [vmem:[#allocation110_spill] sm:$0xff] }
 0x297   :  { %14872 = vst [vmem:[#allocation30_spill] sm:$0xff] %v10620_v22  ;;  %v10627_v37 = vadd.f32 %v3288_v31, %v14874_v1  ;;  %v10629_v52 = vpop.f32.mrf.mxu0  ;;  %v10644_v1 = vld [vmem:[%s14077_s0 + $0x268] ss:$20 sps:$4 sm:$0xff]   ;;  %v14881_v31 = vld [vmem:[#allocation4_spill] sm:$0xff] }
 0x298   :  { %v3290_v47 = vpop.f32.mrf.mxu1  ;;  %14880 = vst [vmem:[#allocation126_spill] sm:$0xff] %v10644_v1 }
 0x299   :  { %14875 = vst [vmem:[#allocation96_spill] sm:$0xff] %v10627_v37  ;;  %v10632_v57 = vadd.f32 %v3290_v47, %v14876_v26  ;;  %v10634_v59 = vpop.f32.mrf.mxu0  ;;  %v14882_v26 = vld [vmem:[#allocation40_spill] sm:$0xff] }
 0x29a   :  { %v3292_v58 = vpop.f32.mrf.mxu1 }
 0x29b   :  { %14877 = vst [vmem:[#allocation32_spill] sm:$0xff] %v10632_v57  ;;  %v10637_v8 = vadd.f32 %v3292_v58, %v14878_v38  ;;  %v10639_v22 = vpop.f32.mrf.mxu0  ;;  %6927 = vmatmul.mubr.msk.bf16.gmra.mxu0 %vm2098_vm0, %v10644_v1  ;;  %v14885_v57 = vld [vmem:[#allocation42_spill] sm:$0xff] }
 0x29c   :  { %v3296_v49 = vpop.f32.mrf.mxu1  ;;  %3973 = vmatmul.mubr.bf16.gmra.mxu1 %v14881_v31  ;;  %v14887_v31 = vld [vmem:[#allocation132_spill] sm:$0xff] }
 0x29d   :  { %14879 = vst [vmem:[#allocation125_spill] sm:$0xff] %v10637_v8  ;;  %v10650_v47 = vadd.f32 %v3296_v49, %v14882_v26  ;;  %3980 = vmatprep.mubr.bf16.mxu1 %v14884_v24  ;;  %v10653_v38 = vpop.f32.mrf.mxu0  ;;  %v7880_v8 = vld [vmem:[%s14077_s0 + $0xc] ss:$20 sps:$4 sm:$0xff]   ;;  %v14889_v24 = vld [vmem:[#allocation133_spill] sm:$0xff] }
 0x29e   :  { %v3298_v58 = vpop.f32.mrf.mxu1  ;;  %4077 = vmatprep.mubr.bf16.mxu0 %v7880_v8 }
 0x29f   :  { %14883 = vst [vmem:[#allocation3_spill] sm:$0xff] %v10650_v47  ;;  %v10659_v37 = vadd.f32 %v3298_v58, %v14885_v57  ;;  %v10661_v1 = vpop.f32.mrf.mxu0  ;;  %v7881_v57 = vld [vmem:[%s14077_s0 + $0x8] ss:$20 sps:$4 sm:$0xff]  }
 0x2a0   :  { %v3300_v15 = vpop.f32.mrf.mxu1 }
 0x2a1   :  { %14886 = vst [vmem:[#allocation35_spill] sm:$0xff] %v10659_v37  ;;  %v10664_v12 = vadd.f32 %v3300_v15, %v14887_v31  ;;  %v10666_v26 = vpop.f32.mrf.mxu0  ;;  %v14892_v15 = vld [vmem:[#allocation26_spill] sm:$0xff] }
 0x2a2   :  { %v3302_v49 = vpop.f32.mrf.mxu1 }
 0x2a3   :  { %14888 = vst [vmem:[#allocation104_spill] sm:$0xff] %v10664_v12  ;;  %v10669_v47 = vadd.f32 %v3302_v49, %v14889_v24  ;;  %v10671_v23 = vpop.f32.mrf.mxu0  ;;  %4078 = vmatmul.mubr.bf16.vlgmr.msra.gmra.mxu0 %v7881_v57  ;;  %v7882_v49 = vld [vmem:[%s14077_s0 + $0x34] ss:$20 sps:$4 sm:$0xff]  }
 0x2a4   :  { %v3532_v19 = vpop.f32.mrf.mxu1  ;;  %3981 = vmatmul.mubr.bf16.gmra.mxu1 %v14891_v39  ;;  %4085 = vmatprep.mubr.bf16.mxu0 %v7882_v49 }
 0x2a5   :  { %14890 = vst [vmem:[#allocation37_spill] sm:$0xff] %v10669_v47  ;;  %v10678_v8 = vadd.f32 %v3532_v19, %v10408_v63  ;;  %3988 = vmatprep.mubr.bf16.mxu1 %v14892_v15  ;;  %v10681_v58 = vpop.f32.mrf.mxu0 }
 0x2a6   :  { %v3534_v31 = vpop.f32.mrf.mxu1 }
 0x2a7   :  { %v10687_v39 = vadd.f32 %v3534_v31, %v10424_v14  ;;  %v10689_v24 = vpop.f32.mrf.mxu0  ;;  %v7883_v14 = vld [vmem:[%s14077_s0 + $0x30] ss:$20 sps:$4 sm:$0xff]  }
 0x2a8   :  { %v3536_v37 = vpop.f32.mrf.mxu1 }
 0x2a9   :  { %v10692_v57 = vadd.f32 %v3536_v37, %v10434_v45  ;;  %v10694_v19 = vpop.f32.mrf.mxu0  ;;  %v14894_v37 = vld [vmem:[#allocation31_spill] sm:$0xff] }
 0x2aa   :  { %v3538_v63 = vpop.f32.mrf.mxu1 }
 0x2ab   :  { %v10697_v15 = vadd.f32 %v3538_v63, %v10440_v43  ;;  %v10699_v47 = vpop.f32.mrf.mxu0  ;;  %4086 = vmatmul.mubr.bf16.gmra.mxu0 %v7883_v14  ;;  %v7884_v43 = vld [vmem:[%s14077_s0 + $0x5c] ss:$20 sps:$4 sm:$0xff]  }
 0x2ac   :  { %v3542_v12 = vpop.f32.mrf.mxu1  ;;  %3989 = vmatmul.mubr.bf16.gmra.mxu1 %v14893_v46  ;;  %4093 = vmatprep.mubr.bf16.mxu0 %v7884_v43 }
 0x2ad   :  { %v10706_v31 = vadd.f32 %v3542_v12, %v10449_v20  ;;  %3996 = vmatprep.mubr.bf16.mxu1 %v14894_v37  ;;  %v10712_v45 = vpop.f32.mrf.mxu0 }
 0x2ae   :  { %v3544_v49 = vpop.f32.mrf.mxu1 }
 0x2af   :  { %v10715_v46 = vadd.f32 %v3544_v49, %v10464_v9  ;;  %v10717_v63 = vpop.f32.mrf.mxu0  ;;  %v7885_v9 = vld [vmem:[%s14077_s0 + $0x58] ss:$20 sps:$4 sm:$0xff]  }
 0x2b0   :  { %v3546_v44 = vpop.f32.mrf.mxu1 }
 0x2b1   :  { %v10720_v14 = vadd.f32 %v3546_v44, %v10471_v3  ;;  %v10722_v12 = vpop.f32.mrf.mxu0  ;;  %v14896_v3 = vld [vmem:[#allocation36_spill] sm:$0xff] }
 0x2b2   :  { %v3548_v20 = vpop.f32.mrf.mxu1 }
 0x2b3   :  { %v10725_v37 = vadd.f32 %v3548_v20, %v10477_v53  ;;  %v10727_v5 = vpop.f32.mrf.mxu0  ;;  %4094 = vmatmul.mubr.bf16.gmra.mxu0 %v7885_v9  ;;  %v7886_v53 = vld [vmem:[%s14077_s0 + $0x84] ss:$20 sps:$4 sm:$0xff]  }
 0x2b4   :  { %v3552_v43 = vpop.f32.mrf.mxu1  ;;  %3997 = vmatmul.mubr.bf16.gmra.mxu1 %v14895_v56  ;;  %4101 = vmatprep.mubr.bf16.mxu0 %v7886_v53 }
 0x2b5   :  { %v10734_v49 = vadd.f32 %v3552_v43, %v10483_v13  ;;  %4004 = vmatprep.mubr.bf16.mxu1 %v14896_v3  ;;  %v10740_v44 = vpop.f32.mrf.mxu0 }
 0x2b6   :  { %v3554_v20 = vpop.f32.mrf.mxu1 }
 0x2b7   :  { %v10743_v56 = vadd.f32 %v3554_v20, %v10498_v51  ;;  %v10745_v42 = vpop.f32.mrf.mxu0  ;;  %v7887_v51 = vld [vmem:[%s14077_s0 + $0x80] ss:$20 sps:$4 sm:$0xff]  }
 0x2b8   :  { %v3556_v32 = vpop.f32.mrf.mxu1 }
 0x2b9   :  { %v10748_v9 = vadd.f32 %v3556_v32, %v10505_v50  ;;  %v10750_v13 = vpop.f32.mrf.mxu0  ;;  %v14898_v50 = vld [vmem:[#allocation41_spill] sm:$0xff]  ;;  %v7888_v32 = vld [vmem:[%s14077_s0 + $0xac] ss:$20 sps:$4 sm:$0xff]  }
 0x2ba   :  { %v3558_v43 = vpop.f32.mrf.mxu1 }
 0x2bb   :  { %v10753_v3 = vadd.f32 %v3558_v43, %v10511_v17  ;;  %v10755_v4 = vpop.f32.mrf.mxu0  ;;  %4102 = vmatmul.mubr.bf16.gmra.mxu0 %v7887_v51 }
 0x2bc   :  { %v3562_v53 = vpop.f32.mrf.mxu1  ;;  %4005 = vmatmul.mubr.bf16.gmra.mxu1 %v14897_v0  ;;  %4109 = vmatprep.mubr.bf16.mxu0 %v7888_v32 }
 0x2bd   :  { %v10762_v20 = vadd.f32 %v3562_v53, %v10517_v60  ;;  %4012 = vmatprep.mubr.bf16.mxu1 %v14898_v50  ;;  %v10768_v17 = vpop.f32.mrf.mxu0 }
 0x2be   :  { %14899 = vst [vmem:[#allocation129_spill] sm:$0xff] %v10768_v17  ;;  %v3564_v43 = vpop.f32.mrf.mxu1  ;;  %v14902_v17 = vld [vmem:[#allocation120_spill] sm:$0xff] }
 0x2bf   :  { %v10771_v0 = vadd.f32 %v3564_v43, %v10532_v34  ;;  %v10773_v6 = vpop.f32.mrf.mxu0  ;;  %v7889_v34 = vld [vmem:[%s14077_s0 + $0xa8] ss:$20 sps:$4 sm:$0xff]  }
 0x2c0   :  { %v3566_v33 = vpop.f32.mrf.mxu1 }
 0x2c1   :  { %v10776_v51 = vadd.f32 %v3566_v33, %v10539_v2  ;;  %v10778_v60 = vpop.f32.mrf.mxu0  ;;  %v14904_v33 = vld [vmem:[#allocation121_spill] sm:$0xff]  ;;  %v7890_v2 = vld [vmem:[%s14077_s0 + $0xd4] ss:$20 sps:$4 sm:$0xff]  }
 0x2c2   :  { %v3568_v53 = vpop.f32.mrf.mxu1 }
 0x2c3   :  { %v10781_v50 = vadd.f32 %v3568_v53, %v10545_v61  ;;  %v10783_v41 = vpop.f32.mrf.mxu0  ;;  %4110 = vmatmul.mubr.bf16.gmra.mxu0 %v7889_v34 }
 0x2c4   :  { %14901 = vst [vmem:[#allocation4_spill] sm:$0xff] %v10783_v41  ;;  %v3572_v32 = vpop.f32.mrf.mxu1  ;;  %4013 = vmatmul.mubr.bf16.gmra.mxu1 %v14902_v17  ;;  %4117 = vmatprep.mubr.bf16.mxu0 %v7890_v2 }
 0x2c5   :  { %14900 = vst [vmem:[#allocation130_spill] sm:$0xff] %v10781_v50  ;;  %v10790_v43 = vadd.f32 %v3572_v32, %v10549_v30  ;;  %4020 = vmatprep.mubr.bf16.mxu1 %v14904_v33  ;;  %v10796_v61 = vpop.f32.mrf.mxu0 }
 0x2c6   :  { %14905 = vst [vmem:[#allocation110_spill] sm:$0xff] %v10796_v61  ;;  %v3574_v53 = vpop.f32.mrf.mxu1  ;;  %v14908_v61 = vld [vmem:[#allocation123_spill] sm:$0xff] }
 0x2c7   :  { %14903 = vst [vmem:[#allocation40_spill] sm:$0xff] %v10790_v43  ;;  %v10799_v17 = vadd.f32 %v3574_v53, %v10563_v54  ;;  %v10801_v41 = vpop.f32.mrf.mxu0  ;;  %v7891_v54 = vld [vmem:[%s14077_s0 + $0xd0] ss:$20 sps:$4 sm:$0xff]  }
 0x2c8   :  { %v3576_v50 = vpop.f32.mrf.mxu1 }
 0x2c9   :  { %v10804_v34 = vadd.f32 %v3576_v50, %v10569_v62  ;;  %v10806_v30 = vpop.f32.mrf.mxu0  ;;  %v14910_v62 = vld [vmem:[#allocation124_spill] sm:$0xff] }
 0x2ca   :  { %v3578_v32 = vpop.f32.mrf.mxu1 }
 0x2cb   :  { %v10809_v33 = vadd.f32 %v3578_v32, %v10574_v25  ;;  %v10811_v43 = vpop.f32.mrf.mxu0  ;;  %4118 = vmatmul.mubr.bf16.gmra.mxu0 %v7891_v54  ;;  %v7892_v25 = vld [vmem:[%s14077_s0 + $0xfc] ss:$20 sps:$4 sm:$0xff]  }
 0x2cc   :  { %14907 = vst [vmem:[#allocation132_spill] sm:$0xff] %v10811_v43  ;;  %v3582_v2 = vpop.f32.mrf.mxu1  ;;  %4021 = vmatmul.mubr.bf16.gmra.mxu1 %v14908_v61  ;;  %4125 = vmatprep.mubr.bf16.mxu0 %v7892_v25 }
 0x2cd   :  { %14906 = vst [vmem:[#allocation42_spill] sm:$0xff] %v10809_v33  ;;  %v10818_v53 = vadd.f32 %v3582_v2, %v10579_v36  ;;  %4028 = vmatprep.mubr.bf16.mxu1 %v14910_v62  ;;  %v10824_v50 = vpop.f32.mrf.mxu0 }
 0x2ce   :  { %14911 = vst [vmem:[#allocation113_spill] sm:$0xff] %v10824_v50  ;;  %v3584_v32 = vpop.f32.mrf.mxu1  ;;  %v14914_v50 = vld [vmem:[#allocation127_spill] sm:$0xff] }
 0x2cf   :  { %14909 = vst [vmem:[#allocation133_spill] sm:$0xff] %v10818_v53  ;;  %v10827_v61 = vadd.f32 %v3584_v32, %v10593_v28  ;;  %v10829_v43 = vpop.f32.mrf.mxu0  ;;  %v7893_v28 = vld [vmem:[%s14077_s0 + $0xf8] ss:$20 sps:$4 sm:$0xff]  }
 0x2d0   :  { %v3586_v33 = vpop.f32.mrf.mxu1 }
 0x2d1   :  { %v10832_v54 = vadd.f32 %v3586_v33, %v10599_v10  ;;  %v10834_v36 = vpop.f32.mrf.mxu0  ;;  %v14916_v10 = vld [vmem:[#allocation128_spill] sm:$0xff] }
 0x2d2   :  { %v3588_v2 = vpop.f32.mrf.mxu1 }
 0x2d3   :  { %v10837_v62 = vadd.f32 %v3588_v2, %v10604_v21  ;;  %v10839_v53 = vpop.f32.mrf.mxu0  ;;  %4126 = vmatmul.mubr.bf16.gmra.mxu0 %v7893_v28  ;;  %v7894_v21 = vld [vmem:[%s14077_s0 + $0x124] ss:$20 sps:$4 sm:$0xff]  }
 0x2d4   :  { %14913 = vst [vmem:[#allocation114_spill] sm:$0xff] %v10839_v53  ;;  %v3592_v25 = vpop.f32.mrf.mxu1  ;;  %4029 = vmatmul.mubr.bf16.gmra.mxu1 %v14914_v50  ;;  %4133 = vmatprep.mubr.bf16.mxu0 %v7894_v21 }
 0x2d5   :  { %14912 = vst [vmem:[#allocation26_spill] sm:$0xff] %v10837_v62  ;;  %v10846_v32 = vadd.f32 %v3592_v25, %v10609_v7  ;;  %4036 = vmatprep.mubr.bf16.mxu1 %v14916_v10  ;;  %v10852_v33 = vpop.f32.mrf.mxu0 }
 0x2d6   :  { %14917 = vst [vmem:[#allocation115_spill] sm:$0xff] %v10852_v33  ;;  %v3594_v2 = vpop.f32.mrf.mxu1  ;;  %v14919_v33 = vld [vmem:[#allocation131_spill] sm:$0xff] }
 0x2d7   :  { %14915 = vst [vmem:[#allocation31_spill] sm:$0xff] %v10846_v32  ;;  %v10855_v50 = vadd.f32 %v3594_v2, %v10623_v27  ;;  %v10857_v53 = vpop.f32.mrf.mxu0  ;;  %v7895_v27 = vld [vmem:[%s14077_s0 + $0x120] ss:$20 sps:$4 sm:$0xff]  }
 0x2d8   :  { %v3596_v62 = vpop.f32.mrf.mxu1 }
 0x2d9   :  { %v10860_v28 = vadd.f32 %v3596_v62, %v10629_v52  ;;  %v10862_v7 = vpop.f32.mrf.mxu0  ;;  %v7896_v52 = vld [vmem:[%s14077_s0 + $0x14c] ss:$20 sps:$4 sm:$0xff]  }
 0x2da   :  { %v3598_v25 = vpop.f32.mrf.mxu1 }
 0x2db   :  { %v10865_v10 = vadd.f32 %v3598_v25, %v10634_v59  ;;  %v10867_v32 = vpop.f32.mrf.mxu0  ;;  %4134 = vmatmul.mubr.bf16.gmra.mxu0 %v7895_v27 }
 0x2dc   :  { %14918 = vst [vmem:[#allocation36_spill] sm:$0xff] %v10867_v32  ;;  %v3602_v21 = vpop.f32.mrf.mxu1  ;;  %4037 = vmatmul.mubr.bf16.gmra.mxu1 %v14919_v33  ;;  %4141 = vmatprep.mubr.bf16.mxu0 %v7896_v52 }
 0x2dd   :  { %v10874_v2 = vadd.f32 %v3602_v21, %v10639_v22  ;;  %7196 = vmatprep.mubr.msk.bf16.mxu1 %vm2098_vm0, %v10060_v18  ;;  %v10881_v59 = vpop.f32.mrf.mxu0 }
 0x2de   :  { %14921 = vst [vmem:[#allocation41_spill] sm:$0xff] %v10881_v59  ;;  %v3604_v62 = vpop.f32.mrf.mxu1  ;;  %v7897_v59 = vld [vmem:[%s14077_s0 + $0x148] ss:$20 sps:$4 sm:$0xff]  }
 0x2df   :  { %14920 = vst [vmem:[#allocation116_spill] sm:$0xff] %v10874_v2  ;;  %v10884_v33 = vadd.f32 %v3604_v62, %v10653_v38  ;;  %v10886_v25 = vpop.f32.mrf.mxu0 }
 0x2e0   :  { %v3606_v27 = vpop.f32.mrf.mxu1 }
 0x2e1   :  { %v10889_v22 = vadd.f32 %v3606_v27, %v10661_v1  ;;  %v10891_v21 = vpop.f32.mrf.mxu0 }
 0x2e2   :  { %v3608_v2 = vpop.f32.mrf.mxu1 }
 0x2e3   :  { %v10894_v52 = vadd.f32 %v3608_v2, %v10666_v26  ;;  %v3725_v18 = vpop.f32.mrf.mxu0  ;;  %4142 = vmatmul.mubr.bf16.gmra.mxu0 %v7897_v59  ;;  %v7898_v26 = vld [vmem:[%s14077_s0 + $0x174] ss:$20 sps:$4 sm:$0xff]  }
 0x2e4   :  { %v3612_v32 = vpop.f32.mrf.mxu1  ;;  %7197 = vmatmul.mubr.msk.bf16.vlgmr.msra.gmra.mxu1 %vm2098_vm0, %v10106_v29  ;;  %v10905_v1 = vadd.f32 %v3725_v18, %v10678_v8  ;;  %4149 = vmatprep.mubr.bf16.mxu0 %v7898_v26 }
 0x2e5   :  { %v10902_v38 = vadd.f32 %v3612_v32, %v10671_v23  ;;  %7200 = vmatprep.mubr.msk.bf16.mxu1 %vm2098_vm0, %v10152_v48  ;;  %v3727_v62 = vpop.f32.mrf.mxu0 }
 0x2e6   :  { %14922 = vst [vmem:[#allocation120_spill] sm:$0xff] %v10905_v1  ;;  %v3614_v2 = vpop.f32.mrf.mxu1  ;;  %v10916_v29 = vadd.f32 %v3727_v62, %v10687_v39  ;;  %v7899_v39 = vld [vmem:[%s14077_s0 + $0x170] ss:$20 sps:$4 sm:$0xff]  }
 0x2e7   :  { %v10913_v59 = vadd.f32 %v3614_v2, %v10681_v58  ;;  %v3729_v32 = vpop.f32.mrf.mxu0 }
 0x2e8   :  { %14923 = vst [vmem:[#allocation121_spill] sm:$0xff] %v10916_v29  ;;  %v3616_v23 = vpop.f32.mrf.mxu1  ;;  %v10922_v27 = vadd.f32 %v3729_v32, %v10692_v57 }
 0x2e9   :  { %v10919_v8 = vadd.f32 %v3616_v23, %v10689_v24  ;;  %v3731_v26 = vpop.f32.mrf.mxu0 }
 0x2ea   :  { %14924 = vst [vmem:[#allocation123_spill] sm:$0xff] %v10922_v27  ;;  %v3618_v18 = vpop.f32.mrf.mxu1  ;;  %v10928_v1 = vadd.f32 %v3731_v26, %v10697_v15 }
 0x2eb   :  { %v10925_v48 = vadd.f32 %v3618_v18, %v10694_v19  ;;  %v3735_v2 = vpop.f32.mrf.mxu0  ;;  %4150 = vmatmul.mubr.bf16.gmra.mxu0 %v7899_v39  ;;  %v7900_v19 = vld [vmem:[%s14077_s0 + $0x19c] ss:$20 sps:$4 sm:$0xff]  }
 0x2ec   :  { %14925 = vst [vmem:[#allocation124_spill] sm:$0xff] %v10928_v1  ;;  %v3622_v58 = vpop.f32.mrf.mxu1  ;;  %7201 = vmatmul.mubr.msk.bf16.gmra.mxu1 %vm2098_vm0, %v10198_v16  ;;  %v10939_v57 = vadd.f32 %v3735_v2, %v10706_v31  ;;  %4157 = vmatprep.mubr.bf16.mxu0 %v7900_v19 }
 0x2ed   :  { %v10936_v24 = vadd.f32 %v3622_v58, %v10699_v47  ;;  %7204 = vmatprep.mubr.msk.bf16.mxu1 %vm2098_vm0, %v10245_v55  ;;  %v3737_v62 = vpop.f32.mrf.mxu0 }
 0x2ee   :  { %14926 = vst [vmem:[#allocation127_spill] sm:$0xff] %v10939_v57  ;;  %v3624_v15 = vpop.f32.mrf.mxu1  ;;  %v10950_v16 = vadd.f32 %v3737_v62, %v10715_v46  ;;  %v7901_v46 = vld [vmem:[%s14077_s0 + $0x198] ss:$20 sps:$4 sm:$0xff]   ;;  %v15096_v57 = vld [vmem:[#allocation20_spill] sm:$0xff] }
 0x2ef   :  { %v10947_v23 = vadd.f32 %v3624_v15, %v10712_v45  ;;  %v3739_v32 = vpop.f32.mrf.mxu0 }
 0x2f0   :  { %14927 = vst [vmem:[#allocation128_spill] sm:$0xff] %v10950_v16  ;;  %v3626_v47 = vpop.f32.mrf.mxu1  ;;  %v10956_v18 = vadd.f32 %v3739_v32, %v10720_v14  ;;  %v15082_v16 = vld [vmem:[#allocation106_spill] sm:$0xff] }
 0x2f1   :  { %v10953_v31 = vadd.f32 %v3626_v47, %v10717_v63  ;;  %v3741_v58 = vpop.f32.mrf.mxu0 }
 0x2f2   :  { %14928 = vst [vmem:[#allocation131_spill] sm:$0xff] %v10956_v18  ;;  %v3628_v26 = vpop.f32.mrf.mxu1  ;;  %v10962_v2 = vadd.f32 %v3741_v58, %v10725_v37 }
 0x2f3   :  { %v10959_v55 = vadd.f32 %v3628_v26, %v10722_v12  ;;  %v3745_v39 = vpop.f32.mrf.mxu0  ;;  %4158 = vmatmul.mubr.bf16.gmra.mxu0 %v7901_v46  ;;  %v7902_v12 = vld [vmem:[%s14077_s0 + $0x1c4] ss:$20 sps:$4 sm:$0xff]  }
 0x2f4   :  { %14929 = vst [vmem:[#allocation169_spill] sm:$0xff] %v10962_v2  ;;  %v3632_v45 = vpop.f32.mrf.mxu1  ;;  %7205 = vmatmul.mubr.msk.bf16.gmra.mxu1 %vm2098_vm0, %v10289_v11  ;;  %v10973_v14 = vadd.f32 %v3745_v39, %v10734_v49  ;;  %4165 = vmatprep.mubr.bf16.mxu0 %v7902_v12  ;;  %v14937_v12 = vld [vmem:[#allocation129_spill] sm:$0xff] }
 0x2f5   :  { %v10970_v63 = vadd.f32 %v3632_v45, %v10727_v5  ;;  %7208 = vmatprep.mubr.msk.bf16.mxu1 %vm2098_vm0, %v10333_v40  ;;  %v3747_v19 = vpop.f32.mrf.mxu0 }
 0x2f6   :  { %14930 = vst [vmem:[#allocation170_spill] sm:$0xff] %v10973_v14  ;;  %v3634_v37 = vpop.f32.mrf.mxu1  ;;  %v10984_v11 = vadd.f32 %v3747_v19, %v10743_v56  ;;  %v7903_v56 = vld [vmem:[%s14077_s0 + $0x1c0] ss:$20 sps:$4 sm:$0xff]   ;;  %v15066_v14 = vld [vmem:[#allocation87_spill] sm:$0xff] }
 0x2f7   :  { %v10981_v15 = vadd.f32 %v3634_v37, %v10740_v44  ;;  %v3749_v62 = vpop.f32.mrf.mxu0 }
 0x2f8   :  { %14931 = vst [vmem:[#allocation171_spill] sm:$0xff] %v10984_v11  ;;  %v3636_v5 = vpop.f32.mrf.mxu1  ;;  %v10990_v47 = vadd.f32 %v3749_v62, %v10748_v9  ;;  %v15061_v11 = vld [vmem:[#allocation79_spill] sm:$0xff] }
 0x2f9   :  { %v10987_v49 = vadd.f32 %v3636_v5, %v10745_v42  ;;  %v3751_v26 = vpop.f32.mrf.mxu0 }
 0x2fa   :  { %14932 = vst [vmem:[#allocation172_spill] sm:$0xff] %v10990_v47  ;;  %v3638_v32 = vpop.f32.mrf.mxu1  ;;  %v10996_v58 = vadd.f32 %v3751_v26, %v10753_v3  ;;  %v14936_v3 = vld [vmem:[#allocation168_spill] sm:$0xff] }
 0x2fb   :  { %v10993_v40 = vadd.f32 %v3638_v32, %v10750_v13  ;;  %v3755_v45 = vpop.f32.mrf.mxu0  ;;  %4166 = vmatmul.mubr.bf16.gmra.mxu0 %v7903_v56  ;;  %v14935_v13 = vld [vmem:[#allocation143_spill] sm:$0xff] }
 0x2fc   :  { %14933 = vst [vmem:[#allocation173_spill] sm:$0xff] %v10996_v58  ;;  %v3642_v44 = vpop.f32.mrf.mxu1  ;;  %7209 = vmatmul.mubr.msk.bf16.gmra.mxu1 %vm2098_vm0, %v10377_v35  ;;  %v11007_v9 = vadd.f32 %v3755_v45, %v10762_v20  ;;  %4173 = vmatprep.mubr.bf16.mxu0 %v14935_v13  ;;  %v15065_v58 = vld [vmem:[#allocation77_spill] sm:$0xff] }
 0x2fd   :  { %v11004_v42 = vadd.f32 %v3642_v44, %v10755_v4  ;;  %7212 = vmatprep.mubr.msk.bf16.mxu1 %vm2098_vm0, %v14936_v3  ;;  %v3757_v46 = vpop.f32.mrf.mxu0  ;;  %v14940_v44 = vld [vmem:[#allocation130_spill] sm:$0xff]  ;;  %v14943_v3 = vld [vmem:[#allocation93_spill] sm:$0xff] }
 0x2fe   :  { %14934 = vst [vmem:[#allocation174_spill] sm:$0xff] %v11007_v9  ;;  %v3644_v39 = vpop.f32.mrf.mxu1  ;;  %v11016_v19 = vadd.f32 %v3757_v46, %v10771_v0  ;;  %v14942_v0 = vld [vmem:[#allocation147_spill] sm:$0xff]  ;;  %v15071_v9 = vld [vmem:[#allocation86_spill] sm:$0xff] }
 0x2ff   :  { %v11013_v37 = vadd.f32 %v3644_v39, %v14937_v12  ;;  %v3759_v5 = vpop.f32.mrf.mxu0  ;;  %v14947_v12 = vld [vmem:[#allocation149_spill] sm:$0xff] }
 0x300   :  { %14938 = vst [vmem:[#allocation143_spill] sm:$0xff] %v11016_v19  ;;  %v3646_v35 = vpop.f32.mrf.mxu1  ;;  %v11022_v20 = vadd.f32 %v3759_v5, %v10776_v51  ;;  %v14945_v51 = vld [vmem:[#allocation40_spill] sm:$0xff]  ;;  %v4772_v19 = vmul.f32 %v15065_v58, %v15065_v58 }
 0x301   :  { %v11019_v4 = vadd.f32 %v3646_v35, %v10773_v6  ;;  %v3761_v32 = vpop.f32.mrf.mxu0  ;;  %v14944_v6 = vld [vmem:[#allocation4_spill] sm:$0xff] }
 0x302   :  { %14939 = vst [vmem:[#allocation168_spill] sm:$0xff] %v11022_v20  ;;  %v3648_v62 = vpop.f32.mrf.mxu1  ;;  %v11028_v45 = vadd.f32 %v3761_v32, %v14940_v44  ;;  %v15072_v20 = vld [vmem:[#allocation92_spill] sm:$0xff] }
 0x303   :  { %v11025_v26 = vadd.f32 %v3648_v62, %v10778_v60  ;;  %v3765_v13 = vpop.f32.mrf.mxu0  ;;  %4174 = vmatmul.mubr.bf16.gmra.mxu0 %v14942_v0  ;;  %v14948_v60 = vld [vmem:[#allocation72_spill] sm:$0xff]  ;;  %v14949_v62 = vld [vmem:[#allocation110_spill] sm:$0xff] }
 0x304   :  { %14941 = vst [vmem:[#allocation129_spill] sm:$0xff] %v11028_v45  ;;  %v3652_v56 = vpop.f32.mrf.mxu1  ;;  %7213 = vmatmul.mubr.msk.bf16.gmra.mxu1 %vm2098_vm0, %v14943_v3  ;;  %v11037_v46 = vadd.f32 %v3765_v13, %v14945_v51  ;;  %4181 = vmatprep.mubr.bf16.mxu0 %v14947_v12  ;;  %v15068_v45 = vld [vmem:[#allocation80_spill] sm:$0xff] }
 0x305   :  { %v11034_v39 = vadd.f32 %v3652_v56, %v14944_v6  ;;  %7216 = vmatprep.mubr.msk.bf16.mxu1 %vm2098_vm0, %v14948_v60  ;;  %v3767_v5 = vpop.f32.mrf.mxu0  ;;  %v14952_v60 = vld [vmem:[#allocation42_spill] sm:$0xff]  ;;  %v4779_v47 = vmul.f32 %v15068_v45, %v15068_v45 }
 0x306   :  { %14946 = vst [vmem:[#allocation130_spill] sm:$0xff] %v11037_v46  ;;  %v3654_v35 = vpop.f32.mrf.mxu1  ;;  %v11046_v44 = vadd.f32 %v3767_v5, %v10799_v17  ;;  %v14954_v17 = vld [vmem:[#allocation153_spill] sm:$0xff] }
 0x307   :  { %v11043_v32 = vadd.f32 %v3654_v35, %v14949_v62  ;;  %v3769_v3 = vpop.f32.mrf.mxu0  ;;  %v14955_v5 = vld [vmem:[#allocation105_spill] sm:$0xff] }
 0x308   :  { %14950 = vst [vmem:[#allocation147_spill] sm:$0xff] %v11046_v44  ;;  %v3656_v0 = vpop.f32.mrf.mxu1  ;;  %v11052_v13 = vadd.f32 %v3769_v3, %v10804_v34  ;;  %v14957_v34 = vld [vmem:[#allocation133_spill] sm:$0xff]  ;;  %v14959_v44 = vld [vmem:[#allocation155_spill] sm:$0xff] }
 0x309   :  { %v11049_v56 = vadd.f32 %v3656_v0, %v10801_v41  ;;  %v3771_v51 = vpop.f32.mrf.mxu0  ;;  %v14956_v41 = vld [vmem:[#allocation132_spill] sm:$0xff] }
 0x30a   :  { %14951 = vst [vmem:[#allocation93_spill] sm:$0xff] %v11052_v13  ;;  %v3658_v6 = vpop.f32.mrf.mxu1  ;;  %v11058_v46 = vadd.f32 %v3771_v51, %v14952_v60  ;;  %v14961_v60 = vld [vmem:[#allocation113_spill] sm:$0xff] }
 0x30b   :  { %v11055_v12 = vadd.f32 %v3658_v6, %v10806_v30  ;;  %v3775_v62 = vpop.f32.mrf.mxu0  ;;  %4182 = vmatmul.mubr.bf16.gmra.mxu0 %v14954_v17  ;;  %v14960_v30 = vld [vmem:[#allocation82_spill] sm:$0xff] }
 0x30c   :  { %14953 = vst [vmem:[#allocation4_spill] sm:$0xff] %v11058_v46  ;;  %v3662_v35 = vpop.f32.mrf.mxu1  ;;  %7217 = vmatmul.mubr.msk.bf16.gmra.mxu1 %vm2098_vm0, %v14955_v5  ;;  %v11067_v3 = vadd.f32 %v3775_v62, %v14957_v34  ;;  %4189 = vmatprep.mubr.bf16.mxu0 %v14959_v44 }
 0x30d   :  { %v11064_v0 = vadd.f32 %v3662_v35, %v14956_v41  ;;  %7220 = vmatprep.mubr.msk.bf16.mxu1 %vm2098_vm0, %v14960_v30  ;;  %v3777_v51 = vpop.f32.mrf.mxu0  ;;  %v14964_v30 = vld [vmem:[#allocation26_spill] sm:$0xff] }
 0x30e   :  { %14958 = vst [vmem:[#allocation40_spill] sm:$0xff] %v11067_v3  ;;  %v3664_v6 = vpop.f32.mrf.mxu1  ;;  %v11076_v17 = vadd.f32 %v3777_v51, %v10827_v61  ;;  %v14966_v61 = vld [vmem:[#allocation159_spill] sm:$0xff]  ;;  %v14967_v51 = vld [vmem:[#allocation89_spill] sm:$0xff] }
 0x30f   :  { %v11073_v46 = vadd.f32 %v3664_v6, %v14961_v60  ;;  %v3779_v13 = vpop.f32.mrf.mxu0 }
 0x310   :  { %14962 = vst [vmem:[#allocation149_spill] sm:$0xff] %v11076_v17  ;;  %v3666_v5 = vpop.f32.mrf.mxu1  ;;  %v11082_v62 = vadd.f32 %v3779_v13, %v10832_v54  ;;  %v14969_v54 = vld [vmem:[#allocation31_spill] sm:$0xff]  ;;  %v14971_v17 = vld [vmem:[#allocation161_spill] sm:$0xff] }
 0x311   :  { %v11079_v35 = vadd.f32 %v3666_v5, %v10829_v43  ;;  %v3781_v41 = vpop.f32.mrf.mxu0  ;;  %v14968_v43 = vld [vmem:[#allocation114_spill] sm:$0xff] }
 0x312   :  { %14963 = vst [vmem:[#allocation72_spill] sm:$0xff] %v11082_v62  ;;  %v3668_v44 = vpop.f32.mrf.mxu1  ;;  %v11088_v3 = vadd.f32 %v3781_v41, %v14964_v30  ;;  %v14973_v30 = vld [vmem:[#allocation115_spill] sm:$0xff] }
 0x313   :  { %v11085_v34 = vadd.f32 %v3668_v44, %v10834_v36  ;;  %v3785_v60 = vpop.f32.mrf.mxu0  ;;  %4190 = vmatmul.mubr.bf16.gmra.mxu0 %v14966_v61  ;;  %v14972_v36 = vld [vmem:[#allocation2_spill] sm:$0xff] }
 0x314   :  { %14965 = vst [vmem:[#allocation110_spill] sm:$0xff] %v11088_v3  ;;  %v3672_v6 = vpop.f32.mrf.mxu1  ;;  %7221 = vmatmul.mubr.msk.bf16.gmra.mxu1 %vm2098_vm0, %v14967_v51  ;;  %v11097_v13 = vadd.f32 %v3785_v60, %v14969_v54  ;;  %4197 = vmatprep.mubr.bf16.mxu0 %v14971_v17 }
 0x315   :  { %v11094_v5 = vadd.f32 %v3672_v6, %v14968_v43  ;;  %7224 = vmatprep.mubr.msk.bf16.mxu1 %vm2098_vm0, %v14972_v36  ;;  %v3787_v41 = vpop.f32.mrf.mxu0 }
 0x316   :  { %14970 = vst [vmem:[#allocation42_spill] sm:$0xff] %v11097_v13  ;;  %v3674_v44 = vpop.f32.mrf.mxu1  ;;  %v11106_v61 = vadd.f32 %v3787_v41, %v10855_v50  ;;  %v14977_v50 = vld [vmem:[#allocation165_spill] sm:$0xff]  ;;  %v14978_v41 = vld [vmem:[#allocation126_spill] sm:$0xff] }
 0x317   :  { %v11103_v3 = vadd.f32 %v3674_v44, %v14973_v30  ;;  %v3789_v62 = vpop.f32.mrf.mxu0 }
 0x318   :  { %14974 = vst [vmem:[#allocation153_spill] sm:$0xff] %v11106_v61  ;;  %v3676_v51 = vpop.f32.mrf.mxu1  ;;  %v11112_v60 = vadd.f32 %v3789_v62, %v10860_v28  ;;  %v14980_v28 = vld [vmem:[#allocation116_spill] sm:$0xff] }
 0x319   :  { %v11109_v6 = vadd.f32 %v3676_v51, %v10857_v53  ;;  %v3791_v43 = vpop.f32.mrf.mxu0  ;;  %v14979_v53 = vld [vmem:[#allocation36_spill] sm:$0xff] }
 0x31a   :  { %14975 = vst [vmem:[#allocation105_spill] sm:$0xff] %v11112_v60  ;;  %v3678_v17 = vpop.f32.mrf.mxu1  ;;  %v11118_v36 = vadd.f32 %v3791_v43, %v10865_v10  ;;  %v15047_v60 = vld [vmem:[#allocation67_spill] sm:$0xff] }
 0x31b   :  { %v11115_v54 = vadd.f32 %v3678_v17, %v10862_v7  ;;  %v3795_v30 = vpop.f32.mrf.mxu0  ;;  %4198 = vmatmul.mubr.bf16.gmra.mxu0 %v14977_v50  ;;  %v14982_v7 = vld [vmem:[#allocation41_spill] sm:$0xff] }
 0x31c   :  { %14976 = vst [vmem:[#allocation132_spill] sm:$0xff] %v11118_v36  ;;  %v3682_v44 = vpop.f32.mrf.mxu1  ;;  %7225 = vmatmul.mubr.msk.bf16.gmra.mxu1 %vm2098_vm0, %v14978_v41  ;;  %v11127_v62 = vadd.f32 %v3795_v30, %v14980_v28 }
 0x31d   :  { %v11124_v51 = vadd.f32 %v3682_v44, %v14979_v53  ;;  %v3797_v13 = vpop.f32.mrf.mxu0 }
 0x31e   :  { %14981 = vst [vmem:[#allocation133_spill] sm:$0xff] %v11127_v62  ;;  %v3684_v61 = vpop.f32.mrf.mxu1  ;;  %v11133_v10 = vadd.f32 %v3797_v13, %v10884_v33 }
 0x31f   :  { %v11130_v17 = vadd.f32 %v3684_v61, %v14982_v7  ;;  %v3799_v36 = vpop.f32.mrf.mxu0 }
 0x320   :  { %14983 = vst [vmem:[#allocation155_spill] sm:$0xff] %v11133_v10  ;;  %v3686_v43 = vpop.f32.mrf.mxu1  ;;  %v11139_v41 = vadd.f32 %v3799_v36, %v10889_v22 }
 0x321   :  { %v11136_v50 = vadd.f32 %v3686_v43, %v10886_v25  ;;  %v3801_v53 = vpop.f32.mrf.mxu0 }
 0x322   :  { %14984 = vst [vmem:[#allocation82_spill] sm:$0xff] %v11139_v41  ;;  %v3688_v44 = vpop.f32.mrf.mxu1  ;;  %v11145_v28 = vadd.f32 %v3801_v53, %v10894_v52 }
 0x323   :  { %v11142_v30 = vadd.f32 %v3688_v44, %v10891_v21  ;;  %v3805_v61 = vpop.f32.mrf.mxu0 }
 0x324   :  { %14985 = vst [vmem:[#allocation113_spill] sm:$0xff] %v11145_v28  ;;  %v6960_v7 = vpop.f32.mrf.mxu1  ;;  %v11148_v33 = vadd.f32 %v3805_v61, %v10902_v38 }
 0x325   :  { %v3807_v13 = vpop.f32.mrf.mxu0 }
 0x326   :  { %14986 = vst [vmem:[#allocation26_spill] sm:$0xff] %v11148_v33  ;;  %v6961_v10 = vpop.f32.mrf.mxu1  ;;  %v11151_v25 = vadd.f32 %v3807_v13, %v10913_v59 }
 0x327   :  { %v11153_v22 = vadd.f32 %v6961_v10, %v6960_v7  ;;  %v3809_v36 = vpop.f32.mrf.mxu0 }
 0x328   :  { %14987 = vst [vmem:[#allocation159_spill] sm:$0xff] %v11151_v25  ;;  %v6963_v43 = vpop.f32.mrf.mxu1  ;;  %v11156_v21 = vadd.f32 %v3809_v36, %v10919_v8 }
 0x329   :  { %14988 = vst [vmem:[#allocation89_spill] sm:$0xff] %v11153_v22  ;;  %v3811_v44 = vpop.f32.mrf.mxu0 }
 0x32a   :  { %14989 = vst [vmem:[#allocation114_spill] sm:$0xff] %v11156_v21  ;;  %v6964_v52 = vpop.f32.mrf.mxu1  ;;  %v11159_v53 = vadd.f32 %v3811_v44, %v10925_v48 }
 0x32b   :  { %v11161_v28 = vadd.f32 %v6964_v52, %v6963_v43  ;;  %v3815_v38 = vpop.f32.mrf.mxu0 }
 0x32c   :  { %14990 = vst [vmem:[#allocation31_spill] sm:$0xff] %v11159_v53  ;;  %v6966_v61 = vpop.f32.mrf.mxu1  ;;  %v11164_v33 = vadd.f32 %v3815_v38, %v10936_v24 }
 0x32d   :  { %14991 = vst [vmem:[#allocation161_spill] sm:$0xff] %v11161_v28  ;;  %v3817_v59 = vpop.f32.mrf.mxu0 }
 0x32e   :  { %14992 = vst [vmem:[#allocation2_spill] sm:$0xff] %v11164_v33  ;;  %v6967_v10 = vpop.f32.mrf.mxu1  ;;  %v11167_v7 = vadd.f32 %v3817_v59, %v10947_v23  ;;  %v15045_v33 = vld [vmem:[#allocation63_spill] sm:$0xff] }
 0x32f   :  { %v11169_v13 = vadd.f32 %v6967_v10, %v6966_v61  ;;  %v3819_v8 = vpop.f32.mrf.mxu0 }
 0x330   :  { %14993 = vst [vmem:[#allocation115_spill] sm:$0xff] %v11167_v7  ;;  %v6969_v36 = vpop.f32.mrf.mxu1  ;;  %v11172_v25 = vadd.f32 %v3819_v8, %v10953_v31 }
 0x331   :  { %14994 = vst [vmem:[#allocation165_spill] sm:$0xff] %v11169_v13  ;;  %v3821_v48 = vpop.f32.mrf.mxu0 }
 0x332   :  { %14995 = vst [vmem:[#allocation126_spill] sm:$0xff] %v11172_v25  ;;  %v6970_v43 = vpop.f32.mrf.mxu1  ;;  %v11175_v44 = vadd.f32 %v3821_v48, %v10959_v55 }
 0x333   :  { %v11177_v52 = vadd.f32 %v6970_v43, %v6969_v36  ;;  %v3825_v24 = vpop.f32.mrf.mxu0 }
 0x334   :  { %14996 = vst [vmem:[#allocation36_spill] sm:$0xff] %v11175_v44  ;;  %v6972_v38 = vpop.f32.mrf.mxu1  ;;  %v11180_v53 = vadd.f32 %v3825_v24, %v10970_v63  ;;  %v15041_v44 = vld [vmem:[#allocation58_spill] sm:$0xff] }
 0x335   :  { %14997 = vst [vmem:[#allocation116_spill] sm:$0xff] %v11177_v52  ;;  %v3827_v23 = vpop.f32.mrf.mxu0  ;;  %v15081_v52 = vld [vmem:[#allocation12_spill] sm:$0xff] }
 0x336   :  { %14998 = vst [vmem:[#allocation41_spill] sm:$0xff] %v11180_v53  ;;  %v6973_v61 = vpop.f32.mrf.mxu1  ;;  %v11183_v59 = vadd.f32 %v3827_v23, %v10981_v15  ;;  %v4814_v29 = vmul.f32 %v15081_v52, %v15081_v52 }
 0x337   :  { %v11185_v10 = vadd.f32 %v6973_v61, %v6972_v38  ;;  %v3829_v31 = vpop.f32.mrf.mxu0 }
 0x338   :  { %14999 = vst [vmem:[#allocation175_spill] sm:$0xff] %v11183_v59  ;;  %v6975_v8 = vpop.f32.mrf.mxu1  ;;  %v11188_v7 = vadd.f32 %v3829_v31, %v10987_v49 }
 0x339   :  { %15000 = vst [vmem:[#allocation176_spill] sm:$0xff] %v11185_v10  ;;  %v3831_v55 = vpop.f32.mrf.mxu0 }
 0x33a   :  { %15001 = vst [vmem:[#allocation177_spill] sm:$0xff] %v11188_v7  ;;  %v6976_v36 = vpop.f32.mrf.mxu1  ;;  %v11191_v48 = vadd.f32 %v3831_v55, %v10993_v40 }
 0x33b   :  { %v11193_v43 = vadd.f32 %v6976_v36, %v6975_v8  ;;  %v3835_v63 = vpop.f32.mrf.mxu0 }
 0x33c   :  { %15002 = vst [vmem:[#allocation178_spill] sm:$0xff] %v11191_v48  ;;  %v6978_v24 = vpop.f32.mrf.mxu1  ;;  %v11196_v53 = vadd.f32 %v3835_v63, %v11004_v42 }
 0x33d   :  { %15003 = vst [vmem:[#allocation179_spill] sm:$0xff] %v11193_v43  ;;  %v3837_v15 = vpop.f32.mrf.mxu0  ;;  %v4793_v43 = vmul.f32 %v15071_v9, %v15071_v9 }
 0x33e   :  { %15004 = vst [vmem:[#allocation180_spill] sm:$0xff] %v11196_v53  ;;  %v6979_v38 = vpop.f32.mrf.mxu1  ;;  %v11199_v23 = vadd.f32 %v3837_v15, %v11013_v37 }
 0x33f   :  { %v11201_v61 = vadd.f32 %v6979_v38, %v6978_v24  ;;  %v3839_v49 = vpop.f32.mrf.mxu0 }
 0x340   :  { %15005 = vst [vmem:[#allocation181_spill] sm:$0xff] %v11199_v23  ;;  %v6981_v31 = vpop.f32.mrf.mxu1  ;;  %v11204_v59 = vadd.f32 %v3839_v49, %v11019_v4 }
 0x341   :  { %15006 = vst [vmem:[#allocation182_spill] sm:$0xff] %v11201_v61  ;;  %v3841_v40 = vpop.f32.mrf.mxu0 }
 0x342   :  { %15007 = vst [vmem:[#allocation183_spill] sm:$0xff] %v11204_v59  ;;  %v6982_v8 = vpop.f32.mrf.mxu1  ;;  %v11207_v55 = vadd.f32 %v3841_v40, %v11025_v26  ;;  %v15037_v59 = vld [vmem:[#allocation52_spill] sm:$0xff] }
 0x343   :  { %v11209_v36 = vadd.f32 %v6982_v8, %v6981_v31  ;;  %v3845_v42 = vpop.f32.mrf.mxu0 }
 0x344   :  { %15008 = vst [vmem:[#allocation184_spill] sm:$0xff] %v11207_v55  ;;  %v6984_v63 = vpop.f32.mrf.mxu1  ;;  %v11212_v48 = vadd.f32 %v3845_v42, %v11034_v39 }
 0x345   :  { %15009 = vst [vmem:[#allocation185_spill] sm:$0xff] %v11209_v36  ;;  %v3847_v37 = vpop.f32.mrf.mxu0 }
 0x346   :  { %15010 = vst [vmem:[#allocation186_spill] sm:$0xff] %v11212_v48  ;;  %v6985_v24 = vpop.f32.mrf.mxu1  ;;  %v11215_v15 = vadd.f32 %v3847_v37, %v11043_v32 }
 0x347   :  { %v11217_v38 = vadd.f32 %v6985_v24, %v6984_v63  ;;  %v3849_v4 = vpop.f32.mrf.mxu0 }
 0x348   :  { %15011 = vst [vmem:[#allocation187_spill] sm:$0xff] %v11215_v15  ;;  %v6987_v49 = vpop.f32.mrf.mxu1  ;;  %v11220_v23 = vadd.f32 %v3849_v4, %v11049_v56 }
 0x349   :  { %15012 = vst [vmem:[#allocation188_spill] sm:$0xff] %v11217_v38  ;;  %v3851_v26 = vpop.f32.mrf.mxu0 }
 0x34a   :  { %15013 = vst [vmem:[#allocation189_spill] sm:$0xff] %v11220_v23  ;;  %v6988_v31 = vpop.f32.mrf.mxu1  ;;  %v11223_v40 = vadd.f32 %v3851_v26, %v11055_v12 }
 0x34b   :  { %v11225_v8 = vadd.f32 %v6988_v31, %v6987_v49  ;;  %v3855_v39 = vpop.f32.mrf.mxu0 }
 0x34c   :  { %15014 = vst [vmem:[#allocation190_spill] sm:$0xff] %v11223_v40  ;;  %v6990_v42 = vpop.f32.mrf.mxu1  ;;  %v11228_v48 = vadd.f32 %v3855_v39, %v11064_v0 }
 0x34d   :  { %15015 = vst [vmem:[#allocation191_spill] sm:$0xff] %v11225_v8  ;;  %v3857_v32 = vpop.f32.mrf.mxu0  ;;  %v15058_v8 = vld [vmem:[#allocation71_spill] sm:$0xff] }
 0x34e   :  { %15016 = vst [vmem:[#allocation192_spill] sm:$0xff] %v11228_v48  ;;  %v6991_v63 = vpop.f32.mrf.mxu1  ;;  %v11231_v37 = vadd.f32 %v3857_v32, %v11073_v46  ;;  %v15033_v48 = vld [vmem:[#allocation53_spill] sm:$0xff] }
 0x34f   :  { %v11233_v24 = vadd.f32 %v6991_v63, %v6990_v42  ;;  %v3859_v56 = vpop.f32.mrf.mxu0 }
 0x350   :  { %15017 = vst [vmem:[#allocation193_spill] sm:$0xff] %v11231_v37  ;;  %v6993_v4 = vpop.f32.mrf.mxu1  ;;  %v11236_v15 = vadd.f32 %v3859_v56, %v11079_v35 }
 0x351   :  { %15018 = vst [vmem:[#allocation194_spill] sm:$0xff] %v11233_v24  ;;  %v3861_v12 = vpop.f32.mrf.mxu0  ;;  %v15060_v24 = vld [vmem:[#allocation74_spill] sm:$0xff] }
 0x352   :  { %15019 = vst [vmem:[#allocation195_spill] sm:$0xff] %v11236_v15  ;;  %v6994_v49 = vpop.f32.mrf.mxu1  ;;  %v11239_v26 = vadd.f32 %v3861_v12, %v11085_v34  ;;  %v15026_v34 = vld [vmem:[#allocation46_spill] sm:$0xff] }
 0x353   :  { %v11241_v31 = vadd.f32 %v6994_v49, %v6993_v4  ;;  %v3865_v0 = vpop.f32.mrf.mxu0  ;;  %v4689_v4 = vmul.f32 %v15026_v34, %v15026_v34 }
 0x354   :  { %15020 = vst [vmem:[#allocation196_spill] sm:$0xff] %v11239_v26  ;;  %v6996_v39 = vpop.f32.mrf.mxu1  ;;  %v11244_v40 = vadd.f32 %v3865_v0, %v11094_v5  ;;  %v15027_v26 = vld [vmem:[#allocation48_spill] sm:$0xff] }
 0x355   :  { %15021 = vst [vmem:[#allocation197_spill] sm:$0xff] %v11241_v31  ;;  %v3867_v46 = vpop.f32.mrf.mxu0  ;;  %v4696_v5 = vmul.f32 %v15027_v26, %v15027_v26  ;;  %v4765_v31 = vmul.f32 %v15060_v24, %v15060_v24 }
 0x356   :  { %15022 = vst [vmem:[#allocation198_spill] sm:$0xff] %v11244_v40  ;;  %v6997_v42 = vpop.f32.mrf.mxu1  ;;  %v11247_v32 = vadd.f32 %v3867_v46, %v11103_v3 }
 0x357   :  { %v11249_v63 = vadd.f32 %v6997_v42, %v6996_v39  ;;  %v3869_v35 = vpop.f32.mrf.mxu0  ;;  %v15030_v39 = vld [vmem:[#allocation43_spill] sm:$0xff]  ;;  %v15031_v42 = vld [vmem:[#allocation50_spill] sm:$0xff] }
 0x358   :  { %15023 = vst [vmem:[#allocation199_spill] sm:$0xff] %v11247_v32  ;;  %v6999_v56 = vpop.f32.mrf.mxu1  ;;  %v11252_v37 = vadd.f32 %v3869_v35, %v11109_v6  ;;  %v4688_v46 = vmul.f32 %v15030_v39, %v15030_v39  ;;  %v4703_v6 = vmul.f32 %v15031_v42, %v15031_v42  ;;  %v11269_v40 = vadd.f32 %v15026_v34, %v15030_v39  ;;  %v15036_v34 = vld [vmem:[#allocation55_spill] sm:$0xff] }
 0x359   :  { %15024 = vst [vmem:[#allocation200_spill] sm:$0xff] %v11249_v63  ;;  %v3871_v12 = vpop.f32.mrf.mxu0  ;;  %v4717_v39 = vmul.f32 %v15036_v34, %v15036_v34  ;;  %v15051_v63 = vld [vmem:[#allocation69_spill] sm:$0xff] }
 0x35a   :  { %15025 = vst [vmem:[#allocation201_spill] sm:$0xff] %v11252_v37  ;;  %v7000_v49 = vpop.f32.mrf.mxu1  ;;  %v11259_v0 = vadd.f32 %v3871_v12, %v11115_v54  ;;  %v15032_v37 = vld [vmem:[#allocation47_spill] sm:$0xff]  ;;  %v4710_v54 = vmul.f32 %v15033_v48, %v15033_v48  ;;  %v11278_v12 = vadd.f32 %v4689_v4, %v4688_v46  ;;  %v4752_v62 = vmul.f32 %v15051_v63, %v15051_v63 }
 0x35b   :  { %v11261_v3 = vadd.f32 %v7000_v49, %v6999_v56  ;;  %v3875_v35 = vpop.f32.mrf.mxu0  ;;  %v4695_v23 = vmul.f32 %v15032_v37, %v15032_v37  ;;  %v11282_v49 = vadd.f32 %v15027_v26, %v15032_v37  ;;  %v15040_v37 = vld [vmem:[#allocation54_spill] sm:$0xff] }
 0x35c   :  { %15028 = vst [vmem:[#allocation202_spill] sm:$0xff] %v11259_v0  ;;  %v7002_v32 = vpop.f32.mrf.mxu1  ;;  %v11276_v56 = vadd.f32 %v3875_v35, %v11124_v51  ;;  %v15035_v0 = vld [vmem:[#allocation49_spill] sm:$0xff]  ;;  %v4709_v51 = vmul.f32 %v15037_v59, %v15037_v59 }
 0x35d   :  { %15029 = vst [vmem:[#allocation203_spill] sm:$0xff] %v11261_v3  ;;  %v4702_v15 = vmul.f32 %v15035_v0, %v15035_v0  ;;  %v3877_v55 = vpop.f32.mrf.mxu0  ;;  %v11288_v53 = vadd.f32 %v4696_v5, %v4695_v23  ;;  %v11299_v35 = vadd.f32 %v15031_v42, %v15035_v0  ;;  %v4724_v23 = vmul.f32 %v15041_v44, %v15041_v44  ;;  %v15044_v0 = vld [vmem:[#allocation57_spill] sm:$0xff] }
 0x35e   :  { %15034 = vst [vmem:[#allocation204_spill] sm:$0xff] %v11276_v56  ;;  %v7003_v7 = vpop.f32.mrf.mxu1  ;;  %v11293_v4 = vadd.f32 %v3877_v55, %v11130_v17  ;;  %v4716_v56 = vmul.f32 %v15040_v37, %v15040_v37  ;;  %v11309_v17 = vadd.f32 %v15033_v48, %v15037_v59  ;;  %v15042_v55 = vld [vmem:[#allocation61_spill] sm:$0xff]  ;;  %v4738_v48 = vmul.f32 %v15045_v33, %v15045_v33  ;;  %v15046_v59 = vld [vmem:[#allocation59_spill] sm:$0xff] }
 0x35f   :  { %v11295_v46 = vadd.f32 %v7003_v7, %v7002_v32  ;;  %v11301_v26 = vadd.f32 %v4703_v6, %v4702_v15  ;;  %v3879_v5 = vpop.f32.mrf.mxu0  ;;  %v11311_v7 = vadd.f32 %v4710_v54, %v4709_v51  ;;  %v4731_v32 = vmul.f32 %v15042_v55, %v15042_v55 }
 0x360   :  { %15038 = vst [vmem:[#allocation205_spill] sm:$0xff] %v11293_v4  ;;  %v7005_v21 = vpop.f32.mrf.mxu1  ;;  %v11316_v15 = vadd.f32 %v3879_v5, %v11136_v50  ;;  %v11320_v6 = vadd.f32 %v15036_v34, %v15040_v37  ;;  %v11322_v42 = vadd.f32 %v4717_v39, %v4716_v56  ;;  %v4723_v4 = vmul.f32 %v15044_v0, %v15044_v0  ;;  %v15050_v37 = vld [vmem:[#allocation62_spill] sm:$0xff] }
 0x361   :  { %15039 = vst [vmem:[#allocation206_spill] sm:$0xff] %v11295_v46  ;;  %v3881_v54 = vpop.f32.mrf.mxu0  ;;  %v4730_v25 = vmul.f32 %v15046_v59, %v15046_v59  ;;  %v4745_v50 = vmul.f32 %v15047_v60, %v15047_v60  ;;  %v11339_v39 = vadd.f32 %v15041_v44, %v15044_v0  ;;  %v11361_v44 = vadd.f32 %v15045_v33, %v15050_v37 }
 0x362   :  { %15043 = vst [vmem:[#allocation207_spill] sm:$0xff] %v11316_v15  ;;  %v7006_v51 = vpop.f32.mrf.mxu1  ;;  %v11333_v5 = vadd.f32 %v3881_v54, %v11142_v30  ;;  %v11341_v56 = vadd.f32 %v4724_v23, %v4723_v4  ;;  %v4737_v15 = vmul.f32 %v15050_v37, %v15050_v37  ;;  %v11351_v30 = vadd.f32 %v15042_v55, %v15046_v59  ;;  %v15053_v54 = vld [vmem:[#allocation65_spill] sm:$0xff] }
 0x363   :  { %v11335_v34 = vadd.f32 %v7006_v51, %v7005_v21  ;;  %v11347_v41 = vpop.f32.mrf.mxu0  ;;  %v11353_v21 = vadd.f32 %v4731_v32, %v4730_v25  ;;  %v4744_v51 = vmul.f32 %v15053_v54, %v15053_v54  ;;  %v15054_v4 = vld [vmem:[#allocation73_spill] sm:$0xff]  ;;  %v11373_v59 = vadd.f32 %v15047_v60, %v15053_v54 }
 0x364   :  { %15048 = vst [vmem:[#allocation208_spill] sm:$0xff] %v11333_v5  ;;  %v7008_v3 = vpop.f32.mrf.mxu1  ;;  %15052 = vst [vmem:[#allocation210_spill] sm:$0xff] %v11347_v41  ;;  %v4759_v23 = vmul.f32 %v15054_v4, %v15054_v4  ;;  %v11363_v0 = vadd.f32 %v4738_v48, %v4737_v15  ;;  %v15055_v5 = vld [vmem:[#allocation68_spill] sm:$0xff]  ;;  %v4758_v33 = vmul.f32 %v15058_v8, %v15058_v8 }
 0x365   :  { %15049 = vst [vmem:[#allocation209_spill] sm:$0xff] %v11335_v34  ;;  %v4751_v46 = vmul.f32 %v15055_v5, %v15055_v5  ;;  %v15056_v34 = vld [vmem:[#allocation75_spill] sm:$0xff]  ;;  %v11369_v32 = vpop.f32.mrf.mxu0  ;;  %v11375_v38 = vadd.f32 %v4745_v50, %v4744_v51  ;;  %v11383_v15 = vadd.f32 %v15051_v63, %v15055_v5  ;;  %v4773_v60 = vmul.f32 %v15061_v11, %v15061_v11 }
 0x366   :  { %v4766_v55 = vmul.f32 %v15056_v34, %v15056_v34  ;;  %v7009_v25 = vpop.f32.mrf.mxu1  ;;  %15057 = vst [vmem:[#allocation211_spill] sm:$0xff] %v11369_v32  ;;  %v11395_v51 = vadd.f32 %v15054_v4, %v15058_v8  ;;  %v11405_v5 = vadd.f32 %v15056_v34, %v15060_v24  ;;  %v4794_v4 = vmul.f32 %v15066_v14, %v15066_v14  ;;  %v15069_v34 = vld [vmem:[#allocation83_spill] sm:$0xff] }
 0x367   :  { %v11379_v48 = vadd.f32 %v7009_v25, %v7008_v3  ;;  %v11385_v37 = vadd.f32 %v4752_v62, %v4751_v46  ;;  %v11391_v50 = vpop.f32.mrf.mxu0  ;;  %v11397_v3 = vadd.f32 %v4759_v23, %v4758_v33  ;;  %v15063_v25 = vld [vmem:[#allocation81_spill] sm:$0xff]  ;;  %v11417_v8 = vadd.f32 %v15061_v11, %v15065_v58 }
 0x368   :  { %v7011_v54 = vpop.f32.mrf.mxu1  ;;  %15062 = vst [vmem:[#allocation213_spill] sm:$0xff] %v11391_v50  ;;  %v4780_v63 = vmul.f32 %v15063_v25, %v15063_v25  ;;  %v15064_v62 = vld [vmem:[#allocation85_spill] sm:$0xff]  ;;  %v11425_v24 = vadd.f32 %v4773_v60, %v4772_v19  ;;  %v11429_v10 = vadd.f32 %v15063_v25, %v15068_v45  ;;  %v4801_v11 = vmul.f32 %v15072_v20, %v15072_v20  ;;  %v15074_v60 = vld [vmem:[#allocation10_spill] sm:$0xff] }
 0x369   :  { %15059 = vst [vmem:[#allocation212_spill] sm:$0xff] %v11379_v48  ;;  %v4787_v46 = vmul.f32 %v15064_v62, %v15064_v62  ;;  %v11407_v48 = vadd.f32 %v4766_v55, %v4765_v31  ;;  %v11413_v23 = vpop.f32.mrf.mxu0  ;;  %v4786_v31 = vmul.f32 %v15069_v34, %v15069_v34  ;;  %v11449_v25 = vadd.f32 %v15066_v14, %v15071_v9  ;;  %v15079_v14 = vld [vmem:[#allocation102_spill] sm:$0xff] }
 0x36a   :  { %v7012_v33 = vpop.f32.mrf.mxu1  ;;  %15067 = vst [vmem:[#allocation214_spill] sm:$0xff] %v11413_v23  ;;  %v11437_v36 = vadd.f32 %v4780_v63, %v4779_v47  ;;  %v11451_v45 = vadd.f32 %v4794_v4, %v4793_v43  ;;  %v15076_v47 = vld [vmem:[#allocation98_spill] sm:$0xff]  ;;  %v4822_v43 = vmul.f32 %v15079_v14, %v15079_v14  ;;  %v15087_v23 = vld [vmem:[#allocation15_spill] sm:$0xff] }
 0x36b   :  { %v11423_v55 = vadd.f32 %v7012_v33, %v7011_v54  ;;  %v11435_v61 = vpop.f32.mrf.mxu0  ;;  %v11441_v54 = vadd.f32 %v15064_v62, %v15069_v34  ;;  %v11443_v19 = vadd.f32 %v4787_v46, %v4786_v31  ;;  %v4808_v33 = vmul.f32 %v15074_v60, %v15074_v60  ;;  %v15078_v31 = vld [vmem:[#allocation9_spill] sm:$0xff] }
 0x36c   :  { %v7014_v58 = vpop.f32.mrf.mxu1  ;;  %15073 = vst [vmem:[#allocation216_spill] sm:$0xff] %v11435_v61  ;;  %v4815_v63 = vmul.f32 %v15076_v47, %v15076_v47  ;;  %v4807_v34 = vmul.f32 %v15078_v31, %v15078_v31  ;;  %v11473_v2 = vadd.f32 %v15074_v60, %v15078_v31  ;;  %v11507_v13 = vadd.f32 %v15082_v16, %v15087_v23 }
 0x36d   :  { %15070 = vst [vmem:[#allocation215_spill] sm:$0xff] %v11423_v55  ;;  %v15075_v55 = vld [vmem:[#allocation7_spill] sm:$0xff]  ;;  %v11457_v62 = vpop.f32.mrf.mxu0 }
 0x36e   :  { %v4800_v1 = vmul.f32 %v15075_v55, %v15075_v55  ;;  %v7015_v28 = vpop.f32.mrf.mxu1  ;;  %15077 = vst [vmem:[#allocation217_spill] sm:$0xff] %v11457_v62  ;;  %v11461_v46 = vadd.f32 %v15072_v20, %v15075_v55  ;;  %v4829_v20 = vmul.f32 %v15082_v16, %v15082_v16  ;;  %v11481_v22 = vadd.f32 %v4808_v33, %v4807_v34  ;;  %v15088_v33 = vld [vmem:[#allocation22_spill] sm:$0xff]  ;;  %v15109_v62 = vld [vmem:[#allocation28_spill] sm:$0xff] }
 0x36f   :  { %v11467_v4 = vadd.f32 %v7015_v28, %v7014_v58  ;;  %v11479_v27 = vpop.f32.mrf.mxu0  ;;  %v11485_v58 = vadd.f32 %v15076_v47, %v15081_v52  ;;  %v15085_v28 = vld [vmem:[#allocation18_spill] sm:$0xff]  ;;  %v11491_v31 = vadd.f32 %v4815_v63, %v4814_v29  ;;  %v4828_v34 = vmul.f32 %v15087_v23, %v15087_v23  ;;  %15091 = vst [vmem:[#allocation223_spill] sm:$0xff] %v11507_v13  ;;  %v15092_v29 = vld [vmem:[#allocation17_spill] sm:$0xff] }
 0x370   :  { %v11469_v9 = vadd.f32 %v4801_v11, %v4800_v1  ;;  %v7017_v55 = vpop.f32.mrf.mxu1  ;;  %15083 = vst [vmem:[#allocation219_spill] sm:$0xff] %v11479_v27  ;;  %v15084_v1 = vld [vmem:[#allocation100_spill] sm:$0xff]  ;;  %v4836_v60 = vmul.f32 %v15085_v28, %v15085_v28  ;;  %v4843_v50 = vmul.f32 %v15088_v33, %v15088_v33  ;;  %v4835_v63 = vmul.f32 %v15092_v29, %v15092_v29 }
 0x371   :  { %15080 = vst [vmem:[#allocation218_spill] sm:$0xff] %v11467_v4  ;;  %v4821_v11 = vmul.f32 %v15084_v1, %v15084_v1  ;;  %v11495_v4 = vadd.f32 %v15079_v14, %v15084_v1  ;;  %v11501_v52 = vpop.f32.mrf.mxu0  ;;  %v11513_v1 = vadd.f32 %v4829_v20, %v4828_v34  ;;  %v11517_v27 = vadd.f32 %v15085_v28, %v15092_v29  ;;  %v15101_v20 = vld [vmem:[#allocation8_spill] sm:$0xff]  ;;  %v15102_v34 = vld [vmem:[#allocation29_spill] sm:$0xff] }
 0x372   :  { %v7018_v47 = vpop.f32.mrf.mxu1  ;;  %15089 = vst [vmem:[#allocation221_spill] sm:$0xff] %v11501_v52  ;;  %v4842_v52 = vmul.f32 %v15096_v57, %v15096_v57  ;;  %v11525_v23 = vadd.f32 %v4836_v60, %v4835_v63  ;;  %v4864_v28 = vmul.f32 %v15102_v34, %v15102_v34  ;;  %v15106_v60 = vld [vmem:[#allocation13_spill] sm:$0xff] }
 0x373   :  { %15086 = vst [vmem:[#allocation220_spill] sm:$0xff] %v11495_v4  ;;  %v11503_v18 = vadd.f32 %v4822_v43, %v4821_v11  ;;  %v11511_v14 = vadd.f32 %v7018_v47, %v7017_v55  ;;  %15094 = vst [vmem:[#allocation225_spill] sm:$0xff] %v11513_v1  ;;  %v15097_v43 = vld [vmem:[#allocation24_spill] sm:$0xff]  ;;  %v11523_v16 = vpop.f32.mrf.mxu0  ;;  %v11529_v55 = vadd.f32 %v15088_v33, %v15096_v57 }
 0x374   :  { %15095 = vst [vmem:[#allocation226_spill] sm:$0xff] %v11517_v27  ;;  %v4850_v11 = vmul.f32 %v15097_v43, %v15097_v43  ;;  %v7020_v32 = vpop.f32.mrf.mxu1  ;;  %15098 = vst [vmem:[#allocation227_spill] sm:$0xff] %v11523_v16  ;;  %v4857_v47 = vmul.f32 %v15101_v20, %v15101_v20  ;;  %v11535_v29 = vadd.f32 %v4843_v50, %v4842_v52  ;;  %v15110_v50 = vld [vmem:[#allocation34_spill] sm:$0xff] }
 0x375   :  { %15090 = vst [vmem:[#allocation222_spill] sm:$0xff] %v11503_v18  ;;  %15093 = vst [vmem:[#allocation224_spill] sm:$0xff] %v11511_v14  ;;  %v15104_v14 = vld [vmem:[#allocation23_spill] sm:$0xff]  ;;  %v4871_v63 = vmul.f32 %v15106_v60, %v15106_v60  ;;  %v11545_v57 = vpop.f32.mrf.mxu0  ;;  %v4863_v52 = vmul.f32 %v15109_v62, %v15109_v62 }
 0x376   :  { %15099 = vst [vmem:[#allocation228_spill] sm:$0xff] %v11525_v23  ;;  %15100 = vst [vmem:[#allocation229_spill] sm:$0xff] %v11529_v55  ;;  %v4849_v41 = vmul.f32 %v15104_v14, %v15104_v14  ;;  %v11541_v16 = vadd.f32 %v15097_v43, %v15104_v14  ;;  %v7021_v33 = vpop.f32.mrf.mxu1  ;;  %v15108_v55 = vld [vmem:[#allocation6_spill] sm:$0xff]  ;;  %v15114_v14 = vld [vmem:[#allocation11_spill] sm:$0xff] }
 0x377   :  { %15103 = vst [vmem:[#allocation230_spill] sm:$0xff] %v11535_v29  ;;  %15107 = vst [vmem:[#allocation232_spill] sm:$0xff] %v11545_v57  ;;  %v4856_v23 = vmul.f32 %v15108_v55, %v15108_v55  ;;  %v4878_v29 = vmul.f32 %v15110_v50, %v15110_v50  ;;  %v11553_v61 = vadd.f32 %v7021_v33, %v7020_v32  ;;  %v15115_v57 = vld [vmem:[#allocation16_spill] sm:$0xff]  ;;  %v11565_v18 = vpop.f32.mrf.mxu0  ;;  %v15120_v33 = vld [vmem:[#allocation33_spill] sm:$0xff] }
 0x378   :  { %15105 = vst [vmem:[#allocation231_spill] sm:$0xff] %v11541_v16  ;;  %v11555_v27 = vadd.f32 %v4850_v11, %v4849_v41  ;;  %v11559_v43 = vadd.f32 %v15101_v20, %v15108_v55  ;;  %v4870_v16 = vmul.f32 %v15114_v14, %v15114_v14  ;;  %v4885_v1 = vmul.f32 %v15115_v57, %v15115_v57  ;;  %v7023_v13 = vpop.f32.mrf.mxu1 }
 0x379   :  { %15111 = vst [vmem:[#allocation233_spill] sm:$0xff] %v11553_v61  ;;  %15116 = vst [vmem:[#allocation236_spill] sm:$0xff] %v11565_v18  ;;  %v11567_v4 = vadd.f32 %v4857_v47, %v4856_v23  ;;  %v11571_v32 = vadd.f32 %v15102_v34, %v15109_v62  ;;  %v11573_v41 = vadd.f32 %v4864_v28, %v4863_v52  ;;  %v15123_v61 = vld [vmem:[#allocation14_spill] sm:$0xff]  ;;  %v15124_v23 = vld [vmem:[#allocation39_spill] sm:$0xff]  ;;  %v11587_v34 = vpop.f32.mrf.mxu0 }
 0x37a   :  { %15112 = vst [vmem:[#allocation234_spill] sm:$0xff] %v11555_v27  ;;  %15113 = vst [vmem:[#allocation235_spill] sm:$0xff] %v11559_v43  ;;  %v4877_v11 = vmul.f32 %v15120_v33, %v15120_v33  ;;  %v11579_v20 = vadd.f32 %v15106_v60, %v15114_v14  ;;  %v11581_v55 = vadd.f32 %v4871_v63, %v4870_v16  ;;  %v15128_v62 = vld [vmem:[#allocation21_spill] sm:$0xff] }
 0x37b   :  { %15117 = vst [vmem:[#allocation237_spill] sm:$0xff] %v11567_v4  ;;  %15118 = vst [vmem:[#allocation238_spill] sm:$0xff] %v11571_v32  ;;  %v4884_v43 = vmul.f32 %v15123_v61, %v15123_v61  ;;  %v4892_v47 = vmul.f32 %v15124_v23, %v15124_v23  ;;  %v7024_v4 = vpop.f32.mrf.mxu1  ;;  %v11591_v28 = vadd.f32 %v15110_v50, %v15120_v33  ;;  %v15142_v32 = vld [vmem:[#allocation118_spill] sm:$0xff] }
 0x37c   :  { %15119 = vst [vmem:[#allocation239_spill] sm:$0xff] %v11573_v41  ;;  %15121 = vst [vmem:[#allocation240_spill] sm:$0xff] %v11579_v20  ;;  %v11593_v52 = vadd.f32 %v4878_v29, %v4877_v11  ;;  %v4899_v60 = vmul.f32 %v15128_v62, %v15128_v62  ;;  %v11597_v16 = vadd.f32 %v7024_v4, %v7023_v13  ;;  %v15133_v41 = vld [vmem:[#allocation45_spill] sm:$0xff]  ;;  %v11609_v29 = vpop.f32.mrf.mxu0  ;;  %v15135_v13 = vld [vmem:[#allocation19_spill] sm:$0xff] }
 0x37d   :  { %15122 = vst [vmem:[#allocation241_spill] sm:$0xff] %v11581_v55  ;;  %15125 = vst [vmem:[#allocation242_spill] sm:$0xff] %v11587_v34  ;;  %v11601_v63 = vadd.f32 %v15115_v57, %v15123_v61  ;;  %v11603_v14 = vadd.f32 %v4885_v1, %v4884_v43  ;;  %v15132_v55 = vld [vmem:[#allocation38_spill] sm:$0xff]  ;;  %v4690_v50 = vmul.f32 %v15133_v41, %v15133_v41  ;;  %v7026_v33 = vpop.f32.mrf.mxu1  ;;  %v15136_v57 = vld [vmem:[#allocation119_spill] sm:$0xff] }
 0x37e   :  { %15126 = vst [vmem:[#allocation243_spill] sm:$0xff] %v11591_v28  ;;  %15127 = vst [vmem:[#allocation244_spill] sm:$0xff] %v11593_v52  ;;  %v4891_v20 = vmul.f32 %v15132_v55, %v15132_v55  ;;  %v11613_v11 = vadd.f32 %v15124_v23, %v15132_v55  ;;  %v4898_v4 = vmul.f32 %v15135_v13, %v15135_v13  ;;  %v15137_v43 = vld [vmem:[#allocation134_spill] sm:$0xff]  ;;  %v15140_v23 = vld [vmem:[#allocation136_spill] sm:$0xff]  ;;  %v11631_v52 = vpop.f32.mrf.mxu0 }
 0x37f   :  { %15129 = vst [vmem:[#allocation245_spill] sm:$0xff] %v11597_v16  ;;  %15130 = vst [vmem:[#allocation246_spill] sm:$0xff] %v11601_v63  ;;  %v4906_v1 = vmul.f32 %v15136_v57, %v15136_v57  ;;  %v4697_v61 = vmul.f32 %v15137_v43, %v15137_v43  ;;  %v4368_v63 = vadd.f32 %v11269_v40, %v15133_v41 }
 0x380   :  { %15131 = vst [vmem:[#allocation247_spill] sm:$0xff] %v11603_v14  ;;  %15134 = vst [vmem:[#allocation248_spill] sm:$0xff] %v11613_v11  ;;  %v11621_v16 = vadd.f32 %v4892_v47, %v4891_v20  ;;  %v11625_v14 = vadd.f32 %v15128_v62, %v15135_v13  ;;  %v4704_v55 = vmul.f32 %v15140_v23, %v15140_v23  ;;  %v7027_v11 = vpop.f32.mrf.mxu1  ;;  %v15143_v20 = vld [vmem:[#allocation51_spill] sm:$0xff]  ;;  %v15146_v13 = vld [vmem:[#allocation44_spill] sm:$0xff] }
 0x381   :  { %v11633_v28 = vadd.f32 %v4899_v60, %v4898_v4  ;;  %v4905_v27 = vmul.f32 %v15142_v32, %v15142_v32  ;;  %v4711_v47 = vmul.f32 %v15143_v20, %v15143_v20  ;;  %v11643_v62 = vadd.f32 %v15136_v57, %v15142_v32  ;;  %v15149_v57 = vld [vmem:[#allocation139_spill] sm:$0xff] }
 0x382   :  { %15138 = vst [vmem:[#allocation249_spill] sm:$0xff] %v11621_v16  ;;  %15139 = vst [vmem:[#allocation250_spill] sm:$0xff] %v11625_v14  ;;  %v11639_v16 = vadd.f32 %v7027_v11, %v7026_v33  ;;  %v4913_v40 = vadd.f32 %v11278_v12, %v4690_v50  ;;  %v4691_v41 = vmul.f32 %v15146_v13, %v15146_v13  ;;  %v7029_v4 = vpop.f32.mrf.mxu1  ;;  %v15148_v11 = vld [vmem:[#allocation135_spill] sm:$0xff] }
 0x383   :  { %15141 = vst [vmem:[#allocation251_spill] sm:$0xff] %v11633_v28  ;;  %15145 = vst [vmem:[#allocation253_spill] sm:$0xff] %v11643_v62  ;;  %v4378_v60 = vadd.f32 %v11282_v49, %v15137_v43  ;;  %v11650_v28 = vpop.f32.mrf.mxu0  ;;  %v11652_v14 = vadd.f32 %v4906_v1, %v4905_v27  ;;  %v4922_v33 = vadd.f32 %v11288_v53, %v4697_v61  ;;  %v15150_v43 = vld [vmem:[#allocation137_spill] sm:$0xff]  ;;  %v15151_v62 = vld [vmem:[#allocation138_spill] sm:$0xff] }
 0x384   :  { %15144 = vst [vmem:[#allocation252_spill] sm:$0xff] %v11639_v16  ;;  %v4698_v16 = vmul.f32 %v15148_v11, %v15148_v11  ;;  %v4718_v32 = vmul.f32 %v15149_v57, %v15149_v57  ;;  %v11660_v12 = vadd.f32 %v4368_v63, %v15146_v13  ;;  %v4387_v50 = vadd.f32 %v11299_v35, %v15140_v23  ;;  %v7030_v1 = vpop.f32.mrf.mxu1 }
 0x385   :  { %15147 = vst [vmem:[#allocation254_spill] sm:$0xff] %v11652_v14  ;;  %v4931_v49 = vadd.f32 %v11301_v26, %v4704_v55  ;;  %v4705_v27 = vmul.f32 %v15150_v43, %v15150_v43  ;;  %v11667_v14 = vpop.f32.mrf.mxu0  ;;  %v4396_v53 = vadd.f32 %v11309_v17, %v15143_v20  ;;  %v4940_v61 = vadd.f32 %v11311_v7, %v4711_v47  ;;  %v15153_v55 = vld [vmem:[#allocation56_spill] sm:$0xff] }
 0x386   :  { %v4712_v63 = vmul.f32 %v15151_v62, %v15151_v62  ;;  %v11674_v13 = vadd.f32 %v7030_v1, %v7029_v4  ;;  %v11676_v34 = vadd.f32 %v4913_v40, %v4691_v41  ;;  %v11679_v26 = vadd.f32 %v4378_v60, %v15148_v11  ;;  %v7032_v18 = vpop.f32.mrf.mxu1  ;;  %v15155_v47 = vld [vmem:[#allocation140_spill] sm:$0xff]  ;;  %v15156_v1 = vld [vmem:[#allocation142_spill] sm:$0xff]  ;;  %v15157_v11 = vld [vmem:[#allocation145_spill] sm:$0xff] }
 0x387   :  { %v4405_v35 = vadd.f32 %v11320_v6, %v15149_v57  ;;  %v4725_v23 = vmul.f32 %v15153_v55, %v15153_v55  ;;  %v11685_v17 = vpop.f32.mrf.mxu0  ;;  %v4949_v7 = vadd.f32 %v11322_v42, %v4718_v32  ;;  %v4719_v4 = vmul.f32 %v15155_v47, %v15155_v47 }
 0x388   :  { %15152 = vst [vmem:[#allocation255_spill] sm:$0xff] %v11674_v13  ;;  %15154 = vst [vmem:[#allocation256_spill] sm:$0xff] %v11685_v17  ;;  %v4732_v41 = vmul.f32 %v15156_v1, %v15156_v1  ;;  %v11692_v40 = vadd.f32 %v4922_v33, %v4698_v16  ;;  %v11695_v60 = vadd.f32 %v4387_v50, %v15150_v43  ;;  %v7033_v42 = vpop.f32.mrf.mxu1  ;;  %v15159_v17 = vld [vmem:[#allocation148_spill] sm:$0xff] }
 0x389   :  { %v11697_v6 = vadd.f32 %v4931_v49, %v4705_v27  ;;  %v4414_v57 = vadd.f32 %v11339_v39, %v15153_v55  ;;  %v4739_v20 = vmul.f32 %v15157_v11, %v15157_v11  ;;  %v11703_v32 = vpop.f32.mrf.mxu0  ;;  %v11706_v13 = vadd.f32 %v4396_v53, %v15151_v62  ;;  %v15161_v27 = vld [vmem:[#allocation141_spill] sm:$0xff] }
 0x38a   :  { %15158 = vst [vmem:[#allocation257_spill] sm:$0xff] %v11703_v32  ;;  %v4746_v16 = vmul.f32 %v15159_v17, %v15159_v17  ;;  %v11710_v33 = vadd.f32 %v7033_v42, %v7032_v18  ;;  %v11712_v50 = vadd.f32 %v4940_v61, %v4712_v63  ;;  %v11715_v49 = vadd.f32 %v4405_v35, %v15155_v47  ;;  %v7035_v53 = vpop.f32.mrf.mxu1  ;;  %v15164_v61 = vld [vmem:[#allocation144_spill] sm:$0xff]  ;;  %v15165_v35 = vld [vmem:[#allocation151_spill] sm:$0xff]  ;;  %v15166_v47 = vld [vmem:[#allocation146_spill] sm:$0xff] }
 0x38b   :  { %v4958_v39 = vadd.f32 %v11341_v56, %v4725_v23  ;;  %v4726_v55 = vmul.f32 %v15161_v27, %v15161_v27  ;;  %v4423_v43 = vadd.f32 %v11351_v30, %v15156_v1  ;;  %v11722_v62 = vpop.f32.mrf.mxu0  ;;  %v11724_v32 = vadd.f32 %v4949_v7, %v4719_v4 }
 0x38c   :  { %15160 = vst [vmem:[#allocation258_spill] sm:$0xff] %v11710_v33  ;;  %15162 = vst [vmem:[#allocation259_spill] sm:$0xff] %v11722_v62  ;;  %v4967_v18 = vadd.f32 %v11353_v21, %v4732_v41  ;;  %v4733_v63 = vmul.f32 %v15164_v61, %v15164_v61  ;;  %v4753_v42 = vmul.f32 %v15165_v35, %v15165_v35  ;;  %v7036_v4 = vpop.f32.mrf.mxu1  ;;  %v15168_v33 = vld [vmem:[#allocation150_spill] sm:$0xff]  ;;  %v15179_v62 = vld [vmem:[#allocation156_spill] sm:$0xff] }
 0x38d   :  { %15163 = vst [vmem:[#allocation260_spill] sm:$0xff] %v11724_v32  ;;  %v11732_v56 = vadd.f32 %v4414_v57, %v15161_v27  ;;  %v4432_v23 = vadd.f32 %v11361_v44, %v15157_v11  ;;  %v4976_v30 = vadd.f32 %v11363_v0, %v4739_v20  ;;  %v4740_v7 = vmul.f32 %v15166_v47, %v15166_v47  ;;  %v11739_v1 = vpop.f32.mrf.mxu0  ;;  %v15170_v20 = vld [vmem:[#allocation154_spill] sm:$0xff] }
 0x38e   :  { %15167 = vst [vmem:[#allocation261_spill] sm:$0xff] %v11739_v1  ;;  %v4441_v21 = vadd.f32 %v11373_v59, %v15159_v17  ;;  %v4985_v41 = vadd.f32 %v11375_v38, %v4746_v16  ;;  %v4747_v57 = vmul.f32 %v15168_v33, %v15168_v33  ;;  %v11746_v27 = vadd.f32 %v7036_v4, %v7035_v53  ;;  %v7038_v32 = vpop.f32.mrf.mxu1  ;;  %v15172_v53 = vld [vmem:[#allocation152_spill] sm:$0xff] }
 0x38f   :  { %v11749_v44 = vadd.f32 %v4423_v43, %v15164_v61  ;;  %v4450_v0 = vadd.f32 %v11383_v15, %v15165_v35  ;;  %v4760_v11 = vmul.f32 %v15170_v20, %v15170_v20  ;;  %v11755_v1 = vpop.f32.mrf.mxu0  ;;  %v11757_v59 = vadd.f32 %v4958_v39, %v4726_v55  ;;  %v15173_v43 = vld [vmem:[#allocation157_spill] sm:$0xff]  ;;  %v15174_v61 = vld [vmem:[#allocation160_spill] sm:$0xff] }
 0x390   :  { %15169 = vst [vmem:[#allocation262_spill] sm:$0xff] %v11746_v27  ;;  %v11759_v38 = vadd.f32 %v4967_v18, %v4733_v63  ;;  %v4994_v16 = vadd.f32 %v11385_v37, %v4753_v42  ;;  %v4754_v4 = vmul.f32 %v15172_v53, %v15172_v53  ;;  %v4767_v17 = vmul.f32 %v15173_v43, %v15173_v43  ;;  %v7039_v39 = vpop.f32.mrf.mxu1  ;;  %v15177_v27 = vld [vmem:[#allocation163_spill] sm:$0xff] }
 0x391   :  { %15171 = vst [vmem:[#allocation263_spill] sm:$0xff] %v11757_v59  ;;  %v11767_v15 = vadd.f32 %v4432_v23, %v15166_v47  ;;  %v4459_v35 = vadd.f32 %v11395_v51, %v15170_v20  ;;  %v4774_v55 = vmul.f32 %v15174_v61, %v15174_v61  ;;  %v11773_v18 = vpop.f32.mrf.mxu0  ;;  %v11775_v63 = vadd.f32 %v4976_v30, %v4740_v7  ;;  %v15180_v30 = vld [vmem:[#allocation166_spill] sm:$0xff] }
 0x392   :  { %v11778_v37 = vadd.f32 %v4441_v21, %v15168_v33  ;;  %v11780_v42 = vadd.f32 %v4985_v41, %v4747_v57  ;;  %v4781_v23 = vmul.f32 %v15177_v27, %v15177_v27  ;;  %v11784_v47 = vadd.f32 %v7039_v39, %v7038_v32  ;;  %v7041_v21 = vpop.f32.mrf.mxu1  ;;  %v15181_v57 = vld [vmem:[#allocation158_spill] sm:$0xff] }
 0x393   :  { %v11787_v51 = vadd.f32 %v4450_v0, %v15172_v53  ;;  %v5003_v20 = vadd.f32 %v11397_v3, %v4760_v11  ;;  %v4761_v59 = vmul.f32 %v15179_v62, %v15179_v62  ;;  %v4788_v7 = vmul.f32 %v15180_v30, %v15180_v30  ;;  %v11794_v33 = vpop.f32.mrf.mxu0 }
 0x394   :  { %15175 = vst [vmem:[#allocation264_spill] sm:$0xff] %v11778_v37  ;;  %15176 = vst [vmem:[#allocation265_spill] sm:$0xff] %v11780_v42  ;;  %v4468_v41 = vadd.f32 %v11405_v5, %v15173_v43  ;;  %v5012_v32 = vadd.f32 %v11407_v48, %v4767_v17  ;;  %v4768_v0 = vmul.f32 %v15181_v57, %v15181_v57  ;;  %v7042_v37 = vpop.f32.mrf.mxu1 }
 0x395   :  { %15178 = vst [vmem:[#allocation266_spill] sm:$0xff] %v11784_v47  ;;  %v11801_v39 = vadd.f32 %v4994_v16, %v4754_v4  ;;  %v11804_v3 = vadd.f32 %v4459_v35, %v15179_v62  ;;  %v4477_v11 = vadd.f32 %v11417_v8, %v15174_v61  ;;  %v5021_v53 = vadd.f32 %v11425_v24, %v4774_v55  ;;  %v15183_v47 = vld [vmem:[#allocation162_spill] sm:$0xff]  ;;  %v11811_v5 = vpop.f32.mrf.mxu0  ;;  %v15184_v16 = vld [vmem:[#allocation164_spill] sm:$0xff] }
 0x396   :  { %v4775_v42 = vmul.f32 %v15183_v47, %v15183_v47  ;;  %v4486_v48 = vadd.f32 %v11429_v10, %v15177_v27  ;;  %v5030_v17 = vadd.f32 %v11437_v36, %v4781_v23  ;;  %v4782_v35 = vmul.f32 %v15184_v16, %v15184_v16  ;;  %v15186_v55 = vld [vmem:[#allocation60_spill] sm:$0xff]  ;;  %v7044_v43 = vpop.f32.mrf.mxu1  ;;  %v15188_v36 = vld [vmem:[#allocation167_spill] sm:$0xff] }
 0x397   :  { %15182 = vst [vmem:[#allocation267_spill] sm:$0xff] %v11801_v39  ;;  %v11818_v4 = vadd.f32 %v7042_v37, %v7041_v21  ;;  %v11820_v62 = vadd.f32 %v5003_v20, %v4761_v59  ;;  %v4495_v8 = vadd.f32 %v11441_v54, %v15180_v30  ;;  %v5039_v24 = vadd.f32 %v11443_v19, %v4788_v7  ;;  %v11827_v39 = vpop.f32.mrf.mxu0  ;;  %v15191_v23 = vld [vmem:[#allocation64_spill] sm:$0xff]  ;;  %v15192_v21 = vld [vmem:[#allocation117_spill] sm:$0xff] }
 0x398   :  { %v4789_v61 = vmul.f32 %v15186_v55, %v15186_v55  ;;  %15187 = vst [vmem:[#allocation269_spill] sm:$0xff] %v11827_v39  ;;  %v11830_v10 = vadd.f32 %v4468_v41, %v15181_v57  ;;  %v4504_v37 = vadd.f32 %v11449_v25, %v15188_v36  ;;  %v4795_v20 = vmul.f32 %v15188_v36, %v15188_v36  ;;  %v7045_v30 = vpop.f32.mrf.mxu1  ;;  %v15195_v36 = vld [vmem:[#allocation94_spill] sm:$0xff] }
 0x399   :  { %15185 = vst [vmem:[#allocation268_spill] sm:$0xff] %v11818_v4  ;;  %v11836_v59 = vadd.f32 %v5012_v32, %v4768_v0  ;;  %v11839_v54 = vadd.f32 %v4477_v11, %v15183_v47  ;;  %v11841_v19 = vadd.f32 %v5021_v53, %v4775_v42  ;;  %v4802_v7 = vmul.f32 %v15191_v23, %v15191_v23  ;;  %v11847_v27 = vpop.f32.mrf.mxu0  ;;  %v15200_v47 = vld [vmem:[#allocation88_spill] sm:$0xff]  ;;  %v15201_v4 = vld [vmem:[#allocation70_spill] sm:$0xff] }
 0x39a   :  { %v4809_v41 = vmul.f32 %v15192_v21, %v15192_v21  ;;  %15193 = vst [vmem:[#allocation272_spill] sm:$0xff] %v11847_v27  ;;  %v11850_v25 = vadd.f32 %v4486_v48, %v15184_v16  ;;  %v4816_v32 = vmul.f32 %v15195_v36, %v15195_v36  ;;  %v11854_v0 = vadd.f32 %v7045_v30, %v7044_v43  ;;  %v7047_v48 = vpop.f32.mrf.mxu1 }
 0x39b   :  { %15189 = vst [vmem:[#allocation270_spill] sm:$0xff] %v11839_v54  ;;  %15190 = vst [vmem:[#allocation271_spill] sm:$0xff] %v11841_v19  ;;  %v11856_v11 = vadd.f32 %v5030_v17, %v4782_v35  ;;  %v11859_v53 = vadd.f32 %v4495_v8, %v15186_v55  ;;  %v11861_v42 = vadd.f32 %v5039_v24, %v4789_v61  ;;  %v11867_v16 = vpop.f32.mrf.mxu0  ;;  %v15204_v17 = vld [vmem:[#allocation99_spill] sm:$0xff] }
 0x39c   :  { %15194 = vst [vmem:[#allocation273_spill] sm:$0xff] %v11850_v25  ;;  %15196 = vst [vmem:[#allocation274_spill] sm:$0xff] %v11854_v0  ;;  %v4796_v57 = vmul.f32 %v15200_v47, %v15200_v47  ;;  %v4823_v19 = vmul.f32 %v15201_v4, %v15201_v4  ;;  %v5048_v54 = vadd.f32 %v11451_v45, %v4795_v20  ;;  %v15205_v8 = vld [vmem:[#allocation91_spill] sm:$0xff]  ;;  %v7048_v45 = vpop.f32.mrf.mxu1 }
 0x39d   :  { %15197 = vst [vmem:[#allocation275_spill] sm:$0xff] %v11856_v11  ;;  %15198 = vst [vmem:[#allocation276_spill] sm:$0xff] %v11859_v53  ;;  %v11871_v43 = vadd.f32 %v4504_v37, %v15200_v47  ;;  %v4513_v30 = vadd.f32 %v11461_v46, %v15191_v23  ;;  %v4830_v61 = vmul.f32 %v15204_v17, %v15204_v17  ;;  %v11883_v20 = vpop.f32.mrf.mxu0  ;;  %v15207_v37 = vld [vmem:[#allocation66_spill] sm:$0xff] }
 0x39e   :  { %15199 = vst [vmem:[#allocation277_spill] sm:$0xff] %v11861_v42  ;;  %15202 = vst [vmem:[#allocation278_spill] sm:$0xff] %v11867_v16  ;;  %v5057_v35 = vadd.f32 %v11469_v9, %v4802_v7  ;;  %v4803_v24 = vmul.f32 %v15205_v8, %v15205_v8  ;;  %v4522_v55 = vadd.f32 %v11473_v2, %v15192_v21  ;;  %v15209_v7 = vld [vmem:[#allocation95_spill] sm:$0xff]  ;;  %v15210_v2 = vld [vmem:[#allocation220_spill] sm:$0xff]  ;;  %v7050_v53 = vpop.f32.mrf.mxu1 }
 0x39f   :  { %15203 = vst [vmem:[#allocation279_spill] sm:$0xff] %v11871_v43  ;;  %v5066_v0 = vadd.f32 %v11481_v22, %v4809_v41  ;;  %15206 = vst [vmem:[#allocation280_spill] sm:$0xff] %v11883_v20  ;;  %v4810_v47 = vmul.f32 %v15207_v37, %v15207_v37  ;;  %v4531_v46 = vadd.f32 %v11485_v58, %v15195_v36  ;;  %v15211_v22 = vld [vmem:[#allocation222_spill] sm:$0xff]  ;;  %v15212_v42 = vld [vmem:[#allocation97_spill] sm:$0xff]  ;;  %v11899_v43 = vpop.f32.mrf.mxu0 }
 0x3a0   :  { %v5075_v23 = vadd.f32 %v11491_v31, %v4816_v32  ;;  %v11890_v9 = vadd.f32 %v7048_v45, %v7047_v48  ;;  %v4817_v11 = vmul.f32 %v15209_v7, %v15209_v7  ;;  %v4540_v21 = vadd.f32 %v15210_v2, %v15201_v4  ;;  %15213 = vst [vmem:[#allocation220_spill] sm:$0xff] %v11899_v43  ;;  %v15214_v58 = vld [vmem:[#allocation223_spill] sm:$0xff]  ;;  %v15215_v31 = vld [vmem:[#allocation225_spill] sm:$0xff]  ;;  %v7051_v39 = vpop.f32.mrf.mxu1 }
 0x3a1   :  { %v5084_v41 = vadd.f32 %v15211_v22, %v4823_v19  ;;  %v4824_v25 = vmul.f32 %v15212_v42, %v15212_v42  ;;  %v4549_v36 = vadd.f32 %v15214_v58, %v15204_v17  ;;  %v5093_v32 = vadd.f32 %v15215_v31, %v4830_v61  ;;  %v15216_v48 = vld [vmem:[#allocation101_spill] sm:$0xff]  ;;  %v15220_v22 = vld [vmem:[#allocation226_spill] sm:$0xff]  ;;  %v11915_v20 = vpop.f32.mrf.mxu0  ;;  %v15222_v31 = vld [vmem:[#allocation216_spill] sm:$0xff] }
 0x3a2   :  { %15208 = vst [vmem:[#allocation281_spill] sm:$0xff] %v11890_v9  ;;  %v4831_v45 = vmul.f32 %v15216_v48, %v15216_v48  ;;  %v15217_v9 = vld [vmem:[#allocation103_spill] sm:$0xff]  ;;  %v11909_v2 = vadd.f32 %v4513_v30, %v15205_v8  ;;  %v11911_v19 = vadd.f32 %v5057_v35, %v4803_v24  ;;  %v11917_v58 = vadd.f32 %v5048_v54, %v4796_v57  ;;  %v15223_v17 = vld [vmem:[#allocation217_spill] sm:$0xff]  ;;  %v7053_v57 = vpop.f32.mrf.mxu1 }
 0x3a3   :  { %v4837_v27 = vmul.f32 %v15217_v9, %v15217_v9  ;;  %v4558_v4 = vadd.f32 %v15220_v22, %v15217_v9  ;;  %v11920_v61 = vadd.f32 %v4522_v55, %v15207_v37  ;;  %v7080_v16 = vadd.f32 %v15223_v17, %v15222_v31  ;;  %v11936_v54 = vpop.f32.mrf.mxu0  ;;  %v15232_v17 = vld [vmem:[#allocation211_spill] sm:$0xff] }
 0x3a4   :  { %15218 = vst [vmem:[#allocation222_spill] sm:$0xff] %v11909_v2  ;;  %15219 = vst [vmem:[#allocation223_spill] sm:$0xff] %v11911_v19  ;;  %v11924_v43 = vadd.f32 %v7051_v39, %v7050_v53  ;;  %v11926_v30 = vadd.f32 %v5066_v0, %v4810_v47  ;;  %v11929_v35 = vadd.f32 %v4531_v46, %v15209_v7  ;;  %v15230_v47 = vld [vmem:[#allocation228_spill] sm:$0xff]  ;;  %v15231_v53 = vld [vmem:[#allocation210_spill] sm:$0xff]  ;;  %v7054_v31 = vpop.f32.mrf.mxu1 }
 0x3a5   :  { %15221 = vst [vmem:[#allocation225_spill] sm:$0xff] %v11920_v61  ;;  %v11931_v24 = vadd.f32 %v5075_v23, %v4817_v11  ;;  %v11934_v22 = vadd.f32 %v4540_v21, %v15212_v42  ;;  %v11938_v55 = vadd.f32 %v5084_v41, %v4824_v25  ;;  %v11941_v9 = vadd.f32 %v4549_v36, %v15216_v48  ;;  %v15233_v11 = vld [vmem:[#allocation76_spill] sm:$0xff]  ;;  %v11955_v25 = vpop.f32.mrf.mxu0  ;;  %v15235_v41 = vld [vmem:[#allocation127_spill] sm:$0xff]  ;;  %v15242_v7 = vld [vmem:[#allocation165_spill] sm:$0xff] }
 0x3a6   :  { %15224 = vst [vmem:[#allocation226_spill] sm:$0xff] %v11924_v43  ;;  %15225 = vst [vmem:[#allocation216_spill] sm:$0xff] %v11926_v30  ;;  %v11943_v39 = vadd.f32 %v5093_v32, %v4831_v45  ;;  %v11946_v0 = vadd.f32 %v15230_v47, %v4837_v27  ;;  %v7074_v23 = vadd.f32 %v15232_v17, %v15231_v53  ;;  %v15236_v32 = vld [vmem:[#allocation120_spill] sm:$0xff]  ;;  %v15237_v27 = vld [vmem:[#allocation78_spill] sm:$0xff] }
 0x3a7   :  { %15226 = vst [vmem:[#allocation217_spill] sm:$0xff] %v11931_v24  ;;  %15227 = vst [vmem:[#allocation282_spill] sm:$0xff] %v11938_v55  ;;  %v11951_v46 = vadd.f32 %v4558_v4, %v15233_v11  ;;  %v4838_v21 = vmul.f32 %v15233_v11, %v15233_v11  ;;  %v4389_v36 = vadd.f32 %v11695_v60, %v15235_v41  ;;  %v15238_v47 = vld [vmem:[#allocation229_spill] sm:$0xff]  ;;  %v15239_v53 = vld [vmem:[#allocation219_spill] sm:$0xff]  ;;  %v11976_v43 = vpop.f32.mrf.mxu0 }
 0x3a8   :  { %15228 = vst [vmem:[#allocation283_spill] sm:$0xff] %v11941_v9  ;;  %15229 = vst [vmem:[#allocation284_spill] sm:$0xff] %v11943_v39  ;;  %v4370_v45 = vadd.f32 %v11660_v12, %v15236_v32  ;;  %v11963_v48 = vadd.f32 %v15238_v47, %v15237_v27  ;;  %v15240_v17 = vld [vmem:[#allocation221_spill] sm:$0xff]  ;;  %v11967_v8 = vadd.f32 %v7054_v31, %v7053_v57  ;;  %v15243_v42 = vld [vmem:[#allocation131_spill] sm:$0xff]  ;;  %v7198_v47 = vpop.f32.mrf.mxu1 }
 0x3a9   :  { %15234 = vst [vmem:[#allocation228_spill] sm:$0xff] %v11951_v46  ;;  %v7083_v4 = vadd.f32 %v15240_v17, %v15239_v53  ;;  %v4088_v11 = vadd.f32 %v7080_v16, %v15242_v7  ;;  %v4844_v37 = vmul.f32 %v15237_v27, %v15237_v27  ;;  %v4706_v60 = vmul.f32 %v15235_v41, %v15235_v41  ;;  %v15244_v57 = vld [vmem:[#allocation213_spill] sm:$0xff]  ;;  %v15245_v31 = vld [vmem:[#allocation214_spill] sm:$0xff]  ;;  %v11989_v39 = vpop.f32.mrf.mxu0  ;;  %v15249_v46 = vld [vmem:[#allocation128_spill] sm:$0xff] }
 0x3aa   :  { %15241 = vst [vmem:[#allocation210_spill] sm:$0xff] %v11967_v8  ;;  %v4398_v12 = vadd.f32 %v11706_v13, %v15243_v42  ;;  %v4692_v53 = vmul.f32 %v15236_v32, %v15236_v32  ;;  %v7077_v17 = vadd.f32 %v15245_v31, %v15244_v57  ;;  %v15247_v7 = vld [vmem:[#allocation89_spill] sm:$0xff]  ;;  %v15248_v8 = vld [vmem:[#allocation123_spill] sm:$0xff]  ;;  %v4713_v13 = vmul.f32 %v15243_v42, %v15243_v42  ;;  %v4240_v9 = vpop.f32.mrf.mxu1  ;;  %v15252_v57 = vld [vmem:[#allocation116_spill] sm:$0xff] }
 0x3ab   :  { %v11982_v16 = vadd.f32 %v7198_v47, %v4088_v11  ;;  %v4080_v27 = vadd.f32 %v7074_v23, %v15247_v7  ;;  %v4699_v41 = vmul.f32 %v15248_v8, %v15248_v8  ;;  %v4390_v19 = vadd.f32 %v4389_v36, %v15249_v46  ;;  %v15250_v30 = vld [vmem:[#allocation121_spill] sm:$0xff]  ;;  %v12002_v7 = vpop.f32.mrf.mxu0 }
 0x3ac   :  { %v4371_v32 = vadd.f32 %v4370_v45, %v15250_v30  ;;  %v4091_v11 = vadd.f32 %v7083_v4, %v15252_v57  ;;  %v4707_v31 = vmul.f32 %v15249_v46, %v15249_v46  ;;  %v7199_v42 = vpop.f32.mrf.mxu1  ;;  %v15253_v36 = vld [vmem:[#allocation169_spill] sm:$0xff]  ;;  %v7095_v46 = vadd.f32 %v11667_v14, %v11650_v28 }
 0x3ad   :  { %15246 = vst [vmem:[#allocation211_spill] sm:$0xff] %v11982_v16  ;;  %v11993_v24 = vadd.f32 %v4240_v9, %v4080_v27  ;;  %v4391_v23 = vsel %vm4372_vm1, %v11982_v16, 0.0  ;;  %v4708_v47 = vmul.f32 %v11982_v16, %v11982_v16  ;;  %v4399_v2 = vadd.f32 %v4398_v12, %v15253_v36  ;;  %v15255_v27 = vld [vmem:[#allocation161_spill] sm:$0xff]  ;;  %v12015_v61 = vpop.f32.mrf.mxu0 }
 0x3ae   :  { %v4392_v55 = vadd.f32 %v4391_v23, %v4390_v19  ;;  %v4933_v9 = vadd.f32 %v11697_v6, %v4706_v60  ;;  %v12006_v45 = vadd.f32 %v7199_v42, %v4091_v11  ;;  %v4083_v4 = vadd.f32 %v7077_v17, %v15255_v27  ;;  %v4243_v19 = vpop.f32.mrf.mxu1 }
 0x3af   :  { %15251 = vst [vmem:[#allocation229_spill] sm:$0xff] %v11993_v24  ;;  %v4373_v57 = vsel %vm4372_vm1, %v11993_v24, 0.0  ;;  %v4714_v16 = vmul.f32 %v15253_v36, %v15253_v36  ;;  %v4935_v6 = vsel %vm4372_vm1, %v4708_v47, 0.0  ;;  %v4942_v42 = vadd.f32 %v11712_v50, %v4713_v13 }
 0x3b0   :  { %15254 = vst [vmem:[#allocation219_spill] sm:$0xff] %v12006_v45  ;;  %4393 = vadd.xlane.f32.xlu1 %v4392_v55  ;;  %v4374_v12 = vadd.f32 %v4373_v57, %v4371_v32  ;;  %v12019_v60 = vadd.f32 %v4243_v19, %v4083_v4  ;;  %v4400_v17 = vsel %vm4372_vm1, %v12006_v45, 0.0  ;;  %v4715_v11 = vmul.f32 %v12006_v45, %v12006_v45  ;;  %v12029_v55 = vpop.f32.mrf.mxu0  ;;  %v7202_v32 = vpop.f32.mrf.mxu1 }
 0x3b1   :  { %v4694_v14 = vmul.f32 %v11993_v24, %v11993_v24  ;;  %v4693_v28 = vmul.f32 %v15250_v30, %v15250_v30  ;;  %v4401_v23 = vadd.f32 %v4400_v17, %v4399_v2  ;;  %v4934_v50 = vadd.f32 %v4933_v9, %v4707_v31  ;;  %v15258_v31 = vld [vmem:[#allocation124_spill] sm:$0xff]  ;;  %v15261_v17 = vld [vmem:[#allocation242_spill] sm:$0xff]  ;;  %v15262_v30 = vld [vmem:[#allocation185_spill] sm:$0xff] }
 0x3b2   :  { %15256 = vst [vmem:[#allocation221_spill] sm:$0xff] %v12019_v60  ;;  %4375 = vadd.xlane.f32.xlu0 %v4374_v12  ;;  %v4915_v13 = vadd.f32 %v11676_v34, %v4692_v53  ;;  %v7092_v47 = vadd.f32 %v11631_v52, %v11609_v29  ;;  %v4944_v27 = vsel %vm4372_vm1, %v4715_v11, 0.0  ;;  %v4701_v4 = vmul.f32 %v12019_v60, %v12019_v60  ;;  %v12040_v19 = vpop.f32.mrf.mxu0  ;;  %v4256_v24 = vpop.f32.mrf.mxu1  ;;  %v15259_v52 = vld [vmem:[#allocation230_spill] sm:$0xff]  ;;  %v15260_v9 = vld [vmem:[#allocation236_spill] sm:$0xff] }
 0x3b3   :  { %v12038_v57 = vadd.f32 %v11946_v0, %v4838_v21  ;;  %v4936_v12 = vadd.f32 %v4935_v6, %v4934_v50  ;;  %v4943_v2 = vadd.f32 %v4942_v42, %v4714_v16  ;;  %v4700_v34 = vmul.f32 %v15258_v31, %v15258_v31  ;;  %v15263_v21 = vld [vmem:[#allocation107_spill] sm:$0xff] }
 0x3b4   :  { %4402 = vadd.xlane.f32.xlu1 %v4401_v23  ;;  %v4924_v53 = vadd.f32 %v11692_v40, %v4699_v41  ;;  %v5111_v29 = vadd.f32 %v15259_v52, %v4844_v37  ;;  %v7089_v11 = vadd.f32 %v15261_v17, %v15260_v9  ;;  %v4107_v45 = vadd.f32 %v7095_v46, %v15262_v30  ;;  %v12054_v6 = vpop.f32.mrf.mxu0  ;;  %v7203_v42 = vpop.f32.mrf.mxu1  ;;  %v15264_v37 = vld [vmem:[#allocation227_spill] sm:$0xff]  ;;  %v15265_v23 = vld [vmem:[#allocation232_spill] sm:$0xff]  ;;  %v15266_v52 = vld [vmem:[#allocation182_spill] sm:$0xff] }
 0x3b5   :  { %15257 = vst [vmem:[#allocation165_spill] sm:$0xff] %v12038_v57  ;;  %v4917_v0 = vsel %vm4372_vm1, %v4694_v14, 0.0  ;;  %v4845_v36 = vmul.f32 %v15263_v21, %v15263_v21  ;;  %v4380_v16 = vadd.f32 %v11679_v26, %v15248_v8  ;;  %v4945_v40 = vadd.f32 %v4944_v27, %v4943_v2  ;;  %v15269_v26 = vld [vmem:[#allocation168_spill] sm:$0xff]  ;;  %v15272_v2 = vld [vmem:[#allocation179_spill] sm:$0xff] }
 0x3b6   :  { %4937 = vadd.xlane.f32.xlu0 %v4936_v12  ;;  %v4916_v41 = vadd.f32 %v4915_v13, %v4693_v28  ;;  %v7086_v50 = vadd.f32 %v15265_v23, %v15264_v37  ;;  %v4104_v9 = vadd.f32 %v7092_v47, %v15266_v52  ;;  %v12059_v30 = vadd.f32 %v7203_v42, %v4107_v45  ;;  %v12068_v8 = vpop.f32.mrf.mxu0  ;;  %v4259_v27 = vpop.f32.mrf.mxu1  ;;  %v15270_v12 = vld [vmem:[#allocation108_spill] sm:$0xff]  ;;  %v15274_v37 = vld [vmem:[#allocation174_spill] sm:$0xff] }
 0x3b7   :  { %v4926_v46 = vsel %vm4372_vm1, %v4701_v4, 0.0  ;;  %v12064_v14 = vadd.f32 %v11963_v48, %v15263_v21  ;;  %v4434_v17 = vadd.f32 %v11767_v15, %v15269_v26  ;;  %v4925_v13 = vadd.f32 %v4924_v53, %v4700_v34  ;;  %v15283_v21 = vld [vmem:[#allocation170_spill] sm:$0xff] }
 0x3b8   :  { %15267 = vst [vmem:[#allocation213_spill] sm:$0xff] %v12059_v30  ;;  %4946 = vadd.xlane.f32.xlu1 %v4945_v40  ;;  %v4918_v28 = vadd.f32 %v4917_v0, %v4916_v41  ;;  %v4851_v47 = vmul.f32 %v15270_v12, %v15270_v12  ;;  %v12072_v45 = vadd.f32 %v7202_v32, %v4104_v9  ;;  %v4382_v48 = vsel %vm4372_vm1, %v12019_v60, 0.0  ;;  %v12081_v23 = vpop.f32.mrf.mxu0  ;;  %v12083_v40 = vpop.f32.mrf.mxu1  ;;  %v15275_v32 = vld [vmem:[#allocation231_spill] sm:$0xff] }
 0x3b9   :  { %15268 = vst [vmem:[#allocation214_spill] sm:$0xff] %v12064_v14  ;;  %v4099_v4 = vadd.f32 %v7089_v11, %v15272_v2  ;;  %v12077_v42 = vadd.f32 %v5111_v29, %v4845_v36  ;;  %v4425_v15 = vadd.f32 %v11749_v44, %v15274_v37  ;;  %v4927_v34 = vadd.f32 %v4926_v46, %v4925_v13  ;;  %v15276_v11 = vld [vmem:[#allocation176_spill] sm:$0xff]  ;;  %v15279_v13 = vld [vmem:[#allocation129_spill] sm:$0xff] }
 0x3ba   :  { %15271 = vst [vmem:[#allocation89_spill] sm:$0xff] %v12072_v45  ;;  %4919 = vadd.xlane.f32.xlu0 %v4918_v28  ;;  %v4381_v53 = vadd.f32 %v4380_v16, %v15258_v31  ;;  %v12088_v0 = vadd.f32 %v15275_v32, %v15270_v12  ;;  %v4096_v41 = vadd.f32 %v7086_v50, %v15276_v11  ;;  %v4436_v36 = vsel %vm4372_vm1, %v12059_v30, 0.0  ;;  %v15278_v44 = vld [vmem:[#allocation172_spill] sm:$0xff]  ;;  %v12099_v46 = vpop.f32.mrf.mxu0  ;;  %v12101_v16 = vpop.f32.mrf.mxu1  ;;  %v15280_v50 = vld [vmem:[#allocation234_spill] sm:$0xff] }
 0x3bb   :  { %15273 = vst [vmem:[#allocation116_spill] sm:$0xff] %v12077_v42  ;;  %v12091_v52 = vadd.f32 %v4259_v27, %v4099_v4  ;;  %v4416_v29 = vadd.f32 %v11732_v56, %v15278_v44  ;;  %v4741_v9 = vmul.f32 %v15269_v26, %v15269_v26  ;;  %v4435_v2 = vadd.f32 %v4434_v17, %v15279_v13  ;;  %v15281_v4 = vld [vmem:[#allocation109_spill] sm:$0xff]  ;;  %v15296_v42 = vld [vmem:[#allocation194_spill] sm:$0xff] }
 0x3bc   :  { %4928 = vadd.xlane.f32.xlu1 %v4927_v34  ;;  %v4383_v28 = vadd.f32 %v4382_v48, %v4381_v53  ;;  %v12105_v27 = vadd.f32 %v15280_v50, %v4851_v47  ;;  %v12109_v32 = vmul.f32 %v15281_v4, %v15281_v4  ;;  %v12111_v11 = vadd.f32 %v4256_v24, %v4096_v41  ;;  %v15284_v34 = vld [vmem:[#allocation143_spill] sm:$0xff]  ;;  %v15285_v53 = vld [vmem:[#allocation5_spill] sm:$0xff]  ;;  %v12130_v60 = vpop.f32.mrf.mxu0 }
 0x3bd   :  { %15277 = vst [vmem:[#allocation161_spill] sm:$0xff] %v12091_v52  ;;  %v4427_v56 = vsel %vm4372_vm1, %v12072_v45, 0.0  ;;  %v4407_v12 = vadd.f32 %v11715_v49, %v15283_v21  ;;  %v4734_v48 = vmul.f32 %v15274_v37, %v15274_v37  ;;  %v4437_v17 = vadd.f32 %v4436_v36, %v4435_v2  ;;  %v15286_v50 = vld [vmem:[#allocation235_spill] sm:$0xff]  ;;  %v7207_v37 = vpop.f32.mrf.mxu1 }
 0x3be   :  { %15282 = vst [vmem:[#allocation230_spill] sm:$0xff] %v12111_v11  ;;  %4384 = vadd.xlane.f32.xlu0 %v4383_v28  ;;  %v4426_v47 = vadd.f32 %v4425_v15, %v15284_v34  ;;  %v12122_v26 = vadd.f32 %v15286_v50, %v15285_v53  ;;  %v4727_v24 = vmul.f32 %v15278_v44, %v15278_v44  ;;  %v4418_v41 = vsel %vm4372_vm1, %v12091_v52, 0.0  ;;  %v15287_v28 = vld [vmem:[#allocation173_spill] sm:$0xff] }
 0x3bf   :  { %v4743_v49 = vmul.f32 %v12059_v30, %v12059_v30  ;;  %v4417_v15 = vadd.f32 %v4416_v29, %v15287_v28  ;;  %v4742_v2 = vmul.f32 %v15279_v13, %v15279_v13  ;;  %v4978_v50 = vadd.f32 %v11775_v63, %v4741_v9 }
 0x3c0   :  { %4438 = vadd.xlane.f32.xlu1 %v4437_v17  ;;  %v4428_v36 = vadd.f32 %v4427_v56, %v4426_v47  ;;  %v4720_v44 = vmul.f32 %v15283_v21, %v15283_v21  ;;  %v7107_v31 = vadd.f32 %v11811_v5, %v11794_v33  ;;  %v4409_v30 = vsel %vm4372_vm1, %v12111_v11, 0.0  ;;  %v15288_v47 = vld [vmem:[#allocation171_spill] sm:$0xff] }
 0x3c1   :  { %v4736_v17 = vmul.f32 %v12072_v45, %v12072_v45  ;;  %v4735_v29 = vmul.f32 %v15284_v34, %v15284_v34  ;;  %v4419_v56 = vadd.f32 %v4418_v41, %v4417_v15  ;;  %v4408_v13 = vadd.f32 %v4407_v12, %v15288_v47  ;;  %v12155_v45 = vpop.f32.mrf.mxu0  ;;  %v4275_v34 = vpop.f32.mrf.mxu1  ;;  %v15289_v12 = vld [vmem:[#allocation263_spill] sm:$0xff] }
 0x3c2   :  { %4429 = vadd.xlane.f32.xlu0 %v4428_v36  ;;  %v4969_v63 = vadd.f32 %v11759_v38, %v4734_v48  ;;  %v4858_v9 = vmul.f32 %v15285_v53, %v15285_v53  ;;  %v7104_v33 = vadd.f32 %v11773_v18, %v11755_v1  ;;  %v4980_v5 = vsel %vm4372_vm1, %v4743_v49, 0.0  ;;  %v15290_v15 = vld [vmem:[#allocation259_spill] sm:$0xff]  ;;  %v15291_v53 = vld [vmem:[#allocation261_spill] sm:$0xff] }
 0x3c3   :  { %v4729_v21 = vmul.f32 %v12091_v52, %v12091_v52  ;;  %v4410_v41 = vadd.f32 %v4409_v30, %v4408_v13  ;;  %v4979_v36 = vadd.f32 %v4978_v50, %v4742_v2  ;;  %v4728_v38 = vmul.f32 %v15287_v28, %v15287_v28  ;;  %v15292_v1 = vld [vmem:[#allocation197_spill] sm:$0xff]  ;;  %v15293_v2 = vld [vmem:[#allocation260_spill] sm:$0xff] }
 0x3c4   :  { %4420 = vadd.xlane.f32.xlu1 %v4419_v56  ;;  %v4960_v48 = vadd.f32 %v15289_v12, %v4727_v24  ;;  %v7101_v57 = vadd.f32 %v15291_v53, %v15290_v15  ;;  %v4123_v18 = vadd.f32 %v7107_v31, %v15292_v1  ;;  %v4971_v49 = vsel %vm4372_vm1, %v4736_v17, 0.0  ;;  %v15294_v28 = vld [vmem:[#allocation256_spill] sm:$0xff]  ;;  %v15295_v24 = vld [vmem:[#allocation257_spill] sm:$0xff] }
 0x3c5   :  { %v4722_v52 = vmul.f32 %v12111_v11, %v12111_v11  ;;  %v4721_v56 = vmul.f32 %v15288_v47, %v15288_v47  ;;  %v4981_v30 = vadd.f32 %v4980_v5, %v4979_v36  ;;  %v4970_v13 = vadd.f32 %v4969_v63, %v4735_v29  ;;  %v15297_v17 = vld [vmem:[#allocation237_spill] sm:$0xff]  ;;  %v15298_v11 = vld [vmem:[#allocation72_spill] sm:$0xff]  ;;  %v12178_v47 = vpop.f32.mrf.mxu0  ;;  %v12180_v5 = vpop.f32.mrf.mxu1 }
 0x3c6   :  { %4411 = vadd.xlane.f32.xlu0 %v4410_v41  ;;  %v4951_v50 = vadd.f32 %v15293_v2, %v4720_v44  ;;  %v7098_v12 = vadd.f32 %v15295_v24, %v15294_v28  ;;  %v4120_v53 = vadd.f32 %v7104_v33, %v15296_v42  ;;  %v12172_v15 = vadd.f32 %v7207_v37, %v4123_v18  ;;  %v15299_v63 = vld [vmem:[#allocation84_spill] sm:$0xff]  ;;  %v15301_v37 = vld [vmem:[#allocation191_spill] sm:$0xff]  ;;  %v15308_v24 = vld [vmem:[#allocation130_spill] sm:$0xff] }
 0x3c7   :  { %v4962_v31 = vsel %vm4372_vm1, %v4729_v21, 0.0  ;;  %v5129_v1 = vadd.f32 %v15297_v17, %v4858_v9  ;;  %v4470_v14 = vadd.f32 %v11830_v10, %v15298_v11  ;;  %v4972_v44 = vadd.f32 %v4971_v49, %v4970_v13  ;;  %v15302_v33 = vld [vmem:[#allocation40_spill] sm:$0xff]  ;;  %v15306_v13 = vld [vmem:[#allocation110_spill] sm:$0xff]  ;;  %v15310_v17 = vld [vmem:[#allocation149_spill] sm:$0xff] }
 0x3c8   :  { %4982 = vadd.xlane.f32.xlu1 %v4981_v30  ;;  %v4961_v29 = vadd.f32 %v4960_v48, %v4728_v38  ;;  %v4859_v28 = vmul.f32 %v15299_v63, %v15299_v63  ;;  %v12185_v42 = vadd.f32 %v12083_v40, %v4120_v53  ;;  %v4115_v21 = vadd.f32 %v7101_v57, %v15301_v37  ;;  %v15303_v48 = vld [vmem:[#allocation188_spill] sm:$0xff]  ;;  %v12208_v30 = vpop.f32.mrf.mxu0 }
 0x3c9   :  { %v4953_v9 = vsel %vm4372_vm1, %v4722_v52, 0.0  ;;  %v12191_v10 = vadd.f32 %v12088_v0, %v15281_v4  ;;  %v4461_v41 = vadd.f32 %v11804_v3, %v15302_v33  ;;  %v4952_v38 = vadd.f32 %v4951_v50, %v4721_v56  ;;  %v15305_v52 = vld [vmem:[#allocation93_spill] sm:$0xff]  ;;  %v12210_v56 = vpop.f32.mrf.mxu1 }
 0x3ca   :  { %15300 = vst [vmem:[#allocation236_spill] sm:$0xff] %v12185_v42  ;;  %4973 = vadd.xlane.f32.xlu0 %v4972_v44  ;;  %v4963_v36 = vadd.f32 %v4962_v31, %v4961_v29  ;;  %v4112_v18 = vadd.f32 %v7098_v12, %v15303_v48  ;;  %v12196_v49 = vadd.f32 %v4275_v34, %v4115_v21  ;;  %v4472_v40 = vsel %vm4372_vm1, %v12172_v15, 0.0  ;;  %v15309_v12 = vld [vmem:[#allocation264_spill] sm:$0xff]  ;;  %v15312_v29 = vld [vmem:[#allocation238_spill] sm:$0xff] }
 0x3cb   :  { %v12202_v57 = vadd.f32 %v12105_v27, %v12109_v32  ;;  %v4452_v0 = vadd.f32 %v11787_v51, %v15305_v52  ;;  %v4769_v3 = vmul.f32 %v15298_v11, %v15298_v11  ;;  %v4954_v34 = vadd.f32 %v4953_v9, %v4952_v38  ;;  %v12239_v9 = vpop.f32.mrf.mxu0  ;;  %v15313_v38 = vld [vmem:[#allocation4_spill] sm:$0xff] }
 0x3cc   :  { %15304 = vst [vmem:[#allocation242_spill] sm:$0xff] %v12196_v49  ;;  %4964 = vadd.xlane.f32.xlu1 %v4963_v36  ;;  %v4471_v2 = vadd.f32 %v4470_v14, %v15306_v13  ;;  %v12215_v50 = vadd.f32 %v12122_v26, %v15299_v63  ;;  %v12217_v27 = vadd.f32 %v5129_v1, %v4859_v28  ;;  %v4463_v51 = vsel %vm4372_vm1, %v12185_v42, 0.0  ;;  %v15311_v26 = vld [vmem:[#allocation111_spill] sm:$0xff]  ;;  %v7211_v36 = vpop.f32.mrf.mxu1 }
 0x3cd   :  { %v12220_v32 = vadd.f32 %v12101_v16, %v4112_v18  ;;  %v4443_v53 = vadd.f32 %v15309_v12, %v15308_v24  ;;  %v4762_v31 = vmul.f32 %v15302_v33, %v15302_v33  ;;  %v4462_v44 = vadd.f32 %v4461_v41, %v15310_v17 }
 0x3ce   :  { %4955 = vadd.xlane.f32.xlu0 %v4954_v34  ;;  %v4473_v14 = vadd.f32 %v4472_v40, %v4471_v2  ;;  %v4594_v1 = vadd.f32 %v15312_v29, %v15311_v26  ;;  %v4755_v16 = vmul.f32 %v15305_v52, %v15305_v52  ;;  %v4454_v28 = vsel %vm4372_vm1, %v12196_v49, 0.0  ;;  %v15315_v29 = vld [vmem:[#allocation220_spill] sm:$0xff] }
 0x3cf   :  { %15307 = vst [vmem:[#allocation185_spill] sm:$0xff] %v12220_v32  ;;  %v4771_v37 = vmul.f32 %v12172_v15, %v12172_v15  ;;  %v4770_v21 = vmul.f32 %v15306_v13, %v15306_v13  ;;  %v4464_v41 = vadd.f32 %v4463_v51, %v4462_v44  ;;  %v4453_v48 = vadd.f32 %v4452_v0, %v15313_v38  ;;  %v15314_v0 = vld [vmem:[#allocation147_spill] sm:$0xff] }
 0x3d0   :  { %4474 = vadd.xlane.f32.xlu1 %v4473_v14  ;;  %v5014_v18 = vadd.f32 %v11836_v59, %v4769_v3  ;;  %v4748_v40 = vmul.f32 %v15308_v24, %v15308_v24  ;;  %v7119_v34 = vadd.f32 %v11955_v25, %v11936_v54  ;;  %v4445_v2 = vsel %vm4372_vm1, %v12220_v32, 0.0  ;;  %v15318_v24 = vld [vmem:[#allocation280_spill] sm:$0xff] }
 0x3d1   :  { %v4764_v12 = vmul.f32 %v12185_v42, %v12185_v42  ;;  %v4763_v14 = vmul.f32 %v15310_v17, %v15310_v17  ;;  %v4455_v51 = vadd.f32 %v4454_v28, %v4453_v48  ;;  %v4444_v44 = vadd.f32 %v4443_v53, %v15314_v0  ;;  %v4291_v28 = vpop.f32.mrf.mxu1 }
 0x3d2   :  { %4465 = vadd.xlane.f32.xlu0 %v4464_v41  ;;  %v5005_v59 = vadd.f32 %v11820_v62, %v4762_v31  ;;  %v4865_v3 = vmul.f32 %v15311_v26, %v15311_v26  ;;  %v7116_v54 = vadd.f32 %v11915_v20, %v15315_v29  ;;  %v5016_v25 = vsel %vm4372_vm1, %v4771_v37, 0.0  ;;  %v12264_v41 = vpop.f32.mrf.mxu0  ;;  %v15316_v31 = vld [vmem:[#allocation267_spill] sm:$0xff]  ;;  %v15317_v26 = vld [vmem:[#allocation278_spill] sm:$0xff]  ;;  %v15319_v20 = vld [vmem:[#allocation209_spill] sm:$0xff] }
 0x3d3   :  { %v4757_v63 = vmul.f32 %v12196_v49, %v12196_v49  ;;  %v4756_v4 = vmul.f32 %v15313_v38, %v15313_v38  ;;  %v4446_v53 = vadd.f32 %v4445_v2, %v4444_v44  ;;  %v5015_v62 = vadd.f32 %v5014_v18, %v4770_v21  ;;  %v15320_v2 = vld [vmem:[#allocation265_spill] sm:$0xff]  ;;  %v15327_v38 = vld [vmem:[#allocation279_spill] sm:$0xff] }
 0x3d4   :  { %4456 = vadd.xlane.f32.xlu1 %v4455_v51  ;;  %v4996_v48 = vadd.f32 %v15316_v31, %v4755_v16  ;;  %v7113_v42 = vadd.f32 %v15318_v24, %v15317_v26  ;;  %v4139_v29 = vadd.f32 %v7119_v34, %v15319_v20  ;;  %v5007_v37 = vsel %vm4372_vm1, %v4764_v12, 0.0  ;;  %v15321_v18 = vld [vmem:[#allocation269_spill] sm:$0xff]  ;;  %v15322_v16 = vld [vmem:[#allocation272_spill] sm:$0xff]  ;;  %v15323_v31 = vld [vmem:[#allocation206_spill] sm:$0xff] }
 0x3d5   :  { %v4750_v17 = vmul.f32 %v12220_v32, %v12220_v32  ;;  %v4749_v33 = vmul.f32 %v15314_v0, %v15314_v0  ;;  %v5017_v49 = vadd.f32 %v5016_v25, %v5015_v62  ;;  %v5006_v51 = vadd.f32 %v5005_v59, %v4763_v14  ;;  %v15325_v12 = vld [vmem:[#allocation239_spill] sm:$0xff]  ;;  %v15326_v32 = vld [vmem:[#allocation82_spill] sm:$0xff]  ;;  %v12285_v0 = vpop.f32.mrf.mxu0  ;;  %v12287_v25 = vpop.f32.mrf.mxu1  ;;  %v15328_v59 = vld [vmem:[#allocation112_spill] sm:$0xff] }
 0x3d6   :  { %4447 = vadd.xlane.f32.xlu0 %v4446_v53  ;;  %v4987_v21 = vadd.f32 %v15320_v2, %v4748_v40  ;;  %v7110_v44 = vadd.f32 %v15322_v16, %v15321_v18  ;;  %v4136_v24 = vadd.f32 %v7116_v54, %v15323_v31  ;;  %v12279_v26 = vadd.f32 %v7211_v36, %v4139_v29  ;;  %v15330_v54 = vld [vmem:[#allocation203_spill] sm:$0xff]  ;;  %v15332_v29 = vld [vmem:[#allocation276_spill] sm:$0xff]  ;;  %v15337_v16 = vld [vmem:[#allocation273_spill] sm:$0xff] }
 0x3d7   :  { %v4998_v34 = vsel %vm4372_vm1, %v4757_v63, 0.0  ;;  %v5138_v20 = vadd.f32 %v15325_v12, %v4865_v3  ;;  %v4506_v52 = vadd.f32 %v15327_v38, %v15326_v32  ;;  %v5008_v40 = vadd.f32 %v5007_v37, %v5006_v51  ;;  %v15331_v38 = vld [vmem:[#allocation133_spill] sm:$0xff]  ;;  %v15334_v51 = vld [vmem:[#allocation200_spill] sm:$0xff] }
 0x3d8   :  { %15324 = vst [vmem:[#allocation227_spill] sm:$0xff] %v12279_v26  ;;  %5018 = vadd.xlane.f32.xlu1 %v5017_v49  ;;  %v4997_v14 = vadd.f32 %v4996_v48, %v4756_v4  ;;  %v4866_v53 = vmul.f32 %v15328_v59, %v15328_v59  ;;  %v12292_v36 = vadd.f32 %v12180_v5, %v4136_v24  ;;  %v4989_v3 = vsel %vm4372_vm1, %v4750_v17, 0.0  ;;  %v15333_v4 = vld [vmem:[#allocation25_spill] sm:$0xff]  ;;  %v12312_v24 = vpop.f32.mrf.mxu0 }
 0x3d9   :  { %v4131_v63 = vadd.f32 %v7113_v42, %v15330_v54  ;;  %v12297_v62 = vadd.f32 %v4594_v1, %v15328_v59  ;;  %v4497_v2 = vadd.f32 %v15332_v29, %v15331_v38  ;;  %v4988_v37 = vadd.f32 %v4987_v21, %v4749_v33  ;;  %v15336_v17 = vld [vmem:[#allocation105_spill] sm:$0xff]  ;;  %v15341_v29 = vld [vmem:[#allocation270_spill] sm:$0xff] }
 0x3da   :  { %15329 = vst [vmem:[#allocation232_spill] sm:$0xff] %v12292_v36  ;;  %5009 = vadd.xlane.f32.xlu0 %v5008_v40  ;;  %v4999_v49 = vadd.f32 %v4998_v34, %v4997_v14  ;;  %v4872_v48 = vmul.f32 %v15333_v4, %v15333_v4  ;;  %v4128_v18 = vadd.f32 %v7110_v44, %v15334_v51  ;;  %v4508_v42 = vsel %vm4372_vm1, %v12279_v26, 0.0  ;;  %v12314_v34 = vpop.f32.mrf.mxu1  ;;  %v15338_v21 = vld [vmem:[#allocation113_spill] sm:$0xff] }
 0x3db   :  { %v12304_v5 = vadd.f32 %v4291_v28, %v4131_v63  ;;  %v4488_v1 = vadd.f32 %v15337_v16, %v15336_v17  ;;  %v4797_v31 = vmul.f32 %v15326_v32, %v15326_v32  ;;  %v4990_v33 = vadd.f32 %v4989_v3, %v4988_v37  ;;  %v15339_v28 = vld [vmem:[#allocation240_spill] sm:$0xff]  ;;  %v15340_v63 = vld [vmem:[#allocation42_spill] sm:$0xff]  ;;  %v15343_v16 = vld [vmem:[#allocation241_spill] sm:$0xff] }
 0x3dc   :  { %5000 = vadd.xlane.f32.xlu1 %v4999_v49  ;;  %v4507_v12 = vadd.f32 %v4506_v52, %v15338_v21  ;;  %v4603_v44 = vadd.f32 %v15339_v28, %v15333_v4  ;;  %v12320_v40 = vadd.f32 %v12210_v56, %v4128_v18  ;;  %v4499_v14 = vsel %vm4372_vm1, %v12292_v36, 0.0  ;;  %v15342_v52 = vld [vmem:[#allocation155_spill] sm:$0xff] }
 0x3dd   :  { %15335 = vst [vmem:[#allocation182_spill] sm:$0xff] %v12304_v5  ;;  %v12324_v54 = vadd.f32 %v5138_v20, %v4866_v53  ;;  %v4479_v51 = vadd.f32 %v15341_v29, %v15340_v63  ;;  %v4790_v49 = vmul.f32 %v15331_v38, %v15331_v38  ;;  %v4498_v37 = vadd.f32 %v4497_v2, %v15342_v52  ;;  %v12340_v29 = vpop.f32.mrf.mxu0  ;;  %v15344_v2 = vld [vmem:[#allocation132_spill] sm:$0xff] }
 0x3de   :  { %4991 = vadd.xlane.f32.xlu0 %v4990_v33  ;;  %v4509_v3 = vadd.f32 %v4508_v42, %v4507_v12  ;;  %v5147_v28 = vadd.f32 %v15343_v16, %v4872_v48  ;;  %v4783_v56 = vmul.f32 %v15336_v17, %v15336_v17  ;;  %v4490_v18 = vsel %vm4372_vm1, %v12304_v5, 0.0  ;;  %v7215_v33 = vpop.f32.mrf.mxu1  ;;  %v15347_v17 = vld [vmem:[#allocation90_spill] sm:$0xff] }
 0x3df   :  { %v4799_v20 = vmul.f32 %v12279_v26, %v12279_v26  ;;  %v4798_v53 = vmul.f32 %v15338_v21, %v15338_v21  ;;  %v4500_v42 = vadd.f32 %v4499_v14, %v4498_v37  ;;  %v4489_v12 = vadd.f32 %v4488_v1, %v15344_v2  ;;  %v15345_v1 = vld [vmem:[#allocation153_spill] sm:$0xff] }
 0x3e0   :  { %4510 = vadd.xlane.f32.xlu1 %v4509_v3  ;;  %v5050_v48 = vadd.f32 %v11917_v58, %v4797_v31  ;;  %v4776_v16 = vmul.f32 %v15340_v63, %v15340_v63  ;;  %v7131_v4 = vadd.f32 %v12068_v8, %v12054_v6  ;;  %v4481_v59 = vsel %vm4372_vm1, %v12320_v40, 0.0  ;;  %v15346_v58 = vld [vmem:[#allocation277_spill] sm:$0xff] }
 0x3e1   :  { %v4792_v38 = vmul.f32 %v12292_v36, %v12292_v36  ;;  %v4791_v3 = vmul.f32 %v15342_v52, %v15342_v52  ;;  %v4491_v14 = vadd.f32 %v4490_v18, %v4489_v12  ;;  %v4480_v37 = vadd.f32 %v4479_v51, %v15345_v1  ;;  %v4307_v18 = vpop.f32.mrf.mxu1  ;;  %v15348_v12 = vld [vmem:[#allocation275_spill] sm:$0xff] }
 0x3e2   :  { %4501 = vadd.xlane.f32.xlu0 %v4500_v42  ;;  %v5041_v31 = vadd.f32 %v15346_v58, %v4790_v49  ;;  %v4873_v63 = vmul.f32 %v15347_v17, %v15347_v17  ;;  %v7128_v8 = vadd.f32 %v12040_v19, %v12029_v55  ;;  %v5052_v6 = vsel %vm4372_vm1, %v4799_v20, 0.0  ;;  %v12365_v42 = vpop.f32.mrf.mxu0  ;;  %v15349_v55 = vld [vmem:[#allocation224_spill] sm:$0xff] }
 0x3e3   :  { %v4785_v36 = vmul.f32 %v12304_v5, %v12304_v5  ;;  %v4784_v52 = vmul.f32 %v15344_v2, %v15344_v2  ;;  %v4482_v51 = vadd.f32 %v4481_v59, %v4480_v37  ;;  %v5051_v49 = vadd.f32 %v5050_v48, %v4798_v53  ;;  %v15350_v59 = vld [vmem:[#allocation271_spill] sm:$0xff]  ;;  %v15351_v48 = vld [vmem:[#allocation218_spill] sm:$0xff] }
 0x3e4   :  { %4492 = vadd.xlane.f32.xlu1 %v4491_v14  ;;  %v5032_v58 = vadd.f32 %v15348_v12, %v4783_v56  ;;  %v7125_v26 = vadd.f32 %v12015_v61, %v12002_v7  ;;  %v4155_v19 = vadd.f32 %v7131_v4, %v15349_v55  ;;  %v5043_v20 = vsel %vm4372_vm1, %v4792_v38, 0.0  ;;  %v15353_v37 = vld [vmem:[#allocation126_spill] sm:$0xff] }
 0x3e5   :  { %v4778_v5 = vmul.f32 %v12320_v40, %v12320_v40  ;;  %v4777_v2 = vmul.f32 %v15345_v1, %v15345_v1  ;;  %v5053_v21 = vadd.f32 %v5052_v6, %v5051_v49  ;;  %v5042_v14 = vadd.f32 %v5041_v31, %v4791_v3  ;;  %v12390_v3 = vpop.f32.mrf.mxu1 }
 0x3e6   :  { %4483 = vadd.xlane.f32.xlu0 %v4482_v51  ;;  %v5023_v53 = vadd.f32 %v15350_v59, %v4776_v16  ;;  %v7122_v56 = vadd.f32 %v11989_v39, %v11976_v43  ;;  %v4152_v61 = vadd.f32 %v7128_v8, %v15351_v48  ;;  %v12380_v7 = vadd.f32 %v7215_v33, %v4155_v19  ;;  %v12388_v51 = vpop.f32.mrf.mxu0  ;;  %v15354_v43 = vld [vmem:[#allocation27_spill] sm:$0xff]  ;;  %v15359_v19 = vld [vmem:[#allocation212_spill] sm:$0xff] }
 0x3e7   :  { %v5034_v38 = vsel %vm4372_vm1, %v4785_v36, 0.0  ;;  %v12384_v4 = vadd.f32 %v4603_v44, %v15347_v17  ;;  %v4542_v12 = vadd.f32 %v11934_v22, %v15353_v37  ;;  %v5044_v16 = vadd.f32 %v5043_v20, %v5042_v14  ;;  %v15356_v36 = vld [vmem:[#allocation215_spill] sm:$0xff]  ;;  %v15357_v22 = vld [vmem:[#allocation2_spill] sm:$0xff] }
 0x3e8   :  { %15352 = vst [vmem:[#allocation179_spill] sm:$0xff] %v12380_v7  ;;  %5054 = vadd.xlane.f32.xlu1 %v5053_v21  ;;  %v5033_v31 = vadd.f32 %v5032_v58, %v4784_v52  ;;  %v4879_v39 = vmul.f32 %v15354_v43, %v15354_v43  ;;  %v12395_v33 = vadd.f32 %v12287_v25, %v4152_v61  ;;  %v5025_v44 = vsel %vm4372_vm1, %v4778_v5, 0.0  ;;  %v15358_v52 = vld [vmem:[#allocation243_spill] sm:$0xff]  ;;  %v15361_v5 = vld [vmem:[#allocation114_spill] sm:$0xff]  ;;  %v12416_v14 = vpop.f32.mrf.mxu0 }
 0x3e9   :  { %v4147_v8 = vadd.f32 %v7125_v26, %v15356_v36  ;;  %v12399_v6 = vadd.f32 %v5147_v28, %v4873_v63  ;;  %v4533_v49 = vadd.f32 %v11929_v35, %v15357_v22  ;;  %v5024_v21 = vadd.f32 %v5023_v53, %v4777_v2  ;;  %v15362_v63 = vld [vmem:[#allocation225_spill] sm:$0xff]  ;;  %v12418_v2 = vpop.f32.mrf.mxu1  ;;  %v15363_v53 = vld [vmem:[#allocation36_spill] sm:$0xff]  ;;  %v15365_v61 = vld [vmem:[#allocation122_spill] sm:$0xff] }
 0x3ea   :  { %15355 = vst [vmem:[#allocation231_spill] sm:$0xff] %v12395_v33  ;;  %5045 = vadd.xlane.f32.xlu0 %v5044_v16  ;;  %v5035_v55 = vadd.f32 %v5034_v38, %v5033_v31  ;;  %v12405_v58 = vadd.f32 %v15358_v52, %v15354_v43  ;;  %v4144_v20 = vadd.f32 %v7122_v56, %v15359_v19  ;;  %v4544_v26 = vsel %vm4372_vm1, %v12380_v7, 0.0  ;;  %v15364_v56 = vld [vmem:[#allocation244_spill] sm:$0xff]  ;;  %v15367_v36 = vld [vmem:[#allocation26_spill] sm:$0xff] }
 0x3eb   :  { %v12408_v25 = vadd.f32 %v4307_v18, %v4147_v8  ;;  %v4524_v28 = vadd.f32 %v15362_v63, %v15361_v5  ;;  %v4825_v35 = vmul.f32 %v15353_v37, %v15353_v37  ;;  %v5026_v59 = vadd.f32 %v5025_v44, %v5024_v21  ;;  %v15368_v8 = vld [vmem:[#allocation222_spill] sm:$0xff] }
 0x3ec   :  { %5036 = vadd.xlane.f32.xlu1 %v5035_v55  ;;  %v4543_v48 = vadd.f32 %v4542_v12, %v15363_v53  ;;  %v12422_v18 = vadd.f32 %v15364_v56, %v4879_v39  ;;  %v12426_v38 = vmul.f32 %v15365_v61, %v15365_v61  ;;  %v12429_v16 = vadd.f32 %v12314_v34, %v4144_v20  ;;  %v15369_v39 = vld [vmem:[#allocation115_spill] sm:$0xff]  ;;  %v15370_v21 = vld [vmem:[#allocation30_spill] sm:$0xff] }
 0x3ed   :  { %15360 = vst [vmem:[#allocation176_spill] sm:$0xff] %v12408_v25  ;;  %v4535_v31 = vsel %vm4372_vm1, %v12395_v33, 0.0  ;;  %v4515_v52 = vadd.f32 %v15368_v8, %v15367_v36  ;;  %v4818_v44 = vmul.f32 %v15357_v22, %v15357_v22  ;;  %v4534_v55 = vadd.f32 %v4533_v49, %v15369_v39  ;;  %v15371_v19 = vld [vmem:[#allocation246_spill] sm:$0xff] }
 0x3ee   :  { %15366 = vst [vmem:[#allocation234_spill] sm:$0xff] %v12429_v16  ;;  %5027 = vadd.xlane.f32.xlu0 %v5026_v59  ;;  %v4545_v12 = vadd.f32 %v4544_v26, %v4543_v48  ;;  %v12440_v63 = vadd.f32 %v15371_v19, %v15370_v21  ;;  %v4811_v34 = vmul.f32 %v15361_v5, %v15361_v5  ;;  %v4526_v20 = vsel %vm4372_vm1, %v12408_v25, 0.0  ;;  %v12450_v59 = vpop.f32.mrf.mxu0  ;;  %v7219_v26 = vpop.f32.mrf.mxu1  ;;  %v15372_v48 = vld [vmem:[#allocation31_spill] sm:$0xff]  ;;  %v15373_v17 = vld [vmem:[#allocation282_spill] sm:$0xff] }
 0x3ef   :  { %v4827_v56 = vmul.f32 %v12380_v7, %v12380_v7  ;;  %v4826_v8 = vmul.f32 %v15363_v53, %v15363_v53  ;;  %v4536_v49 = vadd.f32 %v4535_v31, %v4534_v55  ;;  %v4525_v19 = vadd.f32 %v4524_v28, %v15372_v48  ;;  %v15374_v28 = vld [vmem:[#allocation159_spill] sm:$0xff] }
 0x3f0   :  { %4546 = vadd.xlane.f32.xlu1 %v4545_v12  ;;  %v5086_v43 = vadd.f32 %v15373_v17, %v4825_v35  ;;  %v4804_v22 = vmul.f32 %v15367_v36, %v15367_v36  ;;  %v7143_v5 = vadd.f32 %v12264_v41, %v12239_v9  ;;  %v4517_v7 = vsel %vm4372_vm1, %v12429_v16, 0.0  ;;  %v15375_v17 = vld [vmem:[#allocation217_spill] sm:$0xff] }
 0x3f1   :  { %v4820_v53 = vmul.f32 %v12395_v33, %v12395_v33  ;;  %v4819_v12 = vmul.f32 %v15369_v39, %v15369_v39  ;;  %v4527_v31 = vadd.f32 %v4526_v20, %v4525_v19  ;;  %v4516_v55 = vadd.f32 %v4515_v52, %v15374_v28  ;;  %v4323_v20 = vpop.f32.mrf.mxu1  ;;  %v15376_v19 = vld [vmem:[#allocation216_spill] sm:$0xff] }
 0x3f2   :  { %4537 = vadd.xlane.f32.xlu0 %v4536_v49  ;;  %v5077_v35 = vadd.f32 %v15375_v17, %v4818_v44  ;;  %v4886_v36 = vmul.f32 %v15370_v21, %v15370_v21  ;;  %v7140_v9 = vadd.f32 %v12208_v30, %v12178_v47  ;;  %v5088_v41 = vsel %vm4372_vm1, %v4827_v56, 0.0  ;;  %v12475_v49 = vpop.f32.mrf.mxu0  ;;  %v15377_v47 = vld [vmem:[#allocation255_spill] sm:$0xff] }
 0x3f3   :  { %v4813_v33 = vmul.f32 %v12408_v25, %v12408_v25  ;;  %v4812_v39 = vmul.f32 %v15372_v48, %v15372_v48  ;;  %v4518_v52 = vadd.f32 %v4517_v7, %v4516_v55  ;;  %v5087_v44 = vadd.f32 %v5086_v43, %v4826_v8  ;;  %v15378_v7 = vld [vmem:[#allocation223_spill] sm:$0xff]  ;;  %v15379_v8 = vld [vmem:[#allocation252_spill] sm:$0xff] }
 0x3f4   :  { %4528 = vadd.xlane.f32.xlu1 %v4527_v31  ;;  %v5068_v17 = vadd.f32 %v15376_v19, %v4811_v34  ;;  %v7137_v21 = vadd.f32 %v12155_v45, %v12130_v60  ;;  %v4171_v30 = vadd.f32 %v7143_v5, %v15377_v47  ;;  %v5079_v56 = vsel %vm4372_vm1, %v4820_v53, 0.0  ;;  %v15380_v53 = vld [vmem:[#allocation247_spill] sm:$0xff] }
 0x3f5   :  { %v4806_v25 = vmul.f32 %v12429_v16, %v12429_v16  ;;  %v4805_v48 = vmul.f32 %v15374_v28, %v15374_v28  ;;  %v5089_v37 = vadd.f32 %v5088_v41, %v5087_v44  ;;  %v5078_v31 = vadd.f32 %v5077_v35, %v4819_v12  ;;  %v15381_v19 = vld [vmem:[#allocation183_spill] sm:$0xff]  ;;  %v12496_v16 = vpop.f32.mrf.mxu0  ;;  %v12498_v41 = vpop.f32.mrf.mxu1  ;;  %v15382_v35 = vld [vmem:[#allocation96_spill] sm:$0xff] }
 0x3f6   :  { %4519 = vadd.xlane.f32.xlu0 %v4518_v52  ;;  %v5059_v43 = vadd.f32 %v15378_v7, %v4804_v22  ;;  %v7134_v34 = vadd.f32 %v12099_v46, %v12081_v23  ;;  %v4168_v60 = vadd.f32 %v7140_v9, %v15379_v8  ;;  %v12490_v45 = vadd.f32 %v7219_v26, %v4171_v30  ;;  %v15384_v26 = vld [vmem:[#allocation245_spill] sm:$0xff]  ;;  %v15385_v9 = vld [vmem:[#allocation180_spill] sm:$0xff]  ;;  %v15386_v52 = vld [vmem:[#allocation214_spill] sm:$0xff] }
 0x3f7   :  { %v5070_v5 = vsel %vm4372_vm1, %v4813_v33, 0.0  ;;  %v5165_v55 = vadd.f32 %v15380_v53, %v4886_v36  ;;  %v4578_v47 = vadd.f32 %v12191_v10, %v15381_v19  ;;  %v5080_v22 = vadd.f32 %v5079_v56, %v5078_v31  ;;  %v12526_v8 = vpop.f32.mrf.mxu0  ;;  %v15393_v53 = vld [vmem:[#allocation41_spill] sm:$0xff] }
 0x3f8   :  { %5090 = vadd.xlane.f32.xlu1 %v5089_v37  ;;  %v5069_v12 = vadd.f32 %v5068_v17, %v4812_v39  ;;  %v4887_v23 = vmul.f32 %v15382_v35, %v15382_v35  ;;  %v12503_v46 = vadd.f32 %v12390_v3, %v4168_v60  ;;  %v4163_v33 = vadd.f32 %v7137_v21, %v15384_v26  ;;  %v15387_v17 = vld [vmem:[#allocation233_spill] sm:$0xff] }
 0x3f9   :  { %v5061_v36 = vsel %vm4372_vm1, %v4806_v25, 0.0  ;;  %v12509_v10 = vadd.f32 %v12405_v58, %v15365_v61  ;;  %v4569_v44 = vadd.f32 %v15386_v52, %v15385_v9  ;;  %v5060_v39 = vadd.f32 %v5059_v43, %v4805_v48  ;;  %v15389_v21 = vld [vmem:[#allocation177_spill] sm:$0xff]  ;;  %v15390_v58 = vld [vmem:[#allocation228_spill] sm:$0xff]  ;;  %v12528_v48 = vpop.f32.mrf.mxu1 }
 0x3fa   :  { %15383 = vst [vmem:[#allocation235_spill] sm:$0xff] %v12503_v46  ;;  %5081 = vadd.xlane.f32.xlu0 %v5080_v22  ;;  %v5071_v37 = vadd.f32 %v5070_v5, %v5069_v12  ;;  %v4160_v30 = vadd.f32 %v7134_v34, %v15387_v17  ;;  %v12514_v56 = vadd.f32 %v4323_v20, %v4163_v33  ;;  %v4580_v3 = vsel %vm4372_vm1, %v12490_v45, 0.0  ;;  %v15391_v43 = vld [vmem:[#allocation184_spill] sm:$0xff]  ;;  %v15394_v22 = vld [vmem:[#allocation283_spill] sm:$0xff]  ;;  %v15395_v33 = vld [vmem:[#allocation181_spill] sm:$0xff]  ;;  %v12557_v17 = vpop.f32.mrf.mxu0 }
 0x3fb   :  { %v12520_v25 = vadd.f32 %v12422_v18, %v12426_v38  ;;  %v4560_v31 = vadd.f32 %v15390_v58, %v15389_v21  ;;  %v4853_v7 = vmul.f32 %v15381_v19, %v15381_v19  ;;  %v5062_v20 = vadd.f32 %v5061_v36, %v5060_v39  ;;  %v15397_v52 = vld [vmem:[#allocation248_spill] sm:$0xff] }
 0x3fc   :  { %15388 = vst [vmem:[#allocation263_spill] sm:$0xff] %v12514_v56  ;;  %5072 = vadd.xlane.f32.xlu1 %v5071_v37  ;;  %v4579_v34 = vadd.f32 %v4578_v47, %v15391_v43  ;;  %v12533_v60 = vadd.f32 %v12440_v63, %v15382_v35  ;;  %v12535_v18 = vadd.f32 %v5165_v55, %v4887_v23  ;;  %v4571_v5 = vsel %vm4372_vm1, %v12503_v46, 0.0  ;;  %v15396_v63 = vld [vmem:[#allocation32_spill] sm:$0xff] }
 0x3fd   :  { %v12538_v38 = vadd.f32 %v12418_v2, %v4160_v30  ;;  %v4551_v12 = vadd.f32 %v15394_v22, %v15393_v53  ;;  %v4846_v26 = vmul.f32 %v15385_v9, %v15385_v9  ;;  %v4570_v36 = vadd.f32 %v4569_v44, %v15395_v33  ;;  %v7223_v30 = vpop.f32.mrf.mxu1 }
 0x3fe   :  { %5063 = vadd.xlane.f32.xlu0 %v5062_v20  ;;  %v4581_v47 = vadd.f32 %v4580_v3, %v4579_v34  ;;  %v4630_v55 = vadd.f32 %v15397_v52, %v15396_v63  ;;  %v4839_v2 = vmul.f32 %v15389_v21, %v15389_v21  ;;  %v4562_v23 = vsel %vm4372_vm1, %v12514_v56, 0.0  ;;  %v15398_v3 = vld [vmem:[#allocation178_spill] sm:$0xff] }
 0x3ff   :  { %15392 = vst [vmem:[#allocation259_spill] sm:$0xff] %v12538_v38  ;;  %v4855_v37 = vmul.f32 %v12490_v45, %v12490_v45  ;;  %v4854_v39 = vmul.f32 %v15391_v43, %v15391_v43  ;;  %v4572_v44 = vadd.f32 %v4571_v5, %v4570_v36  ;;  %v4561_v58 = vadd.f32 %v4560_v31, %v15398_v3  ;;  %v15399_v31 = vld [vmem:[#allocation175_spill] sm:$0xff] }
 0x400   :  { %4582 = vadd.xlane.f32.xlu1 %v4581_v47  ;;  %v5122_v20 = vadd.f32 %v12202_v57, %v4853_v7  ;;  %v4832_v34 = vmul.f32 %v15393_v53, %v15393_v53  ;;  %v7155_v22 = vadd.f32 %v12475_v49, %v12450_v59  ;;  %v4553_v52 = vsel %vm4372_vm1, %v12538_v38, 0.0  ;;  %v15400_v57 = vld [vmem:[#allocation116_spill] sm:$0xff] }
 0x401   :  { %v4848_v35 = vmul.f32 %v12503_v46, %v12503_v46  ;;  %v4847_v47 = vmul.f32 %v15395_v33, %v15395_v33  ;;  %v4563_v5 = vadd.f32 %v4562_v23, %v4561_v58  ;;  %v4552_v36 = vadd.f32 %v4551_v12, %v15399_v31  ;;  %v4339_v23 = vpop.f32.mrf.mxu1  ;;  %v15401_v58 = vld [vmem:[#allocation165_spill] sm:$0xff] }
 0x402   :  { %4573 = vadd.xlane.f32.xlu0 %v4572_v44  ;;  %v5113_v7 = vadd.f32 %v15400_v57, %v4846_v26  ;;  %v4893_v61 = vmul.f32 %v15396_v63, %v15396_v63  ;;  %v7152_v59 = vadd.f32 %v12416_v14, %v12388_v51  ;;  %v5124_v49 = vsel %vm4372_vm1, %v4855_v37, 0.0  ;;  %v12582_v44 = vpop.f32.mrf.mxu0  ;;  %v15402_v51 = vld [vmem:[#allocation268_spill] sm:$0xff] }
 0x403   :  { %v4841_v53 = vmul.f32 %v12514_v56, %v12514_v56  ;;  %v4840_v46 = vmul.f32 %v15398_v3, %v15398_v3  ;;  %v4554_v12 = vadd.f32 %v4553_v52, %v4552_v36  ;;  %v5123_v26 = vadd.f32 %v5122_v20, %v4854_v39  ;;  %v15403_v52 = vld [vmem:[#allocation284_spill] sm:$0xff]  ;;  %v15404_v20 = vld [vmem:[#allocation266_spill] sm:$0xff] }
 0x404   :  { %4564 = vadd.xlane.f32.xlu1 %v4563_v5  ;;  %v5104_v57 = vadd.f32 %v15401_v58, %v4839_v2  ;;  %v7149_v63 = vadd.f32 %v12365_v42, %v12340_v29  ;;  %v4187_v14 = vadd.f32 %v7155_v22, %v15402_v51  ;;  %v5115_v37 = vsel %vm4372_vm1, %v4848_v35, 0.0  ;;  %v15405_v22 = vld [vmem:[#allocation249_spill] sm:$0xff]  ;;  %v15406_v58 = vld [vmem:[#allocation195_spill] sm:$0xff] }
 0x405   :  { %v4834_v33 = vmul.f32 %v12538_v38, %v12538_v38  ;;  %v4833_v9 = vmul.f32 %v15399_v31, %v15399_v31  ;;  %v5125_v56 = vadd.f32 %v5124_v49, %v5123_v26  ;;  %v5114_v5 = vadd.f32 %v5113_v7, %v4847_v47  ;;  %v12603_v38 = vpop.f32.mrf.mxu0  ;;  %v12605_v49 = vpop.f32.mrf.mxu1  ;;  %v15407_v7 = vld [vmem:[#allocation125_spill] sm:$0xff] }
 0x406   :  { %4555 = vadd.xlane.f32.xlu0 %v4554_v12  ;;  %v5095_v39 = vadd.f32 %v15403_v52, %v4832_v34  ;;  %v7146_v2 = vadd.f32 %v12312_v24, %v12285_v0  ;;  %v4184_v29 = vadd.f32 %v7152_v59, %v15404_v20  ;;  %v12597_v42 = vadd.f32 %v7223_v30, %v4187_v14  ;;  %v15409_v30 = vld [vmem:[#allocation262_spill] sm:$0xff] }
 0x407   :  { %v5106_v35 = vsel %vm4372_vm1, %v4841_v53, 0.0  ;;  %v5174_v36 = vadd.f32 %v15405_v22, %v4893_v61  ;;  %v4614_v51 = vadd.f32 %v12509_v10, %v15406_v58  ;;  %v5116_v34 = vadd.f32 %v5115_v37, %v5114_v5  ;;  %v15410_v10 = vld [vmem:[#allocation192_spill] sm:$0xff]  ;;  %v15412_v14 = vld [vmem:[#allocation258_spill] sm:$0xff]  ;;  %v12632_v52 = vpop.f32.mrf.mxu1 }
 0x408   :  { %5126 = vadd.xlane.f32.xlu1 %v5125_v56  ;;  %v5105_v47 = vadd.f32 %v5104_v57, %v4840_v46  ;;  %v4894_v0 = vmul.f32 %v15407_v7, %v15407_v7  ;;  %v12610_v24 = vadd.f32 %v12498_v41, %v4184_v29  ;;  %v4179_v53 = vadd.f32 %v7149_v63, %v15409_v30  ;;  %v15411_v46 = vld [vmem:[#allocation3_spill] sm:$0xff]  ;;  %v15416_v22 = vld [vmem:[#allocation186_spill] sm:$0xff]  ;;  %v15417_v30 = vld [vmem:[#allocation193_spill] sm:$0xff] }
 0x409   :  { %v5097_v61 = vsel %vm4372_vm1, %v4834_v33, 0.0  ;;  %v12615_v59 = vadd.f32 %v4630_v55, %v15407_v7  ;;  %v4605_v12 = vadd.f32 %v12384_v4, %v15410_v10  ;;  %v5096_v26 = vadd.f32 %v5095_v39, %v4833_v9  ;;  %v15413_v33 = vld [vmem:[#allocation189_spill] sm:$0xff]  ;;  %v12630_v4 = vpop.f32.mrf.mxu0  ;;  %v15414_v39 = vld [vmem:[#allocation196_spill] sm:$0xff] }
 0x40a   :  { %15408 = vst [vmem:[#allocation261_spill] sm:$0xff] %v12610_v24  ;;  %5117 = vadd.xlane.f32.xlu0 %v5116_v34  ;;  %v5107_v56 = vadd.f32 %v5106_v35, %v5105_v47  ;;  %v4900_v57 = vmul.f32 %v15411_v46, %v15411_v46  ;;  %v4176_v37 = vadd.f32 %v7146_v2, %v15412_v14  ;;  %v4616_v63 = vsel %vm4372_vm1, %v12597_v42, 0.0  ;;  %v12662_v14 = vpop.f32.mrf.mxu1 }
 0x40b   :  { %v12622_v41 = vadd.f32 %v4339_v23, %v4179_v53  ;;  %v4596_v55 = vadd.f32 %v12297_v62, %v15413_v33  ;;  %v4881_v5 = vmul.f32 %v15406_v58, %v15406_v58  ;;  %v5098_v9 = vadd.f32 %v5097_v61, %v5096_v26  ;;  %v15415_v23 = vld [vmem:[#allocation250_spill] sm:$0xff]  ;;  %v15418_v61 = vld [vmem:[#allocation251_spill] sm:$0xff]  ;;  %v7165_v26 = vpop.f32.mrf.mxu0 }
 0x40c   :  { %5108 = vadd.xlane.f32.xlu1 %v5107_v56  ;;  %v4615_v20 = vadd.f32 %v4614_v51, %v15414_v39  ;;  %v12637_v2 = vadd.f32 %v15415_v23, %v15411_v46  ;;  %v12640_v29 = vadd.f32 %v12528_v48, %v4176_v37  ;;  %v4607_v62 = vsel %vm4372_vm1, %v12610_v24, 0.0  ;;  %v15419_v37 = vld [vmem:[#allocation190_spill] sm:$0xff]  ;;  %v15422_v46 = vld [vmem:[#allocation253_spill] sm:$0xff] }
 0x40d   :  { %v12644_v35 = vadd.f32 %v5174_v36, %v4894_v0  ;;  %v4587_v34 = vadd.f32 %v12215_v50, %v15416_v22  ;;  %v4874_v47 = vmul.f32 %v15410_v10, %v15410_v10  ;;  %v4606_v53 = vadd.f32 %v4605_v12, %v15417_v30 }
 0x40e   :  { %5099 = vadd.xlane.f32.xlu0 %v5098_v9  ;;  %v4617_v51 = vadd.f32 %v4616_v63, %v4615_v20  ;;  %v12652_v56 = vadd.f32 %v15418_v61, %v4900_v57  ;;  %v4867_v48 = vmul.f32 %v15413_v33, %v15413_v33  ;;  %v4598_v36 = vsel %vm4372_vm1, %v12622_v41, 0.0 }
 0x40f   :  { %v4883_v0 = vmul.f32 %v12597_v42, %v12597_v42  ;;  %v4882_v50 = vmul.f32 %v15414_v39, %v15414_v39  ;;  %v4608_v12 = vadd.f32 %v4607_v62, %v4606_v53  ;;  %v4597_v57 = vadd.f32 %v4596_v55, %v15419_v37  ;;  %v15420_v55 = vld [vmem:[#allocation187_spill] sm:$0xff] }
 0x410   :  { %4618 = vadd.xlane.f32.xlu1 %v4617_v51  ;;  %v5158_v63 = vadd.f32 %v12520_v25, %v4881_v5  ;;  %v4860_v9 = vmul.f32 %v15416_v22, %v15416_v22  ;;  %v7161_v20 = vadd.f32 %v12582_v44, %v12557_v17  ;;  %v4589_v23 = vsel %vm4372_vm1, %v12640_v29, 0.0  ;;  %v15421_v5 = vld [vmem:[#allocation104_spill] sm:$0xff] }
 0x411   :  { %v4876_v61 = vmul.f32 %v12610_v24, %v12610_v24  ;;  %v4875_v51 = vmul.f32 %v15417_v30, %v15417_v30  ;;  %v4599_v62 = vadd.f32 %v4598_v36, %v4597_v57  ;;  %v4588_v53 = vadd.f32 %v4587_v34, %v15420_v55  ;;  %v4355_v36 = vpop.f32.mrf.mxu1 }
 0x412   :  { %4609 = vadd.xlane.f32.xlu0 %v4608_v12  ;;  %v5149_v25 = vadd.f32 %v12399_v6, %v4874_v47  ;;  %v4648_v7 = vadd.f32 %v15422_v46, %v15421_v5  ;;  %v7158_v17 = vadd.f32 %v12526_v8, %v12496_v16  ;;  %v5160_v44 = vsel %vm4372_vm1, %v4883_v0, 0.0  ;;  %v7166_v12 = vpop.f32.mrf.mxu0  ;;  %v15423_v47 = vld [vmem:[#allocation281_spill] sm:$0xff] }
 0x413   :  { %v4869_v22 = vmul.f32 %v12622_v41, %v12622_v41  ;;  %v4868_v24 = vmul.f32 %v15419_v37, %v15419_v37  ;;  %v4590_v34 = vadd.f32 %v4589_v23, %v4588_v53  ;;  %v5159_v57 = vadd.f32 %v5158_v63, %v4882_v50  ;;  %v15424_v63 = vld [vmem:[#allocation274_spill] sm:$0xff]  ;;  %v15425_v53 = vld [vmem:[#allocation201_spill] sm:$0xff] }
 0x414   :  { %4600 = vadd.xlane.f32.xlu1 %v4599_v62  ;;  %v5140_v6 = vadd.f32 %v12324_v54, %v4867_v48  ;;  %v4907_v46 = vmul.f32 %v15421_v5, %v15421_v5  ;;  %v4195_v16 = vadd.f32 %v7161_v20, %v15423_v47  ;;  %v5151_v8 = vsel %vm4372_vm1, %v4876_v61, 0.0 }
 0x415   :  { %v4862_v0 = vmul.f32 %v12640_v29, %v12640_v29  ;;  %v4861_v30 = vmul.f32 %v15420_v55, %v15420_v55  ;;  %v5161_v10 = vadd.f32 %v5160_v44, %v5159_v57  ;;  %v5150_v62 = vadd.f32 %v5149_v25, %v4875_v51  ;;  %v15426_v44 = vld [vmem:[#allocation254_spill] sm:$0xff] }
 0x416   :  { %4591 = vadd.xlane.f32.xlu0 %v4590_v34  ;;  %v5131_v50 = vadd.f32 %v12217_v27, %v4860_v9  ;;  %v4192_v54 = vadd.f32 %v7158_v17, %v15424_v63  ;;  %v7167_v48 = vadd.f32 %v7166_v12, %v7165_v26  ;;  %v12698_v23 = vadd.f32 %v4355_v36, %v4195_v16  ;;  %v15430_v36 = vld [vmem:[#allocation210_spill] sm:$0xff] }
 0x417   :  { %v5142_v20 = vsel %vm4372_vm1, %v4869_v22, 0.0  ;;  %v4632_v61 = vadd.f32 %v12615_v59, %v15425_v53  ;;  %v4895_v47 = vmul.f32 %v15425_v53, %v15425_v53  ;;  %v5152_v5 = vadd.f32 %v5151_v8, %v5150_v62  ;;  %v15428_v22 = vld [vmem:[#allocation198_spill] sm:$0xff]  ;;  %v15433_v62 = vld [vmem:[#allocation199_spill] sm:$0xff] }
 0x418   :  { %5162 = vadd.xlane.f32.xlu1 %v5161_v10  ;;  %v5141_v34 = vadd.f32 %v5140_v6, %v4868_v24  ;;  %v5192_v51 = vadd.f32 %v15426_v44, %v4907_v46  ;;  %v7164_v27 = vadd.f32 %v12630_v4, %v12603_v38  ;;  %v12709_v26 = vadd.f32 %v12632_v52, %v4192_v54  ;;  %v15429_v24 = vld [vmem:[#allocation37_spill] sm:$0xff]  ;;  %v15431_v52 = vld [vmem:[#allocation202_spill] sm:$0xff]  ;;  %v15436_v44 = vld [vmem:[#allocation207_spill] sm:$0xff] }
 0x419   :  { %v5133_v9 = vsel %vm4372_vm1, %v4862_v0, 0.0  ;;  %v4623_v25 = vadd.f32 %v12533_v60, %v15428_v22  ;;  %v4888_v59 = vmul.f32 %v15428_v22, %v15428_v22  ;;  %v5132_v17 = vadd.f32 %v5131_v50, %v4861_v30  ;;  %v15432_v30 = vld [vmem:[#allocation226_spill] sm:$0xff] }
 0x41a   :  { %15427 = vst [vmem:[#allocation197_spill] sm:$0xff] %v12709_v26  ;;  %5153 = vadd.xlane.f32.xlu0 %v5152_v5  ;;  %v5143_v10 = vadd.f32 %v5142_v20, %v5141_v34  ;;  %v4649_v12 = vadd.f32 %v4648_v7, %v15429_v24  ;;  %v4203_v57 = vadd.f32 %v7167_v48, %v15430_v36  ;;  %v4634_v38 = vsel %vm4372_vm1, %v12698_v23, 0.0  ;;  %v15434_v48 = vld [vmem:[#allocation35_spill] sm:$0xff] }
 0x41b   :  { %v4897_v4 = vmul.f32 %v12698_v23, %v12698_v23  ;;  %v4896_v6 = vmul.f32 %v15431_v52, %v15431_v52  ;;  %v5134_v60 = vadd.f32 %v5133_v9, %v5132_v17  ;;  %v4633_v46 = vadd.f32 %v4632_v61, %v15431_v52  ;;  %v15438_v17 = vld [vmem:[#allocation204_spill] sm:$0xff] }
 0x41c   :  { %5144 = vadd.xlane.f32.xlu1 %v5143_v10  ;;  %v5176_v5 = vadd.f32 %v12644_v35, %v4895_v47  ;;  %v4908_v7 = vmul.f32 %v15429_v24, %v15429_v24  ;;  %v4200_v16 = vadd.f32 %v7164_v27, %v15432_v30  ;;  %v4625_v8 = vsel %vm4372_vm1, %v12709_v26, 0.0  ;;  %v15440_v30 = vld [vmem:[#allocation205_spill] sm:$0xff] }
 0x41d   :  { %v4890_v0 = vmul.f32 %v12709_v26, %v12709_v26  ;;  %v4889_v50 = vmul.f32 %v15433_v62, %v15433_v62  ;;  %v4635_v63 = vadd.f32 %v4634_v38, %v4633_v46  ;;  %v4624_v54 = vadd.f32 %v4623_v25, %v15433_v62 }
 0x41e   :  { %5135 = vadd.xlane.f32.xlu0 %v5134_v60  ;;  %v5167_v35 = vadd.f32 %v12535_v18, %v4888_v59  ;;  %v4640_v20 = vadd.f32 %v12637_v2, %v15434_v48  ;;  %v4901_v61 = vmul.f32 %v15434_v48, %v15434_v48  ;;  %v12742_v47 = vadd.f32 %v12662_v14, %v4203_v57 }
 0x41f   :  { %v5178_v34 = vsel %vm4372_vm1, %v4897_v4, 0.0  ;;  %v4650_v27 = vadd.f32 %v4649_v12, %v15436_v44  ;;  %v4909_v9 = vmul.f32 %v15436_v44, %v15436_v44  ;;  %v4626_v25 = vadd.f32 %v4625_v8, %v4624_v54 }
 0x420   :  { %15435 = vst [vmem:[#allocation260_spill] sm:$0xff] %v12742_v47  ;;  %4636 = vadd.xlane.f32.xlu1 %v4635_v63  ;;  %v5177_v10 = vadd.f32 %v5176_v5, %v4896_v6  ;;  %v12749_v18 = vadd.f32 %v12605_v49, %v4200_v16  ;;  %v5169_v2 = vsel %vm4372_vm1, %v4890_v0, 0.0  ;;  %v5193_v59 = vadd.f32 %v5192_v51, %v4908_v7  ;;  %v15439_v6 = vld [vmem:[#allocation208_spill] sm:$0xff] }
 0x421   :  { %v4641_v36 = vadd.f32 %v4640_v20, %v15438_v17  ;;  %v4902_v14 = vmul.f32 %v15438_v17, %v15438_v17  ;;  %v5168_v12 = vadd.f32 %v5167_v35, %v4889_v50  ;;  %v5184_v38 = vadd.f32 %v12652_v56, %v4901_v61 }
 0x422   :  { %15437 = vst [vmem:[#allocation256_spill] sm:$0xff] %v12749_v18  ;;  %4627 = vadd.xlane.f32.xlu0 %v4626_v25  ;;  %v5179_v57 = vadd.f32 %v5178_v34, %v5177_v10  ;;  %v4652_v4 = vsel %vm4372_vm1, %v12742_v47, 0.0  ;;  %v4911_v49 = vmul.f32 %v12742_v47, %v12742_v47  ;;  %v4910_v60 = vmul.f32 %v15439_v6, %v15439_v6 }
 0x423   :  { %v5170_v51 = vadd.f32 %v5169_v2, %v5168_v12  ;;  %v4651_v46 = vadd.f32 %v4650_v27, %v15439_v6  ;;  %v5194_v5 = vadd.f32 %v5193_v59, %v4909_v9  ;;  %v4643_v7 = vsel %vm4372_vm1, %v12749_v18, 0.0 }
 0x424   :  { %5180 = vadd.xlane.f32.xlu1 %v5179_v57  ;;  %v4904_v56 = vmul.f32 %v12749_v18, %v12749_v18  ;;  %v4903_v16 = vmul.f32 %v15440_v30, %v15440_v30  ;;  %v4642_v0 = vadd.f32 %v4641_v36, %v15440_v30  ;;  %v5185_v50 = vadd.f32 %v5184_v38, %v4902_v14 }
 0x425   :  { %v4653_v8 = vadd.f32 %v4652_v4, %v4651_v46  ;;  %v5196_v63 = vsel %vm4372_vm1, %v4911_v49, 0.0  ;;  %v5195_v35 = vadd.f32 %v5194_v5, %v4910_v60 }
 0x426   :  { %5171 = vadd.xlane.f32.xlu0 %v5170_v51  ;;  %v4644_v54 = vadd.f32 %v4643_v7, %v4642_v0  ;;  %v5187_v20 = vsel %vm4372_vm1, %v4904_v56, 0.0  ;;  %v5186_v34 = vadd.f32 %v5185_v50, %v4903_v16 }
 0x427   :  { %v5197_v61 = vadd.f32 %v5196_v63, %v5195_v35 }
 0x428   :  { %4654 = vadd.xlane.f32.xlu1 %v4653_v8  ;;  %v5188_v27 = vadd.f32 %v5187_v20, %v5186_v34 }
 0x42a   :  { %4645 = vadd.xlane.f32.xlu0 %v4644_v54 }
 0x42c   :  { %5198 = vadd.xlane.f32.xlu1 %v5197_v61 }
 0x42e   :  { %5189 = vadd.xlane.f32.xlu0 %v5188_v27 }
 0x439   :  { %v4394_v9 = vpop.xlane.xlu1 %4393 }
 0x43a   :  { %v12772_v10 = vmul.f32 0.0012755102, %v4394_v9 }
 0x43b   :  { %v4376_v25 = vpop.xlane.xlu0 %4375 }
 0x43c   :  { %v5234_v14 = vmul.f32 %v12772_v10, %v12772_v10  ;;  %v12778_v57 = vmul.f32 0.0012755102, %v4376_v25 }
 0x43d   :  { %v4403_v2 = vpop.xlane.xlu1 %4402 }
 0x43e   :  { %v12774_v59 = vmul.f32 0.0012755102, %v4403_v2  ;;  %v5232_v46 = vmul.f32 %v12778_v57, %v12778_v57 }
 0x43f   :  { %v4938_v36 = vpop.xlane.xlu0 %4937 }
 0x440   :  { %v5202_v12 = vmul.f32 0.0012755102, %v4938_v36  ;;  %v5235_v4 = vmul.f32 %v12774_v59, %v12774_v59 }
 0x441   :  { %v4947_v38 = vpop.xlane.xlu1 %4946 }
 0x442   :  { %v5266_v49 = vsub.f32 %v5202_v12, %v5234_v14  ;;  %v5203_v60 = vmul.f32 0.0012755102, %v4947_v38 }
 0x443   :  { %v4920_v51 = vpop.xlane.xlu0 %4919 }
 0x444   :  { %v5298_v5 = vmax.f32 %v5266_v49, 0.0  ;;  %v5267_v7 = vsub.f32 %v5203_v60, %v5235_v4  ;;  %v5200_v56 = vmul.f32 0.0012755102, %v4920_v51 }
 0x445   :  { %v4929_v16 = vpop.xlane.xlu1 %4928 }
 0x446   :  { %v5362_v8 = vadd.f32 0.001, %v5298_v5  ;;  %v5299_v0 = vmax.f32 %v5267_v7, 0.0  ;;  %v5264_v50 = vsub.f32 %v5200_v56, %v5232_v46  ;;  %v5201_v27 = vmul.f32 0.0012755102, %v4929_v16  ;;  %v5330_v16 = vld [vmem:[%s14078_s2 + $0x10] sm:$0xff] }
 0x447   :  { %v4385_v63 = vpop.xlane.xlu0 %4384 }
 0x448   :  { %7735 = vrsqrt.f32 %v5362_v8  ;;  %v5363_v54 = vadd.f32 0.001, %v5299_v0  ;;  %v5296_v35 = vmax.f32 %v5264_v50, 0.0  ;;  %v12784_v20 = vmul.f32 0.0012755102, %v4385_v63 }
 0x449   :  { %v4439_v61 = vpop.xlane.xlu1 %4438 }
 0x44a   :  { %7737 = vrsqrt.f32 %v5363_v54  ;;  %v5360_v34 = vadd.f32 0.001, %v5296_v35  ;;  %v5233_v9 = vmul.f32 %v12784_v20, %v12784_v20  ;;  %v12788_v12 = vmul.f32 0.0012755102, %v4439_v61 }
 0x44b   :  { %v4430_v25 = vpop.xlane.xlu0 %4429 }
 0x44c   :  { %7739 = vrsqrt.f32 %v5360_v34  ;;  %v5265_v2 = vsub.f32 %v5201_v27, %v5233_v9  ;;  %v12790_v49 = vmul.f32 0.0012755102, %v4430_v25  ;;  %v5239_v46 = vmul.f32 %v12788_v12, %v12788_v12  ;;  %v5331_v25 = vld [vmem:[%s14078_s2 + $0x18] sm:$0xff] }
 0x44d   :  { %v4421_v36 = vpop.xlane.xlu1 %4420 }
 0x44e   :  { %v5297_v14 = vmax.f32 %v5265_v2, 0.0  ;;  %v12792_v60 = vmul.f32 0.0012755102, %v4421_v36  ;;  %v5238_v8 = vmul.f32 %v12790_v49, %v12790_v49 }
 0x44f   :  { %v4412_v38 = vpop.xlane.xlu0 %4411 }
 0x450   :  { %v5361_v4 = vadd.f32 0.001, %v5297_v14  ;;  %v12796_v7 = vmul.f32 0.0012755102, %v4412_v38  ;;  %v5237_v54 = vmul.f32 %v12792_v60, %v12792_v60 }
 0x451   :  { %v4983_v51 = vpop.xlane.xlu1 %4982 }
 0x452   :  { %7741 = vrsqrt.f32 %v5361_v4  ;;  %v5207_v5 = vmul.f32 0.0012755102, %v4983_v51  ;;  %v5236_v36 = vmul.f32 %v12796_v7, %v12796_v7 }
 0x453   :  { %v4974_v56 = vpop.xlane.xlu0 %4973 }
 0x454   :  { %v5271_v0 = vsub.f32 %v5207_v5, %v5239_v46  ;;  %v5206_v50 = vmul.f32 0.0012755102, %v4974_v56  ;;  %v5328_v5 = vld [vmem:[%s14078_s2] sm:$0xff] }
 0x455   :  { %v7736_v63 = vpop.eup %7735  ;;  %v4965_v35 = vpop.xlane.xlu1 %4964 }
 0x456   :  { %v5303_v61 = vmax.f32 %v5271_v0, 0.0  ;;  %v5270_v34 = vsub.f32 %v5206_v50, %v5238_v8  ;;  %v5205_v27 = vmul.f32 0.0012755102, %v4965_v35  ;;  %v5426_v9 = vmul.f32 %v7736_v63, %v5330_v16 }
 0x457   :  { %v7738_v2 = vpop.eup %7737  ;;  %v4956_v14 = vpop.xlane.xlu0 %4955 }
 0x458   :  { %v5367_v38 = vadd.f32 0.001, %v5303_v61  ;;  %v5302_v4 = vmax.f32 %v5270_v34, 0.0  ;;  %v5269_v51 = vsub.f32 %v5205_v27, %v5237_v54  ;;  %v5204_v46 = vmul.f32 0.0012755102, %v4956_v14  ;;  %5564 = vperm.xlu1 %7261, %v5426_v9   ;;  %v5458_v54 = vld [vmem:[%s14079_s3 + $0x10] sm:$0xff] }
 0x459   :  { %v7740_v56 = vpop.eup %7739  ;;  %v4475_v16 = vpop.xlane.xlu1 %4474  ;;  %v5427_v8 = vmul.f32 %v7738_v2, %v5331_v25  ;;  %v5490_v0 = vmul.f32 %v5426_v9, %v12772_v10  ;;  %v5459_v10 = vld [vmem:[%s14079_s3 + $0x18] sm:$0xff]  ;;  %v5329_v9 = vld [vmem:[%s14078_s2 + $0x8] sm:$0xff] }
 0x45a   :  { %7743 = vrsqrt.f32 %v5367_v38  ;;  %v5366_v50 = vadd.f32 0.001, %v5302_v4  ;;  %v5301_v63 = vmax.f32 %v5269_v51, 0.0  ;;  %v5268_v35 = vsub.f32 %v5204_v46, %v5236_v36 }
 0x45b   :  { %v4466_v18 = vpop.xlane.xlu0 %4465  ;;  %v5424_v30 = vmul.f32 %v7740_v56, %v5328_v5  ;;  %v5491_v61 = vmul.f32 %v5427_v8, %v12774_v59  ;;  %v12824_v25 = vmul.f32 0.0012755102, %v4475_v16  ;;  %v5522_v36 = vsub.f32 %v5458_v54, %v5490_v0  ;;  %v5457_v16 = vld [vmem:[%s14079_s3 + $0x8] sm:$0xff] }
 0x45c   :  { %7745 = vrsqrt.f32 %v5366_v50  ;;  %v5365_v34 = vadd.f32 0.001, %v5301_v63  ;;  %v5300_v27 = vmax.f32 %v5268_v35, 0.0  ;;  %5569 = vperm.xlu1 %7261, %v5427_v8   ;;  %v12828_v5 = vmul.f32 0.0012755102, %v4466_v18 }
 0x45d   :  { %5554 = vperm.xlu0 %7262, %v5424_v30   ;;  %v4457_v59 = vpop.xlane.xlu1 %4456  ;;  %v5523_v4 = vsub.f32 %v5459_v10, %v5491_v61  ;;  %v5243_v46 = vmul.f32 %v12824_v25, %v12824_v25  ;;  %v5488_v63 = vmul.f32 %v5424_v30, %v12778_v57  ;;  %v5456_v61 = vld [vmem:[%s14079_s3] sm:$0xff] }
 0x45e   :  { %7747 = vrsqrt.f32 %v5365_v34  ;;  %v5364_v2 = vadd.f32 0.001, %v5300_v27  ;;  %v12834_v0 = vmul.f32 0.0012755102, %v4457_v59  ;;  %v5242_v27 = vmul.f32 %v12828_v5, %v12828_v5 }
 0x45f   :  { %v7742_v14 = vpop.eup %7741  ;;  %v4448_v38 = vpop.xlane.xlu0 %4447  ;;  %v5520_v57 = vsub.f32 %v5456_v61, %v5488_v63  ;;  %v5463_v61 = vld [vmem:[%s14079_s3 + $0x38] sm:$0xff] }
 0x460   :  { %v5425_v51 = vmul.f32 %v7742_v14, %v5329_v9  ;;  %7749 = vrsqrt.f32 %v5364_v2  ;;  %5948 = vperm.xlu1 %7261, %v5522_v36   ;;  %v12842_v10 = vmul.f32 0.0012755102, %v4448_v38  ;;  %v5241_v9 = vmul.f32 %v12834_v0, %v12834_v0  ;;  %v5335_v2 = vld [vmem:[%s14078_s2 + $0x38] sm:$0xff]  ;;  %v5334_v38 = vld [vmem:[%s14078_s2 + $0x30] sm:$0xff] }
 0x461   :  { %5953 = vperm.xlu0 %7262, %v5523_v4   ;;  %v5019_v56 = vpop.xlane.xlu1 %5018 }
 0x462   :  { %v5489_v8 = vmul.f32 %v5425_v51, %v12784_v20  ;;  %v5211_v50 = vmul.f32 0.0012755102, %v5019_v56 }
 0x463   :  { %v5010_v35 = vpop.xlane.xlu0 %5009 }
 0x464   :  { %v5275_v18 = vsub.f32 %v5211_v50, %v5243_v46  ;;  %v5210_v54 = vmul.f32 0.0012755102, %v5010_v35  ;;  %5559 = vperm.xlu1 %7261, %v5425_v51   ;;  %v5521_v34 = vsub.f32 %v5457_v16, %v5489_v8  ;;  %v5240_v8 = vmul.f32 %v12842_v10, %v12842_v10 }
 0x465   :  { %v5001_v20 = vpop.xlane.xlu1 %5000 }
 0x466   :  { %v5307_v59 = vmax.f32 %v5275_v18, 0.0  ;;  %v5209_v30 = vmul.f32 0.0012755102, %v5001_v20  ;;  %5943 = vperm.xlu0 %7262, %v5521_v34   ;;  %v5274_v14 = vsub.f32 %v5210_v54, %v5242_v27  ;;  %v5333_v18 = vld [vmem:[%s14078_s2 + $0x28] sm:$0xff] }
 0x467   :  { %v7744_v36 = vpop.eup %7743  ;;  %v4992_v4 = vpop.xlane.xlu0 %4991 }
 0x468   :  { %v5371_v51 = vadd.f32 0.001, %v5307_v59  ;;  %v5273_v46 = vsub.f32 %v5209_v30, %v5241_v9  ;;  %v5208_v56 = vmul.f32 0.0012755102, %v4992_v4  ;;  %5938 = vperm.xlu1 %7261, %v5520_v57   ;;  %v5431_v63 = vmul.f32 %v7744_v36, %v5335_v2  ;;  %v5332_v57 = vld [vmem:[%s14078_s2 + $0x20] sm:$0xff] }
 0x469   :  { %v7746_v16 = vpop.eup %7745  ;;  %v4511_v50 = vpop.xlane.xlu1 %4510  ;;  %v5306_v34 = vmax.f32 %v5274_v14, 0.0  ;;  %v5461_v14 = vld [vmem:[%s14079_s3 + $0x28] sm:$0xff] }
 0x46a   :  { %7751 = vrsqrt.f32 %v5371_v51  ;;  %v5305_v35 = vmax.f32 %v5273_v46, 0.0  ;;  %v5272_v27 = vsub.f32 %v5208_v56, %v5240_v8  ;;  %v5430_v9 = vmul.f32 %v7746_v16, %v5334_v38 }
 0x46b   :  { %v7748_v54 = vpop.eup %7747  ;;  %v4502_v20 = vpop.xlane.xlu0 %4501  ;;  %v5495_v59 = vmul.f32 %v5431_v63, %v12788_v12  ;;  %v12864_v46 = vmul.f32 0.0012755102, %v4511_v50  ;;  %v5370_v56 = vadd.f32 0.001, %v5306_v34 }
 0x46c   :  { %v5369_v30 = vadd.f32 0.001, %v5305_v35  ;;  %5584 = vperm.xlu1 %7261, %v5430_v9   ;;  %v5429_v51 = vmul.f32 %v7748_v54, %v5333_v18  ;;  %v5304_v38 = vmax.f32 %v5272_v27, 0.0  ;;  %v12870_v35 = vmul.f32 0.0012755102, %v4502_v20 }
 0x46d   :  { %v7750_v2 = vpop.eup %7749  ;;  %v4493_v36 = vpop.xlane.xlu1 %4492  ;;  %v5527_v4 = vsub.f32 %v5463_v61, %v5495_v59  ;;  %v5247_v50 = vmul.f32 %v12864_v46, %v12864_v46  ;;  %v5494_v27 = vmul.f32 %v5430_v9, %v12790_v49  ;;  %v5339_v49 = vld [vmem:[%s14078_s2 + $0x58] sm:$0xff] }
 0x46e   :  { %7753 = vrsqrt.f32 %v5369_v30  ;;  %v5428_v16 = vmul.f32 %v7750_v2, %v5332_v57  ;;  %v5493_v8 = vmul.f32 %v5429_v51, %v12792_v60  ;;  %v12874_v18 = vmul.f32 0.0012755102, %v4493_v36  ;;  %v5462_v60 = vld [vmem:[%s14079_s3 + $0x30] sm:$0xff] }
 0x46f   :  { %5973 = vperm.xlu0 %7262, %v5527_v4   ;;  %v4484_v12 = vpop.xlane.xlu0 %4483  ;;  %7755 = vrsqrt.f32 %v5370_v56  ;;  %v5368_v59 = vadd.f32 0.001, %v5304_v38  ;;  %v5246_v20 = vmul.f32 %v12870_v35, %v12870_v35 }
 0x470   :  { %5574 = vperm.xlu1 %7261, %v5428_v16   ;;  %v5525_v61 = vsub.f32 %v5461_v14, %v5493_v8  ;;  %v12882_v2 = vmul.f32 0.0012755102, %v4484_v12  ;;  %v5526_v8 = vsub.f32 %v5462_v60, %v5494_v27  ;;  %v5492_v60 = vmul.f32 %v5428_v16, %v12796_v7 }
 0x471   :  { %v5055_v17 = vpop.xlane.xlu1 %5054  ;;  %7757 = vrsqrt.f32 %v5368_v59 }
 0x472   :  { %v5215_v54 = vmul.f32 0.0012755102, %v5055_v17  ;;  %v5245_v17 = vmul.f32 %v12874_v18, %v12874_v18 }
 0x473   :  { %5963 = vperm.xlu0 %7262, %v5525_v61   ;;  %v5046_v34 = vpop.xlane.xlu0 %5045 }
 0x474   :  { %v5279_v30 = vsub.f32 %v5215_v54, %v5247_v50  ;;  %v5214_v57 = vmul.f32 0.0012755102, %v5046_v34  ;;  %5589 = vperm.xlu1 %7261, %v5431_v63   ;;  %v5244_v63 = vmul.f32 %v12882_v2, %v12882_v2 }
 0x475   :  { %v5037_v36 = vpop.xlane.xlu1 %5036 }
 0x476   :  { %v5311_v4 = vmax.f32 %v5279_v30, 0.0  ;;  %v5213_v14 = vmul.f32 0.0012755102, %v5037_v36  ;;  %v5278_v56 = vsub.f32 %v5214_v57, %v5246_v20  ;;  %v5337_v36 = vld [vmem:[%s14078_s2 + $0x48] sm:$0xff] }
 0x477   :  { %v7752_v9 = vpop.eup %7751  ;;  %v5028_v38 = vpop.xlane.xlu0 %5027 }
 0x478   :  { %v5375_v61 = vadd.f32 0.001, %v5311_v4  ;;  %v5277_v50 = vsub.f32 %v5213_v14, %v5245_v17  ;;  %v5212_v12 = vmul.f32 0.0012755102, %v5028_v38  ;;  %5968 = vperm.xlu1 %7261, %v5526_v8   ;;  %v5435_v34 = vmul.f32 %v7752_v9, %v5339_v49  ;;  %v5460_v17 = vld [vmem:[%s14079_s3 + $0x20] sm:$0xff] }
 0x479   :  { %v4547_v54 = vpop.xlane.xlu1 %4546  ;;  %v5310_v59 = vmax.f32 %v5278_v56, 0.0  ;;  %v5467_v56 = vld [vmem:[%s14079_s3 + $0x58] sm:$0xff]  ;;  %v5524_v16 = vsub.f32 %v5460_v17, %v5492_v60  ;;  %v5336_v17 = vld [vmem:[%s14078_s2 + $0x40] sm:$0xff] }
 0x47a   :  { %7759 = vrsqrt.f32 %v5375_v61  ;;  %v5309_v30 = vmax.f32 %v5277_v50, 0.0  ;;  %v5276_v57 = vsub.f32 %v5212_v12, %v5244_v63  ;;  %5609 = vperm.xlu0 %7262, %v5435_v34   ;;  %v5499_v49 = vmul.f32 %v5435_v34, %v12824_v25 }
 0x47b   :  { %v7754_v48 = vpop.eup %7753  ;;  %v4538_v27 = vpop.xlane.xlu0 %4537  ;;  %v12899_v9 = vmul.f32 0.0012755102, %v4547_v54  ;;  %v5374_v38 = vadd.f32 0.001, %v5310_v59 }
 0x47c   :  { %v5373_v20 = vadd.f32 0.001, %v5309_v30  ;;  %5579 = vperm.xlu1 %7261, %v5429_v51   ;;  %v5433_v14 = vmul.f32 %v7754_v48, %v5337_v36  ;;  %v5308_v8 = vmax.f32 %v5276_v57, 0.0  ;;  %v7756_v61 = vpop.eup %7755  ;;  %v12904_v50 = vmul.f32 0.0012755102, %v4538_v27  ;;  %v5338_v48 = vld [vmem:[%s14078_s2 + $0x50] sm:$0xff] }
 0x47d   :  { %v4529_v4 = vpop.xlane.xlu1 %4528  ;;  %v5531_v51 = vsub.f32 %v5467_v56, %v5499_v49  ;;  %v5251_v63 = vmul.f32 %v12899_v9, %v12899_v9  ;;  %v5465_v30 = vld [vmem:[%s14079_s3 + $0x48] sm:$0xff]  ;;  %v5434_v57 = vmul.f32 %v7756_v61, %v5338_v48  ;;  %v5343_v61 = vld [vmem:[%s14078_s2 + $0x78] sm:$0xff] }
 0x47e   :  { %7761 = vrsqrt.f32 %v5373_v20  ;;  %5599 = vperm.xlu0 %7262, %v5433_v14   ;;  %v5497_v12 = vmul.f32 %v5433_v14, %v12834_v0  ;;  %v12912_v54 = vmul.f32 0.0012755102, %v4529_v4  ;;  %v5372_v36 = vadd.f32 0.001, %v5308_v8  ;;  %v7758_v27 = vpop.eup %7757 }
 0x47f   :  { %v4520_v7 = vpop.xlane.xlu0 %4519  ;;  %7763 = vrsqrt.f32 %v5374_v38  ;;  %v5250_v60 = vmul.f32 %v12904_v50, %v12904_v50 }
 0x480   :  { %5958 = vperm.xlu1 %7261, %v5524_v16   ;;  %v12922_v4 = vmul.f32 0.0012755102, %v4520_v7  ;;  %v5529_v49 = vsub.f32 %v5465_v30, %v5497_v12  ;;  %v5249_v56 = vmul.f32 %v12912_v54, %v12912_v54  ;;  %7765 = vrsqrt.f32 %v5372_v36  ;;  %v5466_v30 = vld [vmem:[%s14079_s3 + $0x50] sm:$0xff] }
 0x481   :  { %v5091_v25 = vpop.xlane.xlu1 %5090  ;;  %v5498_v7 = vmul.f32 %v5434_v57, %v12828_v5  ;;  %v5341_v5 = vld [vmem:[%s14078_s2 + $0x68] sm:$0xff] }
 0x482   :  { %v5219_v34 = vmul.f32 0.0012755102, %v5091_v25  ;;  %5993 = vperm.xlu0 %7262, %v5531_v51   ;;  %v5432_v51 = vmul.f32 %v7758_v27, %v5336_v17 }
 0x483   :  { %v5082_v59 = vpop.xlane.xlu0 %5081 }
 0x484   :  { %v5283_v0 = vsub.f32 %v5219_v34, %v5251_v63  ;;  %v5218_v20 = vmul.f32 0.0012755102, %v5082_v59  ;;  %5604 = vperm.xlu1 %7261, %v5434_v57   ;;  %v5248_v59 = vmul.f32 %v12922_v4, %v12922_v4 }
 0x485   :  { %v5073_v14 = vpop.xlane.xlu1 %5072 }
 0x486   :  { %v5315_v38 = vmax.f32 %v5283_v0, 0.0  ;;  %v5282_v8 = vsub.f32 %v5218_v20, %v5250_v60  ;;  %v5217_v16 = vmul.f32 0.0012755102, %v5073_v14  ;;  %5983 = vperm.xlu0 %7262, %v5529_v49   ;;  %v5530_v14 = vsub.f32 %v5466_v30, %v5498_v7  ;;  %v5471_v7 = vld [vmem:[%s14079_s3 + $0x78] sm:$0xff] }
 0x487   :  { %v7760_v48 = vpop.eup %7759  ;;  %v5064_v25 = vpop.xlane.xlu0 %5063  ;;  %v5496_v49 = vmul.f32 %v5432_v51, %v12842_v10 }
 0x488   :  { %v5379_v63 = vadd.f32 0.001, %v5315_v38  ;;  %v5281_v34 = vsub.f32 %v5217_v16, %v5249_v56  ;;  %v5216_v12 = vmul.f32 0.0012755102, %v5064_v25  ;;  %5594 = vperm.xlu1 %7261, %v5432_v51   ;;  %v5439_v0 = vmul.f32 %v7760_v48, %v5343_v61  ;;  %v5464_v38 = vld [vmem:[%s14079_s3 + $0x40] sm:$0xff] }
 0x489   :  { %v4583_v60 = vpop.xlane.xlu1 %4582  ;;  %v5314_v36 = vmax.f32 %v5282_v8, 0.0  ;;  %v5528_v51 = vsub.f32 %v5464_v38, %v5496_v49 }
 0x48a   :  { %7767 = vrsqrt.f32 %v5379_v63  ;;  %v5313_v20 = vmax.f32 %v5281_v34, 0.0  ;;  %v5280_v27 = vsub.f32 %v5216_v12, %v5248_v59  ;;  %5629 = vperm.xlu0 %7262, %v5439_v0   ;;  %v5503_v61 = vmul.f32 %v5439_v0, %v12864_v46  ;;  %v5342_v12 = vld [vmem:[%s14078_s2 + $0x70] sm:$0xff] }
 0x48b   :  { %v7762_v57 = vpop.eup %7761  ;;  %v4574_v17 = vpop.xlane.xlu0 %4573  ;;  %v5378_v48 = vadd.f32 0.001, %v5314_v36  ;;  %v12943_v25 = vmul.f32 0.0012755102, %v4583_v60 }
 0x48c   :  { %v5377_v56 = vadd.f32 0.001, %v5313_v20  ;;  %5988 = vperm.xlu1 %7261, %v5530_v14   ;;  %v5437_v8 = vmul.f32 %v7762_v57, %v5341_v5  ;;  %v5312_v63 = vmax.f32 %v5280_v27, 0.0  ;;  %v7764_v34 = vpop.eup %7763  ;;  %v12951_v30 = vmul.f32 0.0012755102, %v4574_v17  ;;  %v5469_v5 = vld [vmem:[%s14079_s3 + $0x68] sm:$0xff] }
 0x48d   :  { %v4565_v16 = vpop.xlane.xlu1 %4564  ;;  %v5535_v59 = vsub.f32 %v5471_v7, %v5503_v61  ;;  %v5255_v0 = vmul.f32 %v12943_v25, %v12943_v25  ;;  %v5438_v17 = vmul.f32 %v7764_v34, %v5342_v12  ;;  %v7766_v14 = vpop.eup %7765 }
 0x48e   :  { %7769 = vrsqrt.f32 %v5377_v56  ;;  %5619 = vperm.xlu0 %7262, %v5437_v8   ;;  %v5501_v60 = vmul.f32 %v5437_v8, %v12874_v18  ;;  %v12956_v36 = vmul.f32 0.0012755102, %v4565_v16  ;;  %v5376_v57 = vadd.f32 0.001, %v5312_v63  ;;  %v5340_v18 = vld [vmem:[%s14078_s2 + $0x60] sm:$0xff] }
 0x48f   :  { %v4556_v10 = vpop.xlane.xlu0 %4555  ;;  %7771 = vrsqrt.f32 %v5378_v48  ;;  %v5254_v38 = vmul.f32 %v12951_v30, %v12951_v30 }
 0x490   :  { %5978 = vperm.xlu1 %7261, %v5528_v51   ;;  %v12966_v16 = vmul.f32 0.0012755102, %v4556_v10  ;;  %v5533_v61 = vsub.f32 %v5469_v5, %v5501_v60  ;;  %v5253_v48 = vmul.f32 %v12956_v36, %v12956_v36  ;;  %v5347_v51 = vld [vmem:[%s14078_s2 + $0x98] sm:$0xff]  ;;  %7773 = vrsqrt.f32 %v5376_v57  ;;  %v5470_v5 = vld [vmem:[%s14079_s3 + $0x70] sm:$0xff] }
 0x491   :  { %v5127_v46 = vpop.xlane.xlu1 %5126 }
 0x492   :  { %v5223_v20 = vmul.f32 0.0012755102, %v5127_v46  ;;  %6013 = vperm.xlu0 %7262, %v5535_v59   ;;  %v5502_v46 = vmul.f32 %v5438_v17, %v12870_v35  ;;  %v5436_v59 = vmul.f32 %v7766_v14, %v5340_v18  ;;  %v5345_v35 = vld [vmem:[%s14078_s2 + $0x88] sm:$0xff] }
 0x493   :  { %v5118_v27 = vpop.xlane.xlu0 %5117 }
 0x494   :  { %v5287_v49 = vsub.f32 %v5223_v20, %v5255_v0  ;;  %v5222_v56 = vmul.f32 0.0012755102, %v5118_v27  ;;  %5624 = vperm.xlu1 %7261, %v5438_v17   ;;  %v5252_v27 = vmul.f32 %v12966_v16, %v12966_v16  ;;  %v5500_v18 = vmul.f32 %v5436_v59, %v12882_v2  ;;  %v5475_v2 = vld [vmem:[%s14079_s3 + $0x98] sm:$0xff] }
 0x495   :  { %v5109_v8 = vpop.xlane.xlu1 %5108 }
 0x496   :  { %v5319_v7 = vmax.f32 %v5287_v49, 0.0  ;;  %v5221_v63 = vmul.f32 0.0012755102, %v5109_v8  ;;  %v5286_v12 = vsub.f32 %v5222_v56, %v5254_v38  ;;  %6003 = vperm.xlu0 %7262, %v5533_v61   ;;  %v5534_v61 = vsub.f32 %v5470_v5, %v5502_v46 }
 0x497   :  { %v7768_v34 = vpop.eup %7767  ;;  %v5100_v10 = vpop.xlane.xlu0 %5099 }
 0x498   :  { %v5383_v0 = vadd.f32 0.001, %v5319_v7  ;;  %v5285_v20 = vsub.f32 %v5221_v63, %v5253_v48  ;;  %v5220_v60 = vmul.f32 0.0012755102, %v5100_v10  ;;  %5614 = vperm.xlu1 %7261, %v5436_v59   ;;  %v5443_v8 = vmul.f32 %v7768_v34, %v5347_v51  ;;  %v5468_v7 = vld [vmem:[%s14079_s3 + $0x60] sm:$0xff] }
 0x499   :  { %v4619_v49 = vpop.xlane.xlu1 %4618  ;;  %v5318_v14 = vmax.f32 %v5286_v12, 0.0 }
 0x49a   :  { %7775 = vrsqrt.f32 %v5383_v0  ;;  %v5317_v57 = vmax.f32 %v5285_v20, 0.0  ;;  %v5284_v56 = vsub.f32 %v5220_v60, %v5252_v27  ;;  %5649 = vperm.xlu0 %7262, %v5443_v8   ;;  %v5507_v34 = vmul.f32 %v5443_v8, %v12899_v9  ;;  %v5346_v60 = vld [vmem:[%s14078_s2 + $0x90] sm:$0xff] }
 0x49b   :  { %v7770_v17 = vpop.eup %7769  ;;  %v4610_v38 = vpop.xlane.xlu0 %4609  ;;  %v12987_v10 = vmul.f32 0.0012755102, %v4619_v49  ;;  %v5382_v59 = vadd.f32 0.001, %v5318_v14  ;;  %v5532_v20 = vsub.f32 %v5468_v7, %v5500_v18  ;;  %v5473_v14 = vld [vmem:[%s14079_s3 + $0x88] sm:$0xff] }
 0x49c   :  { %v5381_v48 = vadd.f32 0.001, %v5317_v57  ;;  %6008 = vperm.xlu1 %7261, %v5534_v61   ;;  %v5441_v51 = vmul.f32 %v7770_v17, %v5345_v35  ;;  %v7772_v12 = vpop.eup %7771  ;;  %v5316_v46 = vmax.f32 %v5284_v56, 0.0  ;;  %v12995_v5 = vmul.f32 0.0012755102, %v4610_v38 }
 0x49d   :  { %v4601_v63 = vpop.xlane.xlu1 %4600  ;;  %v5539_v27 = vsub.f32 %v5475_v2, %v5507_v34  ;;  %v5259_v8 = vmul.f32 %v12987_v10, %v12987_v10  ;;  %v5442_v17 = vmul.f32 %v7772_v12, %v5346_v60  ;;  %v7774_v38 = vpop.eup %7773 }
 0x49e   :  { %7777 = vrsqrt.f32 %v5381_v48  ;;  %5639 = vperm.xlu0 %7262, %v5441_v51   ;;  %v5505_v49 = vmul.f32 %v5441_v51, %v12912_v54  ;;  %v13000_v57 = vmul.f32 0.0012755102, %v4601_v63  ;;  %v5380_v56 = vadd.f32 0.001, %v5316_v46  ;;  %v5344_v54 = vld [vmem:[%s14078_s2 + $0x80] sm:$0xff]  ;;  %v5351_v46 = vld [vmem:[%s14078_s2 + $0xb8] sm:$0xff] }
 0x49f   :  { %v4592_v0 = vpop.xlane.xlu0 %4591  ;;  %7779 = vrsqrt.f32 %v5382_v59  ;;  %v5258_v7 = vmul.f32 %v12995_v5, %v12995_v5 }
 0x4a0   :  { %5998 = vperm.xlu1 %7261, %v5532_v20   ;;  %v13010_v63 = vmul.f32 0.0012755102, %v4592_v0  ;;  %v5537_v34 = vsub.f32 %v5473_v14, %v5505_v49  ;;  %v5257_v2 = vmul.f32 %v13000_v57, %v13000_v57  ;;  %v5506_v20 = vmul.f32 %v5442_v17, %v12904_v50  ;;  %v5474_v49 = vld [vmem:[%s14079_s3 + $0x90] sm:$0xff] }
 0x4a1   :  { %v5163_v9 = vpop.xlane.xlu1 %5162  ;;  %7781 = vrsqrt.f32 %v5380_v56  ;;  %v5349_v56 = vld [vmem:[%s14078_s2 + $0xa8] sm:$0xff] }
 0x4a2   :  { %v5227_v35 = vmul.f32 0.0012755102, %v5163_v9  ;;  %6033 = vperm.xlu0 %7262, %v5539_v27   ;;  %v5440_v27 = vmul.f32 %v7774_v38, %v5344_v54 }
 0x4a3   :  { %v5154_v18 = vpop.xlane.xlu0 %5153 }
 0x4a4   :  { %v5291_v61 = vsub.f32 %v5227_v35, %v5259_v8  ;;  %v5226_v48 = vmul.f32 0.0012755102, %v5154_v18  ;;  %5644 = vperm.xlu1 %7261, %v5442_v17   ;;  %v5256_v18 = vmul.f32 %v13010_v63, %v13010_v63  ;;  %v5538_v17 = vsub.f32 %v5474_v49, %v5506_v20 }
 0x4a5   :  { %v5145_v51 = vpop.xlane.xlu1 %5144 }
 0x4a6   :  { %v5323_v12 = vmax.f32 %v5291_v61, 0.0  ;;  %v5225_v59 = vmul.f32 0.0012755102, %v5145_v51  ;;  %v5290_v9 = vsub.f32 %v5226_v48, %v5258_v7  ;;  %6023 = vperm.xlu0 %7262, %v5537_v34  }
 0x4a7   :  { %v7776_v60 = vpop.eup %7775  ;;  %v5136_v0 = vpop.xlane.xlu0 %5135 }
 0x4a8   :  { %v5387_v8 = vadd.f32 0.001, %v5323_v12  ;;  %v5289_v35 = vsub.f32 %v5225_v59, %v5257_v2  ;;  %v5224_v14 = vmul.f32 0.0012755102, %v5136_v0  ;;  %5634 = vperm.xlu1 %7261, %v5440_v27   ;;  %v5447_v51 = vmul.f32 %v7776_v60, %v5351_v46  ;;  %v5472_v59 = vld [vmem:[%s14079_s3 + $0x80] sm:$0xff] }
 0x4a9   :  { %v4637_v61 = vpop.xlane.xlu1 %4636  ;;  %v5322_v48 = vmax.f32 %v5290_v9, 0.0  ;;  %v5504_v2 = vmul.f32 %v5440_v27, %v12922_v4  ;;  %v5479_v4 = vld [vmem:[%s14079_s3 + $0xb8] sm:$0xff] }
 0x4aa   :  { %7783 = vrsqrt.f32 %v5387_v8  ;;  %v5321_v50 = vmax.f32 %v5289_v35, 0.0  ;;  %v5288_v54 = vsub.f32 %v5224_v14, %v5256_v18  ;;  %v13026_v7 = vmul.f32 0.0012755102, %v4637_v61  ;;  %5669 = vperm.xlu0 %7262, %v5447_v51  }
 0x4ab   :  { %v7778_v38 = vpop.eup %7777  ;;  %v4628_v34 = vpop.xlane.xlu0 %4627  ;;  %v5511_v0 = vmul.f32 %v5447_v51, %v12943_v25  ;;  %v5386_v27 = vadd.f32 0.001, %v5322_v48  ;;  %v5536_v14 = vsub.f32 %v5472_v59, %v5504_v2  ;;  %v5350_v25 = vld [vmem:[%s14078_s2 + $0xb0] sm:$0xff] }
 0x4ac   :  { %v5385_v12 = vadd.f32 0.001, %v5321_v50  ;;  %v13032_v46 = vmul.f32 0.0012755102, %v4628_v34  ;;  %6028 = vperm.xlu1 %7261, %v5538_v17   ;;  %v5445_v60 = vmul.f32 %v7778_v38, %v5349_v56  ;;  %v5261_v9 = vmul.f32 %v13026_v7, %v13026_v7  ;;  %v7780_v18 = vpop.eup %7779  ;;  %v5477_v34 = vld [vmem:[%s14079_s3 + $0xa8] sm:$0xff] }
 0x4ad   :  { %v5181_v20 = vpop.xlane.xlu1 %5180  ;;  %v5320_v8 = vmax.f32 %v5288_v54, 0.0  ;;  %v5543_v56 = vsub.f32 %v5479_v4, %v5511_v0 }
 0x4ae   :  { %7785 = vrsqrt.f32 %v5385_v12  ;;  %v5229_v49 = vmul.f32 0.0012755102, %v5181_v20  ;;  %5659 = vperm.xlu0 %7262, %v5445_v60   ;;  %v5260_v51 = vmul.f32 %v13032_v46, %v13032_v46  ;;  %v5509_v38 = vmul.f32 %v5445_v60, %v12956_v36  ;;  %v5348_v36 = vld [vmem:[%s14078_s2 + $0xa0] sm:$0xff] }
 0x4af   :  { %v5172_v35 = vpop.xlane.xlu0 %5171  ;;  %7787 = vrsqrt.f32 %v5386_v27  ;;  %v5384_v2 = vadd.f32 0.001, %v5320_v8  ;;  %v5446_v20 = vmul.f32 %v7780_v18, %v5350_v25  ;;  %v5355_v27 = vld [vmem:[%s14078_s2 + $0xd8] sm:$0xff] }
 0x4b0   :  { %v5293_v61 = vsub.f32 %v5229_v49, %v5261_v9  ;;  %v5228_v50 = vmul.f32 0.0012755102, %v5172_v35  ;;  %6018 = vperm.xlu1 %7261, %v5536_v14   ;;  %v7782_v9 = vpop.eup %7781  ;;  %v5541_v4 = vsub.f32 %v5477_v34, %v5509_v38  ;;  %v5353_v34 = vld [vmem:[%s14078_s2 + $0xc8] sm:$0xff] }
 0x4b1   :  { %v4655_v17 = vpop.xlane.xlu1 %4654  ;;  %7789 = vrsqrt.f32 %v5384_v2  ;;  %v5510_v25 = vmul.f32 %v5446_v20, %v12951_v30 }
 0x4b2   :  { %v5325_v48 = vmax.f32 %v5293_v61, 0.0  ;;  %v13046_v54 = vmul.f32 0.0012755102, %v4655_v17  ;;  %v5292_v12 = vsub.f32 %v5228_v50, %v5260_v51  ;;  %6053 = vperm.xlu0 %7262, %v5543_v56   ;;  %v5444_v50 = vmul.f32 %v7782_v9, %v5348_v36 }
 0x4b3   :  { %v4646_v59 = vpop.xlane.xlu0 %4645 }
 0x4b4   :  { %v13051_v49 = vmul.f32 0.0012755102, %v4646_v59  ;;  %v5389_v60 = vadd.f32 0.001, %v5325_v48  ;;  %5664 = vperm.xlu1 %7261, %v5446_v20   ;;  %v5263_v8 = vmul.f32 %v13046_v54, %v13046_v54  ;;  %v5324_v18 = vmax.f32 %v5292_v12, 0.0  ;;  %v5478_v48 = vld [vmem:[%s14079_s3 + $0xb0] sm:$0xff] }
 0x4b5   :  { %v5199_v0 = vpop.xlane.xlu1 %5198  ;;  %v5542_v20 = vsub.f32 %v5478_v48, %v5510_v25  ;;  %v5508_v9 = vmul.f32 %v5444_v50, %v12966_v16  ;;  %v5357_v48 = vld [vmem:[%s14078_s2 + $0xe8] sm:$0xff] }
 0x4b6   :  { %v5231_v35 = vmul.f32 0.0012755102, %v5199_v0  ;;  %6043 = vperm.xlu0 %7262, %v5541_v4   ;;  %v5262_v51 = vmul.f32 %v13051_v49, %v13051_v49  ;;  %7791 = vrsqrt.f32 %v5389_v60  ;;  %v5388_v30 = vadd.f32 0.001, %v5324_v18  ;;  %v5476_v60 = vld [vmem:[%s14079_s3 + $0xa0] sm:$0xff]  ;;  %v5354_v18 = vld [vmem:[%s14078_s2 + $0xd0] sm:$0xff] }
 0x4b7   :  { %v7784_v14 = vpop.eup %7783  ;;  %v5190_v61 = vpop.xlane.xlu0 %5189 }
 0x4b8   :  { %v5295_v17 = vsub.f32 %v5231_v35, %v5263_v8  ;;  %v5230_v56 = vmul.f32 0.0012755102, %v5190_v61  ;;  %v5451_v38 = vmul.f32 %v7784_v14, %v5355_v27  ;;  %5654 = vperm.xlu1 %7261, %v5444_v50   ;;  %v5483_v35 = vld [vmem:[%s14079_s3 + $0xd8] sm:$0xff]  ;;  %v5540_v14 = vsub.f32 %v5476_v60, %v5508_v9  ;;  %v5358_v60 = vld [vmem:[%s14078_s2 + $0xf0] sm:$0xff] }
 0x4ba   :  { %v5327_v2 = vmax.f32 %v5295_v17, 0.0  ;;  %v5294_v12 = vsub.f32 %v5230_v56, %v5262_v51  ;;  %5689 = vperm.xlu0 %7262, %v5451_v38   ;;  %v5515_v27 = vmul.f32 %v5451_v38, %v12987_v10  ;;  %v5481_v10 = vld [vmem:[%s14079_s3 + $0xc8] sm:$0xff]  ;;  %v5352_v17 = vld [vmem:[%s14078_s2 + $0xc0] sm:$0xff] }
 0x4bb   :  { %v7786_v59 = vpop.eup %7785 }
 0x4bc   :  { %v5391_v36 = vadd.f32 0.001, %v5327_v2  ;;  %v5326_v0 = vmax.f32 %v5294_v12, 0.0  ;;  %v5449_v4 = vmul.f32 %v7786_v59, %v5353_v34  ;;  %6048 = vperm.xlu1 %7261, %v5542_v20   ;;  %v7788_v16 = vpop.eup %7787  ;;  %v5547_v61 = vsub.f32 %v5483_v35, %v5515_v27  ;;  %v5482_v2 = vld [vmem:[%s14079_s3 + $0xd0] sm:$0xff]  ;;  %v5359_v59 = vld [vmem:[%s14078_s2 + $0xf8] sm:$0xff] }
 0x4bd   :  { %v5450_v25 = vmul.f32 %v7788_v16, %v5354_v18 }
 0x4be   :  { %7793 = vrsqrt.f32 %v5391_v36  ;;  %v5390_v8 = vadd.f32 0.001, %v5326_v0  ;;  %5679 = vperm.xlu0 %7262, %v5449_v4   ;;  %v5513_v50 = vmul.f32 %v5449_v4, %v13000_v57  ;;  %v7790_v51 = vpop.eup %7789  ;;  %v5356_v4 = vld [vmem:[%s14078_s2 + $0xe0] sm:$0xff] }
 0x4bf   :  { %7795 = vrsqrt.f32 %v5388_v30  ;;  %v5448_v57 = vmul.f32 %v7790_v51, %v5352_v17  ;;  %v5514_v34 = vmul.f32 %v5450_v25, %v12995_v5  ;;  %v5480_v5 = vld [vmem:[%s14079_s3 + $0xc0] sm:$0xff]  ;;  %v13126_v17 = vld [vmem:[%s14079_s3 + $0xf0] sm:$0xff] }
 0x4c0   :  { %7797 = vrsqrt.f32 %v5390_v8  ;;  %6038 = vperm.xlu1 %7261, %v5540_v14   ;;  %v5545_v56 = vsub.f32 %v5481_v10, %v5513_v50  ;;  %v5487_v50 = vld [vmem:[%s14079_s3 + $0xf8] sm:$0xff]  ;;  %v5484_v51 = vld [vmem:[%s14079_s3 + $0xe0] sm:$0xff] }
 0x4c1   :  { %v5546_v20 = vsub.f32 %v5482_v2, %v5514_v34  ;;  %v5512_v9 = vmul.f32 %v5448_v57, %v13010_v63  ;;  %v5485_v63 = vld [vmem:[%s14079_s3 + $0xe8] sm:$0xff]  ;;  %v15443_v2 = vld [vmem:[#allocation136_spill] sm:$0xff] }
 0x4c2   :  { %6073 = vperm.xlu0 %7262, %v5547_v61  }
 0x4c3   :  { %v7792_v38 = vpop.eup %7791  ;;  %v5544_v35 = vsub.f32 %v5480_v5, %v5512_v9 }
 0x4c4   :  { %5684 = vperm.xlu1 %7261, %v5450_v25   ;;  %v5453_v12 = vmul.f32 %v7792_v38, %v5357_v48 }
 0x4c6   :  { %6063 = vperm.xlu0 %7262, %v5545_v56   ;;  %v5517_v8 = vmul.f32 %v5453_v12, %v13026_v7  ;;  %v15441_v56 = vld [vmem:[#allocation49_spill] sm:$0xff] }
 0x4c8   :  { %5674 = vperm.xlu1 %7261, %v5448_v57   ;;  %v5549_v18 = vsub.f32 %v5485_v63, %v5517_v8  ;;  %v15449_v63 = vld [vmem:[#allocation53_spill] sm:$0xff] }
 0x4ca   :  { %5699 = vperm.xlu0 %7262, %v5453_v12  }
 0x4cb   :  { %v7794_v30 = vpop.eup %7793 }
 0x4cc   :  { %v7796_v36 = vpop.eup %7795  ;;  %v5455_v0 = vmul.f32 %v7794_v30, %v5359_v59  ;;  %6068 = vperm.xlu1 %7261, %v5546_v20   ;;  %v15444_v59 = vld [vmem:[#allocation137_spill] sm:$0xff]  ;;  %v15445_v20 = vld [vmem:[#allocation127_spill] sm:$0xff] }
 0x4cd   :  { %v7798_v27 = vpop.eup %7797  ;;  %v5452_v14 = vmul.f32 %v7796_v36, %v5356_v4  ;;  %v15447_v4 = vld [vmem:[#allocation211_spill] sm:$0xff] }
 0x4ce   :  { %5709 = vperm.xlu0 %7262, %v5455_v0   ;;  %v5454_v16 = vmul.f32 %v7798_v27, %v5358_v60  ;;  %v5519_v61 = vmul.f32 %v5455_v0, %v13046_v54  ;;  %v15446_v0 = vld [vmem:[#allocation128_spill] sm:$0xff] }
 0x4cf   :  { %v5516_v7 = vmul.f32 %v5452_v14, %v13032_v46  ;;  %v15448_v27 = vld [vmem:[#allocation52_spill] sm:$0xff] }
 0x4d0   :  { %6058 = vperm.xlu1 %7261, %v5544_v35   ;;  %v13118_v25 = vmul.f32 %v5454_v16, %v13051_v49  ;;  %v5551_v54 = vsub.f32 %v5487_v50, %v5519_v61  ;;  %v15442_v49 = vld [vmem:[#allocation50_spill] sm:$0xff] }
 0x4d1   :  { %v5548_v57 = vsub.f32 %v5484_v51, %v5516_v7  ;;  %v15451_v61 = vld [vmem:[#allocation46_spill] sm:$0xff]  ;;  %v15452_v7 = vld [vmem:[#allocation51_spill] sm:$0xff] }
 0x4d2   :  { %6083 = vperm.xlu0 %7262, %v5549_v18   ;;  %v5550_v46 = vsub.f32 %v13126_v17, %v13118_v25  ;;  %v15453_v51 = vld [vmem:[#allocation138_spill] sm:$0xff] }
 0x4d3   :  { %v5565_v10 = vpop.permute.xlu1 %5564 }
 0x4d4   :  { %5694 = vperm.xlu1 %7261, %v5452_v14   ;;  %v5726_v38 = vmul.f32 %v5565_v10, %v15441_v56  ;;  %v5727_v34 = vmul.f32 %v5565_v10, %v15442_v49  ;;  %v5728_v12 = vmul.f32 %v5565_v10, %v15443_v2  ;;  %v5729_v30 = vmul.f32 %v5565_v10, %v15444_v59  ;;  %v15450_v14 = vld [vmem:[#allocation43_spill] sm:$0xff]  ;;  %v15456_v2 = vld [vmem:[#allocation169_spill] sm:$0xff] }
 0x4d5   :  { %v5730_v9 = vmul.f32 %v5565_v10, %v15445_v20  ;;  %v5731_v5 = vmul.f32 %v5565_v10, %v15446_v0  ;;  %v5732_v60 = vmul.f32 %v5565_v10, %v15447_v4  ;;  %v15455_v56 = vld [vmem:[#allocation131_spill] sm:$0xff] }
 0x4d6   :  { %6093 = vperm.xlu0 %7262, %v5551_v54   ;;  %v15454_v54 = vld [vmem:[#allocation45_spill] sm:$0xff]  ;;  %v15457_v59 = vld [vmem:[#allocation219_spill] sm:$0xff] }
 0x4d7   :  { %v5570_v48 = vpop.permute.xlu1 %5569 }
 0x4d8   :  { %v13135_v36 = vpop.permute.xlu0 %5554  ;;  %v5733_v8 = vmul.f32 %v5570_v48, %v15448_v27  ;;  %v5734_v35 = vmul.f32 %v5570_v48, %v15449_v63  ;;  %5704 = vperm.xlu1 %7261, %v5454_v16   ;;  %v5735_v25 = vmul.f32 %v5570_v48, %v15452_v7  ;;  %v5736_v17 = vmul.f32 %v5570_v48, %v15453_v51 }
 0x4d9   :  { %v13143_v18 = vmul.f32 %v13135_v36, %v15450_v14  ;;  %v13147_v50 = vmul.f32 %v13135_v36, %v15451_v61  ;;  %v13153_v10 = vmul.f32 %v13135_v36, %v15454_v54  ;;  %v5737_v49 = vmul.f32 %v5570_v48, %v15455_v56 }
 0x4da   :  { %v5738_v16 = vmul.f32 %v5570_v48, %v15456_v2  ;;  %v5739_v20 = vmul.f32 %v5570_v48, %v15457_v59 }
 0x4db   :  { %v5949_v0 = vpop.permute.xlu1 %5948 }
 0x4dc   :  { %v5954_v4 = vpop.permute.xlu0 %5953  ;;  %v6110_v27 = vadd.f32 %v5949_v0, %v5726_v38  ;;  %v6111_v63 = vadd.f32 %v5949_v0, %v5727_v34  ;;  %v6112_v14 = vadd.f32 %v5949_v0, %v5728_v12  ;;  %v6113_v61 = vadd.f32 %v5949_v0, %v5729_v30  ;;  %6078 = vperm.xlu1 %7261, %v5548_v57   ;;  %v15458_v38 = vld [vmem:[#allocation44_spill] sm:$0xff] }
 0x4dd   :  { %v6117_v26 = vadd.f32 %v5954_v4, %v5733_v8  ;;  %v6118_v7 = vadd.f32 %v5954_v4, %v5734_v35  ;;  %v6119_v62 = vadd.f32 %v5954_v4, %v5735_v25  ;;  %v6120_v51 = vadd.f32 %v5954_v4, %v5736_v17  ;;  %v15459_v57 = vld [vmem:[#allocation120_spill] sm:$0xff]  ;;  %v15462_v8 = vld [vmem:[#allocation134_spill] sm:$0xff]  ;;  %v15464_v17 = vld [vmem:[#allocation121_spill] sm:$0xff] }
 0x4de   :  { %v6121_v22 = vadd.f32 %v5954_v4, %v5737_v49  ;;  %v6122_v54 = vadd.f32 %v5954_v4, %v5738_v16  ;;  %v6123_v47 = vadd.f32 %v5954_v4, %v5739_v20  ;;  %v6114_v6 = vadd.f32 %v5949_v0, %v5730_v9  ;;  %6334 = vst [vmem:[%s14080_s4 + $0x70] sm:$0xff] %v6110_v27  ;;  %v15466_v49 = vld [vmem:[#allocation124_spill] sm:$0xff]  ;;  %v15467_v16 = vld [vmem:[#allocation221_spill] sm:$0xff] }
 0x4df   :  { %6335 = vst [vmem:[%s14080_s4 + $0x78] sm:$0xff] %v6111_v63  ;;  %6336 = vst [vmem:[%s14080_s4 + $0x80] sm:$0xff] %v6112_v14  ;;  %v5715_v48 = vmul.f32 %v13135_v36, %v15458_v38  ;;  %v5716_v34 = vmul.f32 %v13135_v36, %v15459_v57  ;;  %v6115_v12 = vadd.f32 %v5949_v0, %v5731_v5  ;;  %v5560_v9 = vpop.permute.xlu1 %5559  ;;  %v15461_v5 = vld [vmem:[#allocation48_spill] sm:$0xff]  ;;  %v15468_v14 = vld [vmem:[#allocation229_spill] sm:$0xff] }
 0x4e0   :  { %6337 = vst [vmem:[%s14080_s4 + $0x88] sm:$0xff] %v6113_v61  ;;  %6341 = vst [vmem:[%s14080_s4 + $0xa8] sm:$0xff] %v6117_v26  ;;  %v6116_v30 = vadd.f32 %v5949_v0, %v5732_v60  ;;  %v15460_v26 = vld [vmem:[#allocation47_spill] sm:$0xff]  ;;  %v5720_v60 = vmul.f32 %v5560_v9, %v15461_v5  ;;  %v5721_v35 = vmul.f32 %v5560_v9, %v15462_v8  ;;  %6088 = vperm.xlu1 %7261, %v5550_v46  }
 0x4e1   :  { %6342 = vst [vmem:[%s14080_s4 + $0xb0] sm:$0xff] %v6118_v7  ;;  %6343 = vst [vmem:[%s14080_s4 + $0xb8] sm:$0xff] %v6119_v62  ;;  %v5719_v62 = vmul.f32 %v5560_v9, %v15460_v26  ;;  %v5717_v56 = vmul.f32 %v13135_v36, %v15464_v17  ;;  %v5724_v2 = vmul.f32 %v5560_v9, %v15466_v49  ;;  %v5944_v20 = vpop.permute.xlu0 %5943  ;;  %v15475_v49 = vld [vmem:[#allocation63_spill] sm:$0xff] }
 0x4e2   :  { %6344 = vst [vmem:[%s14080_s4 + $0xc0] sm:$0xff] %v6120_v51  ;;  %6345 = vst [vmem:[%s14080_s4 + $0xc8] sm:$0xff] %v6121_v22  ;;  %v15463_v22 = vld [vmem:[#allocation135_spill] sm:$0xff]  ;;  %v5725_v59 = vmul.f32 %v5560_v9, %v15467_v16  ;;  %v6104_v4 = vadd.f32 %v5944_v20, %v5720_v60  ;;  %v6105_v27 = vadd.f32 %v5944_v20, %v5721_v35  ;;  %v15471_v60 = vld [vmem:[#allocation142_spill] sm:$0xff] }
 0x4e3   :  { %6346 = vst [vmem:[%s14080_s4 + $0xd0] sm:$0xff] %v6122_v54  ;;  %6347 = vst.msk [vmem:[%s14080_s4 + $0xd8] sm:$0xff] %vm4372_vm1, %v6123_v47  ;;  %v5722_v25 = vmul.f32 %v5560_v9, %v15463_v22  ;;  %v15465_v47 = vld [vmem:[#allocation123_spill] sm:$0xff]  ;;  %v6103_v0 = vadd.f32 %v5944_v20, %v5719_v62  ;;  %v5718_v61 = vmul.f32 %v13135_v36, %v15468_v14  ;;  %v5939_v38 = vpop.permute.xlu1 %5938  ;;  %v15470_v62 = vld [vmem:[#allocation61_spill] sm:$0xff] }
 0x4e4   :  { %6338 = vst [vmem:[%s14080_s4 + $0x90] sm:$0xff] %v6114_v6  ;;  %6339 = vst [vmem:[%s14080_s4 + $0x98] sm:$0xff] %v6115_v12  ;;  %v5723_v6 = vmul.f32 %v5560_v9, %v15465_v47  ;;  %v6108_v51 = vadd.f32 %v5944_v20, %v5724_v2  ;;  %v6109_v54 = vadd.f32 %v5944_v20, %v5725_v59  ;;  %v15472_v35 = vld [vmem:[#allocation144_spill] sm:$0xff]  ;;  %v15474_v47 = vld [vmem:[#allocation62_spill] sm:$0xff] }
 0x4e5   :  { %6340 = vst.msk [vmem:[%s14080_s4 + $0xa0] sm:$0xff] %vm4372_vm1, %v6116_v30  ;;  %v6106_v63 = vadd.f32 %v5944_v20, %v5722_v25  ;;  %6327 = vst [vmem:[%s14080_s4 + $0x38] sm:$0xff] %v6103_v0  ;;  %v6096_v46 = vadd.f32 %v5939_v38, %v13143_v18  ;;  %v6097_v36 = vadd.f32 %v5939_v38, %v13147_v50  ;;  %v15473_v25 = vld [vmem:[#allocation174_spill] sm:$0xff]  ;;  %v15476_v16 = vld [vmem:[#allocation145_spill] sm:$0xff] }
 0x4e6   :  { %v6107_v7 = vadd.f32 %v5944_v20, %v5723_v6  ;;  %6328 = vst [vmem:[%s14080_s4 + $0x40] sm:$0xff] %v6104_v4  ;;  %6329 = vst [vmem:[%s14080_s4 + $0x48] sm:$0xff] %v6105_v27  ;;  %v6098_v57 = vadd.f32 %v5939_v38, %v13153_v10  ;;  %v6099_v12 = vadd.f32 %v5939_v38, %v5715_v48  ;;  %v15477_v20 = vld [vmem:[#allocation146_spill] sm:$0xff]  ;;  %v15478_v4 = vld [vmem:[#allocation143_spill] sm:$0xff] }
 0x4e7   :  { %6330 = vst [vmem:[%s14080_s4 + $0x50] sm:$0xff] %v6106_v63  ;;  %6332 = vst [vmem:[%s14080_s4 + $0x60] sm:$0xff] %v6108_v51  ;;  %v6100_v30 = vadd.f32 %v5939_v38, %v5716_v34  ;;  %v6101_v18 = vadd.f32 %v5939_v38, %v5717_v56  ;;  %v6102_v9 = vadd.f32 %v5939_v38, %v5718_v61  ;;  %v5585_v50 = vpop.permute.xlu1 %5584  ;;  %v15469_v34 = vld [vmem:[#allocation59_spill] sm:$0xff]  ;;  %v15479_v14 = vld [vmem:[#allocation168_spill] sm:$0xff] }
 0x4e8   :  { %6331 = vst [vmem:[%s14080_s4 + $0x58] sm:$0xff] %v6107_v7  ;;  %6333 = vst.msk [vmem:[%s14080_s4 + $0x68] sm:$0xff] %vm4372_vm1, %v6109_v54  ;;  %v5754_v26 = vmul.f32 %v5585_v50, %v15469_v34  ;;  %v5755_v5 = vmul.f32 %v5585_v50, %v15470_v62  ;;  %v5756_v8 = vmul.f32 %v5585_v50, %v15471_v60  ;;  %v15480_v7 = vld [vmem:[#allocation129_spill] sm:$0xff] }
 0x4e9   :  { %6320 = vst [vmem:[%s14080_s4] sm:$0xff] %v6096_v46  ;;  %6321 = vst [vmem:[%s14080_s4 + $0x8] sm:$0xff] %v6097_v36  ;;  %v5757_v22 = vmul.f32 %v5585_v50, %v15472_v35  ;;  %v5758_v17 = vmul.f32 %v5585_v50, %v15473_v25  ;;  %v5759_v27 = vmul.f32 %v5585_v50, %v15478_v4  ;;  %v15481_v54 = vld [vmem:[#allocation213_spill] sm:$0xff]  ;;  %v15488_v4 = vld [vmem:[#allocation171_spill] sm:$0xff] }
 0x4ea   :  { %6322 = vst [vmem:[%s14080_s4 + $0x10] sm:$0xff] %v6098_v57  ;;  %6323 = vst [vmem:[%s14080_s4 + $0x18] sm:$0xff] %v6099_v12  ;;  %v5974_v10 = vpop.permute.xlu0 %5973 }
 0x4eb   :  { %6324 = vst [vmem:[%s14080_s4 + $0x20] sm:$0xff] %v6100_v30  ;;  %6325 = vst [vmem:[%s14080_s4 + $0x28] sm:$0xff] %v6101_v18  ;;  %v5575_v48 = vpop.permute.xlu1 %5574  ;;  %v15482_v30 = vld [vmem:[#allocation89_spill] sm:$0xff] }
 0x4ec   :  { %6326 = vst.msk [vmem:[%s14080_s4 + $0x30] sm:$0xff] %vm4372_vm1, %v6102_v9  ;;  %v5760_v18 = vmul.f32 %v5585_v50, %v15482_v30  ;;  %v15494_v30 = vld [vmem:[#allocation74_spill] sm:$0xff] }
 0x4ee   :  { %v5964_v63 = vpop.permute.xlu0 %5963 }
 0x4ef   :  { %v5590_v56 = vpop.permute.xlu1 %5589 }
 0x4f0   :  { %v5761_v6 = vmul.f32 %v5590_v56, %v15474_v47  ;;  %v5762_v2 = vmul.f32 %v5590_v56, %v15475_v49  ;;  %v5763_v59 = vmul.f32 %v5590_v56, %v15476_v16  ;;  %v5764_v0 = vmul.f32 %v5590_v56, %v15477_v20  ;;  %v15487_v20 = vld [vmem:[#allocation170_spill] sm:$0xff] }
 0x4f1   :  { %v5765_v61 = vmul.f32 %v5590_v56, %v15479_v14  ;;  %v5766_v51 = vmul.f32 %v5590_v56, %v15480_v7  ;;  %v5767_v38 = vmul.f32 %v5590_v56, %v15481_v54  ;;  %v15489_v14 = vld [vmem:[#allocation230_spill] sm:$0xff] }
 0x4f2   :  { %v6145_v46 = vadd.f32 %v5974_v10, %v5761_v6  ;;  %v6146_v36 = vadd.f32 %v5974_v10, %v5762_v2  ;;  %v6147_v57 = vadd.f32 %v5974_v10, %v5763_v59  ;;  %v6148_v12 = vadd.f32 %v5974_v10, %v5764_v0  ;;  %v15485_v2 = vld [vmem:[#allocation139_spill] sm:$0xff] }
 0x4f3   :  { %v6149_v9 = vadd.f32 %v5974_v10, %v5765_v61  ;;  %v6150_v34 = vadd.f32 %v5974_v10, %v5766_v51  ;;  %v6151_v62 = vadd.f32 %v5974_v10, %v5767_v38  ;;  %v5969_v60 = vpop.permute.xlu1 %5968  ;;  %v5742_v16 = vmul.f32 %v5575_v48, %v15485_v2  ;;  %v15490_v51 = vld [vmem:[#allocation57_spill] sm:$0xff]  ;;  %v15491_v38 = vld [vmem:[#allocation58_spill] sm:$0xff] }
 0x4f4   :  { %6369 = vst [vmem:[%s14080_s4 + $0x188] sm:$0xff] %v6145_v46  ;;  %6370 = vst [vmem:[%s14080_s4 + $0x190] sm:$0xff] %v6146_v36  ;;  %v6138_v50 = vadd.f32 %v5969_v60, %v5754_v26  ;;  %v6139_v35 = vadd.f32 %v5969_v60, %v5755_v5  ;;  %v6140_v10 = vadd.f32 %v5969_v60, %v5756_v8  ;;  %v15483_v5 = vld [vmem:[#allocation54_spill] sm:$0xff]  ;;  %v15492_v36 = vld [vmem:[#allocation56_spill] sm:$0xff] }
 0x4f5   :  { %6371 = vst [vmem:[%s14080_s4 + $0x198] sm:$0xff] %v6147_v57  ;;  %6372 = vst [vmem:[%s14080_s4 + $0x1a0] sm:$0xff] %v6148_v12  ;;  %v6141_v25 = vadd.f32 %v5969_v60, %v5757_v22  ;;  %v6142_v56 = vadd.f32 %v5969_v60, %v5758_v17  ;;  %v6143_v47 = vadd.f32 %v5969_v60, %v5759_v27  ;;  %v5610_v26 = vpop.permute.xlu0 %5609  ;;  %v15484_v22 = vld [vmem:[#allocation55_spill] sm:$0xff]  ;;  %v15486_v17 = vld [vmem:[#allocation140_spill] sm:$0xff] }
 0x4f6   :  { %6373 = vst [vmem:[%s14080_s4 + $0x1a8] sm:$0xff] %v6149_v9  ;;  %6374 = vst [vmem:[%s14080_s4 + $0x1b0] sm:$0xff] %v6150_v34  ;;  %v6144_v6 = vadd.f32 %v5969_v60, %v5760_v18  ;;  %v5740_v8 = vmul.f32 %v5575_v48, %v15483_v5  ;;  %v5741_v49 = vmul.f32 %v5575_v48, %v15484_v22  ;;  %v15493_v57 = vld [vmem:[#allocation141_spill] sm:$0xff]  ;;  %v15495_v9 = vld [vmem:[#allocation172_spill] sm:$0xff] }
 0x4f7   :  { %6375 = vst.msk [vmem:[%s14080_s4 + $0x1b8] sm:$0xff] %vm4372_vm1, %v6151_v62  ;;  %6362 = vst [vmem:[%s14080_s4 + $0x150] sm:$0xff] %v6138_v50  ;;  %v5743_v59 = vmul.f32 %v5575_v48, %v15486_v17  ;;  %v5744_v0 = vmul.f32 %v5575_v48, %v15487_v20  ;;  %v5745_v27 = vmul.f32 %v5575_v48, %v15488_v4  ;;  %v5580_v7 = vpop.permute.xlu1 %5579  ;;  %v15496_v62 = vld [vmem:[#allocation173_spill] sm:$0xff]  ;;  %v15498_v5 = vld [vmem:[#allocation75_spill] sm:$0xff] }
 0x4f8   :  { %6363 = vst [vmem:[%s14080_s4 + $0x158] sm:$0xff] %v6139_v35  ;;  %6364 = vst [vmem:[%s14080_s4 + $0x160] sm:$0xff] %v6140_v10  ;;  %v5746_v61 = vmul.f32 %v5575_v48, %v15489_v14  ;;  %v5747_v54 = vmul.f32 %v5580_v7, %v15490_v51  ;;  %v5748_v46 = vmul.f32 %v5580_v7, %v15491_v38  ;;  %v15497_v50 = vld [vmem:[#allocation161_spill] sm:$0xff]  ;;  %v15500_v38 = vld [vmem:[#allocation158_spill] sm:$0xff] }
 0x4f9   :  { %6365 = vst [vmem:[%s14080_s4 + $0x168] sm:$0xff] %v6141_v25  ;;  %6366 = vst [vmem:[%s14080_s4 + $0x170] sm:$0xff] %v6142_v56  ;;  %v5749_v48 = vmul.f32 %v5580_v7, %v15492_v36  ;;  %v5750_v12 = vmul.f32 %v5580_v7, %v15493_v57  ;;  %v5789_v18 = vmul.f32 %v5610_v26, %v15494_v30  ;;  %v5600_v10 = vpop.permute.xlu0 %5599  ;;  %v15499_v14 = vld [vmem:[#allocation157_spill] sm:$0xff] }
 0x4fa   :  { %6367 = vst [vmem:[%s14080_s4 + $0x178] sm:$0xff] %v6143_v47  ;;  %6368 = vst.msk [vmem:[%s14080_s4 + $0x180] sm:$0xff] %vm4372_vm1, %v6144_v6  ;;  %v5751_v34 = vmul.f32 %v5580_v7, %v15495_v9  ;;  %v5752_v60 = vmul.f32 %v5580_v7, %v15496_v62  ;;  %v5753_v35 = vmul.f32 %v5580_v7, %v15497_v50 }
 0x4fb   :  { %v6131_v25 = vadd.f32 %v5964_v63, %v5747_v54  ;;  %v6132_v56 = vadd.f32 %v5964_v63, %v5748_v46  ;;  %v6133_v47 = vadd.f32 %v5964_v63, %v5749_v48  ;;  %v6134_v6 = vadd.f32 %v5964_v63, %v5750_v12  ;;  %v5959_v4 = vpop.permute.xlu1 %5958 }
 0x4fc   :  { %v5790_v22 = vmul.f32 %v5610_v26, %v15498_v5  ;;  %v6135_v2 = vadd.f32 %v5964_v63, %v5751_v34  ;;  %v6136_v17 = vadd.f32 %v5964_v63, %v5752_v60  ;;  %v6137_v20 = vadd.f32 %v5964_v63, %v5753_v35  ;;  %v15504_v35 = vld [vmem:[#allocation152_spill] sm:$0xff] }
 0x4fd   :  { %v5791_v51 = vmul.f32 %v5610_v26, %v15499_v14  ;;  %v5792_v36 = vmul.f32 %v5610_v26, %v15500_v38  ;;  %v5793_v57 = vmul.f32 %v5610_v26, %v15298_v11  ;;  %v5794_v30 = vmul.f32 %v5610_v26, %v15306_v13  ;;  %6355 = vst [vmem:[%s14080_s4 + $0x118] sm:$0xff] %v6131_v25  ;;  %v15501_v13 = vld [vmem:[#allocation68_spill] sm:$0xff]  ;;  %v5994_v46 = vpop.permute.xlu0 %5993 }
 0x4fe   :  { %6356 = vst [vmem:[%s14080_s4 + $0x120] sm:$0xff] %v6132_v56  ;;  %6357 = vst [vmem:[%s14080_s4 + $0x128] sm:$0xff] %v6133_v47  ;;  %v5795_v11 = vmul.f32 %v5610_v26, %v12172_v15  ;;  %v5775_v63 = vmul.f32 %v5600_v10, %v15501_v13  ;;  %v6124_v7 = vadd.f32 %v5959_v4, %v5740_v8  ;;  %v15505_v56 = vld [vmem:[#allocation93_spill] sm:$0xff]  ;;  %v15506_v5 = vld [vmem:[#allocation4_spill] sm:$0xff] }
 0x4ff   :  { %6358 = vst [vmem:[%s14080_s4 + $0x130] sm:$0xff] %v6134_v6  ;;  %6359 = vst [vmem:[%s14080_s4 + $0x138] sm:$0xff] %v6135_v2  ;;  %v6125_v54 = vadd.f32 %v5959_v4, %v5741_v49  ;;  %v6126_v48 = vadd.f32 %v5959_v4, %v5742_v16  ;;  %v6127_v15 = vadd.f32 %v5959_v4, %v5743_v59  ;;  %v5605_v50 = vpop.permute.xlu1 %5604  ;;  %v15507_v2 = vld [vmem:[#allocation242_spill] sm:$0xff]  ;;  %v15509_v13 = vld [vmem:[#allocation73_spill] sm:$0xff] }
 0x500   :  { %6360 = vst [vmem:[%s14080_s4 + $0x140] sm:$0xff] %v6136_v17  ;;  %6361 = vst.msk [vmem:[%s14080_s4 + $0x148] sm:$0xff] %vm4372_vm1, %v6137_v20  ;;  %v6128_v26 = vadd.f32 %v5959_v4, %v5744_v0  ;;  %v6129_v12 = vadd.f32 %v5959_v4, %v5745_v27  ;;  %v6130_v9 = vadd.f32 %v5959_v4, %v5746_v61  ;;  %v15502_v0 = vld [vmem:[#allocation69_spill] sm:$0xff]  ;;  %v15503_v61 = vld [vmem:[#allocation151_spill] sm:$0xff] }
 0x501   :  { %6348 = vst [vmem:[%s14080_s4 + $0xe0] sm:$0xff] %v6124_v7  ;;  %6349 = vst [vmem:[%s14080_s4 + $0xe8] sm:$0xff] %v6125_v54  ;;  %v6173_v34 = vadd.f32 %v5994_v46, %v5789_v18  ;;  %v6174_v62 = vadd.f32 %v5994_v46, %v5790_v22  ;;  %v6175_v60 = vadd.f32 %v5994_v46, %v5791_v51  ;;  %v5984_v6 = vpop.permute.xlu0 %5983  ;;  %v15510_v54 = vld [vmem:[#allocation154_spill] sm:$0xff] }
 0x502   :  { %6350 = vst [vmem:[%s14080_s4 + $0xf0] sm:$0xff] %v6126_v48  ;;  %6351 = vst [vmem:[%s14080_s4 + $0xf8] sm:$0xff] %v6127_v15  ;;  %v6176_v8 = vadd.f32 %v5994_v46, %v5792_v36  ;;  %v6177_v49 = vadd.f32 %v5994_v46, %v5793_v57  ;;  %v6178_v16 = vadd.f32 %v5994_v46, %v5794_v30  ;;  %v15508_v30 = vld [vmem:[#allocation71_spill] sm:$0xff]  ;;  %v15511_v48 = vld [vmem:[#allocation156_spill] sm:$0xff] }
 0x503   :  { %6352 = vst [vmem:[%s14080_s4 + $0x100] sm:$0xff] %v6128_v26  ;;  %6353 = vst [vmem:[%s14080_s4 + $0x108] sm:$0xff] %v6129_v12  ;;  %v6179_v59 = vadd.f32 %v5994_v46, %v5795_v11  ;;  %v5776_v27 = vmul.f32 %v5600_v10, %v15502_v0  ;;  %v5777_v18 = vmul.f32 %v5600_v10, %v15503_v61  ;;  %v5595_v38 = vpop.permute.xlu1 %5594  ;;  %v15512_v26 = vld [vmem:[#allocation40_spill] sm:$0xff]  ;;  %v15518_v61 = vld [vmem:[#allocation150_spill] sm:$0xff] }
 0x504   :  { %v5778_v25 = vmul.f32 %v5600_v10, %v15504_v35  ;;  %v5779_v47 = vmul.f32 %v5600_v10, %v15505_v56  ;;  %6354 = vst.msk [vmem:[%s14080_s4 + $0x110] sm:$0xff] %vm4372_vm1, %v6130_v9  ;;  %6397 = vst [vmem:[%s14080_s4 + $0x268] sm:$0xff] %v6173_v34  ;;  %v5780_v22 = vmul.f32 %v5600_v10, %v15506_v5  ;;  %v15513_v9 = vld [vmem:[#allocation149_spill] sm:$0xff]  ;;  %v15517_v0 = vld [vmem:[#allocation148_spill] sm:$0xff] }
 0x505   :  { %6398 = vst [vmem:[%s14080_s4 + $0x270] sm:$0xff] %v6174_v62  ;;  %6399 = vst [vmem:[%s14080_s4 + $0x278] sm:$0xff] %v6175_v60  ;;  %v5781_v17 = vmul.f32 %v5600_v10, %v15507_v2  ;;  %v6159_v20 = vadd.f32 %v5984_v6, %v5775_v63  ;;  %v6160_v4 = vadd.f32 %v5984_v6, %v5776_v27  ;;  %v5630_v63 = vpop.permute.xlu0 %5629  ;;  %v15514_v62 = vld [vmem:[#allocation236_spill] sm:$0xff] }
 0x506   :  { %6400 = vst [vmem:[%s14080_s4 + $0x280] sm:$0xff] %v6176_v8  ;;  %6401 = vst [vmem:[%s14080_s4 + $0x288] sm:$0xff] %v6177_v49  ;;  %v6161_v10 = vadd.f32 %v5984_v6, %v5777_v18  ;;  %v6162_v14 = vadd.f32 %v5984_v6, %v5778_v25  ;;  %v6163_v51 = vadd.f32 %v5984_v6, %v5779_v47  ;;  %v15515_v8 = vld [vmem:[#allocation65_spill] sm:$0xff] }
 0x507   :  { %6402 = vst [vmem:[%s14080_s4 + $0x290] sm:$0xff] %v6178_v16  ;;  %6403 = vst.msk [vmem:[%s14080_s4 + $0x298] sm:$0xff] %vm4372_vm1, %v6179_v59  ;;  %v6164_v36 = vadd.f32 %v5984_v6, %v5780_v22  ;;  %v6165_v57 = vadd.f32 %v5984_v6, %v5781_v17  ;;  %v5782_v11 = vmul.f32 %v5605_v50, %v15508_v30  ;;  %v15516_v16 = vld [vmem:[#allocation67_spill] sm:$0xff]  ;;  %v5989_v35 = vpop.permute.xlu1 %5988  ;;  %v15519_v6 = vld [vmem:[#allocation130_spill] sm:$0xff] }
 0x508   :  { %6383 = vst [vmem:[%s14080_s4 + $0x1f8] sm:$0xff] %v6159_v20  ;;  %v5783_v7 = vmul.f32 %v5605_v50, %v15509_v13  ;;  %v5784_v46 = vmul.f32 %v5605_v50, %v15510_v54  ;;  %6384 = vst [vmem:[%s14080_s4 + $0x200] sm:$0xff] %v6160_v4  ;;  %v5785_v15 = vmul.f32 %v5605_v50, %v15511_v48  ;;  %v15520_v4 = vld [vmem:[#allocation147_spill] sm:$0xff]  ;;  %v15526_v48 = vld [vmem:[#allocation113_spill] sm:$0xff] }
 0x509   :  { %6385 = vst [vmem:[%s14080_s4 + $0x208] sm:$0xff] %v6161_v10  ;;  %6386 = vst [vmem:[%s14080_s4 + $0x210] sm:$0xff] %v6162_v14  ;;  %v5786_v12 = vmul.f32 %v5605_v50, %v15512_v26  ;;  %v5787_v34 = vmul.f32 %v5605_v50, %v15513_v9  ;;  %v5788_v60 = vmul.f32 %v5605_v50, %v15514_v62  ;;  %v5620_v20 = vpop.permute.xlu0 %5619  ;;  %v15521_v14 = vld [vmem:[#allocation185_spill] sm:$0xff]  ;;  %v15523_v30 = vld [vmem:[#allocation87_spill] sm:$0xff] }
 0x50a   :  { %6387 = vst [vmem:[%s14080_s4 + $0x218] sm:$0xff] %v6163_v51  ;;  %6388 = vst [vmem:[%s14080_s4 + $0x220] sm:$0xff] %v6164_v36  ;;  %v5768_v49 = vmul.f32 %v5595_v38, %v15515_v8  ;;  %v5769_v59 = vmul.f32 %v5595_v38, %v15516_v16  ;;  %v5770_v27 = vmul.f32 %v5595_v38, %v15517_v0  ;;  %v15522_v36 = vld [vmem:[#allocation86_spill] sm:$0xff]  ;;  %v15527_v62 = vld [vmem:[#allocation227_spill] sm:$0xff] }
 0x50b   :  { %6389 = vst.msk [vmem:[%s14080_s4 + $0x228] sm:$0xff] %vm4372_vm1, %v6165_v57  ;;  %v5771_v18 = vmul.f32 %v5595_v38, %v15518_v61  ;;  %v6166_v25 = vadd.f32 %v5989_v35, %v5782_v11  ;;  %v6167_v50 = vadd.f32 %v5989_v35, %v5783_v7  ;;  %v6168_v56 = vadd.f32 %v5989_v35, %v5784_v46  ;;  %v15525_v7 = vld [vmem:[#allocation88_spill] sm:$0xff]  ;;  %v5979_v26 = vpop.permute.xlu1 %5978 }
 0x50c   :  { %v6169_v47 = vadd.f32 %v5989_v35, %v5785_v15  ;;  %v5772_v5 = vmul.f32 %v5595_v38, %v15519_v6  ;;  %v6170_v22 = vadd.f32 %v5989_v35, %v5786_v12  ;;  %v6171_v2 = vadd.f32 %v5989_v35, %v5787_v34  ;;  %v15529_v6 = vld [vmem:[#allocation81_spill] sm:$0xff] }
 0x50d   :  { %v6172_v17 = vadd.f32 %v5989_v35, %v5788_v60  ;;  %v5773_v10 = vmul.f32 %v5595_v38, %v15520_v4  ;;  %v5774_v51 = vmul.f32 %v5595_v38, %v15521_v14  ;;  %v5817_v57 = vmul.f32 %v5630_v63, %v15522_v36  ;;  %6390 = vst [vmem:[%s14080_s4 + $0x230] sm:$0xff] %v6166_v25  ;;  %v15524_v38 = vld [vmem:[#allocation167_spill] sm:$0xff]  ;;  %v6014_v61 = vpop.permute.xlu0 %6013 }
 0x50e   :  { %v5818_v13 = vmul.f32 %v5630_v63, %v15523_v30  ;;  %6391 = vst [vmem:[%s14080_s4 + $0x238] sm:$0xff] %v6167_v50  ;;  %6392 = vst [vmem:[%s14080_s4 + $0x240] sm:$0xff] %v6168_v56  ;;  %v5819_v11 = vmul.f32 %v5630_v63, %v15524_v38  ;;  %v5820_v54 = vmul.f32 %v5630_v63, %v15525_v7  ;;  %v15528_v56 = vld [vmem:[#allocation80_spill] sm:$0xff] }
 0x50f   :  { %6393 = vst [vmem:[%s14080_s4 + $0x248] sm:$0xff] %v6169_v47  ;;  %v5821_v46 = vmul.f32 %v5630_v63, %v15326_v32  ;;  %v5822_v15 = vmul.f32 %v5630_v63, %v15526_v48  ;;  %6394 = vst [vmem:[%s14080_s4 + $0x250] sm:$0xff] %v6170_v22  ;;  %v6152_v12 = vadd.f32 %v5979_v26, %v5768_v49  ;;  %v5625_v50 = vpop.permute.xlu1 %5624  ;;  %v15530_v22 = vld [vmem:[#allocation163_spill] sm:$0xff] }
 0x510   :  { %6395 = vst [vmem:[%s14080_s4 + $0x258] sm:$0xff] %v6171_v2  ;;  %6396 = vst.msk [vmem:[%s14080_s4 + $0x260] sm:$0xff] %vm4372_vm1, %v6172_v17  ;;  %v6153_v9 = vadd.f32 %v5979_v26, %v5769_v59  ;;  %v6154_v34 = vadd.f32 %v5979_v26, %v5770_v27  ;;  %v6155_v32 = vadd.f32 %v5979_v26, %v5771_v18  ;;  %v15531_v17 = vld [vmem:[#allocation164_spill] sm:$0xff] }
 0x511   :  { %v5823_v60 = vmul.f32 %v5630_v63, %v15527_v62  ;;  %v6156_v8 = vadd.f32 %v5979_v26, %v5772_v5  ;;  %v6157_v16 = vadd.f32 %v5979_v26, %v5773_v10  ;;  %v6158_v0 = vadd.f32 %v5979_v26, %v5774_v51  ;;  %6376 = vst [vmem:[%s14080_s4 + $0x1c0] sm:$0xff] %v6152_v12  ;;  %v15532_v10 = vld [vmem:[#allocation105_spill] sm:$0xff]  ;;  %v15533_v51 = vld [vmem:[#allocation132_spill] sm:$0xff]  ;;  %v15535_v26 = vld [vmem:[#allocation83_spill] sm:$0xff] }
 0x512   :  { %6377 = vst [vmem:[%s14080_s4 + $0x1c8] sm:$0xff] %v6153_v9  ;;  %6378 = vst [vmem:[%s14080_s4 + $0x1d0] sm:$0xff] %v6154_v34  ;;  %v6201_v63 = vadd.f32 %v6014_v61, %v5817_v57  ;;  %v6202_v49 = vadd.f32 %v6014_v61, %v5818_v13  ;;  %v6203_v59 = vadd.f32 %v6014_v61, %v5819_v11  ;;  %v15534_v57 = vld [vmem:[#allocation182_spill] sm:$0xff]  ;;  %v6004_v13 = vpop.permute.xlu0 %6003  ;;  %v15536_v9 = vld [vmem:[#allocation85_spill] sm:$0xff] }
 0x513   :  { %6379 = vst [vmem:[%s14080_s4 + $0x1d8] sm:$0xff] %v6155_v32  ;;  %v6204_v27 = vadd.f32 %v6014_v61, %v5820_v54  ;;  %6380 = vst [vmem:[%s14080_s4 + $0x1e0] sm:$0xff] %v6156_v8  ;;  %v6205_v18 = vadd.f32 %v6014_v61, %v5821_v46  ;;  %v6206_v35 = vadd.f32 %v6014_v61, %v5822_v15  ;;  %v5615_v15 = vpop.permute.xlu1 %5614  ;;  %v15537_v32 = vld [vmem:[#allocation166_spill] sm:$0xff]  ;;  %v15538_v8 = vld [vmem:[#allocation60_spill] sm:$0xff] }
 0x514   :  { %6381 = vst [vmem:[%s14080_s4 + $0x1e8] sm:$0xff] %v6157_v16  ;;  %6382 = vst.msk [vmem:[%s14080_s4 + $0x1f0] sm:$0xff] %vm4372_vm1, %v6158_v0  ;;  %v6207_v25 = vadd.f32 %v6014_v61, %v5823_v60  ;;  %v5803_v47 = vmul.f32 %v5620_v20, %v15528_v56  ;;  %v5804_v5 = vmul.f32 %v5620_v20, %v15529_v6  ;;  %v15539_v0 = vld [vmem:[#allocation133_spill] sm:$0xff] }
 0x515   :  { %v5805_v2 = vmul.f32 %v5620_v20, %v15530_v22  ;;  %v5806_v4 = vmul.f32 %v5620_v20, %v15531_v17  ;;  %6425 = vst [vmem:[%s14080_s4 + $0x348] sm:$0xff] %v6201_v63  ;;  %6426 = vst [vmem:[%s14080_s4 + $0x350] sm:$0xff] %v6202_v49  ;;  %v5807_v14 = vmul.f32 %v5620_v20, %v15532_v10  ;;  %v15540_v63 = vld [vmem:[#allocation155_spill] sm:$0xff] }
 0x516   :  { %6427 = vst [vmem:[%s14080_s4 + $0x358] sm:$0xff] %v6203_v59  ;;  %6428 = vst [vmem:[%s14080_s4 + $0x360] sm:$0xff] %v6204_v27  ;;  %v5808_v36 = vmul.f32 %v5620_v20, %v15533_v51  ;;  %v5809_v30 = vmul.f32 %v5620_v20, %v15534_v57  ;;  %v6187_v38 = vadd.f32 %v6004_v13, %v5803_v47  ;;  %v5650_v60 = vpop.permute.xlu0 %5649  ;;  %v15541_v59 = vld [vmem:[#allocation232_spill] sm:$0xff]  ;;  %v15546_v51 = vld [vmem:[#allocation42_spill] sm:$0xff] }
 0x517   :  { %6429 = vst [vmem:[%s14080_s4 + $0x368] sm:$0xff] %v6205_v18  ;;  %6430 = vst [vmem:[%s14080_s4 + $0x370] sm:$0xff] %v6206_v35  ;;  %v6188_v11 = vadd.f32 %v6004_v13, %v5804_v5  ;;  %v6189_v7 = vadd.f32 %v6004_v13, %v5805_v2  ;;  %v6190_v54 = vadd.f32 %v6004_v13, %v5806_v4  ;;  %v15542_v18 = vld [vmem:[#allocation77_spill] sm:$0xff]  ;;  %v15544_v47 = vld [vmem:[#allocation160_spill] sm:$0xff]  ;;  %v6009_v2 = vpop.permute.xlu1 %6008 }
 0x518   :  { %6431 = vst.msk [vmem:[%s14080_s4 + $0x378] sm:$0xff] %vm4372_vm1, %v6207_v25  ;;  %v6191_v46 = vadd.f32 %v6004_v13, %v5807_v14  ;;  %v6192_v20 = vadd.f32 %v6004_v13, %v5808_v36  ;;  %v6193_v48 = vadd.f32 %v6004_v13, %v5809_v30  ;;  %6411 = vst [vmem:[%s14080_s4 + $0x2d8] sm:$0xff] %v6187_v38  ;;  %v15543_v25 = vld [vmem:[#allocation79_spill] sm:$0xff]  ;;  %v15545_v5 = vld [vmem:[#allocation162_spill] sm:$0xff] }
 0x519   :  { %6412 = vst [vmem:[%s14080_s4 + $0x2e0] sm:$0xff] %v6188_v11  ;;  %6413 = vst [vmem:[%s14080_s4 + $0x2e8] sm:$0xff] %v6189_v7  ;;  %v5810_v12 = vmul.f32 %v5625_v50, %v15535_v26  ;;  %v5811_v34 = vmul.f32 %v5625_v50, %v15536_v9  ;;  %v5812_v62 = vmul.f32 %v5625_v50, %v15537_v32  ;;  %v15547_v7 = vld [vmem:[#allocation100_spill] sm:$0xff]  ;;  %v15551_v26 = vld [vmem:[#allocation126_spill] sm:$0xff] }
 0x51a   :  { %6414 = vst [vmem:[%s14080_s4 + $0x2f0] sm:$0xff] %v6190_v54  ;;  %6415 = vst [vmem:[%s14080_s4 + $0x2f8] sm:$0xff] %v6191_v46  ;;  %v5813_v16 = vmul.f32 %v5625_v50, %v15538_v8  ;;  %v5814_v61 = vmul.f32 %v5625_v50, %v15539_v0  ;;  %v5815_v49 = vmul.f32 %v5625_v50, %v15540_v63  ;;  %v5640_v38 = vpop.permute.xlu0 %5639  ;;  %v15548_v46 = vld [vmem:[#allocation102_spill] sm:$0xff]  ;;  %v15552_v9 = vld [vmem:[#allocation36_spill] sm:$0xff] }
 0x51b   :  { %6416 = vst [vmem:[%s14080_s4 + $0x300] sm:$0xff] %v6192_v20  ;;  %6417 = vst.msk [vmem:[%s14080_s4 + $0x308] sm:$0xff] %vm4372_vm1, %v6193_v48  ;;  %v5816_v27 = vmul.f32 %v5625_v50, %v15541_v59  ;;  %v5796_v35 = vmul.f32 %v5615_v15, %v15542_v18  ;;  %v5797_v56 = vmul.f32 %v5615_v15, %v15543_v25  ;;  %v15550_v48 = vld [vmem:[#allocation97_spill] sm:$0xff]  ;;  %v5999_v32 = vpop.permute.xlu1 %5998 }
 0x51c   :  { %v5798_v6 = vmul.f32 %v5615_v15, %v15544_v47  ;;  %v5799_v22 = vmul.f32 %v5615_v15, %v15545_v5  ;;  %v6194_v17 = vadd.f32 %v6009_v2, %v5810_v12  ;;  %v6195_v4 = vadd.f32 %v6009_v2, %v5811_v34 }
 0x51d   :  { %v6196_v10 = vadd.f32 %v6009_v2, %v5812_v62  ;;  %v6197_v14 = vadd.f32 %v6009_v2, %v5813_v16  ;;  %v5800_v36 = vmul.f32 %v5615_v15, %v15546_v51  ;;  %v6198_v57 = vadd.f32 %v6009_v2, %v5814_v61  ;;  %v15553_v61 = vld [vmem:[#allocation179_spill] sm:$0xff] }
 0x51e   :  { %v6199_v30 = vadd.f32 %v6009_v2, %v5815_v49  ;;  %v6200_v13 = vadd.f32 %v6009_v2, %v5816_v27  ;;  %v5801_v50 = vmul.f32 %v5615_v15, %v15345_v1  ;;  %v5802_v11 = vmul.f32 %v5615_v15, %v12320_v40  ;;  %6418 = vst [vmem:[%s14080_s4 + $0x310] sm:$0xff] %v6194_v17  ;;  %v15549_v40 = vld [vmem:[#allocation70_spill] sm:$0xff]  ;;  %v6034_v18 = vpop.permute.xlu0 %6033  ;;  %v15554_v2 = vld [vmem:[#allocation9_spill] sm:$0xff] }
 0x51f   :  { %v5845_v54 = vmul.f32 %v5650_v60, %v15547_v7  ;;  %v5846_v20 = vmul.f32 %v5650_v60, %v15548_v46  ;;  %6419 = vst [vmem:[%s14080_s4 + $0x318] sm:$0xff] %v6195_v4  ;;  %6420 = vst [vmem:[%s14080_s4 + $0x320] sm:$0xff] %v6196_v10  ;;  %v5847_v1 = vmul.f32 %v5650_v60, %v15549_v40  ;;  %v15555_v4 = vld [vmem:[#allocation10_spill] sm:$0xff]  ;;  %v15560_v7 = vld [vmem:[#allocation176_spill] sm:$0xff] }
 0x520   :  { %6421 = vst [vmem:[%s14080_s4 + $0x328] sm:$0xff] %v6197_v14  ;;  %v5848_v15 = vmul.f32 %v5650_v60, %v15550_v48  ;;  %v5849_v12 = vmul.f32 %v5650_v60, %v15551_v26  ;;  %v5850_v34 = vmul.f32 %v5650_v60, %v15552_v9  ;;  %6422 = vst [vmem:[%s14080_s4 + $0x330] sm:$0xff] %v6198_v57  ;;  %v15556_v14 = vld [vmem:[#allocation117_spill] sm:$0xff]  ;;  %v15561_v9 = vld [vmem:[#allocation12_spill] sm:$0xff] }
 0x521   :  { %6423 = vst [vmem:[%s14080_s4 + $0x338] sm:$0xff] %v6199_v30  ;;  %6424 = vst.msk [vmem:[%s14080_s4 + $0x340] sm:$0xff] %vm4372_vm1, %v6200_v13  ;;  %v6180_v62 = vadd.f32 %v5999_v32, %v5796_v35  ;;  %v6181_v8 = vadd.f32 %v5999_v32, %v5797_v56  ;;  %v6182_v16 = vadd.f32 %v5999_v32, %v5798_v6  ;;  %v15558_v30 = vld [vmem:[#allocation114_spill] sm:$0xff] }
 0x522   :  { %v6183_v0 = vadd.f32 %v5999_v32, %v5799_v22  ;;  %v5851_v63 = vmul.f32 %v5650_v60, %v15553_v61  ;;  %v6184_v49 = vadd.f32 %v5999_v32, %v5800_v36  ;;  %v6185_v59 = vadd.f32 %v5999_v32, %v5801_v50  ;;  %v5645_v22 = vpop.permute.xlu1 %5644  ;;  %v15557_v36 = vld [vmem:[#allocation66_spill] sm:$0xff]  ;;  %v15559_v50 = vld [vmem:[#allocation31_spill] sm:$0xff]  ;;  %v6024_v46 = vpop.permute.xlu0 %6023 }
 0x523   :  { %v6186_v27 = vadd.f32 %v5999_v32, %v5802_v11  ;;  %6404 = vst [vmem:[%s14080_s4 + $0x2a0] sm:$0xff] %v6180_v62  ;;  %6405 = vst [vmem:[%s14080_s4 + $0x2a8] sm:$0xff] %v6181_v8  ;;  %v6229_v60 = vadd.f32 %v6034_v18, %v5845_v54  ;;  %v6230_v35 = vadd.f32 %v6034_v18, %v5846_v20  ;;  %v15562_v32 = vld [vmem:[#allocation98_spill] sm:$0xff]  ;;  %v15564_v61 = vld [vmem:[#allocation95_spill] sm:$0xff] }
 0x524   :  { %6406 = vst [vmem:[%s14080_s4 + $0x2b0] sm:$0xff] %v6182_v16  ;;  %6407 = vst [vmem:[%s14080_s4 + $0x2b8] sm:$0xff] %v6183_v0  ;;  %v6231_v25 = vadd.f32 %v6034_v18, %v5847_v1  ;;  %v6232_v56 = vadd.f32 %v6034_v18, %v5848_v15  ;;  %v6233_v47 = vadd.f32 %v6034_v18, %v5849_v12  ;;  %v15563_v8 = vld [vmem:[#allocation94_spill] sm:$0xff] }
 0x525   :  { %6408 = vst [vmem:[%s14080_s4 + $0x2c0] sm:$0xff] %v6184_v49  ;;  %6409 = vst [vmem:[%s14080_s4 + $0x2c8] sm:$0xff] %v6185_v59  ;;  %v6234_v6 = vadd.f32 %v6034_v18, %v5850_v34  ;;  %v6235_v5 = vadd.f32 %v6034_v18, %v5851_v63  ;;  %v5831_v17 = vmul.f32 %v5640_v38, %v15554_v2  ;;  %v15565_v49 = vld [vmem:[#allocation2_spill] sm:$0xff] }
 0x526   :  { %6410 = vst.msk [vmem:[%s14080_s4 + $0x2d0] sm:$0xff] %vm4372_vm1, %v6186_v27  ;;  %v5832_v10 = vmul.f32 %v5640_v38, %v15555_v4  ;;  %v5833_v51 = vmul.f32 %v5640_v38, %v15556_v14  ;;  %v5834_v57 = vmul.f32 %v5640_v38, %v15557_v36  ;;  %6453 = vst [vmem:[%s14080_s4 + $0x428] sm:$0xff] %v6229_v60  ;;  %v5635_v12 = vpop.permute.xlu1 %5634  ;;  %v5670_v0 = vpop.permute.xlu0 %5669  ;;  %v15566_v27 = vld [vmem:[#allocation115_spill] sm:$0xff] }
 0x527   :  { %6454 = vst [vmem:[%s14080_s4 + $0x430] sm:$0xff] %v6230_v35  ;;  %6455 = vst [vmem:[%s14080_s4 + $0x438] sm:$0xff] %v6231_v25  ;;  %v5835_v13 = vmul.f32 %v5640_v38, %v15558_v30  ;;  %v5836_v11 = vmul.f32 %v5640_v38, %v15559_v50  ;;  %v5837_v54 = vmul.f32 %v5640_v38, %v15560_v7  ;;  %v15567_v60 = vld [vmem:[#allocation231_spill] sm:$0xff]  ;;  %v15572_v30 = vld [vmem:[#allocation26_spill] sm:$0xff] }
 0x528   :  { %6456 = vst [vmem:[%s14080_s4 + $0x440] sm:$0xff] %v6232_v56  ;;  %6457 = vst [vmem:[%s14080_s4 + $0x448] sm:$0xff] %v6233_v47  ;;  %v6215_v20 = vadd.f32 %v6024_v46, %v5831_v17  ;;  %v6216_v40 = vadd.f32 %v6024_v46, %v5832_v10  ;;  %v6217_v1 = vadd.f32 %v6024_v46, %v5833_v51  ;;  %v15568_v25 = vld [vmem:[#allocation7_spill] sm:$0xff]  ;;  %v15569_v47 = vld [vmem:[#allocation92_spill] sm:$0xff] }
 0x529   :  { %6458 = vst [vmem:[%s14080_s4 + $0x450] sm:$0xff] %v6234_v6  ;;  %6459 = vst.msk [vmem:[%s14080_s4 + $0x458] sm:$0xff] %vm4372_vm1, %v6235_v5  ;;  %v6218_v48 = vadd.f32 %v6024_v46, %v5834_v57  ;;  %v6219_v15 = vadd.f32 %v6024_v46, %v5835_v13  ;;  %v6220_v38 = vadd.f32 %v6024_v46, %v5836_v11  ;;  %v15570_v5 = vld [vmem:[#allocation64_spill] sm:$0xff]  ;;  %v15571_v17 = vld [vmem:[#allocation91_spill] sm:$0xff] }
 0x52a   :  { %v6221_v26 = vadd.f32 %v6024_v46, %v5837_v54  ;;  %6439 = vst [vmem:[%s14080_s4 + $0x3b8] sm:$0xff] %v6215_v20  ;;  %6440 = vst [vmem:[%s14080_s4 + $0x3c0] sm:$0xff] %v6216_v40  ;;  %v5838_v34 = vmul.f32 %v5645_v22, %v15561_v9  ;;  %v5839_v62 = vmul.f32 %v5645_v22, %v15562_v32  ;;  %v6029_v10 = vpop.permute.xlu1 %6028  ;;  %v5660_v54 = vpop.permute.xlu0 %5659  ;;  %v15573_v46 = vld [vmem:[#allocation234_spill] sm:$0xff]  ;;  %v15574_v40 = vld [vmem:[#allocation23_spill] sm:$0xff] }
 0x52b   :  { %6441 = vst [vmem:[%s14080_s4 + $0x3c8] sm:$0xff] %v6217_v1  ;;  %6442 = vst [vmem:[%s14080_s4 + $0x3d0] sm:$0xff] %v6218_v48  ;;  %v5840_v16 = vmul.f32 %v5645_v22, %v15563_v8  ;;  %v5841_v63 = vmul.f32 %v5645_v22, %v15564_v61  ;;  %v5842_v59 = vmul.f32 %v5645_v22, %v15565_v49  ;;  %v15575_v48 = vld [vmem:[#allocation24_spill] sm:$0xff] }
 0x52c   :  { %6443 = vst [vmem:[%s14080_s4 + $0x3d8] sm:$0xff] %v6219_v15  ;;  %6444 = vst [vmem:[%s14080_s4 + $0x3e0] sm:$0xff] %v6220_v38  ;;  %v5843_v18 = vmul.f32 %v5645_v22, %v15566_v27  ;;  %v5844_v35 = vmul.f32 %v5645_v22, %v15567_v60  ;;  %v5824_v56 = vmul.f32 %v5635_v12, %v15568_v25 }
 0x52d   :  { %6445 = vst.msk [vmem:[%s14080_s4 + $0x3e8] sm:$0xff] %vm4372_vm1, %v6221_v26  ;;  %v5825_v6 = vmul.f32 %v5635_v12, %v15569_v47  ;;  %v5826_v2 = vmul.f32 %v5635_v12, %v15570_v5  ;;  %v5827_v4 = vmul.f32 %v5635_v12, %v15571_v17  ;;  %v6222_v14 = vadd.f32 %v6029_v10, %v5838_v34  ;;  %v15577_v26 = vld [vmem:[#allocation109_spill] sm:$0xff]  ;;  %v15579_v5 = vld [vmem:[#allocation18_spill] sm:$0xff]  ;;  %v15580_v17 = vld [vmem:[#allocation103_spill] sm:$0xff] }
 0x52e   :  { %v6223_v51 = vadd.f32 %v6029_v10, %v5839_v62  ;;  %v6224_v36 = vadd.f32 %v6029_v10, %v5840_v16  ;;  %v6225_v57 = vadd.f32 %v6029_v10, %v5841_v63  ;;  %v5828_v13 = vmul.f32 %v5635_v12, %v15572_v30  ;;  %v6019_v32 = vpop.permute.xlu1 %6018  ;;  %v15578_v47 = vld [vmem:[#allocation17_spill] sm:$0xff] }
 0x52f   :  { %v6226_v50 = vadd.f32 %v6029_v10, %v5842_v59  ;;  %v6227_v11 = vadd.f32 %v6029_v10, %v5843_v18  ;;  %v6228_v7 = vadd.f32 %v6029_v10, %v5844_v35  ;;  %v5829_v22 = vmul.f32 %v5635_v12, %v15374_v28  ;;  %6446 = vst [vmem:[%s14080_s4 + $0x3f0] sm:$0xff] %v6222_v14  ;;  %v15576_v28 = vld [vmem:[#allocation108_spill] sm:$0xff]  ;;  %v6054_v59 = vpop.permute.xlu0 %6053 }
 0x530   :  { %v5830_v20 = vmul.f32 %v5635_v12, %v15573_v46  ;;  %v5873_v1 = vmul.f32 %v5670_v0, %v15574_v40  ;;  %v5874_v15 = vmul.f32 %v5670_v0, %v15575_v48  ;;  %6447 = vst [vmem:[%s14080_s4 + $0x3f8] sm:$0xff] %v6223_v51  ;;  %6448 = vst [vmem:[%s14080_s4 + $0x400] sm:$0xff] %v6224_v36  ;;  %v15581_v10 = vld [vmem:[#allocation76_spill] sm:$0xff] }
 0x531   :  { %6449 = vst [vmem:[%s14080_s4 + $0x408] sm:$0xff] %v6225_v57  ;;  %v5875_v38 = vmul.f32 %v5670_v0, %v15576_v28  ;;  %v5876_v12 = vmul.f32 %v5670_v0, %v15577_v26  ;;  %v5877_v9 = vmul.f32 %v5670_v0, %v15381_v19  ;;  %v5878_v34 = vmul.f32 %v5670_v0, %v15391_v43  ;;  %v15582_v57 = vld [vmem:[#allocation263_spill] sm:$0xff] }
 0x532   :  { %6450 = vst [vmem:[%s14080_s4 + $0x410] sm:$0xff] %v6226_v50  ;;  %6451 = vst [vmem:[%s14080_s4 + $0x418] sm:$0xff] %v6227_v11  ;;  %v6208_v62 = vadd.f32 %v6019_v32, %v5824_v56  ;;  %v6209_v8 = vadd.f32 %v6019_v32, %v5825_v6  ;;  %v6210_v16 = vadd.f32 %v6019_v32, %v5826_v2  ;;  %v5665_v56 = vpop.permute.xlu1 %5664  ;;  %v15586_v26 = vld [vmem:[#allocation107_spill] sm:$0xff] }
 0x533   :  { %6452 = vst.msk [vmem:[%s14080_s4 + $0x420] sm:$0xff] %vm4372_vm1, %v6228_v7  ;;  %v6211_v19 = vadd.f32 %v6019_v32, %v5827_v4  ;;  %v5879_v43 = vmul.f32 %v5670_v0, %v12490_v45  ;;  %v6212_v61 = vadd.f32 %v6019_v32, %v5828_v13  ;;  %v6213_v63 = vadd.f32 %v6019_v32, %v5829_v22  ;;  %v6044_v13 = vpop.permute.xlu0 %6043 }
 0x534   :  { %v6214_v49 = vadd.f32 %v6019_v32, %v5830_v20  ;;  %6432 = vst [vmem:[%s14080_s4 + $0x380] sm:$0xff] %v6208_v62  ;;  %6433 = vst [vmem:[%s14080_s4 + $0x388] sm:$0xff] %v6209_v8  ;;  %v6257_v45 = vadd.f32 %v6054_v59, %v5873_v1  ;;  %v6258_v0 = vadd.f32 %v6054_v59, %v5874_v15  ;;  %v15583_v20 = vld [vmem:[#allocation20_spill] sm:$0xff]  ;;  %v15584_v1 = vld [vmem:[#allocation22_spill] sm:$0xff] }
 0x535   :  { %6434 = vst [vmem:[%s14080_s4 + $0x390] sm:$0xff] %v6210_v16  ;;  %6435 = vst [vmem:[%s14080_s4 + $0x398] sm:$0xff] %v6211_v19  ;;  %v6259_v27 = vadd.f32 %v6054_v59, %v5875_v38  ;;  %v6260_v18 = vadd.f32 %v6054_v59, %v5876_v12  ;;  %v6261_v60 = vadd.f32 %v6054_v59, %v5877_v9  ;;  %v15585_v15 = vld [vmem:[#allocation78_spill] sm:$0xff]  ;;  %v15587_v9 = vld [vmem:[#allocation180_spill] sm:$0xff] }
 0x536   :  { %6436 = vst [vmem:[%s14080_s4 + $0x3a0] sm:$0xff] %v6212_v61  ;;  %6437 = vst [vmem:[%s14080_s4 + $0x3a8] sm:$0xff] %v6213_v63  ;;  %v6262_v35 = vadd.f32 %v6054_v59, %v5878_v34  ;;  %v6263_v25 = vadd.f32 %v6054_v59, %v5879_v43  ;;  %v5859_v6 = vmul.f32 %v5660_v54, %v15578_v47  ;;  %v5655_v46 = vpop.permute.xlu1 %5654  ;;  %v15588_v32 = vld [vmem:[#allocation181_spill] sm:$0xff]  ;;  %v15589_v8 = vld [vmem:[#allocation235_spill] sm:$0xff] }
 0x537   :  { %6438 = vst.msk [vmem:[%s14080_s4 + $0x3b0] sm:$0xff] %vm4372_vm1, %v6214_v49  ;;  %v5860_v2 = vmul.f32 %v5660_v54, %v15579_v5  ;;  %v5861_v4 = vmul.f32 %v5660_v54, %v15580_v17  ;;  %v5862_v14 = vmul.f32 %v5660_v54, %v15581_v10  ;;  %6481 = vst [vmem:[%s14080_s4 + $0x508] sm:$0xff] %v6257_v45  ;;  %v5690_v38 = vpop.permute.xlu0 %5689  ;;  %v15590_v19 = vld [vmem:[#allocation15_spill] sm:$0xff]  ;;  %v15591_v61 = vld [vmem:[#allocation106_spill] sm:$0xff] }
 0x538   :  { %6482 = vst [vmem:[%s14080_s4 + $0x510] sm:$0xff] %v6258_v0  ;;  %6483 = vst [vmem:[%s14080_s4 + $0x518] sm:$0xff] %v6259_v27  ;;  %v5863_v51 = vmul.f32 %v5660_v54, %v15389_v21  ;;  %v5864_v36 = vmul.f32 %v5660_v54, %v15398_v3  ;;  %v5865_v30 = vmul.f32 %v5660_v54, %v15582_v57  ;;  %v15592_v49 = vld [vmem:[#allocation99_spill] sm:$0xff]  ;;  %v15593_v45 = vld [vmem:[#allocation101_spill] sm:$0xff] }
 0x539   :  { %6484 = vst [vmem:[%s14080_s4 + $0x520] sm:$0xff] %v6260_v18  ;;  %6485 = vst [vmem:[%s14080_s4 + $0x528] sm:$0xff] %v6261_v60  ;;  %v6243_v50 = vadd.f32 %v6044_v13, %v5859_v6  ;;  %v6244_v21 = vadd.f32 %v6044_v13, %v5860_v2  ;;  %v6245_v11 = vadd.f32 %v6044_v13, %v5861_v4  ;;  %v15594_v47 = vld [vmem:[#allocation41_spill] sm:$0xff]  ;;  %v15595_v10 = vld [vmem:[#allocation259_spill] sm:$0xff] }
 0x53a   :  { %6486 = vst [vmem:[%s14080_s4 + $0x530] sm:$0xff] %v6262_v35  ;;  %6487 = vst.msk [vmem:[%s14080_s4 + $0x538] sm:$0xff] %vm4372_vm1, %v6263_v25  ;;  %v6246_v3 = vadd.f32 %v6044_v13, %v5862_v14  ;;  %v6247_v7 = vadd.f32 %v6044_v13, %v5863_v51  ;;  %v6248_v54 = vadd.f32 %v6044_v13, %v5864_v36  ;;  %v6049_v27 = vpop.permute.xlu1 %6048  ;;  %v15596_v51 = vld [vmem:[#allocation33_spill] sm:$0xff]  ;;  %v15597_v57 = vld [vmem:[#allocation34_spill] sm:$0xff] }
 0x53b   :  { %v6249_v22 = vadd.f32 %v6044_v13, %v5865_v30  ;;  %6467 = vst [vmem:[%s14080_s4 + $0x498] sm:$0xff] %v6243_v50  ;;  %6468 = vst [vmem:[%s14080_s4 + $0x4a0] sm:$0xff] %v6244_v21  ;;  %v5866_v40 = vmul.f32 %v5665_v56, %v15583_v20  ;;  %v5867_v48 = vmul.f32 %v5665_v56, %v15584_v1  ;;  %v5680_v4 = vpop.permute.xlu0 %5679  ;;  %v15599_v50 = vld [vmem:[#allocation122_spill] sm:$0xff] }
 0x53c   :  { %6469 = vst [vmem:[%s14080_s4 + $0x4a8] sm:$0xff] %v6245_v11  ;;  %6470 = vst [vmem:[%s14080_s4 + $0x4b0] sm:$0xff] %v6246_v3  ;;  %v5868_v28 = vmul.f32 %v5665_v56, %v15585_v15  ;;  %v5869_v12 = vmul.f32 %v5665_v56, %v15586_v26  ;;  %v5870_v34 = vmul.f32 %v5665_v56, %v15587_v9 }
 0x53d   :  { %6471 = vst [vmem:[%s14080_s4 + $0x4b8] sm:$0xff] %v6247_v7  ;;  %6472 = vst [vmem:[%s14080_s4 + $0x4c0] sm:$0xff] %v6248_v54  ;;  %v5871_v62 = vmul.f32 %v5665_v56, %v15588_v32  ;;  %v5872_v16 = vmul.f32 %v5665_v56, %v15589_v8  ;;  %v5852_v43 = vmul.f32 %v5655_v46, %v15590_v19  ;;  %v15600_v32 = vld [vmem:[#allocation28_spill] sm:$0xff]  ;;  %v15601_v8 = vld [vmem:[#allocation29_spill] sm:$0xff] }
 0x53e   :  { %6473 = vst.msk [vmem:[%s14080_s4 + $0x4c8] sm:$0xff] %vm4372_vm1, %v6249_v22  ;;  %v5853_v63 = vmul.f32 %v5655_v46, %v15591_v61  ;;  %v5854_v59 = vmul.f32 %v5655_v46, %v15592_v49  ;;  %v5855_v0 = vmul.f32 %v5655_v46, %v15593_v45  ;;  %v6250_v18 = vadd.f32 %v6049_v27, %v5866_v40  ;;  %v6039_v7 = vpop.permute.xlu1 %6038  ;;  %v15602_v19 = vld [vmem:[#allocation111_spill] sm:$0xff]  ;;  %v15603_v61 = vld [vmem:[#allocation112_spill] sm:$0xff] }
 0x53f   :  { %v6251_v60 = vadd.f32 %v6049_v27, %v5867_v48  ;;  %v6252_v35 = vadd.f32 %v6049_v27, %v5868_v28  ;;  %v6253_v25 = vadd.f32 %v6049_v27, %v5869_v12  ;;  %v5856_v6 = vmul.f32 %v5655_v46, %v15594_v47  ;;  %v6074_v48 = vpop.permute.xlu0 %6073  ;;  %v15604_v47 = vld [vmem:[#allocation11_spill] sm:$0xff] }
 0x540   :  { %v6254_v5 = vadd.f32 %v6049_v27, %v5870_v34  ;;  %v6255_v2 = vadd.f32 %v6049_v27, %v5871_v62  ;;  %v6256_v17 = vadd.f32 %v6049_v27, %v5872_v16  ;;  %v5857_v56 = vmul.f32 %v5655_v46, %v15399_v31  ;;  %6474 = vst [vmem:[%s14080_s4 + $0x4d0] sm:$0xff] %v6250_v18  ;;  %v15598_v31 = vld [vmem:[#allocation27_spill] sm:$0xff] }
 0x541   :  { %v5858_v14 = vmul.f32 %v5655_v46, %v15595_v10  ;;  %v5901_v36 = vmul.f32 %v5690_v38, %v15596_v51  ;;  %v5902_v30 = vmul.f32 %v5690_v38, %v15597_v57  ;;  %6475 = vst [vmem:[%s14080_s4 + $0x4d8] sm:$0xff] %v6251_v60  ;;  %6476 = vst [vmem:[%s14080_s4 + $0x4e0] sm:$0xff] %v6252_v35  ;;  %v15607_v10 = vld [vmem:[#allocation90_spill] sm:$0xff]  ;;  %v15608_v51 = vld [vmem:[#allocation192_spill] sm:$0xff] }
 0x542   :  { %6477 = vst [vmem:[%s14080_s4 + $0x4e8] sm:$0xff] %v6253_v25  ;;  %v5903_v13 = vmul.f32 %v5690_v38, %v15598_v31  ;;  %v5904_v21 = vmul.f32 %v5690_v38, %v15599_v50  ;;  %v5905_v11 = vmul.f32 %v5690_v38, %v15406_v58  ;;  %v5906_v3 = vmul.f32 %v5690_v38, %v15414_v39  ;;  %v5685_v34 = vpop.permute.xlu1 %5684  ;;  %v15609_v57 = vld [vmem:[#allocation193_spill] sm:$0xff]  ;;  %v15611_v50 = vld [vmem:[#allocation6_spill] sm:$0xff] }
 0x543   :  { %6478 = vst [vmem:[%s14080_s4 + $0x4f0] sm:$0xff] %v6254_v5  ;;  %6479 = vst [vmem:[%s14080_s4 + $0x4f8] sm:$0xff] %v6255_v2  ;;  %v6236_v54 = vadd.f32 %v6039_v7, %v5852_v43  ;;  %v6237_v22 = vadd.f32 %v6039_v7, %v5853_v63  ;;  %v6238_v46 = vadd.f32 %v6039_v7, %v5854_v59  ;;  %v15605_v5 = vld [vmem:[#allocation13_spill] sm:$0xff] }
 0x544   :  { %6480 = vst.msk [vmem:[%s14080_s4 + $0x500] sm:$0xff] %vm4372_vm1, %v6256_v17  ;;  %v6239_v58 = vadd.f32 %v6039_v7, %v5855_v0  ;;  %v5907_v39 = vmul.f32 %v5690_v38, %v12597_v42  ;;  %v6240_v20 = vadd.f32 %v6039_v7, %v5856_v6  ;;  %v6241_v40 = vadd.f32 %v6039_v7, %v5857_v56  ;;  %v6064_v0 = vpop.permute.xlu0 %6063  ;;  %v15606_v17 = vld [vmem:[#allocation25_spill] sm:$0xff] }
 0x545   :  { %v6242_v1 = vadd.f32 %v6039_v7, %v5858_v14  ;;  %6460 = vst [vmem:[%s14080_s4 + $0x460] sm:$0xff] %v6236_v54  ;;  %6461 = vst [vmem:[%s14080_s4 + $0x468] sm:$0xff] %v6237_v22  ;;  %v6285_v42 = vadd.f32 %v6074_v48, %v5901_v36  ;;  %v6286_v15 = vadd.f32 %v6074_v48, %v5902_v30  ;;  %v15610_v31 = vld [vmem:[#allocation261_spill] sm:$0xff]  ;;  %v15614_v22 = vld [vmem:[#allocation84_spill] sm:$0xff] }
 0x546   :  { %6462 = vst [vmem:[%s14080_s4 + $0x470] sm:$0xff] %v6238_v46  ;;  %6463 = vst [vmem:[%s14080_s4 + $0x478] sm:$0xff] %v6239_v58  ;;  %v6287_v28 = vadd.f32 %v6074_v48, %v5903_v13  ;;  %v6288_v38 = vadd.f32 %v6074_v48, %v5904_v21  ;;  %v6289_v26 = vadd.f32 %v6074_v48, %v5905_v11  ;;  %v5675_v25 = vpop.permute.xlu1 %5674  ;;  %v15612_v11 = vld [vmem:[#allocation8_spill] sm:$0xff]  ;;  %v15613_v7 = vld [vmem:[#allocation5_spill] sm:$0xff] }
 0x547   :  { %6464 = vst [vmem:[%s14080_s4 + $0x480] sm:$0xff] %v6240_v20  ;;  %6465 = vst [vmem:[%s14080_s4 + $0x488] sm:$0xff] %v6241_v40  ;;  %v6290_v12 = vadd.f32 %v6074_v48, %v5906_v3  ;;  %v6291_v9 = vadd.f32 %v6074_v48, %v5907_v39  ;;  %v5887_v62 = vmul.f32 %v5680_v4, %v15600_v32  ;;  %v15615_v48 = vld [vmem:[#allocation186_spill] sm:$0xff] }
 0x548   :  { %6466 = vst.msk [vmem:[%s14080_s4 + $0x490] sm:$0xff] %vm4372_vm1, %v6242_v1  ;;  %v5888_v16 = vmul.f32 %v5680_v4, %v15601_v8  ;;  %v5889_v43 = vmul.f32 %v5680_v4, %v15602_v19  ;;  %v5890_v63 = vmul.f32 %v5680_v4, %v15603_v61  ;;  %6509 = vst [vmem:[%s14080_s4 + $0x5e8] sm:$0xff] %v6285_v42  ;;  %v5700_v56 = vpop.permute.xlu0 %5699 }
 0x549   :  { %6510 = vst [vmem:[%s14080_s4 + $0x5f0] sm:$0xff] %v6286_v15  ;;  %6511 = vst [vmem:[%s14080_s4 + $0x5f8] sm:$0xff] %v6287_v28  ;;  %v5891_v49 = vmul.f32 %v5680_v4, %v15413_v33  ;;  %v5892_v59 = vmul.f32 %v5680_v4, %v15419_v37  ;;  %v5893_v45 = vmul.f32 %v5680_v4, %v12622_v41 }
 0x54a   :  { %6512 = vst [vmem:[%s14080_s4 + $0x600] sm:$0xff] %v6288_v38  ;;  %6513 = vst [vmem:[%s14080_s4 + $0x608] sm:$0xff] %v6289_v26  ;;  %v6271_v27 = vadd.f32 %v6064_v0, %v5887_v62  ;;  %v6272_v33 = vadd.f32 %v6064_v0, %v5888_v16  ;;  %v6273_v18 = vadd.f32 %v6064_v0, %v5889_v43  ;;  %v6069_v58 = vpop.permute.xlu1 %6068  ;;  %v15617_v62 = vld [vmem:[#allocation39_spill] sm:$0xff]  ;;  %v15619_v16 = vld [vmem:[#allocation125_spill] sm:$0xff] }
 0x54b   :  { %6514 = vst [vmem:[%s14080_s4 + $0x610] sm:$0xff] %v6290_v12  ;;  %6515 = vst.msk [vmem:[%s14080_s4 + $0x618] sm:$0xff] %vm4372_vm1, %v6291_v9  ;;  %v6274_v37 = vadd.f32 %v6064_v0, %v5890_v63  ;;  %v6275_v60 = vadd.f32 %v6064_v0, %v5891_v49  ;;  %v6276_v41 = vadd.f32 %v6064_v0, %v5892_v59 }
 0x54c   :  { %v6277_v35 = vadd.f32 %v6064_v0, %v5893_v45  ;;  %6495 = vst [vmem:[%s14080_s4 + $0x578] sm:$0xff] %v6271_v27  ;;  %6496 = vst [vmem:[%s14080_s4 + $0x580] sm:$0xff] %v6272_v33  ;;  %v5894_v6 = vmul.f32 %v5685_v34, %v15604_v47  ;;  %v5895_v2 = vmul.f32 %v5685_v34, %v15605_v5  ;;  %v5710_v26 = vpop.permute.xlu0 %5709  ;;  %v15620_v5 = vld [vmem:[#allocation118_spill] sm:$0xff] }
 0x54d   :  { %6497 = vst [vmem:[%s14080_s4 + $0x588] sm:$0xff] %v6273_v18  ;;  %6498 = vst [vmem:[%s14080_s4 + $0x590] sm:$0xff] %v6274_v37  ;;  %v5896_v4 = vmul.f32 %v5685_v34, %v15606_v17  ;;  %v5897_v14 = vmul.f32 %v5685_v34, %v15607_v10  ;;  %v5898_v36 = vmul.f32 %v5685_v34, %v15608_v51  ;;  %v15621_v17 = vld [vmem:[#allocation119_spill] sm:$0xff] }
 0x54e   :  { %6499 = vst [vmem:[%s14080_s4 + $0x598] sm:$0xff] %v6275_v60  ;;  %6500 = vst [vmem:[%s14080_s4 + $0x5a0] sm:$0xff] %v6276_v41  ;;  %v5899_v30 = vmul.f32 %v5685_v34, %v15609_v57  ;;  %v5900_v13 = vmul.f32 %v5685_v34, %v15610_v31  ;;  %v5880_v21 = vmul.f32 %v5675_v25, %v15611_v50  ;;  %v15616_v34 = vld [vmem:[#allocation38_spill] sm:$0xff]  ;;  %v6059_v63 = vpop.permute.xlu1 %6058 }
 0x54f   :  { %6501 = vst.msk [vmem:[%s14080_s4 + $0x5a8] sm:$0xff] %vm4372_vm1, %v6277_v35  ;;  %v5881_v3 = vmul.f32 %v5675_v25, %v15612_v11  ;;  %v5882_v54 = vmul.f32 %v5675_v25, %v15613_v7  ;;  %v5883_v46 = vmul.f32 %v5675_v25, %v15614_v22  ;;  %v6278_v39 = vadd.f32 %v6069_v58, %v5894_v6 }
 0x550   :  { %v6279_v20 = vadd.f32 %v6069_v58, %v5895_v2  ;;  %v6280_v40 = vadd.f32 %v6069_v58, %v5896_v4  ;;  %v6281_v1 = vadd.f32 %v6069_v58, %v5897_v14  ;;  %v5884_v42 = vmul.f32 %v5675_v25, %v15615_v48  ;;  %v6084_v18 = vpop.permute.xlu0 %6083 }
 0x551   :  { %v6282_v15 = vadd.f32 %v6069_v58, %v5898_v36  ;;  %v6283_v28 = vadd.f32 %v6069_v58, %v5899_v30  ;;  %v6284_v38 = vadd.f32 %v6069_v58, %v5900_v13  ;;  %v5885_v12 = vmul.f32 %v5675_v25, %v15420_v55  ;;  %6502 = vst [vmem:[%s14080_s4 + $0x5b0] sm:$0xff] %v6278_v39  ;;  %v15623_v36 = vld [vmem:[#allocation208_spill] sm:$0xff] }
 0x552   :  { %v5886_v9 = vmul.f32 %v5675_v25, %v12640_v29  ;;  %v5915_v32 = vmul.f32 %v5700_v56, %v15616_v34  ;;  %v5916_v8 = vmul.f32 %v5700_v56, %v15617_v62  ;;  %6503 = vst [vmem:[%s14080_s4 + $0x5b8] sm:$0xff] %v6279_v20  ;;  %6504 = vst [vmem:[%s14080_s4 + $0x5c0] sm:$0xff] %v6280_v40  ;;  %v15618_v29 = vld [vmem:[#allocation32_spill] sm:$0xff]  ;;  %v5695_v6 = vpop.permute.xlu1 %5694  ;;  %v15627_v20 = vld [vmem:[#allocation30_spill] sm:$0xff] }
 0x553   :  { %6505 = vst [vmem:[%s14080_s4 + $0x5c8] sm:$0xff] %v6281_v1  ;;  %v5917_v55 = vmul.f32 %v5700_v56, %v15618_v29  ;;  %v5918_v19 = vmul.f32 %v5700_v56, %v15619_v16  ;;  %v5919_v43 = vmul.f32 %v5700_v56, %v15425_v53  ;;  %v5920_v61 = vmul.f32 %v5700_v56, %v15431_v52  ;;  %v15624_v30 = vld [vmem:[#allocation260_spill] sm:$0xff] }
 0x554   :  { %6506 = vst [vmem:[%s14080_s4 + $0x5d0] sm:$0xff] %v6282_v15  ;;  %6507 = vst [vmem:[%s14080_s4 + $0x5d8] sm:$0xff] %v6283_v28  ;;  %v6264_v49 = vadd.f32 %v6059_v63, %v5880_v21  ;;  %v6265_v59 = vadd.f32 %v6059_v63, %v5881_v3  ;;  %v6266_v45 = vadd.f32 %v6059_v63, %v5882_v54  ;;  %v15626_v58 = vld [vmem:[#allocation16_spill] sm:$0xff]  ;;  %v15630_v28 = vld [vmem:[#allocation199_spill] sm:$0xff] }
 0x555   :  { %6508 = vst.msk [vmem:[%s14080_s4 + $0x5e0] sm:$0xff] %vm4372_vm1, %v6284_v38  ;;  %v6267_v53 = vadd.f32 %v6059_v63, %v5883_v46  ;;  %v5921_v52 = vmul.f32 %v5700_v56, %v12698_v23  ;;  %v6268_v0 = vadd.f32 %v6059_v63, %v5884_v42  ;;  %v6269_v27 = vadd.f32 %v6059_v63, %v5885_v12  ;;  %v15622_v56 = vld [vmem:[#allocation104_spill] sm:$0xff]  ;;  %v15629_v42 = vld [vmem:[#allocation198_spill] sm:$0xff] }
 0x556   :  { %v6270_v33 = vadd.f32 %v6059_v63, %v5886_v9  ;;  %6488 = vst [vmem:[%s14080_s4 + $0x540] sm:$0xff] %v6264_v49  ;;  %6489 = vst [vmem:[%s14080_s4 + $0x548] sm:$0xff] %v6265_v59  ;;  %v6299_v23 = vadd.f32 %v6084_v18, %v5915_v32  ;;  %v6300_v37 = vadd.f32 %v6084_v18, %v5916_v8  ;;  %v5705_v22 = vpop.permute.xlu1 %5704  ;;  %v15628_v1 = vld [vmem:[#allocation96_spill] sm:$0xff]  ;;  %v15634_v49 = vld [vmem:[#allocation3_spill] sm:$0xff] }
 0x557   :  { %6490 = vst [vmem:[%s14080_s4 + $0x550] sm:$0xff] %v6266_v45  ;;  %6491 = vst [vmem:[%s14080_s4 + $0x558] sm:$0xff] %v6267_v53  ;;  %v6301_v60 = vadd.f32 %v6084_v18, %v5917_v55  ;;  %v6302_v41 = vadd.f32 %v6084_v18, %v5918_v19  ;;  %v6303_v35 = vadd.f32 %v6084_v18, %v5919_v43  ;;  %v15632_v19 = vld [vmem:[#allocation19_spill] sm:$0xff] }
 0x558   :  { %6492 = vst [vmem:[%s14080_s4 + $0x560] sm:$0xff] %v6268_v0  ;;  %6493 = vst [vmem:[%s14080_s4 + $0x568] sm:$0xff] %v6269_v27  ;;  %v6304_v25 = vadd.f32 %v6084_v18, %v5920_v61  ;;  %v6305_v47 = vadd.f32 %v6084_v18, %v5921_v52  ;;  %v5929_v2 = vmul.f32 %v5710_v26, %v15620_v5  ;;  %v15633_v61 = vld [vmem:[#allocation21_spill] sm:$0xff]  ;;  %v15635_v45 = vld [vmem:[#allocation35_spill] sm:$0xff] }
 0x559   :  { %6494 = vst.msk [vmem:[%s14080_s4 + $0x570] sm:$0xff] %vm4372_vm1, %v6270_v33  ;;  %6523 = vst [vmem:[%s14080_s4 + $0x658] sm:$0xff] %v6299_v23  ;;  %v5930_v4 = vmul.f32 %v5710_v26, %v15621_v17  ;;  %v5931_v10 = vmul.f32 %v5710_v26, %v15622_v56  ;;  %v5932_v14 = vmul.f32 %v5710_v26, %v15429_v24  ;;  %v6094_v24 = vpop.permute.xlu0 %6093  ;;  %v15636_v52 = vld [vmem:[#allocation204_spill] sm:$0xff]  ;;  %v15637_v27 = vld [vmem:[#allocation205_spill] sm:$0xff] }
 0x55a   :  { %6524 = vst [vmem:[%s14080_s4 + $0x660] sm:$0xff] %v6300_v37  ;;  %6525 = vst [vmem:[%s14080_s4 + $0x668] sm:$0xff] %v6301_v60  ;;  %v5933_v51 = vmul.f32 %v5710_v26, %v15436_v44  ;;  %v5934_v57 = vmul.f32 %v5710_v26, %v15623_v36  ;;  %v5935_v31 = vmul.f32 %v5710_v26, %v15624_v30  ;;  %v15625_v44 = vld [vmem:[#allocation14_spill] sm:$0xff]  ;;  %v15631_v26 = vld [vmem:[#allocation197_spill] sm:$0xff]  ;;  %v6079_v9 = vpop.permute.xlu1 %6078 }
 0x55b   :  { %6526 = vst [vmem:[%s14080_s4 + $0x670] sm:$0xff] %v6302_v41  ;;  %6527 = vst [vmem:[%s14080_s4 + $0x678] sm:$0xff] %v6303_v35  ;;  %v6313_v13 = vadd.f32 %v6094_v24, %v5929_v2  ;;  %v6314_v50 = vadd.f32 %v6094_v24, %v5930_v4  ;;  %v6315_v21 = vadd.f32 %v6094_v24, %v5931_v10  ;;  %v15638_v18 = vld [vmem:[#allocation256_spill] sm:$0xff] }
 0x55c   :  { %6528 = vst [vmem:[%s14080_s4 + $0x680] sm:$0xff] %v6304_v25  ;;  %6529 = vst.msk [vmem:[%s14080_s4 + $0x688] sm:$0xff] %vm4372_vm1, %v6305_v47  ;;  %v6316_v11 = vadd.f32 %v6094_v24, %v5932_v14  ;;  %v6317_v3 = vadd.f32 %v6094_v24, %v5933_v51  ;;  %v6318_v7 = vadd.f32 %v6094_v24, %v5934_v57 }
 0x55d   :  { %v6319_v54 = vadd.f32 %v6094_v24, %v5935_v31  ;;  %6537 = vst [vmem:[%s14080_s4 + $0x6c8] sm:$0xff] %v6313_v13  ;;  %6538 = vst [vmem:[%s14080_s4 + $0x6d0] sm:$0xff] %v6314_v50  ;;  %v5908_v46 = vmul.f32 %v5695_v6, %v15625_v44  ;;  %v5909_v39 = vmul.f32 %v5695_v6, %v15626_v58 }
 0x55e   :  { %6539 = vst [vmem:[%s14080_s4 + $0x6d8] sm:$0xff] %v6315_v21  ;;  %6540 = vst [vmem:[%s14080_s4 + $0x6e0] sm:$0xff] %v6316_v11  ;;  %v5910_v40 = vmul.f32 %v5695_v6, %v15627_v20  ;;  %v5911_v48 = vmul.f32 %v5695_v6, %v15628_v1  ;;  %v5912_v15 = vmul.f32 %v5695_v6, %v15629_v42  ;;  %v6089_v37 = vpop.permute.xlu1 %6088 }
 0x55f   :  { %6541 = vst [vmem:[%s14080_s4 + $0x6e8] sm:$0xff] %v6317_v3  ;;  %6542 = vst [vmem:[%s14080_s4 + $0x6f0] sm:$0xff] %v6318_v7  ;;  %v5913_v38 = vmul.f32 %v5695_v6, %v15630_v28  ;;  %v5914_v12 = vmul.f32 %v5695_v6, %v15631_v26  ;;  %v6292_v34 = vadd.f32 %v6079_v9, %v5908_v46 }
 0x560   :  { %6543 = vst.msk [vmem:[%s14080_s4 + $0x6f8] sm:$0xff] %vm4372_vm1, %v6319_v54  ;;  %v6293_v32 = vadd.f32 %v6079_v9, %v5909_v39  ;;  %v6294_v62 = vadd.f32 %v6079_v9, %v5910_v40  ;;  %v6295_v8 = vadd.f32 %v6079_v9, %v5911_v48  ;;  %v6296_v29 = vadd.f32 %v6079_v9, %v5912_v15 }
 0x561   :  { %v6297_v55 = vadd.f32 %v6079_v9, %v5913_v38  ;;  %v6298_v16 = vadd.f32 %v6079_v9, %v5914_v12  ;;  %6516 = vst [vmem:[%s14080_s4 + $0x620] sm:$0xff] %v6292_v34  ;;  %v5922_v43 = vmul.f32 %v5705_v22, %v15632_v19  ;;  %v5923_v63 = vmul.f32 %v5705_v22, %v15633_v61 }
 0x562   :  { %6517 = vst [vmem:[%s14080_s4 + $0x628] sm:$0xff] %v6293_v32  ;;  %6518 = vst [vmem:[%s14080_s4 + $0x630] sm:$0xff] %v6294_v62  ;;  %v5924_v59 = vmul.f32 %v5705_v22, %v15634_v49  ;;  %v5925_v53 = vmul.f32 %v5705_v22, %v15635_v45  ;;  %v5926_v0 = vmul.f32 %v5705_v22, %v15636_v52 }
 0x563   :  { %6519 = vst [vmem:[%s14080_s4 + $0x638] sm:$0xff] %v6295_v8  ;;  %6520 = vst [vmem:[%s14080_s4 + $0x640] sm:$0xff] %v6296_v29  ;;  %v5927_v33 = vmul.f32 %v5705_v22, %v15637_v27  ;;  %v5928_v23 = vmul.f32 %v5705_v22, %v15638_v18  ;;  %v6306_v60 = vadd.f32 %v6089_v37, %v5922_v43 }
 0x564   :  { %6521 = vst [vmem:[%s14080_s4 + $0x648] sm:$0xff] %v6297_v55  ;;  %6522 = vst.msk [vmem:[%s14080_s4 + $0x650] sm:$0xff] %vm4372_vm1, %v6298_v16  ;;  %v6307_v41 = vadd.f32 %v6089_v37, %v5923_v63  ;;  %v6308_v35 = vadd.f32 %v6089_v37, %v5924_v59  ;;  %v6309_v25 = vadd.f32 %v6089_v37, %v5925_v53 }
 0x565   :  { %v6310_v47 = vadd.f32 %v6089_v37, %v5926_v0  ;;  %v6311_v6 = vadd.f32 %v6089_v37, %v5927_v33  ;;  %v6312_v5 = vadd.f32 %v6089_v37, %v5928_v23  ;;  %6530 = vst [vmem:[%s14080_s4 + $0x690] sm:$0xff] %v6306_v60 }
 0x566   :  { %6531 = vst [vmem:[%s14080_s4 + $0x698] sm:$0xff] %v6307_v41  ;;  %6532 = vst [vmem:[%s14080_s4 + $0x6a0] sm:$0xff] %v6308_v35 }
 0x567   :  { %6533 = vst [vmem:[%s14080_s4 + $0x6a8] sm:$0xff] %v6309_v25  ;;  %6534 = vst [vmem:[%s14080_s4 + $0x6b0] sm:$0xff] %v6310_v47 }
 0x568   :  { %6535 = vst [vmem:[%s14080_s4 + $0x6b8] sm:$0xff] %v6311_v6  ;;  %6536 = vst.msk [vmem:[%s14080_s4 + $0x6c0] sm:$0xff] %vm4372_vm1, %v6312_v5 }

</bundles_post_ra>
